<compile_context>
chip_gen: v7x
topology: tpu7x:2x2x1
jax: 0.10.0
libtpu: 0.0.40
codegen_flags: <defaults>
</compile_context>

<pallas_src>
import numpy as np

import jax
import jax.numpy as jnp
from jax.experimental import pallas as pl
from jax.experimental.pallas import tpu as pltpu

BN_EPS = 1e-5
N_BATCH = 2


# ----------------------------------------------------------------------------
# Constant gather/scatter matrices and validity masks (pure numpy, 0/1 valued).
# ----------------------------------------------------------------------------
def _build_constants():
    c = {}
    # G_down1: stride-2 decimation of the 16x16-canvas conv result -> d1 buffer
    g = np.zeros((800, 384), np.float32)
    for n in range(N_BATCH):
        for oh in range(8):
            for ow in range(8):
                g[n * 400 + (2 * oh + 1) * 20 + (2 * ow + 1),
                  n * 144 + (oh + 2) * 12 + (ow + 2)] = 1.0
    c["g_d1"] = g
    # G_down0: stride-2 decimation of the 8x8-canvas conv result -> dense d0 (32)
    g = np.zeros((288, 32), np.float32)
    for n in range(N_BATCH):
        for oh in range(4):
            for ow in range(4):
                g[n * 144 + (2 * oh + 1) * 12 + (2 * ow + 1),
                  n * 16 + oh * 4 + ow] = 1.0
    c["g_d0"] = g
    # G_dil0: dense d0 (4x4) -> x2 zero-dilated lattice on the 8x8 canvas
    g = np.zeros((32, 384), np.float32)
    for n in range(N_BATCH):
        for i in range(4):
            for j in range(4):
                g[n * 16 + i * 4 + j,
                  n * 144 + (2 * i + 2) * 12 + (2 * j + 2)] = 1.0
    c["g_dil0"] = g
    # G_dil1: l0 (8x8 canvas) -> x2 zero-dilated lattice on the 16x16 canvas
    g = np.zeros((384, 896), np.float32)
    for n in range(N_BATCH):
        for i in range(8):
            for j in range(8):
                g[n * 144 + (i + 2) * 12 + (j + 2),
                  n * 400 + (2 * i + 2) * 20 + (2 * j + 2)] = 1.0
    c["g_dil1"] = g

    # validity masks (1, Mg) over the conv-result index space
    m = np.zeros((1, 288), np.float32)          # stride-2 lattice on 8x8 canvas
    for n in range(N_BATCH):
        for oh in range(4):
            for ow in range(4):
                m[0, n * 144 + (2 * oh + 1) * 12 + (2 * ow + 1)] = 1.0
    c["m_dn8"] = m                              # 32 valid positions
    m = np.zeros((1, 288), np.float32)          # convT outputs, 8x8, top-left aligned
    for n in range(N_BATCH):
        for i in range(8):
            for j in range(8):
                m[0, n * 144 + i * 12 + j] = 1.0
    c["m_ct8"] = m                              # 128
    m = np.zeros((1, 288), np.float32)          # k3/s1 outputs, 8x8
    for n in range(N_BATCH):
        for i in range(8):
            for j in range(8):
                m[0, n * 144 + (i + 1) * 12 + (j + 1)] = 1.0
    c["m_s1_8"] = m                             # 128
    m = np.zeros((1, 800), np.float32)          # convT outputs, 16x16
    for n in range(N_BATCH):
        for i in range(16):
            for j in range(16):
                m[0, n * 400 + i * 20 + j] = 1.0
    c["m_ct16"] = m                             # 512
    m = np.zeros((1, 800), np.float32)          # k3/s1 outputs, 16x16
    for n in range(N_BATCH):
        for i in range(16):
            for j in range(16):
                m[0, n * 400 + (i + 1) * 20 + (j + 1)] = 1.0
    c["m_s1_16"] = m                            # 512
    return c


_C = _build_constants()


# ----------------------------------------------------------------------------
# In-kernel helpers (trace-time Python, values only)
# ----------------------------------------------------------------------------
def _conv_accum(xval, wval, kk, wp, mg, cout):
    """conv = sum over taps of W_tap @ x[:, d_tap : d_tap + mg].

    xval: (Cin, Mbuf) f32 canvas buffer, wval: (kk*kk*cout, Cin) bf16 taps in
    (ki, kj) row-major order.  Each tap read is a contiguous lane slice
    (in-kernel im2col, nothing materialised).  Returns (cout, mg) f32.
    """
    acc = None
    t = 0
    for ki in range(kk):
        for kj in range(kk):
            w_t = wval[t * cout:(t + 1) * cout, :]
            x_t = xval[:, ki * wp + kj: ki * wp + kj + mg].astype(jnp.bfloat16)
            y = jnp.dot(w_t, x_t, preferred_element_type=jnp.float32)
            acc = y if acc is None else acc + y
            t += 1
    return acc


def _bn_train(y, mask, count):
    """Training-mode BatchNorm2d (gamma=1, beta=0) over the `count` valid lanes."""
    inv = 1.0 / count
    mean = jnp.sum(y * mask, axis=1, keepdims=True) * inv
    d = y - mean
    var = jnp.sum(d * d * mask, axis=1, keepdims=True) * inv
    return d * jax.lax.rsqrt(var + BN_EPS)


def _leaky(y):
    return jnp.where(y > 0, y, 0.2 * y)


# ----------------------------------------------------------------------------
# The single fused Pallas kernel
# ----------------------------------------------------------------------------
def _unet_kernel(xb, wd1, bd1, gd1,
                 wd0, gd0, m_dn8,
                 wu0t, gdil0, m_ct8,
                 wu0c, m_s18,
                 wu1t, gdil1, m_ct16,
                 wu1c, m_s116,
                 whd, bhd,
                 o_ref, u0_ref, u0c_ref, u1t_ref):
    bf16, f32 = jnp.bfloat16, jnp.float32

    # ---- layer-1 down (top): Conv2d(4->8, k4, s2, p1) + LeakyReLU (no BN) ----
    f1 = _conv_accum(xb[...], wd1[...], 4, 20, 800, 8)
    f1 = _leaky(f1 + bd1[...])
    d1 = jnp.dot(f1.astype(bf16), gd1[...], preferred_element_type=f32)      # (8, 384)

    # ---- layer-0 down (bottom): Conv2d(8->16, k4, s2, p1) + BN + LeakyReLU ----
    f0 = _conv_accum(d1, wd0[...], 4, 12, 288, 16)
    f0 = _leaky(_bn_train(f0, m_dn8[...], 32.0))          # bias dropped: BN cancels it
    d0 = jnp.dot(f0.astype(bf16), gd0[...], preferred_element_type=f32)      # (16, 32)

    # ---- layer-0 up: ConvT(16->16) + BN + ReLU, then Conv(16,16,k3) + BN + LeakyReLU
    xd0 = jnp.dot(d0.astype(bf16), gdil0[...], preferred_element_type=f32)   # dilated (16, 384)
    ft0 = _conv_accum(xd0, wu0t[...], 4, 12, 288, 16)
    ft0 = jnp.maximum(_bn_train(ft0, m_ct8[...], 128.0), 0.0) * m_ct8[...]
    u0_ref[...] = jnp.zeros_like(u0_ref)
    u0_ref[:, pl.ds(26, 288)] = ft0                        # place at canvas (+2,+2)
    fc0 = _conv_accum(u0_ref[...], wu0c[...], 3, 12, 288, 16)
    fc0 = _leaky(_bn_train(fc0, m_s18[...], 128.0))
    u0c_ref[...] = jnp.zeros_like(u0c_ref)
    u0c_ref[:, pl.ds(13, 288)] = fc0
    l0 = jnp.concatenate([d1, u0c_ref[...]], axis=0)       # skip concat -> (24, 384)

    # ---- layer-1 up: ConvT(24->8) + BN + ReLU, then Conv(8,8,k3) + BN + LeakyReLU
    xd1 = jnp.dot(l0.astype(bf16), gdil1[...], preferred_element_type=f32)   # dilated (24, 896)
    ft1 = _conv_accum(xd1, wu1t[...], 4, 20, 800, 8)
    ft1 = jnp.maximum(_bn_train(ft1, m_ct16[...], 512.0), 0.0) * m_ct16[...]
    u1t_ref[...] = jnp.zeros_like(u1t_ref)
    u1t_ref[:, pl.ds(42, 800)] = ft1
    fc1 = _conv_accum(u1t_ref[...], wu1c[...], 3, 20, 800, 8)
    fc1 = _leaky(_bn_train(fc1, m_s116[...], 512.0))

    # ---- head: Conv2d(8->3, k1) + Tanh ----
    hf = jnp.dot(whd[...], fc1.astype(bf16), preferred_element_type=f32) + bhd[...]
    o_ref[...] = jnp.tanh(hf)


# ----------------------------------------------------------------------------
# Wrapper: operand preparation (tiny, one-shot XLA ops) + the pallas_call
# ----------------------------------------------------------------------------
def _conv_taps(w):
    # PyTorch Conv2d weight (Cout, Cin, KH, KW) -> (KH*KW*Cout, Cin) bf16,
    # rows grouped per (ki, kj) tap in row-major order.
    co, ci, kh, kw = w.shape
    return jnp.transpose(w, (2, 3, 0, 1)).reshape(kh * kw * co, ci).astype(jnp.bfloat16)


def _convt_taps(w):
    # ConvTranspose2d(k=4, s=2, p=1) == direct conv over the x2 zero-dilated
    # input with flipped kernel and swapped in/out channels.
    w_eq = jnp.transpose(jnp.flip(w, axis=(2, 3)), (1, 0, 2, 3))
    return _conv_taps(w_eq)


def unet_forward(params, x_nchw):
    f32, bf16 = jnp.float32, jnp.bfloat16

    # Embed the NCHW input into the lane-dense (C, flat padded canvas) layout.
    xp = jnp.pad(x_nchw.astype(f32), ((0, 0), (0, 0), (2, 2), (2, 2)))       # (2,4,20,20)
    xb = jnp.transpose(xp, (1, 0, 2, 3)).reshape(4, 800)
    xb = jnp.pad(xb, ((0, 0), (0, 96)))                                      # (4, 896)

    cst = {k: jnp.asarray(v) for k, v in _C.items()}

    args = (
        xb,
        _conv_taps(params["down1_w"]),
        params["down1_b"].reshape(8, 1).astype(f32),
        cst["g_d1"].astype(bf16),
        _conv_taps(params["down0_w"]),
        cst["g_d0"].astype(bf16),
        cst["m_dn8"],
        _convt_taps(params["up0_tw"]),
        cst["g_dil0"].astype(bf16),
        cst["m_ct8"],
        _conv_taps(params["up0_cw"]),
        cst["m_s1_8"],
        _convt_taps(params["up1_tw"]),
        cst["g_dil1"].astype(bf16),
        cst["m_ct16"],
        _conv_taps(params["up1_cw"]),
        cst["m_s1_16"],
        params["fin_w"].reshape(3, 8).astype(bf16),
        params["fin_b"].reshape(3, 1).astype(f32),
    )

    vmem = pl.BlockSpec(memory_space=pltpu.MemorySpace.VMEM)
    out_flat = pl.pallas_call(
        _unet_kernel,
        out_shape=jax.ShapeDtypeStruct((3, 800), jnp.float32),
        in_specs=[vmem] * len(args),
        out_specs=vmem,
        scratch_shapes=[
            pltpu.VMEM((16, 384), jnp.float32),   # u0  (ConvT0 result on 8x8 canvas)
            pltpu.VMEM((16, 384), jnp.float32),   # u0c (up0 refine conv result)
            pltpu.VMEM((8, 896), jnp.float32),    # u1t (ConvT1 result on 16x16 canvas)
        ],
    )(*args)

    # Un-embed: (3, 800) -> (3, 2, 20, 20) canvas -> valid 16x16 window -> NCHW.
    out = out_flat.reshape(3, 2, 20, 20)[:, :, 1:17, 1:17]
    return jnp.transpose(out, (1, 0, 2, 3))


# ----------------------------------------------------------------------------
# Parameters (PyTorch layouts) and a smoke test
# ----------------------------------------------------------------------------
def init_params(key):
    keys = iter(jax.random.split(key, 20))

    def mk(shape, scale=0.1):
        return scale * jax.random.normal(next(keys), shape, jnp.float32)

    return {
        # top down block: Conv2d(4, 8, k=4, s=2, p=1)
        "down1_w": mk((8, 4, 4, 4)), "down1_b": mk((8,)),
        # bottom down block: Conv2d(8, 16, k=4, s=2, p=1)
        "down0_w": mk((16, 8, 4, 4)), "down0_b": mk((16,)),
        # bottom up: ConvTranspose2d(16, 16, k=4, s=2, p=1) + Conv2d(16, 16, k=3, s=1, p=1)
        "up0_tw": mk((16, 16, 4, 4)), "up0_tb": mk((16,)),
        "up0_cw": mk((16, 16, 3, 3)), "up0_cb": mk((16,)),
        # top up: ConvTranspose2d(24, 8, k=4, s=2, p=1) + Conv2d(8, 8, k=3, s=1, p=1)
        "up1_tw": mk((24, 8, 4, 4)), "up1_tb": mk((8,)),
        "up1_cw": mk((8, 8, 3, 3)), "up1_cb": mk((8,)),
        # head: Conv2d(8, 3, k=1)
        "fin_w": mk((3, 8, 1, 1)), "fin_b": mk((3,)),
    }
    # Note: *_b of BN'd conv layers are unused on purpose -- training-mode
    # BatchNorm subtracts the per-channel mean, which cancels the bias exactly.


if __name__ == "__main__":
    key = jax.random.PRNGKey(0)
    pkey, xkey = jax.random.split(key)
    params = init_params(pkey)
    x = jax.random.normal(xkey, (2, 4, 16, 16), jnp.float32)   # NCHW, like PyTorch

    out = jax.jit(unet_forward)(params, x)
    jax.block_until_ready(out)
    assert out.shape == (2, 3, 16, 16), out.shape
    assert bool(jnp.all(jnp.isfinite(out)))
    print("KERNEL_OK")
</pallas_src>

<mosaic_0001>
module attributes {stable_mosaic.version = 11 : i64} {
  func.func @_unet_kernel(%arg0: memref<4x896xf32, #tpu.memory_space<vmem>>, %arg1: memref<128x4xbf16, #tpu.memory_space<vmem>>, %arg2: memref<8x1xf32, #tpu.memory_space<vmem>>, %arg3: memref<800x384xbf16, #tpu.memory_space<vmem>>, %arg4: memref<256x8xbf16, #tpu.memory_space<vmem>>, %arg5: memref<288x32xbf16, #tpu.memory_space<vmem>>, %arg6: memref<1x288xf32, #tpu.memory_space<vmem>>, %arg7: memref<256x16xbf16, #tpu.memory_space<vmem>>, %arg8: memref<32x384xbf16, #tpu.memory_space<vmem>>, %arg9: memref<1x288xf32, #tpu.memory_space<vmem>>, %arg10: memref<144x16xbf16, #tpu.memory_space<vmem>>, %arg11: memref<1x288xf32, #tpu.memory_space<vmem>>, %arg12: memref<128x24xbf16, #tpu.memory_space<vmem>>, %arg13: memref<384x896xbf16, #tpu.memory_space<vmem>>, %arg14: memref<1x800xf32, #tpu.memory_space<vmem>>, %arg15: memref<72x8xbf16, #tpu.memory_space<vmem>>, %arg16: memref<1x800xf32, #tpu.memory_space<vmem>>, %arg17: memref<3x8xbf16, #tpu.memory_space<vmem>>, %arg18: memref<3x1xf32, #tpu.memory_space<vmem>>, %arg19: memref<3x800xf32, #tpu.memory_space<vmem>>, %arg20: memref<16x384xf32, #tpu.memory_space<vmem>>, %arg21: memref<16x384xf32, #tpu.memory_space<vmem>>, %arg22: memref<8x896xf32, #tpu.memory_space<vmem>>) attributes {dimension_semantics = [], scalar_prefetch = 0 : i64, scratch_operands = 3 : i64, tpu.core_type = #tpu.core_type<tc>} {
    %c0 = arith.constant 0 : index
    %c0_0 = arith.constant 0 : index
    %0 = vector.load %arg0[%c0, %c0_0] : memref<4x896xf32, #tpu.memory_space<vmem>>, vector<4x896xf32>
    %c0_1 = arith.constant 0 : index
    %c0_2 = arith.constant 0 : index
    %1 = vector.load %arg1[%c0_1, %c0_2] : memref<128x4xbf16, #tpu.memory_space<vmem>>, vector<128x4xbf16>
    %2 = vector.extract_strided_slice %1 {offsets = [0, 0], sizes = [8, 4], strides = [1, 1]} : vector<128x4xbf16> to vector<8x4xbf16>
    %3 = vector.extract_strided_slice %0 {offsets = [0, 0], sizes = [4, 800], strides = [1, 1]} : vector<4x896xf32> to vector<4x800xf32>
    %4 = arith.truncf %3 : vector<4x800xf32> to vector<4x800xbf16>
    %cst = arith.constant dense<0.000000e+00> : vector<8x800xf32>
    %5 = tpu.matmul %2, %4, %cst {dimension_numbers = #tpu.dot_dimension_numbers<[1], [0], [0], [1], [0, 0, 1, 1], [], []>} : vector<8x4xbf16>, vector<4x800xbf16>, vector<8x800xf32> -> vector<8x800xf32>
    %6 = vector.extract_strided_slice %1 {offsets = [8, 0], sizes = [8, 4], strides = [1, 1]} : vector<128x4xbf16> to vector<8x4xbf16>
    %7 = vector.extract_strided_slice %0 {offsets = [0, 1], sizes = [4, 800], strides = [1, 1]} : vector<4x896xf32> to vector<4x800xf32>
    %8 = arith.truncf %7 : vector<4x800xf32> to vector<4x800xbf16>
    %cst_3 = arith.constant dense<0.000000e+00> : vector<8x800xf32>
    %9 = tpu.matmul %6, %8, %cst_3 {dimension_numbers = #tpu.dot_dimension_numbers<[1], [0], [0], [1], [0, 0, 1, 1], [], []>} : vector<8x4xbf16>, vector<4x800xbf16>, vector<8x800xf32> -> vector<8x800xf32>
    %10 = arith.addf %5, %9 : vector<8x800xf32>
    %11 = vector.extract_strided_slice %1 {offsets = [16, 0], sizes = [8, 4], strides = [1, 1]} : vector<128x4xbf16> to vector<8x4xbf16>
    %12 = vector.extract_strided_slice %0 {offsets = [0, 2], sizes = [4, 800], strides = [1, 1]} : vector<4x896xf32> to vector<4x800xf32>
    %13 = arith.truncf %12 : vector<4x800xf32> to vector<4x800xbf16>
    %cst_4 = arith.constant dense<0.000000e+00> : vector<8x800xf32>
    %14 = tpu.matmul %11, %13, %cst_4 {dimension_numbers = #tpu.dot_dimension_numbers<[1], [0], [0], [1], [0, 0, 1, 1], [], []>} : vector<8x4xbf16>, vector<4x800xbf16>, vector<8x800xf32> -> vector<8x800xf32>
    %15 = arith.addf %10, %14 : vector<8x800xf32>
    %16 = vector.extract_strided_slice %1 {offsets = [24, 0], sizes = [8, 4], strides = [1, 1]} : vector<128x4xbf16> to vector<8x4xbf16>
    %17 = vector.extract_strided_slice %0 {offsets = [0, 3], sizes = [4, 800], strides = [1, 1]} : vector<4x896xf32> to vector<4x800xf32>
    %18 = arith.truncf %17 : vector<4x800xf32> to vector<4x800xbf16>
    %cst_5 = arith.constant dense<0.000000e+00> : vector<8x800xf32>
    %19 = tpu.matmul %16, %18, %cst_5 {dimension_numbers = #tpu.dot_dimension_numbers<[1], [0], [0], [1], [0, 0, 1, 1], [], []>} : vector<8x4xbf16>, vector<4x800xbf16>, vector<8x800xf32> -> vector<8x800xf32>
    %20 = arith.addf %15, %19 : vector<8x800xf32>
    %21 = vector.extract_strided_slice %1 {offsets = [32, 0], sizes = [8, 4], strides = [1, 1]} : vector<128x4xbf16> to vector<8x4xbf16>
    %22 = vector.extract_strided_slice %0 {offsets = [0, 20], sizes = [4, 800], strides = [1, 1]} : vector<4x896xf32> to vector<4x800xf32>
    %23 = arith.truncf %22 : vector<4x800xf32> to vector<4x800xbf16>
    %cst_6 = arith.constant dense<0.000000e+00> : vector<8x800xf32>
    %24 = tpu.matmul %21, %23, %cst_6 {dimension_numbers = #tpu.dot_dimension_numbers<[1], [0], [0], [1], [0, 0, 1, 1], [], []>} : vector<8x4xbf16>, vector<4x800xbf16>, vector<8x800xf32> -> vector<8x800xf32>
    %25 = arith.addf %20, %24 : vector<8x800xf32>
    %26 = vector.extract_strided_slice %1 {offsets = [40, 0], sizes = [8, 4], strides = [1, 1]} : vector<128x4xbf16> to vector<8x4xbf16>
    %27 = vector.extract_strided_slice %0 {offsets = [0, 21], sizes = [4, 800], strides = [1, 1]} : vector<4x896xf32> to vector<4x800xf32>
    %28 = arith.truncf %27 : vector<4x800xf32> to vector<4x800xbf16>
    %cst_7 = arith.constant dense<0.000000e+00> : vector<8x800xf32>
    %29 = tpu.matmul %26, %28, %cst_7 {dimension_numbers = #tpu.dot_dimension_numbers<[1], [0], [0], [1], [0, 0, 1, 1], [], []>} : vector<8x4xbf16>, vector<4x800xbf16>, vector<8x800xf32> -> vector<8x800xf32>
    %30 = arith.addf %25, %29 : vector<8x800xf32>
    %31 = vector.extract_strided_slice %1 {offsets = [48, 0], sizes = [8, 4], strides = [1, 1]} : vector<128x4xbf16> to vector<8x4xbf16>
    %32 = vector.extract_strided_slice %0 {offsets = [0, 22], sizes = [4, 800], strides = [1, 1]} : vector<4x896xf32> to vector<4x800xf32>
    %33 = arith.truncf %32 : vector<4x800xf32> to vector<4x800xbf16>
    %cst_8 = arith.constant dense<0.000000e+00> : vector<8x800xf32>
    %34 = tpu.matmul %31, %33, %cst_8 {dimension_numbers = #tpu.dot_dimension_numbers<[1], [0], [0], [1], [0, 0, 1, 1], [], []>} : vector<8x4xbf16>, vector<4x800xbf16>, vector<8x800xf32> -> vector<8x800xf32>
    %35 = arith.addf %30, %34 : vector<8x800xf32>
    %36 = vector.extract_strided_slice %1 {offsets = [56, 0], sizes = [8, 4], strides = [1, 1]} : vector<128x4xbf16> to vector<8x4xbf16>
    %37 = vector.extract_strided_slice %0 {offsets = [0, 23], sizes = [4, 800], strides = [1, 1]} : vector<4x896xf32> to vector<4x800xf32>
    %38 = arith.truncf %37 : vector<4x800xf32> to vector<4x800xbf16>
    %cst_9 = arith.constant dense<0.000000e+00> : vector<8x800xf32>
    %39 = tpu.matmul %36, %38, %cst_9 {dimension_numbers = #tpu.dot_dimension_numbers<[1], [0], [0], [1], [0, 0, 1, 1], [], []>} : vector<8x4xbf16>, vector<4x800xbf16>, vector<8x800xf32> -> vector<8x800xf32>
    %40 = arith.addf %35, %39 : vector<8x800xf32>
    %41 = vector.extract_strided_slice %1 {offsets = [64, 0], sizes = [8, 4], strides = [1, 1]} : vector<128x4xbf16> to vector<8x4xbf16>
    %42 = vector.extract_strided_slice %0 {offsets = [0, 40], sizes = [4, 800], strides = [1, 1]} : vector<4x896xf32> to vector<4x800xf32>
    %43 = arith.truncf %42 : vector<4x800xf32> to vector<4x800xbf16>
    %cst_10 = arith.constant dense<0.000000e+00> : vector<8x800xf32>
    %44 = tpu.matmul %41, %43, %cst_10 {dimension_numbers = #tpu.dot_dimension_numbers<[1], [0], [0], [1], [0, 0, 1, 1], [], []>} : vector<8x4xbf16>, vector<4x800xbf16>, vector<8x800xf32> -> vector<8x800xf32>
    %45 = arith.addf %40, %44 : vector<8x800xf32>
    %46 = vector.extract_strided_slice %1 {offsets = [72, 0], sizes = [8, 4], strides = [1, 1]} : vector<128x4xbf16> to vector<8x4xbf16>
    %47 = vector.extract_strided_slice %0 {offsets = [0, 41], sizes = [4, 800], strides = [1, 1]} : vector<4x896xf32> to vector<4x800xf32>
    %48 = arith.truncf %47 : vector<4x800xf32> to vector<4x800xbf16>
    %cst_11 = arith.constant dense<0.000000e+00> : vector<8x800xf32>
    %49 = tpu.matmul %46, %48, %cst_11 {dimension_numbers = #tpu.dot_dimension_numbers<[1], [0], [0], [1], [0, 0, 1, 1], [], []>} : vector<8x4xbf16>, vector<4x800xbf16>, vector<8x800xf32> -> vector<8x800xf32>
    %50 = arith.addf %45, %49 : vector<8x800xf32>
    %51 = vector.extract_strided_slice %1 {offsets = [80, 0], sizes = [8, 4], strides = [1, 1]} : vector<128x4xbf16> to vector<8x4xbf16>
    %52 = vector.extract_strided_slice %0 {offsets = [0, 42], sizes = [4, 800], strides = [1, 1]} : vector<4x896xf32> to vector<4x800xf32>
    %53 = arith.truncf %52 : vector<4x800xf32> to vector<4x800xbf16>
    %cst_12 = arith.constant dense<0.000000e+00> : vector<8x800xf32>
    %54 = tpu.matmul %51, %53, %cst_12 {dimension_numbers = #tpu.dot_dimension_numbers<[1], [0], [0], [1], [0, 0, 1, 1], [], []>} : vector<8x4xbf16>, vector<4x800xbf16>, vector<8x800xf32> -> vector<8x800xf32>
    %55 = arith.addf %50, %54 : vector<8x800xf32>
    %56 = vector.extract_strided_slice %1 {offsets = [88, 0], sizes = [8, 4], strides = [1, 1]} : vector<128x4xbf16> to vector<8x4xbf16>
    %57 = vector.extract_strided_slice %0 {offsets = [0, 43], sizes = [4, 800], strides = [1, 1]} : vector<4x896xf32> to vector<4x800xf32>
    %58 = arith.truncf %57 : vector<4x800xf32> to vector<4x800xbf16>
    %cst_13 = arith.constant dense<0.000000e+00> : vector<8x800xf32>
    %59 = tpu.matmul %56, %58, %cst_13 {dimension_numbers = #tpu.dot_dimension_numbers<[1], [0], [0], [1], [0, 0, 1, 1], [], []>} : vector<8x4xbf16>, vector<4x800xbf16>, vector<8x800xf32> -> vector<8x800xf32>
    %60 = arith.addf %55, %59 : vector<8x800xf32>
    %61 = vector.extract_strided_slice %1 {offsets = [96, 0], sizes = [8, 4], strides = [1, 1]} : vector<128x4xbf16> to vector<8x4xbf16>
    %62 = vector.extract_strided_slice %0 {offsets = [0, 60], sizes = [4, 800], strides = [1, 1]} : vector<4x896xf32> to vector<4x800xf32>
    %63 = arith.truncf %62 : vector<4x800xf32> to vector<4x800xbf16>
    %cst_14 = arith.constant dense<0.000000e+00> : vector<8x800xf32>
    %64 = tpu.matmul %61, %63, %cst_14 {dimension_numbers = #tpu.dot_dimension_numbers<[1], [0], [0], [1], [0, 0, 1, 1], [], []>} : vector<8x4xbf16>, vector<4x800xbf16>, vector<8x800xf32> -> vector<8x800xf32>
    %65 = arith.addf %60, %64 : vector<8x800xf32>
    %66 = vector.extract_strided_slice %1 {offsets = [104, 0], sizes = [8, 4], strides = [1, 1]} : vector<128x4xbf16> to vector<8x4xbf16>
    %67 = vector.extract_strided_slice %0 {offsets = [0, 61], sizes = [4, 800], strides = [1, 1]} : vector<4x896xf32> to vector<4x800xf32>
    %68 = arith.truncf %67 : vector<4x800xf32> to vector<4x800xbf16>
    %cst_15 = arith.constant dense<0.000000e+00> : vector<8x800xf32>
    %69 = tpu.matmul %66, %68, %cst_15 {dimension_numbers = #tpu.dot_dimension_numbers<[1], [0], [0], [1], [0, 0, 1, 1], [], []>} : vector<8x4xbf16>, vector<4x800xbf16>, vector<8x800xf32> -> vector<8x800xf32>
    %70 = arith.addf %65, %69 : vector<8x800xf32>
    %71 = vector.extract_strided_slice %1 {offsets = [112, 0], sizes = [8, 4], strides = [1, 1]} : vector<128x4xbf16> to vector<8x4xbf16>
    %72 = vector.extract_strided_slice %0 {offsets = [0, 62], sizes = [4, 800], strides = [1, 1]} : vector<4x896xf32> to vector<4x800xf32>
    %73 = arith.truncf %72 : vector<4x800xf32> to vector<4x800xbf16>
    %cst_16 = arith.constant dense<0.000000e+00> : vector<8x800xf32>
    %74 = tpu.matmul %71, %73, %cst_16 {dimension_numbers = #tpu.dot_dimension_numbers<[1], [0], [0], [1], [0, 0, 1, 1], [], []>} : vector<8x4xbf16>, vector<4x800xbf16>, vector<8x800xf32> -> vector<8x800xf32>
    %75 = arith.addf %70, %74 : vector<8x800xf32>
    %76 = vector.extract_strided_slice %1 {offsets = [120, 0], sizes = [8, 4], strides = [1, 1]} : vector<128x4xbf16> to vector<8x4xbf16>
    %77 = vector.extract_strided_slice %0 {offsets = [0, 63], sizes = [4, 800], strides = [1, 1]} : vector<4x896xf32> to vector<4x800xf32>
    %78 = arith.truncf %77 : vector<4x800xf32> to vector<4x800xbf16>
    %cst_17 = arith.constant dense<0.000000e+00> : vector<8x800xf32>
    %79 = tpu.matmul %76, %78, %cst_17 {dimension_numbers = #tpu.dot_dimension_numbers<[1], [0], [0], [1], [0, 0, 1, 1], [], []>} : vector<8x4xbf16>, vector<4x800xbf16>, vector<8x800xf32> -> vector<8x800xf32>
    %80 = arith.addf %75, %79 : vector<8x800xf32>
    %c0_18 = arith.constant 0 : index
    %c0_19 = arith.constant 0 : index
    %81 = vector.load %arg2[%c0_18, %c0_19] : memref<8x1xf32, #tpu.memory_space<vmem>>, vector<8x1xf32>
    %82 = vector.broadcast %81 : vector<8x1xf32> to vector<8x800xf32>
    %83 = arith.addf %80, %82 : vector<8x800xf32>
    %cst_20 = arith.constant 0.000000e+00 : f32
    %84 = vector.broadcast %cst_20 : f32 to vector<8x800xf32>
    %85 = arith.cmpf ogt, %83, %84 : vector<8x800xf32>
    %cst_21 = arith.constant 2.000000e-01 : f32
    %86 = vector.broadcast %cst_21 : f32 to vector<8x800xf32>
    %87 = arith.mulf %86, %83 : vector<8x800xf32>
    %88 = arith.select %85, %83, %87 : vector<8x800xi1>, vector<8x800xf32>
    %89 = arith.truncf %88 : vector<8x800xf32> to vector<8x800xbf16>
    %c0_22 = arith.constant 0 : index
    %c0_23 = arith.constant 0 : index
    %90 = vector.load %arg3[%c0_22, %c0_23] : memref<800x384xbf16, #tpu.memory_space<vmem>>, vector<800x384xbf16>
    %cst_24 = arith.constant dense<0.000000e+00> : vector<8x384xf32>
    %91 = tpu.matmul %89, %90, %cst_24 {dimension_numbers = #tpu.dot_dimension_numbers<[1], [0], [0], [1], [0, 0, 1, 1], [], []>} : vector<8x800xbf16>, vector<800x384xbf16>, vector<8x384xf32> -> vector<8x384xf32>
    %c0_25 = arith.constant 0 : index
    %c0_26 = arith.constant 0 : index
    %92 = vector.load %arg4[%c0_25, %c0_26] : memref<256x8xbf16, #tpu.memory_space<vmem>>, vector<256x8xbf16>
    %93 = vector.extract_strided_slice %92 {offsets = [0, 0], sizes = [16, 8], strides = [1, 1]} : vector<256x8xbf16> to vector<16x8xbf16>
    %94 = vector.extract_strided_slice %91 {offsets = [0, 0], sizes = [8, 288], strides = [1, 1]} : vector<8x384xf32> to vector<8x288xf32>
    %95 = arith.truncf %94 : vector<8x288xf32> to vector<8x288xbf16>
    %cst_27 = arith.constant dense<0.000000e+00> : vector<16x288xf32>
    %96 = tpu.matmul %93, %95, %cst_27 {dimension_numbers = #tpu.dot_dimension_numbers<[1], [0], [0], [1], [0, 0, 1, 1], [], []>} : vector<16x8xbf16>, vector<8x288xbf16>, vector<16x288xf32> -> vector<16x288xf32>
    %97 = vector.extract_strided_slice %92 {offsets = [16, 0], sizes = [16, 8], strides = [1, 1]} : vector<256x8xbf16> to vector<16x8xbf16>
    %98 = vector.extract_strided_slice %91 {offsets = [0, 1], sizes = [8, 288], strides = [1, 1]} : vector<8x384xf32> to vector<8x288xf32>
    %99 = arith.truncf %98 : vector<8x288xf32> to vector<8x288xbf16>
    %cst_28 = arith.constant dense<0.000000e+00> : vector<16x288xf32>
    %100 = tpu.matmul %97, %99, %cst_28 {dimension_numbers = #tpu.dot_dimension_numbers<[1], [0], [0], [1], [0, 0, 1, 1], [], []>} : vector<16x8xbf16>, vector<8x288xbf16>, vector<16x288xf32> -> vector<16x288xf32>
    %101 = arith.addf %96, %100 : vector<16x288xf32>
    %102 = vector.extract_strided_slice %92 {offsets = [32, 0], sizes = [16, 8], strides = [1, 1]} : vector<256x8xbf16> to vector<16x8xbf16>
    %103 = vector.extract_strided_slice %91 {offsets = [0, 2], sizes = [8, 288], strides = [1, 1]} : vector<8x384xf32> to vector<8x288xf32>
    %104 = arith.truncf %103 : vector<8x288xf32> to vector<8x288xbf16>
    %cst_29 = arith.constant dense<0.000000e+00> : vector<16x288xf32>
    %105 = tpu.matmul %102, %104, %cst_29 {dimension_numbers = #tpu.dot_dimension_numbers<[1], [0], [0], [1], [0, 0, 1, 1], [], []>} : vector<16x8xbf16>, vector<8x288xbf16>, vector<16x288xf32> -> vector<16x288xf32>
    %106 = arith.addf %101, %105 : vector<16x288xf32>
    %107 = vector.extract_strided_slice %92 {offsets = [48, 0], sizes = [16, 8], strides = [1, 1]} : vector<256x8xbf16> to vector<16x8xbf16>
    %108 = vector.extract_strided_slice %91 {offsets = [0, 3], sizes = [8, 288], strides = [1, 1]} : vector<8x384xf32> to vector<8x288xf32>
    %109 = arith.truncf %108 : vector<8x288xf32> to vector<8x288xbf16>
    %cst_30 = arith.constant dense<0.000000e+00> : vector<16x288xf32>
    %110 = tpu.matmul %107, %109, %cst_30 {dimension_numbers = #tpu.dot_dimension_numbers<[1], [0], [0], [1], [0, 0, 1, 1], [], []>} : vector<16x8xbf16>, vector<8x288xbf16>, vector<16x288xf32> -> vector<16x288xf32>
    %111 = arith.addf %106, %110 : vector<16x288xf32>
    %112 = vector.extract_strided_slice %92 {offsets = [64, 0], sizes = [16, 8], strides = [1, 1]} : vector<256x8xbf16> to vector<16x8xbf16>
    %113 = vector.extract_strided_slice %91 {offsets = [0, 12], sizes = [8, 288], strides = [1, 1]} : vector<8x384xf32> to vector<8x288xf32>
    %114 = arith.truncf %113 : vector<8x288xf32> to vector<8x288xbf16>
    %cst_31 = arith.constant dense<0.000000e+00> : vector<16x288xf32>
    %115 = tpu.matmul %112, %114, %cst_31 {dimension_numbers = #tpu.dot_dimension_numbers<[1], [0], [0], [1], [0, 0, 1, 1], [], []>} : vector<16x8xbf16>, vector<8x288xbf16>, vector<16x288xf32> -> vector<16x288xf32>
    %116 = arith.addf %111, %115 : vector<16x288xf32>
    %117 = vector.extract_strided_slice %92 {offsets = [80, 0], sizes = [16, 8], strides = [1, 1]} : vector<256x8xbf16> to vector<16x8xbf16>
    %118 = vector.extract_strided_slice %91 {offsets = [0, 13], sizes = [8, 288], strides = [1, 1]} : vector<8x384xf32> to vector<8x288xf32>
    %119 = arith.truncf %118 : vector<8x288xf32> to vector<8x288xbf16>
    %cst_32 = arith.constant dense<0.000000e+00> : vector<16x288xf32>
    %120 = tpu.matmul %117, %119, %cst_32 {dimension_numbers = #tpu.dot_dimension_numbers<[1], [0], [0], [1], [0, 0, 1, 1], [], []>} : vector<16x8xbf16>, vector<8x288xbf16>, vector<16x288xf32> -> vector<16x288xf32>
    %121 = arith.addf %116, %120 : vector<16x288xf32>
    %122 = vector.extract_strided_slice %92 {offsets = [96, 0], sizes = [16, 8], strides = [1, 1]} : vector<256x8xbf16> to vector<16x8xbf16>
    %123 = vector.extract_strided_slice %91 {offsets = [0, 14], sizes = [8, 288], strides = [1, 1]} : vector<8x384xf32> to vector<8x288xf32>
    %124 = arith.truncf %123 : vector<8x288xf32> to vector<8x288xbf16>
    %cst_33 = arith.constant dense<0.000000e+00> : vector<16x288xf32>
    %125 = tpu.matmul %122, %124, %cst_33 {dimension_numbers = #tpu.dot_dimension_numbers<[1], [0], [0], [1], [0, 0, 1, 1], [], []>} : vector<16x8xbf16>, vector<8x288xbf16>, vector<16x288xf32> -> vector<16x288xf32>
    %126 = arith.addf %121, %125 : vector<16x288xf32>
    %127 = vector.extract_strided_slice %92 {offsets = [112, 0], sizes = [16, 8], strides = [1, 1]} : vector<256x8xbf16> to vector<16x8xbf16>
    %128 = vector.extract_strided_slice %91 {offsets = [0, 15], sizes = [8, 288], strides = [1, 1]} : vector<8x384xf32> to vector<8x288xf32>
    %129 = arith.truncf %128 : vector<8x288xf32> to vector<8x288xbf16>
    %cst_34 = arith.constant dense<0.000000e+00> : vector<16x288xf32>
    %130 = tpu.matmul %127, %129, %cst_34 {dimension_numbers = #tpu.dot_dimension_numbers<[1], [0], [0], [1], [0, 0, 1, 1], [], []>} : vector<16x8xbf16>, vector<8x288xbf16>, vector<16x288xf32> -> vector<16x288xf32>
    %131 = arith.addf %126, %130 : vector<16x288xf32>
    %132 = vector.extract_strided_slice %92 {offsets = [128, 0], sizes = [16, 8], strides = [1, 1]} : vector<256x8xbf16> to vector<16x8xbf16>
    %133 = vector.extract_strided_slice %91 {offsets = [0, 24], sizes = [8, 288], strides = [1, 1]} : vector<8x384xf32> to vector<8x288xf32>
    %134 = arith.truncf %133 : vector<8x288xf32> to vector<8x288xbf16>
    %cst_35 = arith.constant dense<0.000000e+00> : vector<16x288xf32>
    %135 = tpu.matmul %132, %134, %cst_35 {dimension_numbers = #tpu.dot_dimension_numbers<[1], [0], [0], [1], [0, 0, 1, 1], [], []>} : vector<16x8xbf16>, vector<8x288xbf16>, vector<16x288xf32> -> vector<16x288xf32>
    %136 = arith.addf %131, %135 : vector<16x288xf32>
    %137 = vector.extract_strided_slice %92 {offsets = [144, 0], sizes = [16, 8], strides = [1, 1]} : vector<256x8xbf16> to vector<16x8xbf16>
    %138 = vector.extract_strided_slice %91 {offsets = [0, 25], sizes = [8, 288], strides = [1, 1]} : vector<8x384xf32> to vector<8x288xf32>
    %139 = arith.truncf %138 : vector<8x288xf32> to vector<8x288xbf16>
    %cst_36 = arith.constant dense<0.000000e+00> : vector<16x288xf32>
    %140 = tpu.matmul %137, %139, %cst_36 {dimension_numbers = #tpu.dot_dimension_numbers<[1], [0], [0], [1], [0, 0, 1, 1], [], []>} : vector<16x8xbf16>, vector<8x288xbf16>, vector<16x288xf32> -> vector<16x288xf32>
    %141 = arith.addf %136, %140 : vector<16x288xf32>
    %142 = vector.extract_strided_slice %92 {offsets = [160, 0], sizes = [16, 8], strides = [1, 1]} : vector<256x8xbf16> to vector<16x8xbf16>
    %143 = vector.extract_strided_slice %91 {offsets = [0, 26], sizes = [8, 288], strides = [1, 1]} : vector<8x384xf32> to vector<8x288xf32>
    %144 = arith.truncf %143 : vector<8x288xf32> to vector<8x288xbf16>
    %cst_37 = arith.constant dense<0.000000e+00> : vector<16x288xf32>
    %145 = tpu.matmul %142, %144, %cst_37 {dimension_numbers = #tpu.dot_dimension_numbers<[1], [0], [0], [1], [0, 0, 1, 1], [], []>} : vector<16x8xbf16>, vector<8x288xbf16>, vector<16x288xf32> -> vector<16x288xf32>
    %146 = arith.addf %141, %145 : vector<16x288xf32>
    %147 = vector.extract_strided_slice %92 {offsets = [176, 0], sizes = [16, 8], strides = [1, 1]} : vector<256x8xbf16> to vector<16x8xbf16>
    %148 = vector.extract_strided_slice %91 {offsets = [0, 27], sizes = [8, 288], strides = [1, 1]} : vector<8x384xf32> to vector<8x288xf32>
    %149 = arith.truncf %148 : vector<8x288xf32> to vector<8x288xbf16>
    %cst_38 = arith.constant dense<0.000000e+00> : vector<16x288xf32>
    %150 = tpu.matmul %147, %149, %cst_38 {dimension_numbers = #tpu.dot_dimension_numbers<[1], [0], [0], [1], [0, 0, 1, 1], [], []>} : vector<16x8xbf16>, vector<8x288xbf16>, vector<16x288xf32> -> vector<16x288xf32>
    %151 = arith.addf %146, %150 : vector<16x288xf32>
    %152 = vector.extract_strided_slice %92 {offsets = [192, 0], sizes = [16, 8], strides = [1, 1]} : vector<256x8xbf16> to vector<16x8xbf16>
    %153 = vector.extract_strided_slice %91 {offsets = [0, 36], sizes = [8, 288], strides = [1, 1]} : vector<8x384xf32> to vector<8x288xf32>
    %154 = arith.truncf %153 : vector<8x288xf32> to vector<8x288xbf16>
    %cst_39 = arith.constant dense<0.000000e+00> : vector<16x288xf32>
    %155 = tpu.matmul %152, %154, %cst_39 {dimension_numbers = #tpu.dot_dimension_numbers<[1], [0], [0], [1], [0, 0, 1, 1], [], []>} : vector<16x8xbf16>, vector<8x288xbf16>, vector<16x288xf32> -> vector<16x288xf32>
    %156 = arith.addf %151, %155 : vector<16x288xf32>
    %157 = vector.extract_strided_slice %92 {offsets = [208, 0], sizes = [16, 8], strides = [1, 1]} : vector<256x8xbf16> to vector<16x8xbf16>
    %158 = vector.extract_strided_slice %91 {offsets = [0, 37], sizes = [8, 288], strides = [1, 1]} : vector<8x384xf32> to vector<8x288xf32>
    %159 = arith.truncf %158 : vector<8x288xf32> to vector<8x288xbf16>
    %cst_40 = arith.constant dense<0.000000e+00> : vector<16x288xf32>
    %160 = tpu.matmul %157, %159, %cst_40 {dimension_numbers = #tpu.dot_dimension_numbers<[1], [0], [0], [1], [0, 0, 1, 1], [], []>} : vector<16x8xbf16>, vector<8x288xbf16>, vector<16x288xf32> -> vector<16x288xf32>
    %161 = arith.addf %156, %160 : vector<16x288xf32>
    %162 = vector.extract_strided_slice %92 {offsets = [224, 0], sizes = [16, 8], strides = [1, 1]} : vector<256x8xbf16> to vector<16x8xbf16>
    %163 = vector.extract_strided_slice %91 {offsets = [0, 38], sizes = [8, 288], strides = [1, 1]} : vector<8x384xf32> to vector<8x288xf32>
    %164 = arith.truncf %163 : vector<8x288xf32> to vector<8x288xbf16>
    %cst_41 = arith.constant dense<0.000000e+00> : vector<16x288xf32>
    %165 = tpu.matmul %162, %164, %cst_41 {dimension_numbers = #tpu.dot_dimension_numbers<[1], [0], [0], [1], [0, 0, 1, 1], [], []>} : vector<16x8xbf16>, vector<8x288xbf16>, vector<16x288xf32> -> vector<16x288xf32>
    %166 = arith.addf %161, %165 : vector<16x288xf32>
    %167 = vector.extract_strided_slice %92 {offsets = [240, 0], sizes = [16, 8], strides = [1, 1]} : vector<256x8xbf16> to vector<16x8xbf16>
    %168 = vector.extract_strided_slice %91 {offsets = [0, 39], sizes = [8, 288], strides = [1, 1]} : vector<8x384xf32> to vector<8x288xf32>
    %169 = arith.truncf %168 : vector<8x288xf32> to vector<8x288xbf16>
    %cst_42 = arith.constant dense<0.000000e+00> : vector<16x288xf32>
    %170 = tpu.matmul %167, %169, %cst_42 {dimension_numbers = #tpu.dot_dimension_numbers<[1], [0], [0], [1], [0, 0, 1, 1], [], []>} : vector<16x8xbf16>, vector<8x288xbf16>, vector<16x288xf32> -> vector<16x288xf32>
    %171 = arith.addf %166, %170 : vector<16x288xf32>
    %c0_43 = arith.constant 0 : index
    %c0_44 = arith.constant 0 : index
    %172 = vector.load %arg6[%c0_43, %c0_44] : memref<1x288xf32, #tpu.memory_space<vmem>>, vector<1x288xf32>
    %173 = vector.broadcast %172 : vector<1x288xf32> to vector<16x288xf32>
    %174 = arith.mulf %171, %173 : vector<16x288xf32>
    %cst_45 = arith.constant dense<0.000000e+00> : vector<16xf32>
    %175 = vector.multi_reduction <add>, %174, %cst_45 [1] : vector<16x288xf32> to vector<16xf32>
    %176 = vector.shape_cast %175 : vector<16xf32> to vector<16x1xf32>
    %cst_46 = arith.constant 3.125000e-02 : f32
    %177 = vector.broadcast %cst_46 : f32 to vector<16x1xf32>
    %178 = arith.mulf %176, %177 : vector<16x1xf32>
    %179 = vector.broadcast %178 : vector<16x1xf32> to vector<16x288xf32>
    %180 = arith.subf %171, %179 : vector<16x288xf32>
    %181 = arith.mulf %180, %180 : vector<16x288xf32>
    %182 = vector.broadcast %172 : vector<1x288xf32> to vector<16x288xf32>
    %183 = arith.mulf %181, %182 : vector<16x288xf32>
    %cst_47 = arith.constant dense<0.000000e+00> : vector<16xf32>
    %184 = vector.multi_reduction <add>, %183, %cst_47 [1] : vector<16x288xf32> to vector<16xf32>
    %185 = vector.shape_cast %184 : vector<16xf32> to vector<16x1xf32>
    %cst_48 = arith.constant 3.125000e-02 : f32
    %186 = vector.broadcast %cst_48 : f32 to vector<16x1xf32>
    %187 = arith.mulf %185, %186 : vector<16x1xf32>
    %cst_49 = arith.constant 9.99999974E-6 : f32
    %188 = vector.broadcast %cst_49 : f32 to vector<16x1xf32>
    %189 = arith.addf %187, %188 : vector<16x1xf32>
    %190 = math.rsqrt %189 : vector<16x1xf32>
    %191 = vector.broadcast %190 : vector<16x1xf32> to vector<16x288xf32>
    %192 = arith.mulf %180, %191 : vector<16x288xf32>
    %cst_50 = arith.constant 0.000000e+00 : f32
    %193 = vector.broadcast %cst_50 : f32 to vector<16x288xf32>
    %194 = arith.cmpf ogt, %192, %193 : vector<16x288xf32>
    %cst_51 = arith.constant 2.000000e-01 : f32
    %195 = vector.broadcast %cst_51 : f32 to vector<16x288xf32>
    %196 = arith.mulf %195, %192 : vector<16x288xf32>
    %197 = arith.select %194, %192, %196 : vector<16x288xi1>, vector<16x288xf32>
    %198 = arith.truncf %197 : vector<16x288xf32> to vector<16x288xbf16>
    %c0_52 = arith.constant 0 : index
    %c0_53 = arith.constant 0 : index
    %199 = vector.load %arg5[%c0_52, %c0_53] : memref<288x32xbf16, #tpu.memory_space<vmem>>, vector<288x32xbf16>
    %cst_54 = arith.constant dense<0.000000e+00> : vector<16x32xf32>
    %200 = tpu.matmul %198, %199, %cst_54 {dimension_numbers = #tpu.dot_dimension_numbers<[1], [0], [0], [1], [0, 0, 1, 1], [], []>} : vector<16x288xbf16>, vector<288x32xbf16>, vector<16x32xf32> -> vector<16x32xf32>
    %201 = arith.truncf %200 : vector<16x32xf32> to vector<16x32xbf16>
    %c0_55 = arith.constant 0 : index
    %c0_56 = arith.constant 0 : index
    %202 = vector.load %arg8[%c0_55, %c0_56] : memref<32x384xbf16, #tpu.memory_space<vmem>>, vector<32x384xbf16>
    %cst_57 = arith.constant dense<0.000000e+00> : vector<16x384xf32>
    %203 = tpu.matmul %201, %202, %cst_57 {dimension_numbers = #tpu.dot_dimension_numbers<[1], [0], [0], [1], [0, 0, 1, 1], [], []>} : vector<16x32xbf16>, vector<32x384xbf16>, vector<16x384xf32> -> vector<16x384xf32>
    %c0_58 = arith.constant 0 : index
    %c0_59 = arith.constant 0 : index
    %204 = vector.load %arg7[%c0_58, %c0_59] : memref<256x16xbf16, #tpu.memory_space<vmem>>, vector<256x16xbf16>
    %205 = vector.extract_strided_slice %204 {offsets = [0, 0], sizes = [16, 16], strides = [1, 1]} : vector<256x16xbf16> to vector<16x16xbf16>
    %206 = vector.extract_strided_slice %203 {offsets = [0, 0], sizes = [16, 288], strides = [1, 1]} : vector<16x384xf32> to vector<16x288xf32>
    %207 = arith.truncf %206 : vector<16x288xf32> to vector<16x288xbf16>
    %cst_60 = arith.constant dense<0.000000e+00> : vector<16x288xf32>
    %208 = tpu.matmul %205, %207, %cst_60 {dimension_numbers = #tpu.dot_dimension_numbers<[1], [0], [0], [1], [0, 0, 1, 1], [], []>} : vector<16x16xbf16>, vector<16x288xbf16>, vector<16x288xf32> -> vector<16x288xf32>
    %209 = vector.extract_strided_slice %204 {offsets = [16, 0], sizes = [16, 16], strides = [1, 1]} : vector<256x16xbf16> to vector<16x16xbf16>
    %210 = vector.extract_strided_slice %203 {offsets = [0, 1], sizes = [16, 288], strides = [1, 1]} : vector<16x384xf32> to vector<16x288xf32>
    %211 = arith.truncf %210 : vector<16x288xf32> to vector<16x288xbf16>
    %cst_61 = arith.constant dense<0.000000e+00> : vector<16x288xf32>
    %212 = tpu.matmul %209, %211, %cst_61 {dimension_numbers = #tpu.dot_dimension_numbers<[1], [0], [0], [1], [0, 0, 1, 1], [], []>} : vector<16x16xbf16>, vector<16x288xbf16>, vector<16x288xf32> -> vector<16x288xf32>
    %213 = arith.addf %208, %212 : vector<16x288xf32>
    %214 = vector.extract_strided_slice %204 {offsets = [32, 0], sizes = [16, 16], strides = [1, 1]} : vector<256x16xbf16> to vector<16x16xbf16>
    %215 = vector.extract_strided_slice %203 {offsets = [0, 2], sizes = [16, 288], strides = [1, 1]} : vector<16x384xf32> to vector<16x288xf32>
    %216 = arith.truncf %215 : vector<16x288xf32> to vector<16x288xbf16>
    %cst_62 = arith.constant dense<0.000000e+00> : vector<16x288xf32>
    %217 = tpu.matmul %214, %216, %cst_62 {dimension_numbers = #tpu.dot_dimension_numbers<[1], [0], [0], [1], [0, 0, 1, 1], [], []>} : vector<16x16xbf16>, vector<16x288xbf16>, vector<16x288xf32> -> vector<16x288xf32>
    %218 = arith.addf %213, %217 : vector<16x288xf32>
    %219 = vector.extract_strided_slice %204 {offsets = [48, 0], sizes = [16, 16], strides = [1, 1]} : vector<256x16xbf16> to vector<16x16xbf16>
    %220 = vector.extract_strided_slice %203 {offsets = [0, 3], sizes = [16, 288], strides = [1, 1]} : vector<16x384xf32> to vector<16x288xf32>
    %221 = arith.truncf %220 : vector<16x288xf32> to vector<16x288xbf16>
    %cst_63 = arith.constant dense<0.000000e+00> : vector<16x288xf32>
    %222 = tpu.matmul %219, %221, %cst_63 {dimension_numbers = #tpu.dot_dimension_numbers<[1], [0], [0], [1], [0, 0, 1, 1], [], []>} : vector<16x16xbf16>, vector<16x288xbf16>, vector<16x288xf32> -> vector<16x288xf32>
    %223 = arith.addf %218, %222 : vector<16x288xf32>
    %224 = vector.extract_strided_slice %204 {offsets = [64, 0], sizes = [16, 16], strides = [1, 1]} : vector<256x16xbf16> to vector<16x16xbf16>
    %225 = vector.extract_strided_slice %203 {offsets = [0, 12], sizes = [16, 288], strides = [1, 1]} : vector<16x384xf32> to vector<16x288xf32>
    %226 = arith.truncf %225 : vector<16x288xf32> to vector<16x288xbf16>
    %cst_64 = arith.constant dense<0.000000e+00> : vector<16x288xf32>
    %227 = tpu.matmul %224, %226, %cst_64 {dimension_numbers = #tpu.dot_dimension_numbers<[1], [0], [0], [1], [0, 0, 1, 1], [], []>} : vector<16x16xbf16>, vector<16x288xbf16>, vector<16x288xf32> -> vector<16x288xf32>
    %228 = arith.addf %223, %227 : vector<16x288xf32>
    %229 = vector.extract_strided_slice %204 {offsets = [80, 0], sizes = [16, 16], strides = [1, 1]} : vector<256x16xbf16> to vector<16x16xbf16>
    %230 = vector.extract_strided_slice %203 {offsets = [0, 13], sizes = [16, 288], strides = [1, 1]} : vector<16x384xf32> to vector<16x288xf32>
    %231 = arith.truncf %230 : vector<16x288xf32> to vector<16x288xbf16>
    %cst_65 = arith.constant dense<0.000000e+00> : vector<16x288xf32>
    %232 = tpu.matmul %229, %231, %cst_65 {dimension_numbers = #tpu.dot_dimension_numbers<[1], [0], [0], [1], [0, 0, 1, 1], [], []>} : vector<16x16xbf16>, vector<16x288xbf16>, vector<16x288xf32> -> vector<16x288xf32>
    %233 = arith.addf %228, %232 : vector<16x288xf32>
    %234 = vector.extract_strided_slice %204 {offsets = [96, 0], sizes = [16, 16], strides = [1, 1]} : vector<256x16xbf16> to vector<16x16xbf16>
    %235 = vector.extract_strided_slice %203 {offsets = [0, 14], sizes = [16, 288], strides = [1, 1]} : vector<16x384xf32> to vector<16x288xf32>
    %236 = arith.truncf %235 : vector<16x288xf32> to vector<16x288xbf16>
    %cst_66 = arith.constant dense<0.000000e+00> : vector<16x288xf32>
    %237 = tpu.matmul %234, %236, %cst_66 {dimension_numbers = #tpu.dot_dimension_numbers<[1], [0], [0], [1], [0, 0, 1, 1], [], []>} : vector<16x16xbf16>, vector<16x288xbf16>, vector<16x288xf32> -> vector<16x288xf32>
    %238 = arith.addf %233, %237 : vector<16x288xf32>
    %239 = vector.extract_strided_slice %204 {offsets = [112, 0], sizes = [16, 16], strides = [1, 1]} : vector<256x16xbf16> to vector<16x16xbf16>
    %240 = vector.extract_strided_slice %203 {offsets = [0, 15], sizes = [16, 288], strides = [1, 1]} : vector<16x384xf32> to vector<16x288xf32>
    %241 = arith.truncf %240 : vector<16x288xf32> to vector<16x288xbf16>
    %cst_67 = arith.constant dense<0.000000e+00> : vector<16x288xf32>
    %242 = tpu.matmul %239, %241, %cst_67 {dimension_numbers = #tpu.dot_dimension_numbers<[1], [0], [0], [1], [0, 0, 1, 1], [], []>} : vector<16x16xbf16>, vector<16x288xbf16>, vector<16x288xf32> -> vector<16x288xf32>
    %243 = arith.addf %238, %242 : vector<16x288xf32>
    %244 = vector.extract_strided_slice %204 {offsets = [128, 0], sizes = [16, 16], strides = [1, 1]} : vector<256x16xbf16> to vector<16x16xbf16>
    %245 = vector.extract_strided_slice %203 {offsets = [0, 24], sizes = [16, 288], strides = [1, 1]} : vector<16x384xf32> to vector<16x288xf32>
    %246 = arith.truncf %245 : vector<16x288xf32> to vector<16x288xbf16>
    %cst_68 = arith.constant dense<0.000000e+00> : vector<16x288xf32>
    %247 = tpu.matmul %244, %246, %cst_68 {dimension_numbers = #tpu.dot_dimension_numbers<[1], [0], [0], [1], [0, 0, 1, 1], [], []>} : vector<16x16xbf16>, vector<16x288xbf16>, vector<16x288xf32> -> vector<16x288xf32>
    %248 = arith.addf %243, %247 : vector<16x288xf32>
    %249 = vector.extract_strided_slice %204 {offsets = [144, 0], sizes = [16, 16], strides = [1, 1]} : vector<256x16xbf16> to vector<16x16xbf16>
    %250 = vector.extract_strided_slice %203 {offsets = [0, 25], sizes = [16, 288], strides = [1, 1]} : vector<16x384xf32> to vector<16x288xf32>
    %251 = arith.truncf %250 : vector<16x288xf32> to vector<16x288xbf16>
    %cst_69 = arith.constant dense<0.000000e+00> : vector<16x288xf32>
    %252 = tpu.matmul %249, %251, %cst_69 {dimension_numbers = #tpu.dot_dimension_numbers<[1], [0], [0], [1], [0, 0, 1, 1], [], []>} : vector<16x16xbf16>, vector<16x288xbf16>, vector<16x288xf32> -> vector<16x288xf32>
    %253 = arith.addf %248, %252 : vector<16x288xf32>
    %254 = vector.extract_strided_slice %204 {offsets = [160, 0], sizes = [16, 16], strides = [1, 1]} : vector<256x16xbf16> to vector<16x16xbf16>
    %255 = vector.extract_strided_slice %203 {offsets = [0, 26], sizes = [16, 288], strides = [1, 1]} : vector<16x384xf32> to vector<16x288xf32>
    %256 = arith.truncf %255 : vector<16x288xf32> to vector<16x288xbf16>
    %cst_70 = arith.constant dense<0.000000e+00> : vector<16x288xf32>
    %257 = tpu.matmul %254, %256, %cst_70 {dimension_numbers = #tpu.dot_dimension_numbers<[1], [0], [0], [1], [0, 0, 1, 1], [], []>} : vector<16x16xbf16>, vector<16x288xbf16>, vector<16x288xf32> -> vector<16x288xf32>
    %258 = arith.addf %253, %257 : vector<16x288xf32>
    %259 = vector.extract_strided_slice %204 {offsets = [176, 0], sizes = [16, 16], strides = [1, 1]} : vector<256x16xbf16> to vector<16x16xbf16>
    %260 = vector.extract_strided_slice %203 {offsets = [0, 27], sizes = [16, 288], strides = [1, 1]} : vector<16x384xf32> to vector<16x288xf32>
    %261 = arith.truncf %260 : vector<16x288xf32> to vector<16x288xbf16>
    %cst_71 = arith.constant dense<0.000000e+00> : vector<16x288xf32>
    %262 = tpu.matmul %259, %261, %cst_71 {dimension_numbers = #tpu.dot_dimension_numbers<[1], [0], [0], [1], [0, 0, 1, 1], [], []>} : vector<16x16xbf16>, vector<16x288xbf16>, vector<16x288xf32> -> vector<16x288xf32>
    %263 = arith.addf %258, %262 : vector<16x288xf32>
    %264 = vector.extract_strided_slice %204 {offsets = [192, 0], sizes = [16, 16], strides = [1, 1]} : vector<256x16xbf16> to vector<16x16xbf16>
    %265 = vector.extract_strided_slice %203 {offsets = [0, 36], sizes = [16, 288], strides = [1, 1]} : vector<16x384xf32> to vector<16x288xf32>
    %266 = arith.truncf %265 : vector<16x288xf32> to vector<16x288xbf16>
    %cst_72 = arith.constant dense<0.000000e+00> : vector<16x288xf32>
    %267 = tpu.matmul %264, %266, %cst_72 {dimension_numbers = #tpu.dot_dimension_numbers<[1], [0], [0], [1], [0, 0, 1, 1], [], []>} : vector<16x16xbf16>, vector<16x288xbf16>, vector<16x288xf32> -> vector<16x288xf32>
    %268 = arith.addf %263, %267 : vector<16x288xf32>
    %269 = vector.extract_strided_slice %204 {offsets = [208, 0], sizes = [16, 16], strides = [1, 1]} : vector<256x16xbf16> to vector<16x16xbf16>
    %270 = vector.extract_strided_slice %203 {offsets = [0, 37], sizes = [16, 288], strides = [1, 1]} : vector<16x384xf32> to vector<16x288xf32>
    %271 = arith.truncf %270 : vector<16x288xf32> to vector<16x288xbf16>
    %cst_73 = arith.constant dense<0.000000e+00> : vector<16x288xf32>
    %272 = tpu.matmul %269, %271, %cst_73 {dimension_numbers = #tpu.dot_dimension_numbers<[1], [0], [0], [1], [0, 0, 1, 1], [], []>} : vector<16x16xbf16>, vector<16x288xbf16>, vector<16x288xf32> -> vector<16x288xf32>
    %273 = arith.addf %268, %272 : vector<16x288xf32>
    %274 = vector.extract_strided_slice %204 {offsets = [224, 0], sizes = [16, 16], strides = [1, 1]} : vector<256x16xbf16> to vector<16x16xbf16>
    %275 = vector.extract_strided_slice %203 {offsets = [0, 38], sizes = [16, 288], strides = [1, 1]} : vector<16x384xf32> to vector<16x288xf32>
    %276 = arith.truncf %275 : vector<16x288xf32> to vector<16x288xbf16>
    %cst_74 = arith.constant dense<0.000000e+00> : vector<16x288xf32>
    %277 = tpu.matmul %274, %276, %cst_74 {dimension_numbers = #tpu.dot_dimension_numbers<[1], [0], [0], [1], [0, 0, 1, 1], [], []>} : vector<16x16xbf16>, vector<16x288xbf16>, vector<16x288xf32> -> vector<16x288xf32>
    %278 = arith.addf %273, %277 : vector<16x288xf32>
    %279 = vector.extract_strided_slice %204 {offsets = [240, 0], sizes = [16, 16], strides = [1, 1]} : vector<256x16xbf16> to vector<16x16xbf16>
    %280 = vector.extract_strided_slice %203 {offsets = [0, 39], sizes = [16, 288], strides = [1, 1]} : vector<16x384xf32> to vector<16x288xf32>
    %281 = arith.truncf %280 : vector<16x288xf32> to vector<16x288xbf16>
    %cst_75 = arith.constant dense<0.000000e+00> : vector<16x288xf32>
    %282 = tpu.matmul %279, %281, %cst_75 {dimension_numbers = #tpu.dot_dimension_numbers<[1], [0], [0], [1], [0, 0, 1, 1], [], []>} : vector<16x16xbf16>, vector<16x288xbf16>, vector<16x288xf32> -> vector<16x288xf32>
    %283 = arith.addf %278, %282 : vector<16x288xf32>
    %c0_76 = arith.constant 0 : index
    %c0_77 = arith.constant 0 : index
    %284 = vector.load %arg9[%c0_76, %c0_77] : memref<1x288xf32, #tpu.memory_space<vmem>>, vector<1x288xf32>
    %285 = vector.broadcast %284 : vector<1x288xf32> to vector<16x288xf32>
    %286 = arith.mulf %283, %285 : vector<16x288xf32>
    %cst_78 = arith.constant dense<0.000000e+00> : vector<16xf32>
    %287 = vector.multi_reduction <add>, %286, %cst_78 [1] : vector<16x288xf32> to vector<16xf32>
    %288 = vector.shape_cast %287 : vector<16xf32> to vector<16x1xf32>
    %cst_79 = arith.constant 7.812500e-03 : f32
    %289 = vector.broadcast %cst_79 : f32 to vector<16x1xf32>
    %290 = arith.mulf %288, %289 : vector<16x1xf32>
    %291 = vector.broadcast %290 : vector<16x1xf32> to vector<16x288xf32>
    %292 = arith.subf %283, %291 : vector<16x288xf32>
    %293 = arith.mulf %292, %292 : vector<16x288xf32>
    %294 = vector.broadcast %284 : vector<1x288xf32> to vector<16x288xf32>
    %295 = arith.mulf %293, %294 : vector<16x288xf32>
    %cst_80 = arith.constant dense<0.000000e+00> : vector<16xf32>
    %296 = vector.multi_reduction <add>, %295, %cst_80 [1] : vector<16x288xf32> to vector<16xf32>
    %297 = vector.shape_cast %296 : vector<16xf32> to vector<16x1xf32>
    %cst_81 = arith.constant 7.812500e-03 : f32
    %298 = vector.broadcast %cst_81 : f32 to vector<16x1xf32>
    %299 = arith.mulf %297, %298 : vector<16x1xf32>
    %cst_82 = arith.constant 9.99999974E-6 : f32
    %300 = vector.broadcast %cst_82 : f32 to vector<16x1xf32>
    %301 = arith.addf %299, %300 : vector<16x1xf32>
    %302 = math.rsqrt %301 : vector<16x1xf32>
    %303 = vector.broadcast %302 : vector<16x1xf32> to vector<16x288xf32>
    %304 = arith.mulf %292, %303 : vector<16x288xf32>
    %cst_83 = arith.constant 0.000000e+00 : f32
    %305 = vector.broadcast %cst_83 : f32 to vector<16x288xf32>
    %306 = arith.maximumf %304, %305 : vector<16x288xf32>
    %c0_84 = arith.constant 0 : index
    %c0_85 = arith.constant 0 : index
    %307 = vector.load %arg9[%c0_84, %c0_85] : memref<1x288xf32, #tpu.memory_space<vmem>>, vector<1x288xf32>
    %308 = vector.broadcast %307 : vector<1x288xf32> to vector<16x288xf32>
    %309 = arith.mulf %306, %308 : vector<16x288xf32>
    %cst_86 = arith.constant 0.000000e+00 : f32
    %310 = vector.broadcast %cst_86 : f32 to vector<16x384xf32>
    %c0_87 = arith.constant 0 : index
    %c0_88 = arith.constant 0 : index
    %311 = vector.load %arg20[%c0_87, %c0_88] : memref<16x384xf32, #tpu.memory_space<vmem>>, vector<16x384xf32>
    tpu.vector_store %arg20[%c0_87, %c0_88], %310 {strides = array<i32>} : memref<16x384xf32, #tpu.memory_space<vmem>>, vector<16x384xf32>,
    %c0_89 = arith.constant 0 : index
    %c26 = arith.constant 26 : index
    %312 = vector.load %arg20[%c0_89, %c26] : memref<16x384xf32, #tpu.memory_space<vmem>>, vector<16x288xf32>
    tpu.vector_store %arg20[%c0_89, %c26], %309 {strides = array<i32>} : memref<16x384xf32, #tpu.memory_space<vmem>>, vector<16x288xf32>,
    %c0_90 = arith.constant 0 : index
    %c0_91 = arith.constant 0 : index
    %313 = vector.load %arg20[%c0_90, %c0_91] : memref<16x384xf32, #tpu.memory_space<vmem>>, vector<16x384xf32>
    %c0_92 = arith.constant 0 : index
    %c0_93 = arith.constant 0 : index
    %314 = vector.load %arg10[%c0_92, %c0_93] : memref<144x16xbf16, #tpu.memory_space<vmem>>, vector<144x16xbf16>
    %315 = vector.extract_strided_slice %314 {offsets = [0, 0], sizes = [16, 16], strides = [1, 1]} : vector<144x16xbf16> to vector<16x16xbf16>
    %316 = vector.extract_strided_slice %313 {offsets = [0, 0], sizes = [16, 288], strides = [1, 1]} : vector<16x384xf32> to vector<16x288xf32>
    %317 = arith.truncf %316 : vector<16x288xf32> to vector<16x288xbf16>
    %cst_94 = arith.constant dense<0.000000e+00> : vector<16x288xf32>
    %318 = tpu.matmul %315, %317, %cst_94 {dimension_numbers = #tpu.dot_dimension_numbers<[1], [0], [0], [1], [0, 0, 1, 1], [], []>} : vector<16x16xbf16>, vector<16x288xbf16>, vector<16x288xf32> -> vector<16x288xf32>
    %319 = vector.extract_strided_slice %314 {offsets = [16, 0], sizes = [16, 16], strides = [1, 1]} : vector<144x16xbf16> to vector<16x16xbf16>
    %320 = vector.extract_strided_slice %313 {offsets = [0, 1], sizes = [16, 288], strides = [1, 1]} : vector<16x384xf32> to vector<16x288xf32>
    %321 = arith.truncf %320 : vector<16x288xf32> to vector<16x288xbf16>
    %cst_95 = arith.constant dense<0.000000e+00> : vector<16x288xf32>
    %322 = tpu.matmul %319, %321, %cst_95 {dimension_numbers = #tpu.dot_dimension_numbers<[1], [0], [0], [1], [0, 0, 1, 1], [], []>} : vector<16x16xbf16>, vector<16x288xbf16>, vector<16x288xf32> -> vector<16x288xf32>
    %323 = arith.addf %318, %322 : vector<16x288xf32>
    %324 = vector.extract_strided_slice %314 {offsets = [32, 0], sizes = [16, 16], strides = [1, 1]} : vector<144x16xbf16> to vector<16x16xbf16>
    %325 = vector.extract_strided_slice %313 {offsets = [0, 2], sizes = [16, 288], strides = [1, 1]} : vector<16x384xf32> to vector<16x288xf32>
    %326 = arith.truncf %325 : vector<16x288xf32> to vector<16x288xbf16>
    %cst_96 = arith.constant dense<0.000000e+00> : vector<16x288xf32>
    %327 = tpu.matmul %324, %326, %cst_96 {dimension_numbers = #tpu.dot_dimension_numbers<[1], [0], [0], [1], [0, 0, 1, 1], [], []>} : vector<16x16xbf16>, vector<16x288xbf16>, vector<16x288xf32> -> vector<16x288xf32>
    %328 = arith.addf %323, %327 : vector<16x288xf32>
    %329 = vector.extract_strided_slice %314 {offsets = [48, 0], sizes = [16, 16], strides = [1, 1]} : vector<144x16xbf16> to vector<16x16xbf16>
    %330 = vector.extract_strided_slice %313 {offsets = [0, 12], sizes = [16, 288], strides = [1, 1]} : vector<16x384xf32> to vector<16x288xf32>
    %331 = arith.truncf %330 : vector<16x288xf32> to vector<16x288xbf16>
    %cst_97 = arith.constant dense<0.000000e+00> : vector<16x288xf32>
    %332 = tpu.matmul %329, %331, %cst_97 {dimension_numbers = #tpu.dot_dimension_numbers<[1], [0], [0], [1], [0, 0, 1, 1], [], []>} : vector<16x16xbf16>, vector<16x288xbf16>, vector<16x288xf32> -> vector<16x288xf32>
    %333 = arith.addf %328, %332 : vector<16x288xf32>
    %334 = vector.extract_strided_slice %314 {offsets = [64, 0], sizes = [16, 16], strides = [1, 1]} : vector<144x16xbf16> to vector<16x16xbf16>
    %335 = vector.extract_strided_slice %313 {offsets = [0, 13], sizes = [16, 288], strides = [1, 1]} : vector<16x384xf32> to vector<16x288xf32>
    %336 = arith.truncf %335 : vector<16x288xf32> to vector<16x288xbf16>
    %cst_98 = arith.constant dense<0.000000e+00> : vector<16x288xf32>
    %337 = tpu.matmul %334, %336, %cst_98 {dimension_numbers = #tpu.dot_dimension_numbers<[1], [0], [0], [1], [0, 0, 1, 1], [], []>} : vector<16x16xbf16>, vector<16x288xbf16>, vector<16x288xf32> -> vector<16x288xf32>
    %338 = arith.addf %333, %337 : vector<16x288xf32>
    %339 = vector.extract_strided_slice %314 {offsets = [80, 0], sizes = [16, 16], strides = [1, 1]} : vector<144x16xbf16> to vector<16x16xbf16>
    %340 = vector.extract_strided_slice %313 {offsets = [0, 14], sizes = [16, 288], strides = [1, 1]} : vector<16x384xf32> to vector<16x288xf32>
    %341 = arith.truncf %340 : vector<16x288xf32> to vector<16x288xbf16>
    %cst_99 = arith.constant dense<0.000000e+00> : vector<16x288xf32>
    %342 = tpu.matmul %339, %341, %cst_99 {dimension_numbers = #tpu.dot_dimension_numbers<[1], [0], [0], [1], [0, 0, 1, 1], [], []>} : vector<16x16xbf16>, vector<16x288xbf16>, vector<16x288xf32> -> vector<16x288xf32>
    %343 = arith.addf %338, %342 : vector<16x288xf32>
    %344 = vector.extract_strided_slice %314 {offsets = [96, 0], sizes = [16, 16], strides = [1, 1]} : vector<144x16xbf16> to vector<16x16xbf16>
    %345 = vector.extract_strided_slice %313 {offsets = [0, 24], sizes = [16, 288], strides = [1, 1]} : vector<16x384xf32> to vector<16x288xf32>
    %346 = arith.truncf %345 : vector<16x288xf32> to vector<16x288xbf16>
    %cst_100 = arith.constant dense<0.000000e+00> : vector<16x288xf32>
    %347 = tpu.matmul %344, %346, %cst_100 {dimension_numbers = #tpu.dot_dimension_numbers<[1], [0], [0], [1], [0, 0, 1, 1], [], []>} : vector<16x16xbf16>, vector<16x288xbf16>, vector<16x288xf32> -> vector<16x288xf32>
    %348 = arith.addf %343, %347 : vector<16x288xf32>
    %349 = vector.extract_strided_slice %314 {offsets = [112, 0], sizes = [16, 16], strides = [1, 1]} : vector<144x16xbf16> to vector<16x16xbf16>
    %350 = vector.extract_strided_slice %313 {offsets = [0, 25], sizes = [16, 288], strides = [1, 1]} : vector<16x384xf32> to vector<16x288xf32>
    %351 = arith.truncf %350 : vector<16x288xf32> to vector<16x288xbf16>
    %cst_101 = arith.constant dense<0.000000e+00> : vector<16x288xf32>
    %352 = tpu.matmul %349, %351, %cst_101 {dimension_numbers = #tpu.dot_dimension_numbers<[1], [0], [0], [1], [0, 0, 1, 1], [], []>} : vector<16x16xbf16>, vector<16x288xbf16>, vector<16x288xf32> -> vector<16x288xf32>
    %353 = arith.addf %348, %352 : vector<16x288xf32>
    %354 = vector.extract_strided_slice %314 {offsets = [128, 0], sizes = [16, 16], strides = [1, 1]} : vector<144x16xbf16> to vector<16x16xbf16>
    %355 = vector.extract_strided_slice %313 {offsets = [0, 26], sizes = [16, 288], strides = [1, 1]} : vector<16x384xf32> to vector<16x288xf32>
    %356 = arith.truncf %355 : vector<16x288xf32> to vector<16x288xbf16>
    %cst_102 = arith.constant dense<0.000000e+00> : vector<16x288xf32>
    %357 = tpu.matmul %354, %356, %cst_102 {dimension_numbers = #tpu.dot_dimension_numbers<[1], [0], [0], [1], [0, 0, 1, 1], [], []>} : vector<16x16xbf16>, vector<16x288xbf16>, vector<16x288xf32> -> vector<16x288xf32>
    %358 = arith.addf %353, %357 : vector<16x288xf32>
    %c0_103 = arith.constant 0 : index
    %c0_104 = arith.constant 0 : index
    %359 = vector.load %arg11[%c0_103, %c0_104] : memref<1x288xf32, #tpu.memory_space<vmem>>, vector<1x288xf32>
    %360 = vector.broadcast %359 : vector<1x288xf32> to vector<16x288xf32>
    %361 = arith.mulf %358, %360 : vector<16x288xf32>
    %cst_105 = arith.constant dense<0.000000e+00> : vector<16xf32>
    %362 = vector.multi_reduction <add>, %361, %cst_105 [1] : vector<16x288xf32> to vector<16xf32>
    %363 = vector.shape_cast %362 : vector<16xf32> to vector<16x1xf32>
    %cst_106 = arith.constant 7.812500e-03 : f32
    %364 = vector.broadcast %cst_106 : f32 to vector<16x1xf32>
    %365 = arith.mulf %363, %364 : vector<16x1xf32>
    %366 = vector.broadcast %365 : vector<16x1xf32> to vector<16x288xf32>
    %367 = arith.subf %358, %366 : vector<16x288xf32>
    %368 = arith.mulf %367, %367 : vector<16x288xf32>
    %369 = vector.broadcast %359 : vector<1x288xf32> to vector<16x288xf32>
    %370 = arith.mulf %368, %369 : vector<16x288xf32>
    %cst_107 = arith.constant dense<0.000000e+00> : vector<16xf32>
    %371 = vector.multi_reduction <add>, %370, %cst_107 [1] : vector<16x288xf32> to vector<16xf32>
    %372 = vector.shape_cast %371 : vector<16xf32> to vector<16x1xf32>
    %cst_108 = arith.constant 7.812500e-03 : f32
    %373 = vector.broadcast %cst_108 : f32 to vector<16x1xf32>
    %374 = arith.mulf %372, %373 : vector<16x1xf32>
    %cst_109 = arith.constant 9.99999974E-6 : f32
    %375 = vector.broadcast %cst_109 : f32 to vector<16x1xf32>
    %376 = arith.addf %374, %375 : vector<16x1xf32>
    %377 = math.rsqrt %376 : vector<16x1xf32>
    %378 = vector.broadcast %377 : vector<16x1xf32> to vector<16x288xf32>
    %379 = arith.mulf %367, %378 : vector<16x288xf32>
    %cst_110 = arith.constant 0.000000e+00 : f32
    %380 = vector.broadcast %cst_110 : f32 to vector<16x288xf32>
    %381 = arith.cmpf ogt, %379, %380 : vector<16x288xf32>
    %cst_111 = arith.constant 2.000000e-01 : f32
    %382 = vector.broadcast %cst_111 : f32 to vector<16x288xf32>
    %383 = arith.mulf %382, %379 : vector<16x288xf32>
    %384 = arith.select %381, %379, %383 : vector<16x288xi1>, vector<16x288xf32>
    %cst_112 = arith.constant 0.000000e+00 : f32
    %385 = vector.broadcast %cst_112 : f32 to vector<16x384xf32>
    %c0_113 = arith.constant 0 : index
    %c0_114 = arith.constant 0 : index
    %386 = vector.load %arg21[%c0_113, %c0_114] : memref<16x384xf32, #tpu.memory_space<vmem>>, vector<16x384xf32>
    tpu.vector_store %arg21[%c0_113, %c0_114], %385 {strides = array<i32>} : memref<16x384xf32, #tpu.memory_space<vmem>>, vector<16x384xf32>,
    %c0_115 = arith.constant 0 : index
    %c13 = arith.constant 13 : index
    %387 = vector.load %arg21[%c0_115, %c13] : memref<16x384xf32, #tpu.memory_space<vmem>>, vector<16x288xf32>
    tpu.vector_store %arg21[%c0_115, %c13], %384 {strides = array<i32>} : memref<16x384xf32, #tpu.memory_space<vmem>>, vector<16x288xf32>,
    %c0_116 = arith.constant 0 : index
    %c0_117 = arith.constant 0 : index
    %388 = vector.load %arg21[%c0_116, %c0_117] : memref<16x384xf32, #tpu.memory_space<vmem>>, vector<16x384xf32>
    %389 = tpu.concatenate %91, %388 in 0 : vector<8x384xf32>, vector<16x384xf32> -> vector<24x384xf32>
    %390 = arith.truncf %389 : vector<24x384xf32> to vector<24x384xbf16>
    %c0_118 = arith.constant 0 : index
    %c0_119 = arith.constant 0 : index
    %391 = vector.load %arg13[%c0_118, %c0_119] : memref<384x896xbf16, #tpu.memory_space<vmem>>, vector<384x896xbf16>
    %cst_120 = arith.constant dense<0.000000e+00> : vector<24x896xf32>
    %392 = tpu.matmul %390, %391, %cst_120 {dimension_numbers = #tpu.dot_dimension_numbers<[1], [0], [0], [1], [0, 0, 1, 1], [], []>} : vector<24x384xbf16>, vector<384x896xbf16>, vector<24x896xf32> -> vector<24x896xf32>
    %c0_121 = arith.constant 0 : index
    %c0_122 = arith.constant 0 : index
    %393 = vector.load %arg12[%c0_121, %c0_122] : memref<128x24xbf16, #tpu.memory_space<vmem>>, vector<128x24xbf16>
    %394 = vector.extract_strided_slice %393 {offsets = [0, 0], sizes = [8, 24], strides = [1, 1]} : vector<128x24xbf16> to vector<8x24xbf16>
    %395 = vector.extract_strided_slice %392 {offsets = [0, 0], sizes = [24, 800], strides = [1, 1]} : vector<24x896xf32> to vector<24x800xf32>
    %396 = arith.truncf %395 : vector<24x800xf32> to vector<24x800xbf16>
    %cst_123 = arith.constant dense<0.000000e+00> : vector<8x800xf32>
    %397 = tpu.matmul %394, %396, %cst_123 {dimension_numbers = #tpu.dot_dimension_numbers<[1], [0], [0], [1], [0, 0, 1, 1], [], []>} : vector<8x24xbf16>, vector<24x800xbf16>, vector<8x800xf32> -> vector<8x800xf32>
    %398 = vector.extract_strided_slice %393 {offsets = [8, 0], sizes = [8, 24], strides = [1, 1]} : vector<128x24xbf16> to vector<8x24xbf16>
    %399 = vector.extract_strided_slice %392 {offsets = [0, 1], sizes = [24, 800], strides = [1, 1]} : vector<24x896xf32> to vector<24x800xf32>
    %400 = arith.truncf %399 : vector<24x800xf32> to vector<24x800xbf16>
    %cst_124 = arith.constant dense<0.000000e+00> : vector<8x800xf32>
    %401 = tpu.matmul %398, %400, %cst_124 {dimension_numbers = #tpu.dot_dimension_numbers<[1], [0], [0], [1], [0, 0, 1, 1], [], []>} : vector<8x24xbf16>, vector<24x800xbf16>, vector<8x800xf32> -> vector<8x800xf32>
    %402 = arith.addf %397, %401 : vector<8x800xf32>
    %403 = vector.extract_strided_slice %393 {offsets = [16, 0], sizes = [8, 24], strides = [1, 1]} : vector<128x24xbf16> to vector<8x24xbf16>
    %404 = vector.extract_strided_slice %392 {offsets = [0, 2], sizes = [24, 800], strides = [1, 1]} : vector<24x896xf32> to vector<24x800xf32>
    %405 = arith.truncf %404 : vector<24x800xf32> to vector<24x800xbf16>
    %cst_125 = arith.constant dense<0.000000e+00> : vector<8x800xf32>
    %406 = tpu.matmul %403, %405, %cst_125 {dimension_numbers = #tpu.dot_dimension_numbers<[1], [0], [0], [1], [0, 0, 1, 1], [], []>} : vector<8x24xbf16>, vector<24x800xbf16>, vector<8x800xf32> -> vector<8x800xf32>
    %407 = arith.addf %402, %406 : vector<8x800xf32>
    %408 = vector.extract_strided_slice %393 {offsets = [24, 0], sizes = [8, 24], strides = [1, 1]} : vector<128x24xbf16> to vector<8x24xbf16>
    %409 = vector.extract_strided_slice %392 {offsets = [0, 3], sizes = [24, 800], strides = [1, 1]} : vector<24x896xf32> to vector<24x800xf32>
    %410 = arith.truncf %409 : vector<24x800xf32> to vector<24x800xbf16>
    %cst_126 = arith.constant dense<0.000000e+00> : vector<8x800xf32>
    %411 = tpu.matmul %408, %410, %cst_126 {dimension_numbers = #tpu.dot_dimension_numbers<[1], [0], [0], [1], [0, 0, 1, 1], [], []>} : vector<8x24xbf16>, vector<24x800xbf16>, vector<8x800xf32> -> vector<8x800xf32>
    %412 = arith.addf %407, %411 : vector<8x800xf32>
    %413 = vector.extract_strided_slice %393 {offsets = [32, 0], sizes = [8, 24], strides = [1, 1]} : vector<128x24xbf16> to vector<8x24xbf16>
    %414 = vector.extract_strided_slice %392 {offsets = [0, 20], sizes = [24, 800], strides = [1, 1]} : vector<24x896xf32> to vector<24x800xf32>
    %415 = arith.truncf %414 : vector<24x800xf32> to vector<24x800xbf16>
    %cst_127 = arith.constant dense<0.000000e+00> : vector<8x800xf32>
    %416 = tpu.matmul %413, %415, %cst_127 {dimension_numbers = #tpu.dot_dimension_numbers<[1], [0], [0], [1], [0, 0, 1, 1], [], []>} : vector<8x24xbf16>, vector<24x800xbf16>, vector<8x800xf32> -> vector<8x800xf32>
    %417 = arith.addf %412, %416 : vector<8x800xf32>
    %418 = vector.extract_strided_slice %393 {offsets = [40, 0], sizes = [8, 24], strides = [1, 1]} : vector<128x24xbf16> to vector<8x24xbf16>
    %419 = vector.extract_strided_slice %392 {offsets = [0, 21], sizes = [24, 800], strides = [1, 1]} : vector<24x896xf32> to vector<24x800xf32>
    %420 = arith.truncf %419 : vector<24x800xf32> to vector<24x800xbf16>
    %cst_128 = arith.constant dense<0.000000e+00> : vector<8x800xf32>
    %421 = tpu.matmul %418, %420, %cst_128 {dimension_numbers = #tpu.dot_dimension_numbers<[1], [0], [0], [1], [0, 0, 1, 1], [], []>} : vector<8x24xbf16>, vector<24x800xbf16>, vector<8x800xf32> -> vector<8x800xf32>
    %422 = arith.addf %417, %421 : vector<8x800xf32>
    %423 = vector.extract_strided_slice %393 {offsets = [48, 0], sizes = [8, 24], strides = [1, 1]} : vector<128x24xbf16> to vector<8x24xbf16>
    %424 = vector.extract_strided_slice %392 {offsets = [0, 22], sizes = [24, 800], strides = [1, 1]} : vector<24x896xf32> to vector<24x800xf32>
    %425 = arith.truncf %424 : vector<24x800xf32> to vector<24x800xbf16>
    %cst_129 = arith.constant dense<0.000000e+00> : vector<8x800xf32>
    %426 = tpu.matmul %423, %425, %cst_129 {dimension_numbers = #tpu.dot_dimension_numbers<[1], [0], [0], [1], [0, 0, 1, 1], [], []>} : vector<8x24xbf16>, vector<24x800xbf16>, vector<8x800xf32> -> vector<8x800xf32>
    %427 = arith.addf %422, %426 : vector<8x800xf32>
    %428 = vector.extract_strided_slice %393 {offsets = [56, 0], sizes = [8, 24], strides = [1, 1]} : vector<128x24xbf16> to vector<8x24xbf16>
    %429 = vector.extract_strided_slice %392 {offsets = [0, 23], sizes = [24, 800], strides = [1, 1]} : vector<24x896xf32> to vector<24x800xf32>
    %430 = arith.truncf %429 : vector<24x800xf32> to vector<24x800xbf16>
    %cst_130 = arith.constant dense<0.000000e+00> : vector<8x800xf32>
    %431 = tpu.matmul %428, %430, %cst_130 {dimension_numbers = #tpu.dot_dimension_numbers<[1], [0], [0], [1], [0, 0, 1, 1], [], []>} : vector<8x24xbf16>, vector<24x800xbf16>, vector<8x800xf32> -> vector<8x800xf32>
    %432 = arith.addf %427, %431 : vector<8x800xf32>
    %433 = vector.extract_strided_slice %393 {offsets = [64, 0], sizes = [8, 24], strides = [1, 1]} : vector<128x24xbf16> to vector<8x24xbf16>
    %434 = vector.extract_strided_slice %392 {offsets = [0, 40], sizes = [24, 800], strides = [1, 1]} : vector<24x896xf32> to vector<24x800xf32>
    %435 = arith.truncf %434 : vector<24x800xf32> to vector<24x800xbf16>
    %cst_131 = arith.constant dense<0.000000e+00> : vector<8x800xf32>
    %436 = tpu.matmul %433, %435, %cst_131 {dimension_numbers = #tpu.dot_dimension_numbers<[1], [0], [0], [1], [0, 0, 1, 1], [], []>} : vector<8x24xbf16>, vector<24x800xbf16>, vector<8x800xf32> -> vector<8x800xf32>
    %437 = arith.addf %432, %436 : vector<8x800xf32>
    %438 = vector.extract_strided_slice %393 {offsets = [72, 0], sizes = [8, 24], strides = [1, 1]} : vector<128x24xbf16> to vector<8x24xbf16>
    %439 = vector.extract_strided_slice %392 {offsets = [0, 41], sizes = [24, 800], strides = [1, 1]} : vector<24x896xf32> to vector<24x800xf32>
    %440 = arith.truncf %439 : vector<24x800xf32> to vector<24x800xbf16>
    %cst_132 = arith.constant dense<0.000000e+00> : vector<8x800xf32>
    %441 = tpu.matmul %438, %440, %cst_132 {dimension_numbers = #tpu.dot_dimension_numbers<[1], [0], [0], [1], [0, 0, 1, 1], [], []>} : vector<8x24xbf16>, vector<24x800xbf16>, vector<8x800xf32> -> vector<8x800xf32>
    %442 = arith.addf %437, %441 : vector<8x800xf32>
    %443 = vector.extract_strided_slice %393 {offsets = [80, 0], sizes = [8, 24], strides = [1, 1]} : vector<128x24xbf16> to vector<8x24xbf16>
    %444 = vector.extract_strided_slice %392 {offsets = [0, 42], sizes = [24, 800], strides = [1, 1]} : vector<24x896xf32> to vector<24x800xf32>
    %445 = arith.truncf %444 : vector<24x800xf32> to vector<24x800xbf16>
    %cst_133 = arith.constant dense<0.000000e+00> : vector<8x800xf32>
    %446 = tpu.matmul %443, %445, %cst_133 {dimension_numbers = #tpu.dot_dimension_numbers<[1], [0], [0], [1], [0, 0, 1, 1], [], []>} : vector<8x24xbf16>, vector<24x800xbf16>, vector<8x800xf32> -> vector<8x800xf32>
    %447 = arith.addf %442, %446 : vector<8x800xf32>
    %448 = vector.extract_strided_slice %393 {offsets = [88, 0], sizes = [8, 24], strides = [1, 1]} : vector<128x24xbf16> to vector<8x24xbf16>
    %449 = vector.extract_strided_slice %392 {offsets = [0, 43], sizes = [24, 800], strides = [1, 1]} : vector<24x896xf32> to vector<24x800xf32>
    %450 = arith.truncf %449 : vector<24x800xf32> to vector<24x800xbf16>
    %cst_134 = arith.constant dense<0.000000e+00> : vector<8x800xf32>
    %451 = tpu.matmul %448, %450, %cst_134 {dimension_numbers = #tpu.dot_dimension_numbers<[1], [0], [0], [1], [0, 0, 1, 1], [], []>} : vector<8x24xbf16>, vector<24x800xbf16>, vector<8x800xf32> -> vector<8x800xf32>
    %452 = arith.addf %447, %451 : vector<8x800xf32>
    %453 = vector.extract_strided_slice %393 {offsets = [96, 0], sizes = [8, 24], strides = [1, 1]} : vector<128x24xbf16> to vector<8x24xbf16>
    %454 = vector.extract_strided_slice %392 {offsets = [0, 60], sizes = [24, 800], strides = [1, 1]} : vector<24x896xf32> to vector<24x800xf32>
    %455 = arith.truncf %454 : vector<24x800xf32> to vector<24x800xbf16>
    %cst_135 = arith.constant dense<0.000000e+00> : vector<8x800xf32>
    %456 = tpu.matmul %453, %455, %cst_135 {dimension_numbers = #tpu.dot_dimension_numbers<[1], [0], [0], [1], [0, 0, 1, 1], [], []>} : vector<8x24xbf16>, vector<24x800xbf16>, vector<8x800xf32> -> vector<8x800xf32>
    %457 = arith.addf %452, %456 : vector<8x800xf32>
    %458 = vector.extract_strided_slice %393 {offsets = [104, 0], sizes = [8, 24], strides = [1, 1]} : vector<128x24xbf16> to vector<8x24xbf16>
    %459 = vector.extract_strided_slice %392 {offsets = [0, 61], sizes = [24, 800], strides = [1, 1]} : vector<24x896xf32> to vector<24x800xf32>
    %460 = arith.truncf %459 : vector<24x800xf32> to vector<24x800xbf16>
    %cst_136 = arith.constant dense<0.000000e+00> : vector<8x800xf32>
    %461 = tpu.matmul %458, %460, %cst_136 {dimension_numbers = #tpu.dot_dimension_numbers<[1], [0], [0], [1], [0, 0, 1, 1], [], []>} : vector<8x24xbf16>, vector<24x800xbf16>, vector<8x800xf32> -> vector<8x800xf32>
    %462 = arith.addf %457, %461 : vector<8x800xf32>
    %463 = vector.extract_strided_slice %393 {offsets = [112, 0], sizes = [8, 24], strides = [1, 1]} : vector<128x24xbf16> to vector<8x24xbf16>
    %464 = vector.extract_strided_slice %392 {offsets = [0, 62], sizes = [24, 800], strides = [1, 1]} : vector<24x896xf32> to vector<24x800xf32>
    %465 = arith.truncf %464 : vector<24x800xf32> to vector<24x800xbf16>
    %cst_137 = arith.constant dense<0.000000e+00> : vector<8x800xf32>
    %466 = tpu.matmul %463, %465, %cst_137 {dimension_numbers = #tpu.dot_dimension_numbers<[1], [0], [0], [1], [0, 0, 1, 1], [], []>} : vector<8x24xbf16>, vector<24x800xbf16>, vector<8x800xf32> -> vector<8x800xf32>
    %467 = arith.addf %462, %466 : vector<8x800xf32>
    %468 = vector.extract_strided_slice %393 {offsets = [120, 0], sizes = [8, 24], strides = [1, 1]} : vector<128x24xbf16> to vector<8x24xbf16>
    %469 = vector.extract_strided_slice %392 {offsets = [0, 63], sizes = [24, 800], strides = [1, 1]} : vector<24x896xf32> to vector<24x800xf32>
    %470 = arith.truncf %469 : vector<24x800xf32> to vector<24x800xbf16>
    %cst_138 = arith.constant dense<0.000000e+00> : vector<8x800xf32>
    %471 = tpu.matmul %468, %470, %cst_138 {dimension_numbers = #tpu.dot_dimension_numbers<[1], [0], [0], [1], [0, 0, 1, 1], [], []>} : vector<8x24xbf16>, vector<24x800xbf16>, vector<8x800xf32> -> vector<8x800xf32>
    %472 = arith.addf %467, %471 : vector<8x800xf32>
    %c0_139 = arith.constant 0 : index
    %c0_140 = arith.constant 0 : index
    %473 = vector.load %arg14[%c0_139, %c0_140] : memref<1x800xf32, #tpu.memory_space<vmem>>, vector<1x800xf32>
    %474 = vector.broadcast %473 : vector<1x800xf32> to vector<8x800xf32>
    %475 = arith.mulf %472, %474 : vector<8x800xf32>
    %cst_141 = arith.constant dense<0.000000e+00> : vector<8xf32>
    %476 = vector.multi_reduction <add>, %475, %cst_141 [1] : vector<8x800xf32> to vector<8xf32>
    %477 = vector.shape_cast %476 : vector<8xf32> to vector<8x1xf32>
    %cst_142 = arith.constant 0.001953125 : f32
    %478 = vector.broadcast %cst_142 : f32 to vector<8x1xf32>
    %479 = arith.mulf %477, %478 : vector<8x1xf32>
    %480 = vector.broadcast %479 : vector<8x1xf32> to vector<8x800xf32>
    %481 = arith.subf %472, %480 : vector<8x800xf32>
    %482 = arith.mulf %481, %481 : vector<8x800xf32>
    %483 = vector.broadcast %473 : vector<1x800xf32> to vector<8x800xf32>
    %484 = arith.mulf %482, %483 : vector<8x800xf32>
    %cst_143 = arith.constant dense<0.000000e+00> : vector<8xf32>
    %485 = vector.multi_reduction <add>, %484, %cst_143 [1] : vector<8x800xf32> to vector<8xf32>
    %486 = vector.shape_cast %485 : vector<8xf32> to vector<8x1xf32>
    %cst_144 = arith.constant 0.001953125 : f32
    %487 = vector.broadcast %cst_144 : f32 to vector<8x1xf32>
    %488 = arith.mulf %486, %487 : vector<8x1xf32>
    %cst_145 = arith.constant 9.99999974E-6 : f32
    %489 = vector.broadcast %cst_145 : f32 to vector<8x1xf32>
    %490 = arith.addf %488, %489 : vector<8x1xf32>
    %491 = math.rsqrt %490 : vector<8x1xf32>
    %492 = vector.broadcast %491 : vector<8x1xf32> to vector<8x800xf32>
    %493 = arith.mulf %481, %492 : vector<8x800xf32>
    %cst_146 = arith.constant 0.000000e+00 : f32
    %494 = vector.broadcast %cst_146 : f32 to vector<8x800xf32>
    %495 = arith.maximumf %493, %494 : vector<8x800xf32>
    %c0_147 = arith.constant 0 : index
    %c0_148 = arith.constant 0 : index
    %496 = vector.load %arg14[%c0_147, %c0_148] : memref<1x800xf32, #tpu.memory_space<vmem>>, vector<1x800xf32>
    %497 = vector.broadcast %496 : vector<1x800xf32> to vector<8x800xf32>
    %498 = arith.mulf %495, %497 : vector<8x800xf32>
    %cst_149 = arith.constant 0.000000e+00 : f32
    %499 = vector.broadcast %cst_149 : f32 to vector<8x896xf32>
    %c0_150 = arith.constant 0 : index
    %c0_151 = arith.constant 0 : index
    %500 = vector.load %arg22[%c0_150, %c0_151] : memref<8x896xf32, #tpu.memory_space<vmem>>, vector<8x896xf32>
    tpu.vector_store %arg22[%c0_150, %c0_151], %499 {strides = array<i32>} : memref<8x896xf32, #tpu.memory_space<vmem>>, vector<8x896xf32>,
    %c0_152 = arith.constant 0 : index
    %c42 = arith.constant 42 : index
    %501 = vector.load %arg22[%c0_152, %c42] : memref<8x896xf32, #tpu.memory_space<vmem>>, vector<8x800xf32>
    tpu.vector_store %arg22[%c0_152, %c42], %498 {strides = array<i32>} : memref<8x896xf32, #tpu.memory_space<vmem>>, vector<8x800xf32>,
    %c0_153 = arith.constant 0 : index
    %c0_154 = arith.constant 0 : index
    %502 = vector.load %arg22[%c0_153, %c0_154] : memref<8x896xf32, #tpu.memory_space<vmem>>, vector<8x896xf32>
    %c0_155 = arith.constant 0 : index
    %c0_156 = arith.constant 0 : index
    %503 = vector.load %arg15[%c0_155, %c0_156] : memref<72x8xbf16, #tpu.memory_space<vmem>>, vector<72x8xbf16>
    %504 = vector.extract_strided_slice %503 {offsets = [0, 0], sizes = [8, 8], strides = [1, 1]} : vector<72x8xbf16> to vector<8x8xbf16>
    %505 = vector.extract_strided_slice %502 {offsets = [0, 0], sizes = [8, 800], strides = [1, 1]} : vector<8x896xf32> to vector<8x800xf32>
    %506 = arith.truncf %505 : vector<8x800xf32> to vector<8x800xbf16>
    %cst_157 = arith.constant dense<0.000000e+00> : vector<8x800xf32>
    %507 = tpu.matmul %504, %506, %cst_157 {dimension_numbers = #tpu.dot_dimension_numbers<[1], [0], [0], [1], [0, 0, 1, 1], [], []>} : vector<8x8xbf16>, vector<8x800xbf16>, vector<8x800xf32> -> vector<8x800xf32>
    %508 = vector.extract_strided_slice %503 {offsets = [8, 0], sizes = [8, 8], strides = [1, 1]} : vector<72x8xbf16> to vector<8x8xbf16>
    %509 = vector.extract_strided_slice %502 {offsets = [0, 1], sizes = [8, 800], strides = [1, 1]} : vector<8x896xf32> to vector<8x800xf32>
    %510 = arith.truncf %509 : vector<8x800xf32> to vector<8x800xbf16>
    %cst_158 = arith.constant dense<0.000000e+00> : vector<8x800xf32>
    %511 = tpu.matmul %508, %510, %cst_158 {dimension_numbers = #tpu.dot_dimension_numbers<[1], [0], [0], [1], [0, 0, 1, 1], [], []>} : vector<8x8xbf16>, vector<8x800xbf16>, vector<8x800xf32> -> vector<8x800xf32>
    %512 = arith.addf %507, %511 : vector<8x800xf32>
    %513 = vector.extract_strided_slice %503 {offsets = [16, 0], sizes = [8, 8], strides = [1, 1]} : vector<72x8xbf16> to vector<8x8xbf16>
    %514 = vector.extract_strided_slice %502 {offsets = [0, 2], sizes = [8, 800], strides = [1, 1]} : vector<8x896xf32> to vector<8x800xf32>
    %515 = arith.truncf %514 : vector<8x800xf32> to vector<8x800xbf16>
    %cst_159 = arith.constant dense<0.000000e+00> : vector<8x800xf32>
    %516 = tpu.matmul %513, %515, %cst_159 {dimension_numbers = #tpu.dot_dimension_numbers<[1], [0], [0], [1], [0, 0, 1, 1], [], []>} : vector<8x8xbf16>, vector<8x800xbf16>, vector<8x800xf32> -> vector<8x800xf32>
    %517 = arith.addf %512, %516 : vector<8x800xf32>
    %518 = vector.extract_strided_slice %503 {offsets = [24, 0], sizes = [8, 8], strides = [1, 1]} : vector<72x8xbf16> to vector<8x8xbf16>
    %519 = vector.extract_strided_slice %502 {offsets = [0, 20], sizes = [8, 800], strides = [1, 1]} : vector<8x896xf32> to vector<8x800xf32>
    %520 = arith.truncf %519 : vector<8x800xf32> to vector<8x800xbf16>
    %cst_160 = arith.constant dense<0.000000e+00> : vector<8x800xf32>
    %521 = tpu.matmul %518, %520, %cst_160 {dimension_numbers = #tpu.dot_dimension_numbers<[1], [0], [0], [1], [0, 0, 1, 1], [], []>} : vector<8x8xbf16>, vector<8x800xbf16>, vector<8x800xf32> -> vector<8x800xf32>
    %522 = arith.addf %517, %521 : vector<8x800xf32>
    %523 = vector.extract_strided_slice %503 {offsets = [32, 0], sizes = [8, 8], strides = [1, 1]} : vector<72x8xbf16> to vector<8x8xbf16>
    %524 = vector.extract_strided_slice %502 {offsets = [0, 21], sizes = [8, 800], strides = [1, 1]} : vector<8x896xf32> to vector<8x800xf32>
    %525 = arith.truncf %524 : vector<8x800xf32> to vector<8x800xbf16>
    %cst_161 = arith.constant dense<0.000000e+00> : vector<8x800xf32>
    %526 = tpu.matmul %523, %525, %cst_161 {dimension_numbers = #tpu.dot_dimension_numbers<[1], [0], [0], [1], [0, 0, 1, 1], [], []>} : vector<8x8xbf16>, vector<8x800xbf16>, vector<8x800xf32> -> vector<8x800xf32>
    %527 = arith.addf %522, %526 : vector<8x800xf32>
    %528 = vector.extract_strided_slice %503 {offsets = [40, 0], sizes = [8, 8], strides = [1, 1]} : vector<72x8xbf16> to vector<8x8xbf16>
    %529 = vector.extract_strided_slice %502 {offsets = [0, 22], sizes = [8, 800], strides = [1, 1]} : vector<8x896xf32> to vector<8x800xf32>
    %530 = arith.truncf %529 : vector<8x800xf32> to vector<8x800xbf16>
    %cst_162 = arith.constant dense<0.000000e+00> : vector<8x800xf32>
    %531 = tpu.matmul %528, %530, %cst_162 {dimension_numbers = #tpu.dot_dimension_numbers<[1], [0], [0], [1], [0, 0, 1, 1], [], []>} : vector<8x8xbf16>, vector<8x800xbf16>, vector<8x800xf32> -> vector<8x800xf32>
    %532 = arith.addf %527, %531 : vector<8x800xf32>
    %533 = vector.extract_strided_slice %503 {offsets = [48, 0], sizes = [8, 8], strides = [1, 1]} : vector<72x8xbf16> to vector<8x8xbf16>
    %534 = vector.extract_strided_slice %502 {offsets = [0, 40], sizes = [8, 800], strides = [1, 1]} : vector<8x896xf32> to vector<8x800xf32>
    %535 = arith.truncf %534 : vector<8x800xf32> to vector<8x800xbf16>
    %cst_163 = arith.constant dense<0.000000e+00> : vector<8x800xf32>
    %536 = tpu.matmul %533, %535, %cst_163 {dimension_numbers = #tpu.dot_dimension_numbers<[1], [0], [0], [1], [0, 0, 1, 1], [], []>} : vector<8x8xbf16>, vector<8x800xbf16>, vector<8x800xf32> -> vector<8x800xf32>
    %537 = arith.addf %532, %536 : vector<8x800xf32>
    %538 = vector.extract_strided_slice %503 {offsets = [56, 0], sizes = [8, 8], strides = [1, 1]} : vector<72x8xbf16> to vector<8x8xbf16>
    %539 = vector.extract_strided_slice %502 {offsets = [0, 41], sizes = [8, 800], strides = [1, 1]} : vector<8x896xf32> to vector<8x800xf32>
    %540 = arith.truncf %539 : vector<8x800xf32> to vector<8x800xbf16>
    %cst_164 = arith.constant dense<0.000000e+00> : vector<8x800xf32>
    %541 = tpu.matmul %538, %540, %cst_164 {dimension_numbers = #tpu.dot_dimension_numbers<[1], [0], [0], [1], [0, 0, 1, 1], [], []>} : vector<8x8xbf16>, vector<8x800xbf16>, vector<8x800xf32> -> vector<8x800xf32>
    %542 = arith.addf %537, %541 : vector<8x800xf32>
    %543 = vector.extract_strided_slice %503 {offsets = [64, 0], sizes = [8, 8], strides = [1, 1]} : vector<72x8xbf16> to vector<8x8xbf16>
    %544 = vector.extract_strided_slice %502 {offsets = [0, 42], sizes = [8, 800], strides = [1, 1]} : vector<8x896xf32> to vector<8x800xf32>
    %545 = arith.truncf %544 : vector<8x800xf32> to vector<8x800xbf16>
    %cst_165 = arith.constant dense<0.000000e+00> : vector<8x800xf32>
    %546 = tpu.matmul %543, %545, %cst_165 {dimension_numbers = #tpu.dot_dimension_numbers<[1], [0], [0], [1], [0, 0, 1, 1], [], []>} : vector<8x8xbf16>, vector<8x800xbf16>, vector<8x800xf32> -> vector<8x800xf32>
    %547 = arith.addf %542, %546 : vector<8x800xf32>
    %c0_166 = arith.constant 0 : index
    %c0_167 = arith.constant 0 : index
    %548 = vector.load %arg16[%c0_166, %c0_167] : memref<1x800xf32, #tpu.memory_space<vmem>>, vector<1x800xf32>
    %549 = vector.broadcast %548 : vector<1x800xf32> to vector<8x800xf32>
    %550 = arith.mulf %547, %549 : vector<8x800xf32>
    %cst_168 = arith.constant dense<0.000000e+00> : vector<8xf32>
    %551 = vector.multi_reduction <add>, %550, %cst_168 [1] : vector<8x800xf32> to vector<8xf32>
    %552 = vector.shape_cast %551 : vector<8xf32> to vector<8x1xf32>
    %cst_169 = arith.constant 0.001953125 : f32
    %553 = vector.broadcast %cst_169 : f32 to vector<8x1xf32>
    %554 = arith.mulf %552, %553 : vector<8x1xf32>
    %555 = vector.broadcast %554 : vector<8x1xf32> to vector<8x800xf32>
    %556 = arith.subf %547, %555 : vector<8x800xf32>
    %557 = arith.mulf %556, %556 : vector<8x800xf32>
    %558 = vector.broadcast %548 : vector<1x800xf32> to vector<8x800xf32>
    %559 = arith.mulf %557, %558 : vector<8x800xf32>
    %cst_170 = arith.constant dense<0.000000e+00> : vector<8xf32>
    %560 = vector.multi_reduction <add>, %559, %cst_170 [1] : vector<8x800xf32> to vector<8xf32>
    %561 = vector.shape_cast %560 : vector<8xf32> to vector<8x1xf32>
    %cst_171 = arith.constant 0.001953125 : f32
    %562 = vector.broadcast %cst_171 : f32 to vector<8x1xf32>
    %563 = arith.mulf %561, %562 : vector<8x1xf32>
    %cst_172 = arith.constant 9.99999974E-6 : f32
    %564 = vector.broadcast %cst_172 : f32 to vector<8x1xf32>
    %565 = arith.addf %563, %564 : vector<8x1xf32>
    %566 = math.rsqrt %565 : vector<8x1xf32>
    %567 = vector.broadcast %566 : vector<8x1xf32> to vector<8x800xf32>
    %568 = arith.mulf %556, %567 : vector<8x800xf32>
    %cst_173 = arith.constant 0.000000e+00 : f32
    %569 = vector.broadcast %cst_173 : f32 to vector<8x800xf32>
    %570 = arith.cmpf ogt, %568, %569 : vector<8x800xf32>
    %cst_174 = arith.constant 2.000000e-01 : f32
    %571 = vector.broadcast %cst_174 : f32 to vector<8x800xf32>
    %572 = arith.mulf %571, %568 : vector<8x800xf32>
    %573 = arith.select %570, %568, %572 : vector<8x800xi1>, vector<8x800xf32>
    %c0_175 = arith.constant 0 : index
    %c0_176 = arith.constant 0 : index
    %574 = vector.load %arg17[%c0_175, %c0_176] : memref<3x8xbf16, #tpu.memory_space<vmem>>, vector<3x8xbf16>
    %575 = arith.truncf %573 : vector<8x800xf32> to vector<8x800xbf16>
    %cst_177 = arith.constant dense<0.000000e+00> : vector<3x800xf32>
    %576 = tpu.matmul %574, %575, %cst_177 {dimension_numbers = #tpu.dot_dimension_numbers<[1], [0], [0], [1], [0, 0, 1, 1], [], []>} : vector<3x8xbf16>, vector<8x800xbf16>, vector<3x800xf32> -> vector<3x800xf32>
    %c0_178 = arith.constant 0 : index
    %c0_179 = arith.constant 0 : index
    %577 = vector.load %arg18[%c0_178, %c0_179] : memref<3x1xf32, #tpu.memory_space<vmem>>, vector<3x1xf32>
    %578 = vector.broadcast %577 : vector<3x1xf32> to vector<3x800xf32>
    %579 = arith.addf %576, %578 : vector<3x800xf32>
    %580 = math.tanh %579 : vector<3x800xf32>
    %c0_180 = arith.constant 0 : index
    %c0_181 = arith.constant 0 : index
    %581 = vector.load %arg19[%c0_180, %c0_181] : memref<3x800xf32, #tpu.memory_space<vmem>>, vector<3x800xf32>
    tpu.vector_store %arg19[%c0_180, %c0_181], %580 {strides = array<i32>} : memref<3x800xf32, #tpu.memory_space<vmem>>, vector<3x800xf32>,
    return
  }
}

</mosaic_0001>

<bundles_post_ra>
// kernel: unet_forward.1
= control target key start
LH: loop header
LB: loop body
LE: loop exit
PB: predicated region body
PF: predicated region fallthrough
CT: control target
= control target key end

     0   :  { %vm131_vm0 = vcmask 1041408   ;;  %v20914_v3 = vmov 0   ;;  %s20915_s23 = smov 127   ;;  %vm127_vm1 = vcmask 31744   ;;  %v20916_v18 = vmov 0.0   ;;  %s20917_s28 = smov 126   ;;  %s26047_s0 = inlined_call_operand.vmem [shape: f32[4,896], index: 0, kind: input, shape index: {}]   ;;  %s26048_s1 = inlined_call_operand.vmem [shape: bf16[128,4], index: 1, kind: input, shape index: {}]   ;;  %s26049_s2 = inlined_call_operand.vmem [shape: f32[8,1], index: 2, kind: input, shape index: {}]   ;;  %s26050_s3 = inlined_call_operand.vmem [shape: bf16[800,384], index: 3, kind: input, shape index: {}]   ;;  %s26051_s4 = inlined_call_operand.vmem [shape: bf16[256,8], index: 4, kind: input, shape index: {}]   ;;  %s26052_s6 = inlined_call_operand.vmem [shape: f32[1,288], index: 6, kind: input, shape index: {}]   ;;  %s26053_s5 = inlined_call_operand.vmem [shape: bf16[288,32], index: 5, kind: input, shape index: {}]   ;;  %s26054_s8 = inlined_call_operand.vmem [shape: bf16[32,384], index: 8, kind: input, shape index: {}]   ;;  %s26055_s7 = inlined_call_operand.vmem [shape: bf16[256,16], index: 7, kind: input, shape index: {}]   ;;  %s26056_s9 = inlined_call_operand.vmem [shape: f32[1,288], index: 9, kind: input, shape index: {}]   ;;  %s26057_s10 = inlined_call_operand.vmem [shape: bf16[144,16], index: 10, kind: input, shape index: {}]   ;;  %s26058_s11 = inlined_call_operand.vmem [shape: f32[1,288], index: 11, kind: input, shape index: {}]   ;;  %s26059_s13 = inlined_call_operand.vmem [shape: bf16[384,896], index: 13, kind: input, shape index: {}]   ;;  %s26060_s12 = inlined_call_operand.vmem [shape: bf16[128,24], index: 12, kind: input, shape index: {}]   ;;  %s26061_s14 = inlined_call_operand.vmem [shape: f32[1,800], index: 14, kind: input, shape index: {}]   ;;  %s26062_s15 = inlined_call_operand.vmem [shape: bf16[72,8], index: 15, kind: input, shape index: {}]   ;;  %s26063_s16 = inlined_call_operand.vmem [shape: f32[1,800], index: 16, kind: input, shape index: {}]   ;;  %s26064_s18 = inlined_call_operand.vmem [shape: f32[3,1], index: 18, kind: input, shape index: {}]   ;;  %s26065_s17 = inlined_call_operand.vmem [shape: bf16[3,8], index: 17, kind: input, shape index: {}]   ;;  %s26066_s19 = inlined_call_operand.vmem [shape: f32[3,800], index: 19, kind: output, shape index: {}]  }
   0x1   :  { %26130 = sst [smem:[#allocation5_spill]] %s26047_s0  ;;  %372 = vmatprep.mubr.bf16.mxu0 %v20914_v3  ;;  %185 = vmatprep.mubr.bf16.mxu1 %v20914_v3  ;;  %9054 = vst [vmem:[#allocation2] sm:$0xff] %v20916_v18  ;;  %9056 = vst [vmem:[#allocation2 + $0x10] sm:$0xff] %v20916_v18  ;;  %s20918_s29 = smov 125   ;;  %vm120_vm2 = vcmask 1039360   ;;  %vm517_vm3 = vcmask 1031168  }
   0x2   :  { %26131 = sst [smem:[#allocation6_spill]] %s26048_s1  ;;  %s26134_s20 = sld [smem:[#allocation5_spill]]  ;;  %20366 = vset.pattern.permute.xlu1 %v20914_v3  ;;  %20367 = vset.pattern.permute.xlu0 %v20914_v3  ;;  %9057 = vst [vmem:[#allocation2 + $0x18] sm:$0xff] %v20916_v18  ;;  %9059 = vst [vmem:[#allocation2 + $0x28] sm:$0xff] %v20916_v18  ;;  %vm732_vm4 = vcmask 1022976   ;;  %vm20927_vm5 = vmmov 0  }
   0x3   :  { %26132 = sst [smem:[#allocation7_spill]] %s26049_s2  ;;  %10178 = vst [vmem:[#allocation3] sm:$0xff] %v20916_v18  ;;  %10180 = vst [vmem:[#allocation3 + $0x10] sm:$0xff] %v20916_v18  ;;  %s26095_s0 = smov 108   ;;  %vm26109_vm6 = vcmask 883712   ;;  %vm26108_vm7 = vcmask 875520  }
   0x4   :  { %26133 = sst [smem:[#allocation8_spill]] %s26050_s3  ;;  %s26135_s3 = sld [smem:[#allocation6_spill]]  ;;  %10181 = vst [vmem:[#allocation3 + $0x18] sm:$0xff] %v20916_v18  ;;  %10183 = vst [vmem:[#allocation3 + $0x28] sm:$0xff] %v20916_v18  ;;  %vm26107_vm8 = vcmask 867328   ;;  %vm26106_vm9 = vcmask 859136  }
   0x5   :  { %15639 = vst [vmem:[#allocation4] sm:$0xff] %v20916_v18  ;;  %15645 = vst [vmem:[#allocation4 + $0x30] sm:$0xff] %v20916_v18  ;;  %s26093_s30 = smov 107   ;;  %s26088_s21 = smov 105   ;;  %vm26105_vm10 = vcmask 719872   ;;  %vm26104_vm11 = vcmask 711680  }
   0x6   :  { %s26086_s1 = smov 88   ;;  %s26084_s22 = smov 87   ;;  %vm26078_vm12 = vcmask 703488   ;;  %vm26079_vm13 = vcmask 695296   ;;  %vm26103_vm14 = vcmask 556032   ;;  %vm26102_vm15 = vcmask 547840  }
   0x7   :  { %s26070_s25 = smov 86   ;;  %s26074_s2 = smov 85  }
   0x8   :  { %v64_v0 = vld [vmem:[%s26134_s20 + $0x8] sm:$0xff]  ;;  %v63_v1 = vld [vmem:[%s26134_s20] sm:$0xff]  ;;  %v65_v2 = vld [vmem:[%s26134_s20 + $0x10] sm:$0xff]  ;;  %s26072_s27 = smov 68   ;;  %s26076_s24 = smov 65  }
   0x9   :  { %v21058_v4 = vpack.c.bf16 %v64_v0, %v64_v0  ;;  %v21060_v5 = vpack.c.bf16 %v63_v1, %v63_v1  ;;  %v87_v6 = vcombine.high %v64_v0, %v64_v0  ;;  %v86_v7 = vcombine.high %v63_v1, %v63_v1  ;;  %v66_v16 = vld [vmem:[%s26134_s20 + $0x18] sm:$0xf]  ;;  %s26091_s20 = smov 106   ;;  %s26119_s26 = smov 102  }
   0xa   :  { %v88_v8 = vcombine.high %v65_v2, %v65_v2  ;;  %v21074_v12 = vpack.c.bf16 %v65_v2, %v65_v2  ;;  %v21083_v14 = vld [vmem:[%s26135_s3] sm:$0xf]  ;;  %v21103_v17 = vpack.c.bf16 %v66_v16, %v66_v16  ;;  %v21238_v27 = vld [vmem:[%s26135_s3 + $0x4] sm:$0xf]  ;;  %v21270_v42 = vld [vmem:[%s26135_s3 + $0x8] sm:$0xf] }
   0xb   :  { %110 = vrot.lane.b32.xlu1 %v21058_v4, %s20915_s23  ;;  %106 = vrot.lane.b32.xlu0 %v21060_v5, %s20915_s23  ;;  %v21068_v9 = vpack.c.bf16 %v87_v6, %v87_v6  ;;  %v21070_v10 = vpack.c.bf16 %v86_v7, %v86_v7  ;;  %v320_v11 = vsel %vm131_vm0, %v21060_v5, 0  ;;  %v326_v58 = vsel %vm131_vm0, %v21058_v4, 0  ;;  %v21331_v60 = vld [vmem:[%s26135_s3 + $0xc] sm:$0xf] }
   0xc   :  { %v21078_v13 = vpack.c.bf16 %v88_v8, %v88_v8  ;;  %v332_v15 = vsel %vm131_vm0, %v21074_v12, 0  ;;  %v338_v6 = vsel %vm131_vm0, %v21103_v17, 0 }
   0xd   :  { %17963 = vmatprep.subr.msk.bf16.mxu0 %vm131_vm0, %v21070_v10 }
   0xe   :  { %341 = vmatpush1.bf16.msra.mxu0 %v320_v11 }
   0xf   :  { %112 = vrot.lane.b32.xlu1 %v21068_v9, %s20915_s23  ;;  %108 = vrot.lane.b32.xlu0 %v21070_v10, %s20915_s23 }
  0x10   :  { %17967 = vmatprep.subr.msk.bf16.mxu0 %vm131_vm0, %v21078_v13 }
  0x11   :  { %17964 = vmatmul.mubr.msk.bf16.vlgmr.msra.gmra.mrb[0].mxu0 %vm127_vm1, %v21083_v14 }
  0x12   :  { %423 = vmatpush1.bf16.msra.mxu0 %v332_v15  ;;  %454 = vmatprep.mubr.bf16.mxu0 %v20914_v3 }
  0x13   :  { %116 = vrot.lane.b32.xlu1 %v21078_v13, %s20915_s23  ;;  %114 = vrot.lane.b32.xlu0 %v21074_v12, %s20915_s23 }
  0x17   :  { %503 = vrot.lane.b32.xlu1 %v21060_v5, %s20917_s28  ;;  %118 = vrot.lane.b32.xlu0 %v21103_v17, %s20915_s23 }
  0x19   :  { %17968 = vmatmul.mubr.msk.bf16.vlgmr.msra.gmra.mrb[4].mxu0 %vm127_vm1, %v21083_v14 }
  0x1a   :  { %580 = vmatprep.mubr.bf16.mxu0 %v20914_v3 }
  0x1b   :  { %507 = vrot.lane.b32.xlu1 %v21058_v4, %s20917_s28  ;;  %505 = vrot.lane.b32.xlu0 %v21070_v10, %s20917_s28 }
  0x1f   :  { %513 = vrot.lane.b32.xlu1 %v21078_v13, %s20917_s28  ;;  %511 = vrot.lane.b32.xlu0 %v21074_v12, %s20917_s28 }
  0x23   :  { %718 = vrot.lane.b32.xlu1 %v21060_v5, %s20918_s29  ;;  %515 = vrot.lane.b32.xlu0 %v21103_v17, %s20917_s28 }
  0x27   :  { %722 = vrot.lane.b32.xlu1 %v21058_v4, %s20918_s29  ;;  %720 = vrot.lane.b32.xlu0 %v21070_v10, %s20918_s29 }
  0x2b   :  { %728 = vrot.lane.b32.xlu1 %v21078_v13, %s20918_s29  ;;  %726 = vrot.lane.b32.xlu0 %v21074_v12, %s20918_s29 }
  0x2f   :  { %509 = vrot.lane.b32.xlu1 %v21068_v9, %s20917_s28  ;;  %730 = vrot.lane.b32.xlu0 %v21103_v17, %s20918_s29 }
  0x33   :  { %935 = vrot.lane.b32.xlu1 %v21070_v10, %s26095_s0  ;;  %933 = vrot.lane.b32.xlu0 %v21060_v5, %s26095_s0 }
  0x37   :  { %941 = vrot.lane.b32.xlu1 %v21074_v12, %s26095_s0  ;;  %937 = vrot.lane.b32.xlu0 %v21058_v4, %s26095_s0 }
  0x3b   :  { %945 = vrot.lane.b32.xlu1 %v21103_v17, %s26095_s0  ;;  %943 = vrot.lane.b32.xlu0 %v21078_v13, %s26095_s0 }
  0x3f   :  { %1148 = vrot.lane.b32.xlu1 %v21060_v5, %s26093_s30  ;;  %724 = vrot.lane.b32.xlu0 %v21068_v9, %s20918_s29 }
  0x43   :  { %1152 = vrot.lane.b32.xlu1 %v21058_v4, %s26093_s30  ;;  %1150 = vrot.lane.b32.xlu0 %v21070_v10, %s26093_s30 }
  0x47   :  { %1158 = vrot.lane.b32.xlu1 %v21078_v13, %s26093_s30  ;;  %1156 = vrot.lane.b32.xlu0 %v21074_v12, %s26093_s30 }
  0x4b   :  { %939 = vrot.lane.b32.xlu1 %v21068_v9, %s26095_s0  ;;  %1160 = vrot.lane.b32.xlu0 %v21103_v17, %s26093_s30  ;;  %s26113_s0 = smov 89  }
  0x4f   :  { %1365 = vrot.lane.b32.xlu1 %v21070_v10, %s26091_s20  ;;  %1363 = vrot.lane.b32.xlu0 %v21060_v5, %s26091_s20 }
  0x53   :  { %1371 = vrot.lane.b32.xlu1 %v21074_v12, %s26091_s20  ;;  %1367 = vrot.lane.b32.xlu0 %v21058_v4, %s26091_s20 }
  0x57   :  { %1375 = vrot.lane.b32.xlu1 %v21103_v17, %s26091_s20  ;;  %1373 = vrot.lane.b32.xlu0 %v21078_v13, %s26091_s20 }
  0x5b   :  { %1578 = vrot.lane.b32.xlu1 %v21060_v5, %s26088_s21  ;;  %1154 = vrot.lane.b32.xlu0 %v21068_v9, %s26093_s30  ;;  %s20935_s30 = smov 113  }
  0x5f   :  { %1582 = vrot.lane.b32.xlu1 %v21058_v4, %s26088_s21  ;;  %1580 = vrot.lane.b32.xlu0 %v21070_v10, %s26088_s21 }
  0x63   :  { %1588 = vrot.lane.b32.xlu1 %v21078_v13, %s26088_s21  ;;  %1586 = vrot.lane.b32.xlu0 %v21074_v12, %s26088_s21 }
  0x67   :  { %1369 = vrot.lane.b32.xlu1 %v21068_v9, %s26091_s20  ;;  %1590 = vrot.lane.b32.xlu0 %v21103_v17, %s26088_s21  ;;  %s26121_s20 = smov 103  }
  0x6b   :  { %1793 = vrot.lane.b32.xlu0 %v21060_v5, %s26086_s1  ;;  %1795 = vrot.lane.b32.xlu1 %v21070_v10, %s26086_s1 }
  0x6f   :  { %1797 = vrot.lane.b32.xlu0 %v21058_v4, %s26086_s1  ;;  %1801 = vrot.lane.b32.xlu1 %v21074_v12, %s26086_s1 }
  0x73   :  { %1803 = vrot.lane.b32.xlu0 %v21078_v13, %s26086_s1  ;;  %1805 = vrot.lane.b32.xlu1 %v21103_v17, %s26086_s1 }
  0x77   :  { %1584 = vrot.lane.b32.xlu0 %v21068_v9, %s26088_s21  ;;  %2008 = vrot.lane.b32.xlu1 %v21060_v5, %s26084_s22  ;;  %s20934_s21 = smov 114  }
  0x7b   :  { %2012 = vrot.lane.b32.xlu1 %v21058_v4, %s26084_s22  ;;  %2010 = vrot.lane.b32.xlu0 %v21070_v10, %s26084_s22 }
  0x7d   :  { %v111_v19 = vpop.permute.xlu1 %110  ;;  %v107_v20 = vpop.permute.xlu0 %106 }
  0x7f   :  { %2018 = vrot.lane.b32.xlu1 %v21078_v13, %s26084_s22  ;;  %2016 = vrot.lane.b32.xlu0 %v21074_v12, %s26084_s22 }
  0x81   :  { %v113_v21 = vpop.permute.xlu1 %112  ;;  %v109_v22 = vpop.permute.xlu0 %108 }
  0x82   :  { %v122_v23 = vsel %vm120_vm2, %v109_v22, %v111_v19  ;;  %v121_v24 = vsel %vm120_vm2, %v107_v20, %v109_v22  ;;  %v123_v26 = vsel %vm120_vm2, %v111_v19, %v113_v21 }
  0x83   :  { %17956 = vmatprep.subr.msk.bf16.mxu1 %vm131_vm0, %v122_v23  ;;  %v133_v25 = vsel %vm131_vm0, %v121_v24, 0  ;;  %1799 = vrot.lane.b32.xlu1 %v21068_v9, %s26086_s1  ;;  %v139_v31 = vsel %vm131_vm0, %v123_v26, 0  ;;  %v21396_v26 = vld [vmem:[%s26135_s3 + $0x10] sm:$0xf]  ;;  %s26115_s1 = smov 92  }
  0x84   :  { %154 = vmatpush1.bf16.msra.mxu1 %v133_v25  ;;  %2020 = vrot.lane.b32.xlu0 %v21103_v17, %s26084_s22 }
  0x85   :  { %v117_v28 = vpop.permute.xlu1 %116  ;;  %v115_v29 = vpop.permute.xlu0 %114 }
  0x86   :  { %v124_v30 = vsel %vm120_vm2, %v113_v21, %v115_v29  ;;  %v125_v35 = vsel %vm120_vm2, %v115_v29, %v117_v28 }
  0x87   :  { %17957 = vmatmul.mubr.msk.bf16.vlgmr.msra.gmra.mrb[0].mxu1 %vm127_vm1, %v21238_v27  ;;  %17958 = vmatprep.subr.msk.bf16.mxu1 %vm131_vm0, %v124_v30  ;;  %v145_v40 = vsel %vm131_vm0, %v125_v35, 0 }
  0x88   :  { %195 = vmatpush1.bf16.msra.mxu1 %v139_v31  ;;  %2223 = vrot.lane.b32.xlu0 %v21060_v5, %s26070_s25 }
  0x89   :  { %v504_v32 = vpop.permute.xlu1 %503  ;;  %v119_v33 = vpop.permute.xlu0 %118  ;;  %226 = vmatprep.mubr.bf16.mxu1 %v20914_v3  ;;  %2225 = vrot.lane.b32.xlu1 %v21070_v10, %s26070_s25 }
  0x8a   :  { %v126_v34 = vsel %vm120_vm2, %v117_v28, %v119_v33  ;;  %v151_v50 = vsel %vm131_vm0, %v119_v33, 0 }
  0x8b   :  { %17960 = vmatprep.subr.msk.bf16.mxu1 %vm131_vm0, %v126_v34 }
  0x8c   :  { %2227 = vrot.lane.b32.xlu0 %v21058_v4, %s26070_s25 }
  0x8d   :  { %v21255_v36 = vpop.permute.xlu1 %507  ;;  %v506_v37 = vpop.permute.xlu0 %505  ;;  %2231 = vrot.lane.b32.xlu1 %v21074_v12, %s26070_s25 }
  0x8e   :  { %v518_v38 = vsel %vm517_vm3, %v504_v32, %v506_v37  ;;  %v519_v39 = vsel %vm517_vm3, %v506_v37, %v21255_v36 }
  0x8f   :  { %17959 = vmatmul.mubr.msk.bf16.vlgmr.msra.gmra.mrb[4].mxu1 %vm127_vm1, %v21238_v27  ;;  %17970 = vmatprep.subr.msk.bf16.mxu0 %vm131_vm0, %v519_v39  ;;  %v528_v41 = vsel %vm131_vm0, %v518_v38, 0 }
  0x90   :  { %236 = vmatpush1.bf16.msra.mxu1 %v145_v40  ;;  %549 = vmatpush1.bf16.msra.mxu0 %v528_v41 }
  0x91   :  { %v514_v43 = vpop.permute.xlu1 %513  ;;  %v21272_v44 = vpop.permute.xlu0 %511  ;;  %2233 = vrot.lane.b32.xlu0 %v21078_v13, %s26070_s25  ;;  %267 = vmatprep.mubr.bf16.mxu1 %v20914_v3 }
  0x92   :  { %v522_v45 = vsel %vm517_vm3, %v21272_v44, %v514_v43  ;;  %19053 = vmatprep.subr.bf16.mxu1 %v20916_v18  ;;  %2235 = vrot.lane.b32.xlu1 %v21103_v17, %s26070_s25 }
  0x93   :  { %17971 = vmatmul.mubr.msk.bf16.vlgmr.msra.gmra.mrb[8].mxu0 %vm127_vm1, %v21270_v42  ;;  %v540_v48 = vsel %vm131_vm0, %v522_v45, 0  ;;  %v21456_v45 = vld [vmem:[%s26135_s3 + $0x14] sm:$0xf] }
  0x94   :  { %662 = vmatprep.mubr.bf16.mxu0 %v20914_v3 }
  0x95   :  { %v719_v46 = vpop.permute.xlu1 %718  ;;  %v21285_v47 = vpop.permute.xlu0 %515  ;;  %2014 = vrot.lane.b32.xlu0 %v21068_v9, %s26084_s22  ;;  %s20933_s22 = smov 115  }
  0x96   :  { %v523_v49 = vsel %vm517_vm3, %v514_v43, %v21285_v47  ;;  %2438 = vrot.lane.b32.xlu1 %v21060_v5, %s26074_s2  ;;  %v546_v33 = vsel %vm131_vm0, %v21285_v47, 0 }
  0x97   :  { %17961 = vmatmul.mubr.msk.bf16.vlgmr.msra.gmra.mrb[8].mxu1 %vm127_vm1, %v21238_v27  ;;  %17974 = vmatprep.subr.msk.bf16.mxu0 %vm131_vm0, %v523_v49 }
  0x98   :  { %19054 = vmatpush3.bf16.msra.mxu1 %v151_v50  ;;  %631 = vmatpush1.bf16.msra.mxu0 %v540_v48 }
  0x99   :  { %v21298_v51 = vpop.permute.xlu1 %722  ;;  %v721_v52 = vpop.permute.xlu0 %720  ;;  %19055 = vmatprep.mubr.msk.bf16.mxu1 %vm20927_vm5, %v20916_v18  ;;  %2440 = vrot.lane.b32.xlu0 %v21070_v10, %s26074_s2 }
  0x9a   :  { %v733_v53 = vsel %vm732_vm4, %v719_v46, %v721_v52  ;;  %2442 = vrot.lane.b32.xlu1 %v21058_v4, %s26074_s2  ;;  %v734_v54 = vsel %vm732_vm4, %v721_v52, %v21298_v51  ;;  %17965 = vmatprep.subr.msk.bf16.mxu1 %vm131_vm0, %v21068_v9 }
  0x9b   :  { %17975 = vmatmul.mubr.msk.bf16.vlgmr.msra.gmra.mrb[12].mxu0 %vm127_vm1, %v21270_v42  ;;  %17977 = vmatprep.subr.msk.bf16.mxu0 %vm131_vm0, %v734_v54  ;;  %v743_v55 = vsel %vm131_vm0, %v733_v53, 0 }
  0x9c   :  { %764 = vmatpush1.bf16.msra.mxu0 %v743_v55  ;;  %795 = vmatprep.mubr.bf16.mxu0 %v20914_v3 }
  0x9d   :  { %v729_v56 = vpop.permute.xlu1 %728  ;;  %v21316_v57 = vpop.permute.xlu0 %726  ;;  %2446 = vrot.lane.b32.xlu0 %v21074_v12, %s26074_s2 }
  0x9e   :  { %v737_v59 = vsel %vm732_vm4, %v21316_v57, %v729_v56  ;;  %2448 = vrot.lane.b32.xlu1 %v21078_v13, %s26074_s2 }
  0x9f   :  { %19056 = vmatmul.mubr.msk.bf16.vlgmr.msra.gmra.mrb[12].mxu1 %vm127_vm1, %v21238_v27  ;;  %v755_v63 = vsel %vm131_vm0, %v737_v59, 0 }
  0xa0   :  { %382 = vmatpush1.bf16.msra.mxu1 %v326_v58  ;;  %413 = vmatprep.mubr.bf16.mxu1 %v20914_v3 }
  0xa1   :  { %v510_v61 = vpop.permute.xlu1 %509  ;;  %v21334_v62 = vpop.permute.xlu0 %730  ;;  %19059 = vmatprep.subr.bf16.mxu1 %v20916_v18  ;;  %2450 = vrot.lane.b32.xlu0 %v21103_v17, %s26074_s2 }
  0xa2   :  { %2229 = vrot.lane.b32.xlu1 %v21068_v9, %s26070_s25  ;;  %v738_v0 = vsel %vm732_vm4, %v729_v56, %v21334_v62  ;;  %v521_v8 = vsel %vm517_vm3, %v510_v61, %v21272_v44  ;;  %v520_v20 = vsel %vm517_vm3, %v21255_v36, %v510_v61  ;;  %s26082_s25 = smov 67   ;;  %v761_v52 = vsel %vm131_vm0, %v21334_v62, 0 }
  0xa3   :  { %17978 = vmatmul.mubr.msk.bf16.vlgmr.msra.gmra.mrb[16].mxu0 %vm127_vm1, %v21331_v60  ;;  %17981 = vmatprep.subr.msk.bf16.mxu0 %vm131_vm0, %v738_v0  ;;  %v534_v25 = vsel %vm131_vm0, %v520_v20, 0  ;;  %v21516_v0 = vld [vmem:[%s26135_s3 + $0x18] sm:$0xf] }
  0xa4   :  { %846 = vmatpush1.bf16.msra.mxu0 %v755_v63  ;;  %877 = vmatprep.mubr.bf16.mxu0 %v20914_v3 }
  0xa5   :  { %v936_v1 = vpop.permute.xlu1 %935  ;;  %v934_v2 = vpop.permute.xlu0 %933  ;;  %2653 = vrot.lane.b32.xlu0 %v21060_v5, %s26072_s27 }
  0xa6   :  { %v948_v7 = vsel %vm26109_vm6, %v934_v2, %v936_v1  ;;  %2655 = vrot.lane.b32.xlu1 %v21070_v10, %s26072_s27 }
  0xa7   :  { %17966 = vmatmul.mubr.msk.bf16.vlgmr.msra.gmra.mrb[16].mxu1 %vm127_vm1, %v21083_v14  ;;  %v958_v11 = vsel %vm131_vm0, %v948_v7, 0 }
  0xa8   :  { %19060 = vmatpush3.bf16.msra.mxu1 %v338_v6  ;;  %19061 = vmatprep.mubr.msk.bf16.mxu1 %vm20927_vm5, %v20916_v18 }
  0xa9   :  { %17972 = vmatprep.subr.msk.bf16.mxu1 %vm131_vm0, %v521_v8  ;;  %v21363_v15 = vpop.permute.xlu1 %941  ;;  %v21365_v16 = vpop.permute.xlu0 %937  ;;  %2657 = vrot.lane.b32.xlu0 %v21058_v4, %s26072_s27 }
  0xaa   :  { %v949_v19 = vsel %vm26109_vm6, %v936_v1, %v21365_v16  ;;  %2661 = vrot.lane.b32.xlu1 %v21074_v12, %s26072_s27 }
  0xab   :  { %17982 = vmatmul.mubr.msk.bf16.vlgmr.msra.gmra.mrb[20].mxu0 %vm127_vm1, %v21331_v60  ;;  %17984 = vmatprep.subr.msk.bf16.mxu0 %vm131_vm0, %v949_v19 }
  0xac   :  { %979 = vmatpush1.bf16.msra.mxu0 %v958_v11  ;;  %1010 = vmatprep.mubr.bf16.mxu0 %v20914_v3 }
  0xad   :  { %v21379_v21 = vpop.permute.xlu1 %945  ;;  %v944_v22 = vpop.permute.xlu0 %943  ;;  %2663 = vrot.lane.b32.xlu0 %v21078_v13, %s26072_s27 }
  0xae   :  { %v952_v23 = vsel %vm26109_vm6, %v21363_v15, %v944_v22  ;;  %2665 = vrot.lane.b32.xlu1 %v21103_v17, %s26072_s27  ;;  %v953_v24 = vsel %vm26109_vm6, %v944_v22, %v21379_v21  ;;  %v21574_v22 = vld [vmem:[%s26135_s3 + $0x1c] sm:$0xf] }
  0xaf   :  { %19062 = vmatmul.mubr.msk.bf16.vlgmr.msra.gmra.mrb[20].mxu1 %vm127_vm1, %v21083_v14  ;;  %17988 = vmatprep.subr.msk.bf16.mxu0 %vm131_vm0, %v953_v24  ;;  %v970_v14 = vsel %vm131_vm0, %v952_v23, 0 }
  0xb0   :  { %590 = vmatpush1.bf16.msra.mxu1 %v534_v25  ;;  %621 = vmatprep.mubr.bf16.mxu1 %v20914_v3 }
  0xb1   :  { %v1149_v27 = vpop.permute.xlu1 %1148  ;;  %v725_v28 = vpop.permute.xlu0 %724  ;;  %19065 = vmatprep.subr.bf16.mxu1 %v20916_v18  ;;  %2444 = vrot.lane.b32.xlu0 %v21068_v9, %s26074_s2  ;;  %s26137_s2 = sld [smem:[#allocation8_spill]] }
  0xb2   :  { %2868 = vrot.lane.b32.xlu1 %v21060_v5, %s26082_s25  ;;  %v736_v34 = vsel %vm732_vm4, %v725_v28, %v21316_v57  ;;  %v735_v38 = vsel %vm732_vm4, %v21298_v51, %v725_v28 }
  0xb3   :  { %17985 = vmatmul.mubr.msk.bf16.vlgmr.msra.gmra.mrb[24].mxu0 %vm127_vm1, %v21396_v26  ;;  %v749_v44 = vsel %vm131_vm0, %v735_v38, 0 }
  0xb4   :  { %1061 = vmatpush1.bf16.msra.mxu0 %v970_v14  ;;  %1092 = vmatprep.mubr.bf16.mxu0 %v20914_v3 }
  0xb5   :  { %v21408_v29 = vpop.permute.xlu1 %1152  ;;  %v1151_v30 = vpop.permute.xlu0 %1150  ;;  %2870 = vrot.lane.b32.xlu0 %v21070_v10, %s26082_s25 }
  0xb6   :  { %v1163_v31 = vsel %vm26108_vm7, %v1149_v27, %v1151_v30  ;;  %2872 = vrot.lane.b32.xlu1 %v21058_v4, %s26082_s25  ;;  %v1164_v32 = vsel %vm26108_vm7, %v1151_v30, %v21408_v29 }
  0xb7   :  { %17973 = vmatmul.mubr.msk.bf16.vlgmr.msra.gmra.mrb[24].mxu1 %vm127_vm1, %v21270_v42  ;;  %17991 = vmatprep.subr.msk.bf16.mxu0 %vm131_vm0, %v1164_v32  ;;  %v1173_v37 = vsel %vm131_vm0, %v1163_v31, 0 }
  0xb8   :  { %19066 = vmatpush3.bf16.msra.mxu1 %v546_v33  ;;  %19067 = vmatprep.mubr.msk.bf16.mxu1 %vm20927_vm5, %v20916_v18 }
  0xb9   :  { %17979 = vmatprep.subr.msk.bf16.mxu1 %vm131_vm0, %v736_v34  ;;  %v1159_v35 = vpop.permute.xlu1 %1158  ;;  %v21427_v36 = vpop.permute.xlu0 %1156  ;;  %2876 = vrot.lane.b32.xlu0 %v21074_v12, %s26082_s25 }
  0xba   :  { %2878 = vrot.lane.b32.xlu1 %v21078_v13, %s26082_s25  ;;  %v1167_v41 = vsel %vm26108_vm7, %v21427_v36, %v1159_v35 }
  0xbb   :  { %17989 = vmatmul.mubr.msk.bf16.vlgmr.msra.gmra.mrb[28].mxu0 %vm127_vm1, %v21396_v26  ;;  %v1185_v48 = vsel %vm131_vm0, %v1167_v41, 0 }
  0xbc   :  { %1194 = vmatpush1.bf16.msra.mxu0 %v1173_v37  ;;  %1225 = vmatprep.mubr.bf16.mxu0 %v20914_v3 }
  0xbd   :  { %v940_v39 = vpop.permute.xlu1 %939  ;;  %v21439_v40 = vpop.permute.xlu0 %1160  ;;  %2880 = vrot.lane.b32.xlu0 %v21103_v17, %s26082_s25 }
  0xbe   :  { %2659 = vrot.lane.b32.xlu1 %v21068_v9, %s26072_s27  ;;  %v1168_v43 = vsel %vm26108_vm7, %v1159_v35, %v21439_v40  ;;  %s26080_s27 = smov 66   ;;  %v951_v53 = vsel %vm26109_vm6, %v940_v39, %v21363_v15  ;;  %v950_v58 = vsel %vm26109_vm6, %v21365_v16, %v940_v39  ;;  %v1191_v30 = vsel %vm131_vm0, %v21439_v40, 0 }
  0xbf   :  { %19068 = vmatmul.mubr.msk.bf16.vlgmr.msra.gmra.mrb[28].mxu1 %vm127_vm1, %v21270_v42  ;;  %17995 = vmatprep.subr.msk.bf16.mxu0 %vm131_vm0, %v1168_v43  ;;  %v964_v63 = vsel %vm131_vm0, %v950_v58, 0  ;;  %vm26111_vm6 = vcmask 752640  }
  0xc0   :  { %805 = vmatpush1.bf16.msra.mxu1 %v749_v44  ;;  %836 = vmatprep.mubr.bf16.mxu1 %v20914_v3 }
  0xc1   :  { %v1366_v46 = vpop.permute.xlu1 %1365  ;;  %v1364_v47 = vpop.permute.xlu0 %1363  ;;  %19071 = vmatprep.subr.bf16.mxu1 %v20916_v18  ;;  %3083 = vrot.lane.b32.xlu0 %v21060_v5, %s26080_s27 }
  0xc2   :  { %3085 = vrot.lane.b32.xlu1 %v21070_v10, %s26080_s27  ;;  %v1378_v50 = vsel %vm26107_vm8, %v1364_v47, %v1366_v46 }
  0xc3   :  { %17992 = vmatmul.mubr.msk.bf16.vlgmr.msra.gmra.mrb[32].mxu0 %vm127_vm1, %v21456_v45  ;;  %v1388_v54 = vsel %vm131_vm0, %v1378_v50, 0 }
  0xc4   :  { %1276 = vmatpush1.bf16.msra.mxu0 %v1185_v48  ;;  %1307 = vmatprep.mubr.bf16.mxu0 %v20914_v3  ;;  %v21628_v48 = vld [vmem:[%s26135_s3 + $0x20] sm:$0xf] }
  0xc5   :  { %v21468_v42 = vpop.permute.xlu1 %1371  ;;  %v21470_v49 = vpop.permute.xlu0 %1367  ;;  %3087 = vrot.lane.b32.xlu0 %v21058_v4, %s26080_s27 }
  0xc6   :  { %v1379_v51 = vsel %vm26107_vm8, %v1366_v46, %v21470_v49  ;;  %3091 = vrot.lane.b32.xlu1 %v21074_v12, %s26080_s27 }
  0xc7   :  { %17980 = vmatmul.mubr.msk.bf16.vlgmr.msra.gmra.mrb[32].mxu1 %vm127_vm1, %v21331_v60  ;;  %17998 = vmatprep.subr.msk.bf16.mxu0 %vm131_vm0, %v1379_v51 }
  0xc8   :  { %19072 = vmatpush3.bf16.msra.mxu1 %v761_v52  ;;  %19073 = vmatprep.mubr.msk.bf16.mxu1 %vm20927_vm5, %v20916_v18 }
  0xc9   :  { %17986 = vmatprep.subr.msk.bf16.mxu1 %vm131_vm0, %v951_v53  ;;  %v21490_v55 = vpop.permute.xlu1 %1375  ;;  %v1374_v56 = vpop.permute.xlu0 %1373  ;;  %3093 = vrot.lane.b32.xlu0 %v21078_v13, %s26080_s27 }
  0xca   :  { %v1383_v57 = vsel %vm26107_vm8, %v1374_v56, %v21490_v55  ;;  %3095 = vrot.lane.b32.xlu1 %v21103_v17, %s26080_s27  ;;  %v1382_v62 = vsel %vm26107_vm8, %v21468_v42, %v1374_v56 }
  0xcb   :  { %17996 = vmatmul.mubr.msk.bf16.vlgmr.msra.gmra.mrb[36].mxu0 %vm127_vm1, %v21456_v45 }
  0xcc   :  { %1409 = vmatpush1.bf16.msra.mxu0 %v1388_v54  ;;  %1440 = vmatprep.mubr.bf16.mxu0 %v20914_v3  ;;  %v1406_v54 = vsel %vm131_vm0, %v21490_v55, 0 }
  0xcd   :  { %v1579_v59 = vpop.permute.xlu1 %1578  ;;  %v1155_v61 = vpop.permute.xlu0 %1154  ;;  %2874 = vrot.lane.b32.xlu0 %v21068_v9, %s26082_s25  ;;  %18002 = vmatprep.subr.msk.bf16.mxu0 %vm131_vm0, %v1383_v57  ;;  %s26123_s25 = smov 104  }
  0xce   :  { %3298 = vrot.lane.b32.xlu1 %v21060_v5, %s26076_s24  ;;  %v1400_v5 = vsel %vm131_vm0, %v1382_v62, 0  ;;  %v1166_v8 = vsel %vm26108_vm7, %v1155_v61, %v21427_v36  ;;  %v1165_v19 = vsel %vm26108_vm7, %v21408_v29, %v1155_v61  ;;  %vm26110_vm7 = vcmask 826368  }
  0xcf   :  { %19074 = vmatmul.mubr.msk.bf16.vlgmr.msra.gmra.mrb[36].mxu1 %vm127_vm1, %v21331_v60 }
  0xd0   :  { %1020 = vmatpush1.bf16.msra.mxu1 %v964_v63  ;;  %1051 = vmatprep.mubr.bf16.mxu1 %v20914_v3 }
  0xd1   :  { %v21519_v1 = vpop.permute.xlu1 %1582  ;;  %v1581_v2 = vpop.permute.xlu0 %1580  ;;  %19077 = vmatprep.subr.bf16.mxu1 %v20916_v18  ;;  %3300 = vrot.lane.b32.xlu0 %v21070_v10, %s26076_s24 }
  0xd2   :  { %v1594_v60 = vsel %vm26106_vm9, %v1581_v2, %v21519_v1  ;;  %3302 = vrot.lane.b32.xlu1 %v21058_v4, %s26076_s24  ;;  %v1593_v10 = vsel %vm26106_vm9, %v1579_v59, %v1581_v2  ;;  %v976_v4 = vsel %vm131_vm0, %v21379_v21, 0 }
  0xd3   :  { %17999 = vmatmul.mubr.msk.bf16.vlgmr.msra.gmra.mrb[40].mxu0 %vm127_vm1, %v21516_v0 }
  0xd4   :  { %1491 = vmatpush1.bf16.msra.mxu0 %v1400_v5  ;;  %1522 = vmatprep.mubr.bf16.mxu0 %v20914_v3 }
  0xd5   :  { %v1589_v6 = vpop.permute.xlu1 %1588  ;;  %v21532_v7 = vpop.permute.xlu0 %1586  ;;  %18005 = vmatprep.subr.msk.bf16.mxu0 %vm131_vm0, %v1594_v60  ;;  %3089 = vrot.lane.b32.xlu0 %v21068_v9, %s26080_s27  ;;  %s26099_s27 = smov 91  }
  0xd6   :  { %3304 = vrot.lane.b32.xlu1 %v21068_v9, %s26076_s24  ;;  %v1603_v9 = vsel %vm131_vm0, %v1593_v10, 0 }
  0xd7   :  { %17987 = vmatmul.mubr.msk.bf16.vlgmr.msra.gmra.mrb[40].mxu1 %vm127_vm1, %v21396_v26 }
  0xd8   :  { %19078 = vmatpush3.bf16.msra.mxu1 %v976_v4  ;;  %19079 = vmatprep.mubr.msk.bf16.mxu1 %vm20927_vm5, %v20916_v18 }
  0xd9   :  { %17993 = vmatprep.subr.msk.bf16.mxu1 %vm131_vm0, %v1166_v8  ;;  %v1370_v11 = vpop.permute.xlu1 %1369  ;;  %v21549_v15 = vpop.permute.xlu0 %1590  ;;  %3306 = vrot.lane.b32.xlu0 %v21074_v12, %s26076_s24  ;;  %v1597_v12 = vsel %vm26106_vm9, %v21532_v7, %v1589_v6 }
  0xda   :  { %v1598_v16 = vsel %vm26106_vm9, %v1589_v6, %v21549_v15  ;;  %3308 = vrot.lane.b32.xlu1 %v21078_v13, %s26076_s24  ;;  %v1179_v13 = vsel %vm131_vm0, %v1165_v19, 0  ;;  %v1615_v24 = vsel %vm131_vm0, %v1597_v12, 0  ;;  %v1381_v32 = vsel %vm26107_vm8, %v1370_v11, %v21468_v42 }
  0xdb   :  { %18003 = vmatmul.mubr.msk.bf16.vlgmr.msra.gmra.mrb[44].mxu0 %vm127_vm1, %v21516_v0  ;;  %v1380_v38 = vsel %vm26107_vm8, %v21470_v49, %v1370_v11  ;;  %v1621_v8 = vsel %vm131_vm0, %v21549_v15, 0  ;;  %vm26129_vm8 = vcmask 834560  }
  0xdc   :  { %1624 = vmatpush1.bf16.msra.mxu0 %v1603_v9  ;;  %1655 = vmatprep.mubr.bf16.mxu0 %v20914_v3  ;;  %v1394_v46 = vsel %vm131_vm0, %v1380_v38, 0 }
  0xdd   :  { %v1794_v20 = vpop.permute.xlu0 %1793  ;;  %v1796_v21 = vpop.permute.xlu1 %1795  ;;  %18009 = vmatprep.subr.msk.bf16.mxu0 %vm131_vm0, %v1598_v16  ;;  %3310 = vrot.lane.b32.xlu0 %v21103_v17, %s26076_s24  ;;  %s26136_s24 = sld [smem:[#allocation7_spill]] }
  0xde   :  { %v1808_v14 = vsel %vm26105_vm10, %v1794_v20, %v1796_v21 }
  0xdf   :  { %19080 = vmatmul.mubr.msk.bf16.vlgmr.msra.gmra.mrb[44].mxu1 %vm127_vm1, %v21396_v26  ;;  %v1818_v36 = vsel %vm131_vm0, %v1808_v14, 0 }
  0xe0   :  { %1235 = vmatpush1.bf16.msra.mxu1 %v1179_v13  ;;  %1266 = vmatprep.mubr.bf16.mxu1 %v20914_v3 }
  0xe1   :  { %v21577_v23 = vpop.permute.xlu0 %1797  ;;  %v21579_v17 = vpop.permute.xlu1 %1801  ;;  %19083 = vmatprep.subr.bf16.mxu1 %v20916_v18 }
  0xe2   :  { %v1809_v25 = vsel %vm26105_vm10, %v1796_v21, %v21577_v23 }
  0xe3   :  { %18006 = vmatmul.mubr.msk.bf16.vlgmr.msra.gmra.mrb[48].mxu0 %vm127_vm1, %v21574_v22 }
  0xe4   :  { %1706 = vmatpush1.bf16.msra.mxu0 %v1615_v24  ;;  %1737 = vmatprep.mubr.bf16.mxu0 %v20914_v3  ;;  %v21588_v26 = vpop.f32.mrb[0].mxu0 }
  0xe5   :  { %v1804_v27 = vpop.permute.xlu0 %1803  ;;  %v21590_v28 = vpop.permute.xlu1 %1805  ;;  %18012 = vmatprep.subr.msk.bf16.mxu0 %vm131_vm0, %v1809_v25 }
  0xe6   :  { %v21594_v29 = vpop.f32.mrb[1].mxu0  ;;  %v1813_v37 = vsel %vm26105_vm10, %v1804_v27, %v21590_v28  ;;  %v1812_v43 = vsel %vm26105_vm10, %v21579_v17, %v1804_v27 }
  0xe7   :  { %17994 = vmatmul.mubr.msk.bf16.vlgmr.msra.gmra.mrb[48].mxu1 %vm127_vm1, %v21456_v45  ;;  %v378_v31 = vpop.f32.mrb[2].mxu0 }
  0xe8   :  { %19084 = vmatpush3.bf16.msra.mxu1 %v1191_v30  ;;  %19085 = vmatprep.mubr.msk.bf16.mxu1 %vm20927_vm5, %v20916_v18  ;;  %v379_v33 = vpop.f32.mrb[3].mxu0 }
  0xe9   :  { %18000 = vmatprep.subr.msk.bf16.mxu1 %vm131_vm0, %v1381_v32  ;;  %v1585_v34 = vpop.permute.xlu0 %1584  ;;  %v2009_v35 = vpop.permute.xlu1 %2008  ;;  %v1836_v32 = vsel %vm131_vm0, %v21590_v28, 0 }
  0xea   :  { %v1596_v57 = vsel %vm26106_vm9, %v1585_v34, %v21532_v7  ;;  %v1595_v62 = vsel %vm26106_vm9, %v21519_v1, %v1585_v34  ;;  %v21674_v1 = vld [vmem:[%s26135_s3 + $0x24] sm:$0xf]  ;;  %vm5953_vm9 = vcmask 842752  }
  0xeb   :  { %18010 = vmatmul.mubr.msk.bf16.vlgmr.msra.gmra.mrb[52].mxu0 %vm127_vm1, %v21574_v22  ;;  %v1609_v5 = vsel %vm131_vm0, %v1595_v62, 0 }
  0xec   :  { %1839 = vmatpush1.bf16.msra.mxu0 %v1818_v36  ;;  %1870 = vmatprep.mubr.bf16.mxu0 %v20914_v3  ;;  %v21613_v39 = vpop.f32.mrb[4].mxu0 }
  0xed   :  { %v21615_v40 = vpop.permute.xlu1 %2012  ;;  %v2011_v41 = vpop.permute.xlu0 %2010  ;;  %18016 = vmatprep.subr.msk.bf16.mxu0 %vm131_vm0, %v1813_v37 }
  0xee   :  { %v21620_v44 = vpop.f32.mrb[5].mxu0  ;;  %v2024_v51 = vsel %vm26104_vm11, %v2011_v41, %v21615_v40  ;;  %v2023_v52 = vsel %vm26104_vm11, %v2009_v35, %v2011_v41 }
  0xef   :  { %19086 = vmatmul.mubr.msk.bf16.vlgmr.msra.gmra.mrb[52].mxu1 %vm127_vm1, %v21456_v45  ;;  %v460_v47 = vpop.f32.mrb[6].mxu0  ;;  %v1830_v45 = vsel %vm131_vm0, %v1812_v43, 0  ;;  %v2033_v58 = vsel %vm131_vm0, %v2023_v52, 0 }
  0xf0   :  { %1450 = vmatpush1.bf16.msra.mxu1 %v1394_v46  ;;  %1481 = vmatprep.mubr.bf16.mxu1 %v20914_v3  ;;  %v461_v42 = vpop.f32.mrb[7].mxu0 }
  0xf1   :  { %v2019_v49 = vpop.permute.xlu1 %2018  ;;  %v21631_v50 = vpop.permute.xlu0 %2016  ;;  %19089 = vmatprep.subr.bf16.mxu1 %v20916_v18 }
  0xf2   :  { %v2027_v63 = vsel %vm26104_vm11, %v21631_v50, %v2019_v49 }
  0xf3   :  { %18013 = vmatmul.mubr.msk.bf16.vlgmr.msra.gmra.mrb[56].mxu0 %vm127_vm1, %v21628_v48  ;;  %v2045_v6 = vsel %vm131_vm0, %v2027_v63, 0 }
  0xf4   :  { %1921 = vmatpush1.bf16.msra.mxu0 %v1830_v45  ;;  %1952 = vmatprep.mubr.bf16.mxu0 %v20914_v3 }
  0xf5   :  { %18019 = vmatprep.subr.msk.bf16.mxu0 %vm131_vm0, %v2024_v51  ;;  %v1800_v56 = vpop.permute.xlu1 %1799 }
  0xf6   :  { %v21642_v53 = vpop.permute.xlu0 %2020  ;;  %v1811_v9 = vsel %vm26105_vm10, %v1800_v56, %v21579_v17  ;;  %v1810_v21 = vsel %vm26105_vm10, %v21577_v23, %v1800_v56  ;;  %v21718_v23 = vld [vmem:[%s26135_s3 + $0x28] sm:$0xf]  ;;  %v21782_v56 = vld [vmem:[#allocation2] sm:$0xff]  ;;  %vm5837_vm10 = vcmask 850944  }
  0xf7   :  { %18001 = vmatmul.mubr.msk.bf16.vlgmr.msra.gmra.mrb[56].mxu1 %vm127_vm1, %v21516_v0  ;;  %v2028_v61 = vsel %vm26104_vm11, %v2019_v49, %v21642_v53  ;;  %v1824_v17 = vsel %vm131_vm0, %v1810_v21, 0 }
  0xf8   :  { %19090 = vmatpush3.bf16.msra.mxu1 %v1406_v54  ;;  %19091 = vmatprep.mubr.msk.bf16.mxu1 %vm20927_vm5, %v20916_v18 }
  0xf9   :  { %18007 = vmatprep.subr.msk.bf16.mxu1 %vm131_vm0, %v1596_v57 }
  0xfa   :  { %v2224_v59 = vpop.permute.xlu0 %2223 }
  0xfb   :  { %18017 = vmatmul.mubr.msk.bf16.vlgmr.msra.gmra.mrb[60].mxu0 %vm127_vm1, %v21628_v48  ;;  %v2226_v55 = vpop.permute.xlu1 %2225 }
  0xfc   :  { %2054 = vmatpush1.bf16.msra.mxu0 %v2033_v58  ;;  %2085 = vmatprep.mubr.bf16.mxu0 %v20914_v3  ;;  %v2238_v4 = vsel %vm26078_vm12, %v2224_v59, %v2226_v55 }
  0xfd   :  { %18023 = vmatprep.subr.msk.bf16.mxu0 %vm131_vm0, %v2028_v61  ;;  %v2248_v19 = vsel %vm131_vm0, %v2238_v4, 0 }
  0xfe   :  { %v21664_v2 = vpop.permute.xlu0 %2227 }
  0xff   :  { %19092 = vmatmul.mubr.msk.bf16.vlgmr.msra.gmra.mrb[60].mxu1 %vm127_vm1, %v21516_v0  ;;  %v21669_v60 = vpop.permute.xlu1 %2231  ;;  %v2239_v0 = vsel %vm26078_vm12, %v2226_v55, %v21664_v2 }
 0x100   :  { %1665 = vmatpush1.bf16.msra.mxu1 %v1609_v5  ;;  %1696 = vmatprep.mubr.bf16.mxu1 %v20914_v3 }
 0x101   :  { %19095 = vmatprep.subr.bf16.mxu1 %v20916_v18 }
 0x103   :  { %18020 = vmatmul.mubr.msk.bf16.vlgmr.msra.gmra.mrb[64].mxu0 %vm127_vm1, %v21674_v1  ;;  %v2234_v7 = vpop.permute.xlu0 %2233 }
 0x104   :  { %2136 = vmatpush1.bf16.msra.mxu0 %v2045_v6  ;;  %v21683_v10 = vpop.permute.xlu1 %2235  ;;  %2167 = vmatprep.mubr.bf16.mxu0 %v20914_v3  ;;  %v2242_v13 = vsel %vm26078_vm12, %v21669_v60, %v2234_v7 }
 0x105   :  { %18026 = vmatprep.subr.msk.bf16.mxu0 %vm131_vm0, %v2239_v0  ;;  %v2243_v20 = vsel %vm26078_vm12, %v2234_v7, %v21683_v10  ;;  %v2260_v27 = vsel %vm131_vm0, %v2242_v13, 0 }
 0x107   :  { %18008 = vmatmul.mubr.msk.bf16.vlgmr.msra.gmra.mrb[64].mxu1 %vm127_vm1, %v21574_v22  ;;  %v2015_v11 = vpop.permute.xlu0 %2014 }
 0x108   :  { %19096 = vmatpush3.bf16.msra.mxu1 %v1621_v8  ;;  %v2439_v16 = vpop.permute.xlu1 %2438  ;;  %19097 = vmatprep.mubr.msk.bf16.mxu1 %vm20927_vm5, %v20916_v18  ;;  %v2026_v34 = vsel %vm26104_vm11, %v2015_v11, %v21631_v50  ;;  %v2025_v38 = vsel %vm26104_vm11, %v21615_v40, %v2015_v11  ;;  %v21762_v40 = vld [vmem:[%s26135_s3 + $0x2c] sm:$0xf]  ;;  %v2266_v8 = vsel %vm131_vm0, %v21683_v10, 0  ;;  %vm5721_vm11 = vcmask 924672  }
 0x109   :  { %18014 = vmatprep.subr.msk.bf16.mxu1 %vm131_vm0, %v1811_v9  ;;  %v2039_v46 = vsel %vm131_vm0, %v2025_v38, 0 }
 0x10b   :  { %18024 = vmatmul.mubr.msk.bf16.vlgmr.msra.gmra.mrb[68].mxu0 %vm127_vm1, %v21674_v1  ;;  %v2441_v15 = vpop.permute.xlu0 %2440 }
 0x10c   :  { %2269 = vmatpush1.bf16.msra.mxu0 %v2248_v19  ;;  %v21704_v12 = vpop.permute.xlu1 %2442  ;;  %2300 = vmatprep.mubr.bf16.mxu0 %v20914_v3  ;;  %v2453_v31 = vsel %vm26079_vm13, %v2439_v16, %v2441_v15 }
 0x10d   :  { %18030 = vmatprep.subr.msk.bf16.mxu0 %vm131_vm0, %v2243_v20  ;;  %v2463_v36 = vsel %vm131_vm0, %v2453_v31, 0  ;;  %v3513_v20 = vld [vmem:[%s26136_s24] sm:$0xff]  ;;  %s26097_s24 = smov 90  }
 0x10e   :  { %3516 = vperm.xlu1 %20366, %v3513_v20  }
 0x10f   :  { %19098 = vmatmul.mubr.msk.bf16.vlgmr.msra.gmra.mrb[68].mxu1 %vm127_vm1, %v21574_v22  ;;  %v21713_v24 = vpop.permute.xlu0 %2446  ;;  %v2454_v22 = vsel %vm26079_vm13, %v2441_v15, %v21704_v12 }
 0x110   :  { %1880 = vmatpush1.bf16.msra.mxu1 %v1824_v17  ;;  %v2449_v25 = vpop.permute.xlu1 %2448  ;;  %1911 = vmatprep.mubr.bf16.mxu1 %v20914_v3 }
 0x111   :  { %19101 = vmatprep.subr.bf16.mxu1 %v20916_v18  ;;  %v2457_v43 = vsel %vm26079_vm13, %v21713_v24, %v2449_v25 }
 0x112   :  { %v2475_v49 = vsel %vm131_vm0, %v2457_v43, 0 }
 0x113   :  { %18027 = vmatmul.mubr.msk.bf16.vlgmr.msra.gmra.mrb[72].mxu0 %vm127_vm1, %v21718_v23  ;;  %v21727_v14 = vpop.permute.xlu0 %2450 }
 0x114   :  { %2351 = vmatpush1.bf16.msra.mxu0 %v2260_v27  ;;  %v2230_v30 = vpop.permute.xlu1 %2229  ;;  %2382 = vmatprep.mubr.bf16.mxu0 %v20914_v3  ;;  %v2458_v37 = vsel %vm26079_vm13, %v2449_v25, %v21727_v14  ;;  %v2481_v31 = vsel %vm131_vm0, %v21727_v14, 0 }
 0x115   :  { %18033 = vmatprep.subr.msk.bf16.mxu0 %vm131_vm0, %v2454_v22  ;;  %v2241_v54 = vsel %vm26078_vm12, %v2230_v30, %v21669_v60  ;;  %v2240_v61 = vsel %vm26078_vm12, %v21664_v2, %v2230_v30  ;;  %v21810_v2 = vld [vmem:[%s26135_s3 + $0x30] sm:$0xf]  ;;  %vm26101_vm12 = vcmask 539648  }
 0x116   :  { %v2254_v63 = vsel %vm131_vm0, %v2240_v61, 0 }
 0x117   :  { %18015 = vmatmul.mubr.msk.bf16.vlgmr.msra.gmra.mrb[72].mxu1 %vm127_vm1, %v21628_v48  ;;  %v2654_v33 = vpop.permute.xlu0 %2653 }
 0x118   :  { %19102 = vmatpush3.bf16.msra.mxu1 %v1836_v32  ;;  %19103 = vmatprep.mubr.msk.bf16.mxu1 %vm20927_vm5, %v20916_v18  ;;  %v2656_v35 = vpop.permute.xlu1 %2655 }
 0x119   :  { %18021 = vmatprep.subr.msk.bf16.mxu1 %vm131_vm0, %v2026_v34  ;;  %v2668_v51 = vsel %vm26103_vm14, %v2654_v33, %v2656_v35 }
 0x11a   :  { %v2678_v58 = vsel %vm131_vm0, %v2668_v51, 0 }
 0x11b   :  { %18031 = vmatmul.mubr.msk.bf16.vlgmr.msra.gmra.mrb[76].mxu0 %vm127_vm1, %v21718_v23  ;;  %v21746_v28 = vpop.permute.xlu0 %2657 }
 0x11c   :  { %2484 = vmatpush1.bf16.msra.mxu0 %v2463_v36  ;;  %2515 = vmatprep.mubr.bf16.mxu0 %v20914_v3  ;;  %v21751_v41 = vpop.permute.xlu1 %2661 }
 0x11d   :  { %18037 = vmatprep.subr.msk.bf16.mxu0 %vm131_vm0, %v2458_v37 }
 0x11f   :  { %19104 = vmatmul.mubr.msk.bf16.vlgmr.msra.gmra.mrb[76].mxu1 %vm127_vm1, %v21628_v48  ;;  %v2664_v47 = vpop.permute.xlu0 %2663  ;;  %v2669_v48 = vsel %vm26103_vm14, %v2656_v35, %v21746_v28 }
 0x120   :  { %2095 = vmatpush1.bf16.msra.mxu1 %v2039_v46  ;;  %2126 = vmatprep.mubr.bf16.mxu1 %v20914_v3  ;;  %v21765_v42 = vpop.permute.xlu1 %2665  ;;  %v2672_v62 = vsel %vm26103_vm14, %v21751_v41, %v2664_v47 }
 0x121   :  { %19107 = vmatprep.subr.bf16.mxu1 %v20916_v18  ;;  %v2051_v18 = vsel %vm131_vm0, %v21642_v53, 0  ;;  %v2673_v59 = vsel %vm26103_vm14, %v2664_v47, %v21765_v42  ;;  %v2690_v6 = vsel %vm131_vm0, %v2672_v62, 0 }
 0x123   :  { %18034 = vmatmul.mubr.msk.bf16.vlgmr.msra.gmra.mrb[80].mxu0 %vm127_vm1, %v21762_v40  ;;  %v2445_v50 = vpop.permute.xlu0 %2444 }
 0x124   :  { %2566 = vmatpush1.bf16.msra.mxu0 %v2475_v49  ;;  %2597 = vmatprep.mubr.bf16.mxu0 %v20914_v3  ;;  %v2869_v45 = vpop.permute.xlu1 %2868  ;;  %v2456_v9 = vsel %vm26079_vm13, %v2445_v50, %v21713_v24  ;;  %v2455_v15 = vsel %vm26079_vm13, %v21704_v12, %v2445_v50  ;;  %v21857_v12 = vld [vmem:[%s26135_s3 + $0x34] sm:$0xf]  ;;  %vm26090_vm13 = vcmask 531456  }
 0x125   :  { %18040 = vmatprep.subr.msk.bf16.mxu0 %vm131_vm0, %v2669_v48  ;;  %v2469_v17 = vsel %vm131_vm0, %v2455_v15, 0  ;;  %v2696_v48 = vsel %vm131_vm0, %v21765_v42, 0 }
 0x127   :  { %18022 = vmatmul.mubr.msk.bf16.vlgmr.msra.gmra.mrb[80].mxu1 %vm127_vm1, %v21674_v1  ;;  %v2871_v52 = vpop.permute.xlu0 %2870 }
 0x128   :  { %19108 = vmatpush3.bf16.msra.mxu1 %v2051_v18  ;;  %19109 = vmatprep.mubr.msk.bf16.mxu1 %vm20927_vm5, %v21782_v56  ;;  %v21786_v57 = vpop.permute.xlu1 %2872  ;;  %v2883_v4 = vsel %vm26102_vm15, %v2869_v45, %v2871_v52 }
 0x129   :  { %18028 = vmatprep.subr.msk.bf16.mxu1 %vm131_vm0, %v2241_v54  ;;  %v2893_v16 = vsel %vm131_vm0, %v2883_v4, 0 }
 0x12b   :  { %18038 = vmatmul.mubr.msk.bf16.vlgmr.msra.gmra.mrb[84].mxu0 %vm127_vm1, %v21762_v40  ;;  %v21794_v53 = vpop.permute.xlu0 %2876 }
 0x12c   :  { %2699 = vmatpush1.bf16.msra.mxu0 %v2678_v58  ;;  %2730 = vmatprep.mubr.bf16.mxu0 %v20914_v3  ;;  %v2879_v55 = vpop.permute.xlu1 %2878 }
 0x12d   :  { %18044 = vmatprep.subr.msk.bf16.mxu0 %vm131_vm0, %v2673_v59  ;;  %v2887_v13 = vsel %vm26102_vm15, %v21794_v53, %v2879_v55 }
 0x12e   :  { %v2905_v25 = vsel %vm131_vm0, %v2887_v13, 0 }
 0x12f   :  { %19110 = vmatmul.mubr.msk.bf16.vlgmr.msra.gmra.mrb[84].mxu1 %vm127_vm1, %v21674_v1  ;;  %v21805_v5 = vpop.permute.xlu0 %2880  ;;  %v2884_v1 = vsel %vm26102_vm15, %v2871_v52, %v21786_v57 }
 0x130   :  { %2310 = vmatpush1.bf16.msra.mxu1 %v2254_v63  ;;  %2341 = vmatprep.mubr.bf16.mxu1 %v20914_v3  ;;  %v2660_v60 = vpop.permute.xlu1 %2659  ;;  %v2888_v10 = vsel %vm26102_vm15, %v2879_v55, %v21805_v5  ;;  %v2911_v4 = vsel %vm131_vm0, %v21805_v5, 0 }
 0x131   :  { %19113 = vmatprep.subr.bf16.mxu1 %v21782_v56  ;;  %v2671_v33 = vsel %vm26103_vm14, %v2660_v60, %v21751_v41  ;;  %v2670_v14 = vsel %vm26103_vm14, %v21746_v28, %v2660_v60  ;;  %v21899_v28 = vld [vmem:[%s26135_s3 + $0x38] sm:$0xf]  ;;  %vm5605_vm14 = vcmask 932864  }
 0x132   :  { %v2684_v41 = vsel %vm131_vm0, %v2670_v14, 0 }
 0x133   :  { %18041 = vmatmul.mubr.msk.bf16.vlgmr.msra.gmra.mrb[88].mxu0 %vm127_vm1, %v21810_v2  ;;  %v3084_v0 = vpop.permute.xlu0 %3083 }
 0x134   :  { %2781 = vmatpush1.bf16.msra.mxu0 %v2690_v6  ;;  %2812 = vmatprep.mubr.bf16.mxu0 %v20914_v3  ;;  %v3086_v7 = vpop.permute.xlu1 %3085 }
 0x135   :  { %18047 = vmatprep.subr.msk.bf16.mxu0 %vm131_vm0, %v2884_v1  ;;  %v3098_v30 = vsel %vm26101_vm12, %v3084_v0, %v3086_v7 }
 0x136   :  { %v3108_v34 = vsel %vm131_vm0, %v3098_v30, 0 }
 0x137   :  { %18029 = vmatmul.mubr.msk.bf16.vlgmr.msra.gmra.mrb[88].mxu1 %vm127_vm1, %v21718_v23  ;;  %v21826_v11 = vpop.permute.xlu0 %3087 }
 0x138   :  { %19114 = vmatpush3.bf16.msra.mxu1 %v2266_v8  ;;  %19115 = vmatprep.mubr.msk.bf16.mxu1 %vm20927_vm5, %v21782_v56  ;;  %v21834_v19 = vpop.permute.xlu1 %3091 }
 0x139   :  { %18035 = vmatprep.subr.msk.bf16.mxu1 %vm131_vm0, %v2456_v9 }
 0x13b   :  { %18045 = vmatmul.mubr.msk.bf16.vlgmr.msra.gmra.mrb[92].mxu0 %vm127_vm1, %v21810_v2  ;;  %v3094_v21 = vpop.permute.xlu0 %3093 }
 0x13c   :  { %2914 = vmatpush1.bf16.msra.mxu0 %v2893_v16  ;;  %2945 = vmatprep.mubr.bf16.mxu0 %v20914_v3  ;;  %v21852_v24 = vpop.permute.xlu1 %3095  ;;  %v3102_v38 = vsel %vm26101_vm12, %v21834_v19, %v3094_v21 }
 0x13d   :  { %18051 = vmatprep.subr.msk.bf16.mxu0 %vm131_vm0, %v2888_v10  ;;  %v3103_v35 = vsel %vm26101_vm12, %v3094_v21, %v21852_v24  ;;  %v3120_v43 = vsel %vm131_vm0, %v3102_v38, 0 }
 0x13f   :  { %19116 = vmatmul.mubr.msk.bf16.vlgmr.msra.gmra.mrb[92].mxu1 %vm127_vm1, %v21718_v23  ;;  %v3099_v23 = vsel %vm26101_vm12, %v3086_v7, %v21826_v11  ;;  %v2875_v27 = vpop.permute.xlu0 %2874 }
 0x140   :  { %2525 = vmatpush1.bf16.msra.mxu1 %v2469_v17  ;;  %2556 = vmatprep.mubr.bf16.mxu1 %v20914_v3  ;;  %v3299_v22 = vpop.permute.xlu1 %3298  ;;  %v2886_v51 = vsel %vm26102_vm15, %v2875_v27, %v21794_v53  ;;  %v2885_v59 = vsel %vm26102_vm15, %v21786_v57, %v2875_v27  ;;  %vm5489_vm15 = vcmask 941056  }
 0x141   :  { %19119 = vmatprep.subr.bf16.mxu1 %v21782_v56 }
 0x143   :  { %18048 = vmatmul.mubr.msk.bf16.vlgmr.msra.gmra.mrb[96].mxu0 %vm127_vm1, %v21857_v12  ;;  %v3301_v32 = vpop.permute.xlu0 %3300 }
 0x144   :  { %2996 = vmatpush1.bf16.msra.mxu0 %v2905_v25  ;;  %3027 = vmatprep.mubr.bf16.mxu0 %v20914_v3  ;;  %v21883_v36 = vpop.permute.xlu1 %3302  ;;  %v3313_v49 = vsel %vm26090_vm13, %v3299_v22, %v3301_v32 }
 0x145   :  { %18054 = vmatprep.subr.msk.bf16.mxu0 %vm131_vm0, %v3099_v23  ;;  %v3323_v18 = vsel %vm131_vm0, %v3313_v49, 0 }
 0x147   :  { %18036 = vmatmul.mubr.msk.bf16.vlgmr.msra.gmra.mrb[96].mxu1 %vm127_vm1, %v21762_v40  ;;  %v21889_v37 = vpop.permute.xlu0 %3089 }
 0x148   :  { %19120 = vmatpush3.bf16.msra.mxu1 %v2481_v31  ;;  %19121 = vmatprep.mubr.msk.bf16.mxu1 %vm20927_vm5, %v21782_v56  ;;  %v21904_v46 = vpop.permute.xlu1 %3304  ;;  %v3101_v9 = vsel %vm26101_vm12, %v21889_v37, %v21834_v19  ;;  %v3100_v5 = vsel %vm26101_vm12, %v21826_v11, %v21889_v37  ;;  %v3126_v37 = vsel %vm131_vm0, %v21852_v24, 0  ;;  %vm5373_vm12 = vcmask 949248  }
 0x149   :  { %18042 = vmatprep.subr.msk.bf16.mxu1 %vm131_vm0, %v2671_v33 }
 0x14b   :  { %18052 = vmatmul.mubr.msk.bf16.vlgmr.msra.gmra.mrb[100].mxu0 %vm127_vm1, %v21857_v12  ;;  %v21906_v47 = vpop.permute.xlu0 %3306 }
 0x14c   :  { %3129 = vmatpush1.bf16.msra.mxu0 %v3108_v34  ;;  %3160 = vmatprep.mubr.bf16.mxu0 %v20914_v3  ;;  %v3309_v50 = vpop.permute.xlu1 %3308 }
 0x14d   :  { %18058 = vmatprep.subr.msk.bf16.mxu0 %vm131_vm0, %v3103_v35  ;;  %v3317_v62 = vsel %vm26090_vm13, %v21906_v47, %v3309_v50  ;;  %v3316_v35 = vsel %vm26090_vm13, %v21904_v46, %v21906_v47 }
 0x14e   :  { %v3335_v57 = vsel %vm131_vm0, %v3317_v62, 0 }
 0x14f   :  { %19122 = vmatmul.mubr.msk.bf16.vlgmr.msra.gmra.mrb[100].mxu1 %vm127_vm1, %v21762_v40  ;;  %v3314_v40 = vsel %vm26090_vm13, %v3301_v32, %v21883_v36  ;;  %v21919_v45 = vpop.permute.xlu0 %3310 }
 0x150   :  { %2740 = vmatpush1.bf16.msra.mxu1 %v2684_v41  ;;  %2771 = vmatprep.mubr.bf16.mxu1 %v20914_v3  ;;  %v3318_v54 = vsel %vm26090_vm13, %v3309_v50, %v21919_v45 }
 0x151   :  { %19125 = vmatprep.subr.bf16.mxu1 %v21782_v56 }
 0x153   :  { %18055 = vmatmul.mubr.msk.bf16.vlgmr.msra.gmra.mrb[104].mxu0 %vm127_vm1, %v21899_v28 }
 0x154   :  { %3211 = vmatpush1.bf16.msra.mxu0 %v3120_v43  ;;  %3242 = vmatprep.mubr.bf16.mxu0 %v20914_v3 }
 0x155   :  { %18061 = vmatprep.subr.msk.bf16.mxu0 %vm131_vm0, %v3314_v40 }
 0x157   :  { %18043 = vmatmul.mubr.msk.bf16.vlgmr.msra.gmra.mrb[104].mxu1 %vm127_vm1, %v21810_v2 }
 0x158   :  { %19126 = vmatpush3.bf16.msra.mxu1 %v2696_v48  ;;  %19127 = vmatprep.mubr.msk.bf16.mxu1 %vm20927_vm5, %v21782_v56  ;;  %v3315_v48 = vsel %vm26090_vm13, %v21883_v36, %v21904_v46 }
 0x159   :  { %18049 = vmatprep.subr.msk.bf16.mxu1 %vm131_vm0, %v2886_v51 }
 0x15a   :  { %v187_v52 = vpop.f32.mrb[0].mxu1 }
 0x15b   :  { %v375_v42 = vadd.f32 %v21588_v26, %v187_v52  ;;  %v189_v58 = vpop.f32.mrb[1].mxu1  ;;  %18059 = vmatmul.mubr.msk.bf16.vlgmr.msra.gmra.mrb[108].mxu0 %vm127_vm1, %v21899_v28  ;;  %v2899_v26 = vsel %vm131_vm0, %v2885_v59, 0 }
 0x15c   :  { %v377_v53 = vadd.f32 %v21594_v29, %v189_v58  ;;  %v191_v61 = vpop.f32.mrb[2].mxu1  ;;  %3344 = vmatpush1.bf16.msra.mxu0 %v3323_v18  ;;  %3375 = vmatprep.mubr.bf16.mxu0 %v20914_v3  ;;  %v21945_v29 = vld [vmem:[%s26135_s3 + $0x3c] sm:$0xf]  ;;  %s26117_s3 = smov 101  }
 0x15d   :  { %v192_v55 = vpop.f32.mrb[3].mxu1  ;;  %18065 = vmatprep.subr.msk.bf16.mxu0 %vm131_vm0, %v3318_v54 }
 0x15f   :  { %19128 = vmatmul.mubr.msk.bf16.vlgmr.msra.gmra.mrb[108].mxu1 %vm127_vm1, %v21810_v2 }
 0x160   :  { %2955 = vmatpush1.bf16.msra.mxu1 %v2899_v26  ;;  %2986 = vmatprep.mubr.bf16.mxu1 %v20914_v3  ;;  %v3341_v26 = vsel %vm131_vm0, %v21919_v45, 0 }
 0x161   :  { %19131 = vmatprep.subr.bf16.mxu1 %v21782_v56 }
 0x162   :  { %v228_v63 = vpop.f32.mrb[4].mxu1 }
 0x163   :  { %v230_v60 = vpop.f32.mrb[5].mxu1  ;;  %18062 = vmatmul.mubr.msk.bf16.vlgmr.msra.gmra.mrb[112].mxu0 %vm127_vm1, %v21945_v29 }
 0x164   :  { %v232_v2 = vpop.f32.mrb[6].mxu1  ;;  %3426 = vmatpush1.bf16.msra.mxu0 %v3335_v57  ;;  %3457 = vmatprep.mubr.bf16.mxu0 %v20914_v3 }
 0x165   :  { %v233_v6 = vpop.f32.mrb[7].mxu1 }
 0x166   :  { %v582_v1 = vpop.f32.mrb[8].mxu0 }
 0x167   :  { %v711_v0 = vadd.f32 %v582_v1, %v375_v42  ;;  %v584_v7 = vpop.f32.mrb[9].mxu0  ;;  %18050 = vmatmul.mubr.msk.bf16.vlgmr.msra.gmra.mrb[112].mxu1 %vm127_vm1, %v21857_v12  ;;  %v3329_v42 = vsel %vm131_vm0, %v3315_v48, 0 }
 0x168   :  { %v712_v8 = vadd.f32 %v584_v7, %v377_v53  ;;  %19132 = vmatpush3.bf16.msra.mxu1 %v2911_v4  ;;  %v586_v16 = vpop.f32.mrb[10].mxu0  ;;  %19133 = vmatprep.mubr.msk.bf16.mxu1 %vm20927_vm5, %v21782_v56 }
 0x169   :  { %18056 = vmatprep.subr.msk.bf16.mxu1 %vm131_vm0, %v3101_v9  ;;  %v587_v20 = vpop.f32.mrb[11].mxu0  ;;  %v20371_v9 = vld [vmem:[%s26137_s2] ss:$12 sps:$4 sm:$0xff]  }
 0x16a   :  { %v269_v10 = vpop.f32.mrb[8].mxu1  ;;  %v20376_v20 = vld [vmem:[%s26137_s2 + $0x1c] ss:$12 sps:$4 sm:$0xff]  }
 0x16b   :  { %v457_v15 = vadd.f32 %v21613_v39, %v269_v10  ;;  %v271_v21 = vpop.f32.mrb[9].mxu1  ;;  %18066 = vmatmul.mubr.msk.bf16.vlgmr.msra.gmra.mrb[116].mxu0 %vm127_vm1, %v21945_v29  ;;  %v3114_v39 = vsel %vm131_vm0, %v3100_v5, 0 }
 0x16c   :  { %v459_v19 = vadd.f32 %v21620_v44, %v271_v21  ;;  %v273_v13 = vpop.f32.mrb[10].mxu1 }
 0x16d   :  { %v274_v17 = vpop.f32.mrb[11].mxu1  ;;  %v20379_v13 = vld [vmem:[%s26137_s2 + $0x34] ss:$12 sps:$4 sm:$0xff]  }
 0x16e   :  { %v664_v25 = vpop.f32.mrb[12].mxu0 }
 0x16f   :  { %v715_v23 = vadd.f32 %v664_v25, %v457_v15  ;;  %v666_v27 = vpop.f32.mrb[13].mxu0  ;;  %19134 = vmatmul.mubr.msk.bf16.vlgmr.msra.gmra.mrb[116].mxu1 %vm127_vm1, %v21857_v12 }
 0x170   :  { %v716_v22 = vadd.f32 %v666_v27, %v459_v19  ;;  %3170 = vmatpush1.bf16.msra.mxu1 %v3114_v39  ;;  %v668_v30 = vpop.f32.mrb[14].mxu0  ;;  %3201 = vmatprep.mubr.bf16.mxu1 %v20914_v3  ;;  %v20374_v19 = vld [vmem:[%s26137_s2 + $0x18] ss:$12 sps:$4 sm:$0xff]  }
 0x171   :  { %v669_v31 = vpop.f32.mrb[15].mxu0  ;;  %19137 = vmatprep.subr.bf16.mxu1 %v21782_v56  ;;  %v20382_v30 = vld [vmem:[%s26137_s2 + $0x4c] ss:$12 sps:$4 sm:$0xff]  }
 0x172   :  { %v310_v11 = vpop.f32.mrb[12].mxu1 }
 0x173   :  { %v19057_v44 = vpop.f32.mrb[13].mxu1 }
 0x174   :  { %v313_v32 = vpop.f32.mrb[14].mxu1 }
 0x175   :  { %v19058_v33 = vpop.f32.mrb[15].mxu1 }
 0x176   :  { %v797_v34 = vpop.f32.mrb[16].mxu0 }
 0x177   :  { %v926_v12 = vadd.f32 %v797_v34, %v711_v0  ;;  %v799_v14 = vpop.f32.mrb[17].mxu0  ;;  %18057 = vmatmul.mubr.msk.bf16.vlgmr.msra.gmra.mrb[120].mxu1 %vm127_vm1, %v21899_v28  ;;  %v20380_v34 = vld [vmem:[%s26137_s2 + $0x48] ss:$12 sps:$4 sm:$0xff]  }
 0x178   :  { %v927_v38 = vadd.f32 %v799_v14, %v712_v8  ;;  %19138 = vmatpush3.bf16.msra.mxu1 %v3126_v37  ;;  %v801_v41 = vpop.f32.mrb[18].mxu0  ;;  %19139 = vmatprep.mubr.msk.bf16.mxu1 %vm20927_vm5, %v21782_v56 }
 0x179   :  { %v802_v43 = vpop.f32.mrb[19].mxu0  ;;  %18063 = vmatprep.subr.msk.bf16.mxu1 %vm131_vm0, %v3316_v35  ;;  %v20385_v35 = vld [vmem:[%s26137_s2 + $0x64] ss:$12 sps:$4 sm:$0xff]  }
 0x17a   :  { %v415_v40 = vpop.f32.mrb[16].mxu1 }
 0x17b   :  { %v416_v49 = vadd.f32 %v415_v40, %v228_v63  ;;  %v417_v47 = vpop.f32.mrb[17].mxu1  ;;  %v20383_v40 = vld [vmem:[%s26137_s2 + $0x60] ss:$12 sps:$4 sm:$0xff]  }
 0x17c   :  { %v418_v50 = vadd.f32 %v417_v47, %v230_v60  ;;  %v419_v51 = vpop.f32.mrb[18].mxu1  ;;  %v20388_v47 = vld [vmem:[%s26137_s2 + $0x7c] ss:$12 sps:$4 sm:$0xff]  }
 0x17d   :  { %v420_v18 = vpop.f32.mrb[19].mxu1 }
 0x17e   :  { %v879_v24 = vpop.f32.mrb[20].mxu0 }
 0x17f   :  { %v930_v52 = vadd.f32 %v879_v24, %v715_v23  ;;  %v881_v54 = vpop.f32.mrb[21].mxu0  ;;  %19140 = vmatmul.mubr.msk.bf16.vlgmr.msra.gmra.mrb[124].mxu1 %vm127_vm1, %v21899_v28  ;;  %v20373_v28 = vld [vmem:[%s26137_s2 + $0x4] ss:$12 sps:$4 sm:$0xff]  }
 0x180   :  { %v931_v58 = vadd.f32 %v881_v54, %v716_v22  ;;  %3385 = vmatpush1.bf16.msra.mxu1 %v3329_v42  ;;  %v883_v59 = vpop.f32.mrb[22].mxu0  ;;  %3416 = vmatprep.mubr.bf16.mxu1 %v20914_v3  ;;  %v20391_v54 = vld [vmem:[%s26137_s2 + $0x94] ss:$12 sps:$4 sm:$0xff]  }
 0x181   :  { %v884_v53 = vpop.f32.mrb[23].mxu0  ;;  %19143 = vmatprep.subr.bf16.mxu1 %v21782_v56 }
 0x182   :  { %v497_v36 = vpop.f32.mrb[20].mxu1 }
 0x183   :  { %v498_v46 = vadd.f32 %v497_v36, %v310_v11  ;;  %v19063_v61 = vpop.f32.mrb[21].mxu1 }
 0x184   :  { %v500_v55 = vpop.f32.mrb[22].mxu1  ;;  %v20403_v61 = vld [vmem:[%s26137_s2 + $0x184] ss:$12 sps:$4 sm:$0xff]  }
 0x185   :  { %v19064_v62 = vpop.f32.mrb[23].mxu1  ;;  %4599 = vmatprep.subr.bf16.mxu0 %v20403_v61 }
 0x186   :  { %v1012_v57 = vpop.f32.mrb[24].mxu0  ;;  %v20394_v62 = vld [vmem:[%s26137_s2 + $0xac] ss:$12 sps:$4 sm:$0xff]  }
 0x187   :  { %v1141_v63 = vadd.f32 %v1012_v57, %v926_v12  ;;  %v1014_v60 = vpop.f32.mrb[25].mxu0  ;;  %18064 = vmatmul.mubr.msk.bf16.vlgmr.msra.gmra.mrb[128].mxu1 %vm127_vm1, %v21945_v29 }
 0x188   :  { %v1142_v2 = vadd.f32 %v1014_v60, %v927_v38  ;;  %v1016_v6 = vpop.f32.mrb[26].mxu0  ;;  %19144 = vmatpush3.bf16.msra.mxu1 %v3341_v26  ;;  %19145 = vmatprep.mubr.msk.bf16.mxu1 %vm20927_vm5, %v21782_v56  ;;  %v20401_v26 = vld [vmem:[%s26137_s2 + $0x180] ss:$12 sps:$4 sm:$0xff]  }
 0x189   :  { %v1017_v1 = vpop.f32.mrb[27].mxu0  ;;  %4558 = vmatprep.subr.bf16.mxu1 %v20373_v28  ;;  %4600 = vmatpush1.bf16.msra.mxu0 %v20401_v26  ;;  %v20392_v6 = vld [vmem:[%s26137_s2 + $0xa8] ss:$12 sps:$4 sm:$0xff]  }
 0x18a   :  { %v623_v0 = vpop.f32.mrb[24].mxu1  ;;  %v20397_v1 = vld [vmem:[%s26137_s2 + $0xc4] ss:$12 sps:$4 sm:$0xff]  }
 0x18b   :  { %v713_v45 = vadd.f32 %v623_v0, %v416_v49  ;;  %v625_v7 = vpop.f32.mrb[25].mxu1 }
 0x18c   :  { %v714_v4 = vadd.f32 %v625_v7, %v418_v50  ;;  %v627_v8 = vpop.f32.mrb[26].mxu1  ;;  %v20409_v7 = vld [vmem:[%s26137_s2 + $0x19c] ss:$12 sps:$4 sm:$0xff]  }
 0x18d   :  { %v628_v16 = vpop.f32.mrb[27].mxu1  ;;  %4601 = vmatprep.subr.bf16.mxu0 %v20409_v7 }
 0x18e   :  { %v1094_v10 = vpop.f32.mrb[28].mxu0 }
 0x18f   :  { %v1145_v15 = vadd.f32 %v1094_v10, %v930_v52  ;;  %v1096_v21 = vpop.f32.mrb[29].mxu0  ;;  %19146 = vmatmul.mubr.msk.bf16.vlgmr.msra.gmra.mrb[132].mxu1 %vm127_vm1, %v21945_v29  ;;  %v20377_v29 = vld [vmem:[%s26137_s2 + $0x30] ss:$12 sps:$4 sm:$0xff]   ;;  %v20386_v52 = vld [vmem:[%s26137_s2 + $0x78] ss:$12 sps:$4 sm:$0xff]  }
 0x190   :  { %v1146_v56 = vadd.f32 %v1096_v21, %v931_v58  ;;  %v1098_v5 = vpop.f32.mrb[30].mxu0  ;;  %4559 = vmatpush1.bf16.msra.mxu1 %v20371_v9  ;;  %v20395_v10 = vld [vmem:[%s26137_s2 + $0xc0] ss:$12 sps:$4 sm:$0xff]  }
 0x191   :  { %v1099_v17 = vpop.f32.mrb[31].mxu0  ;;  %4560 = vmatprep.subr.bf16.mxu1 %v20376_v20  ;;  %v20413_v5 = vld [vmem:[%s26137_s2 + $0x1b0] ss:$12 sps:$4 sm:$0xff]  }
 0x192   :  { %v705_v25 = vpop.f32.mrb[28].mxu1 }
 0x193   :  { %v717_v23 = vadd.f32 %v705_v25, %v498_v46  ;;  %v19069_v27 = vpop.f32.mrb[29].mxu1  ;;  %v20389_v46 = vld [vmem:[%s26137_s2 + $0x90] ss:$12 sps:$4 sm:$0xff]  }
 0x194   :  { %v708_v39 = vpop.f32.mrb[30].mxu1  ;;  %4561 = vmatpush1.bf16.msra.mxu1 %v20374_v19  ;;  %v20398_v27 = vld [vmem:[%s26137_s2 + $0xd8] ss:$12 sps:$4 sm:$0xff]  }
 0x195   :  { %v19070_v22 = vpop.f32.mrb[31].mxu1  ;;  %4562 = vmatprep.subr.bf16.mxu1 %v20379_v13  ;;  %v20406_v39 = vld [vmem:[%s26137_s2 + $0xf4] ss:$12 sps:$4 sm:$0xff]  }
 0x196   :  { %v1227_v31 = vpop.f32.mrb[32].mxu0  ;;  %v20419_v22 = vld [vmem:[%s26137_s2 + $0x1c8] ss:$12 sps:$4 sm:$0xff]  }
 0x197   :  { %v1356_v11 = vadd.f32 %v1227_v31, %v1141_v63  ;;  %v1229_v44 = vpop.f32.mrb[33].mxu0 }
 0x198   :  { %v1357_v32 = vadd.f32 %v1229_v44, %v1142_v2  ;;  %v1231_v33 = vpop.f32.mrb[34].mxu0  ;;  %4563 = vmatpush1.bf16.msra.mxu1 %v20377_v29 }
 0x199   :  { %v1232_v12 = vpop.f32.mrb[35].mxu0  ;;  %4564 = vmatprep.subr.bf16.mxu1 %v20382_v30  ;;  %v20421_v30 = vld [vmem:[%s26137_s2 + $0x1cc] ss:$12 sps:$4 sm:$0xff]   ;;  %v20404_v33 = vld [vmem:[%s26137_s2 + $0xf0] ss:$12 sps:$4 sm:$0xff]  }
 0x19a   :  { %v838_v14 = vpop.f32.mrb[32].mxu1  ;;  %v20412_v12 = vld [vmem:[%s26137_s2 + $0x10c] ss:$12 sps:$4 sm:$0xff]  }
 0x19b   :  { %v928_v37 = vadd.f32 %v838_v14, %v713_v45  ;;  %v840_v38 = vpop.f32.mrb[33].mxu1  ;;  %v20407_v45 = vld [vmem:[%s26137_s2 + $0x198] ss:$12 sps:$4 sm:$0xff]   ;;  %v20425_v14 = vld [vmem:[%s26137_s2 + $0x1e0] ss:$12 sps:$4 sm:$0xff]  }
 0x19c   :  { %v929_v41 = vadd.f32 %v840_v38, %v714_v4  ;;  %v842_v43 = vpop.f32.mrb[34].mxu1  ;;  %4565 = vmatpush1.bf16.msra.mxu1 %v20380_v34  ;;  %4602 = vmatpush1.bf16.msra.mxu0 %v20407_v45  ;;  %v20427_v34 = vld [vmem:[%s26137_s2 + $0x1e4] ss:$12 sps:$4 sm:$0xff]  }
 0x19d   :  { %v843_v49 = vpop.f32.mrb[35].mxu1  ;;  %4566 = vmatprep.subr.bf16.mxu1 %v20385_v35 }
 0x19e   :  { %v1309_v48 = vpop.f32.mrb[36].mxu0  ;;  %v20410_v49 = vld [vmem:[%s26137_s2 + $0x108] ss:$12 sps:$4 sm:$0xff]  }
 0x19f   :  { %v1360_v50 = vadd.f32 %v1309_v48, %v1145_v15  ;;  %v1311_v51 = vpop.f32.mrb[37].mxu0  ;;  %v20415_v15 = vld [vmem:[%s26137_s2 + $0x1b4] ss:$12 sps:$4 sm:$0xff]  }
 0x1a0   :  { %v1361_v18 = vadd.f32 %v1311_v51, %v1146_v56  ;;  %v1313_v24 = vpop.f32.mrb[38].mxu0  ;;  %4567 = vmatpush1.bf16.msra.mxu1 %v20383_v40  ;;  %v20400_v56 = vld [vmem:[%s26137_s2 + $0xdc] ss:$12 sps:$4 sm:$0xff]   ;;  %4603 = vmatprep.subr.bf16.mxu0 %v20415_v15 }
 0x1a1   :  { %v1314_v42 = vpop.f32.mrb[39].mxu0  ;;  %4568 = vmatprep.subr.bf16.mxu1 %v20388_v47  ;;  %4604 = vmatpush1.bf16.msra.mxu0 %v20413_v5  ;;  %v20418_v47 = vld [vmem:[%s26137_s2 + $0x124] ss:$12 sps:$4 sm:$0xff]   ;;  %v20433_v51 = vld [vmem:[%s26137_s2 + $0x1fc] ss:$12 sps:$4 sm:$0xff]  }
 0x1a2   :  { %v920_v58 = vpop.f32.mrb[36].mxu1  ;;  %4605 = vmatprep.subr.bf16.mxu0 %v20421_v30  ;;  %v20452_v5 = vld [vmem:[%s26137_s2 + $0x25c] ss:$12 sps:$4 sm:$0xff]  }
 0x1a3   :  { %v932_v59 = vadd.f32 %v920_v58, %v717_v23  ;;  %v19075_v53 = vpop.f32.mrb[37].mxu1  ;;  %v20416_v58 = vld [vmem:[%s26137_s2 + $0x120] ss:$12 sps:$4 sm:$0xff]  }
 0x1a4   :  { %v923_v36 = vpop.f32.mrb[38].mxu1  ;;  %4569 = vmatpush1.bf16.msra.mxu1 %v20386_v52 }
 0x1a5   :  { %v19076_v55 = vpop.f32.mrb[39].mxu1  ;;  %4570 = vmatprep.subr.bf16.mxu1 %v20391_v54  ;;  %4606 = vmatpush1.bf16.msra.mxu0 %v20419_v22  ;;  %v20424_v36 = vld [vmem:[%s26137_s2 + $0x13c] ss:$12 sps:$4 sm:$0xff]  }
 0x1a6   :  { %v1442_v28 = vpop.f32.mrb[40].mxu0  ;;  %4607 = vmatprep.subr.bf16.mxu0 %v20427_v34 }
 0x1a7   :  { %v1571_v57 = vadd.f32 %v1442_v28, %v1356_v11  ;;  %v1444_v63 = vpop.f32.mrb[41].mxu0 }
 0x1a8   :  { %v1572_v60 = vadd.f32 %v1444_v63, %v1357_v32  ;;  %v1446_v2 = vpop.f32.mrb[42].mxu0  ;;  %4571 = vmatpush1.bf16.msra.mxu1 %v20389_v46  ;;  %v20437_v46 = vld [vmem:[%s26137_s2 + $0x210] ss:$12 sps:$4 sm:$0xff]   ;;  %v20442_v63 = vld [vmem:[%s26137_s2 + $0x22c] ss:$12 sps:$4 sm:$0xff]  }
 0x1a9   :  { %v1447_v0 = vpop.f32.mrb[43].mxu0  ;;  %4572 = vmatprep.subr.bf16.mxu1 %v20394_v62  ;;  %4608 = vmatpush1.bf16.msra.mxu0 %v20425_v14  ;;  %v20430_v2 = vld [vmem:[%s26137_s2 + $0x154] ss:$12 sps:$4 sm:$0xff]  }
 0x1aa   :  { %v1053_v4 = vpop.f32.mrb[40].mxu1  ;;  %4609 = vmatprep.subr.bf16.mxu0 %v20433_v51 }
 0x1ab   :  { %v1143_v8 = vadd.f32 %v1053_v4, %v928_v37  ;;  %v1055_v9 = vpop.f32.mrb[41].mxu1  ;;  %v20428_v4 = vld [vmem:[%s26137_s2 + $0x150] ss:$12 sps:$4 sm:$0xff]  }
 0x1ac   :  { %v1144_v16 = vadd.f32 %v1055_v9, %v929_v41  ;;  %v1057_v20 = vpop.f32.mrb[42].mxu1  ;;  %4573 = vmatpush1.bf16.msra.mxu1 %v20392_v6  ;;  %v20440_v6 = vld [vmem:[%s26137_s2 + $0x228] ss:$12 sps:$4 sm:$0xff]  }
 0x1ad   :  { %v1058_v21 = vpop.f32.mrb[43].mxu1  ;;  %4574 = vmatprep.subr.bf16.mxu1 %v20397_v1  ;;  %v20445_v20 = vld [vmem:[%s26137_s2 + $0x240] ss:$12 sps:$4 sm:$0xff]  }
 0x1ae   :  { %v1524_v19 = vpop.f32.mrb[44].mxu0 }
 0x1af   :  { %v1575_v13 = vadd.f32 %v1524_v19, %v1360_v50  ;;  %v1526_v17 = vpop.f32.mrb[45].mxu0  ;;  %v20431_v50 = vld [vmem:[%s26137_s2 + $0x1f8] ss:$12 sps:$4 sm:$0xff]  }
 0x1b0   :  { %v1576_v25 = vadd.f32 %v1526_v17, %v1361_v18  ;;  %v1528_v23 = vpop.f32.mrb[46].mxu0  ;;  %4575 = vmatpush1.bf16.msra.mxu1 %v20395_v10  ;;  %4610 = vmatpush1.bf16.msra.mxu0 %v20431_v50  ;;  %v20450_v17 = vld [vmem:[%s26137_s2 + $0x258] ss:$12 sps:$4 sm:$0xff]   ;;  %v20465_v50 = vld [vmem:[%s26137_s2 + $0x2a0] ss:$12 sps:$4 sm:$0xff]  }
 0x1b1   :  { %v1529_v29 = vpop.f32.mrb[47].mxu0  ;;  %4576 = vmatprep.subr.bf16.mxu1 %v20400_v56  ;;  %v20434_v56 = vld [vmem:[%s26137_s2 + $0x168] ss:$12 sps:$4 sm:$0xff]  }
 0x1b2   :  { %v1135_v31 = vpop.f32.mrb[44].mxu1  ;;  %v20443_v23 = vld [vmem:[%s26137_s2 + $0xc8] ss:$12 sps:$4 sm:$0xff]  }
 0x1b3   :  { %v1147_v11 = vadd.f32 %v1135_v31, %v932_v59  ;;  %v19081_v44 = vpop.f32.mrb[45].mxu1  ;;  %v20439_v59 = vld [vmem:[%s26137_s2 + $0x214] ss:$12 sps:$4 sm:$0xff]  }
 0x1b4   :  { %v1138_v32 = vpop.f32.mrb[46].mxu1  ;;  %4577 = vmatpush1.bf16.msra.mxu1 %v20398_v27  ;;  %4611 = vmatprep.subr.bf16.mxu0 %v20439_v59  ;;  %v20457_v31 = vld [vmem:[%s26137_s2 + $0x274] ss:$12 sps:$4 sm:$0xff]   ;;  %v20455_v44 = vld [vmem:[%s26137_s2 + $0x270] ss:$12 sps:$4 sm:$0xff]  }
 0x1b5   :  { %v19082_v35 = vpop.f32.mrb[47].mxu1  ;;  %4578 = vmatprep.subr.bf16.mxu1 %v20406_v39  ;;  %4612 = vmatpush1.bf16.msra.mxu0 %v20437_v46 }
 0x1b6   :  { %v1657_v37 = vpop.f32.mrb[48].mxu0  ;;  %4613 = vmatprep.subr.bf16.mxu0 %v20442_v63  ;;  %v20462_v35 = vld [vmem:[%s26137_s2 + $0x28c] ss:$12 sps:$4 sm:$0xff]  }
 0x1b7   :  { %v1786_v38 = vadd.f32 %v1657_v37, %v1571_v57  ;;  %v1659_v41 = vpop.f32.mrb[49].mxu0  ;;  %v20422_v57 = vld [vmem:[%s26137_s2 + $0x138] ss:$12 sps:$4 sm:$0xff]   ;;  %v20460_v37 = vld [vmem:[%s26137_s2 + $0x288] ss:$12 sps:$4 sm:$0xff]  }
 0x1b8   :  { %v1787_v43 = vadd.f32 %v1659_v41, %v1572_v60  ;;  %v1661_v40 = vpop.f32.mrb[50].mxu0  ;;  %4579 = vmatpush1.bf16.msra.mxu1 %v20404_v33 }
 0x1b9   :  { %v1662_v48 = vpop.f32.mrb[51].mxu0  ;;  %4580 = vmatprep.subr.bf16.mxu1 %v20412_v12  ;;  %4614 = vmatpush1.bf16.msra.mxu0 %v20440_v6 }
 0x1ba   :  { %v1268_v18 = vpop.f32.mrb[48].mxu1 }
 0x1bb   :  { %v1358_v24 = vadd.f32 %v1268_v18, %v1143_v8  ;;  %v1270_v52 = vpop.f32.mrb[49].mxu1  ;;  %v20447_v8 = vld [vmem:[%s26137_s2 + $0x244] ss:$12 sps:$4 sm:$0xff]  }
 0x1bc   :  { %v1359_v54 = vadd.f32 %v1270_v52, %v1144_v16  ;;  %v1272_v42 = vpop.f32.mrb[50].mxu1  ;;  %4581 = vmatpush1.bf16.msra.mxu1 %v20410_v49  ;;  %v20436_v16 = vld [vmem:[%s26137_s2 + $0x16c] ss:$12 sps:$4 sm:$0xff]   ;;  %4615 = vmatprep.subr.bf16.mxu0 %v20447_v8  ;;  %v20472_v52 = vld [vmem:[%s26137_s2 + $0x2bc] ss:$12 sps:$4 sm:$0xff]  }
 0x1bd   :  { %v1273_v53 = vpop.f32.mrb[51].mxu1  ;;  %4582 = vmatprep.subr.bf16.mxu1 %v20418_v47  ;;  %4616 = vmatpush1.bf16.msra.mxu0 %v20445_v20  ;;  %v20467_v47 = vld [vmem:[%s26137_s2 + $0x2a4] ss:$12 sps:$4 sm:$0xff]  }
 0x1be   :  { %v1739_v61 = vpop.f32.mrb[52].mxu0  ;;  %4617 = vmatprep.subr.bf16.mxu0 %v20452_v5 }
 0x1bf   :  { %v1790_v55 = vadd.f32 %v1739_v61, %v1575_v13  ;;  %v1741_v62 = vpop.f32.mrb[53].mxu0 }
 0x1c0   :  { %v1791_v26 = vadd.f32 %v1741_v62, %v1576_v25  ;;  %v1743_v28 = vpop.f32.mrb[54].mxu0  ;;  %4583 = vmatpush1.bf16.msra.mxu1 %v20416_v58  ;;  %v20470_v58 = vld [vmem:[%s26137_s2 + $0x2b8] ss:$12 sps:$4 sm:$0xff]   ;;  %v20477_v62 = vld [vmem:[%s26137_s2 + $0x2d4] ss:$12 sps:$4 sm:$0xff]  }
 0x1c1   :  { %v1744_v60 = vpop.f32.mrb[55].mxu0  ;;  %4584 = vmatprep.subr.bf16.mxu1 %v20424_v36  ;;  %4618 = vmatpush1.bf16.msra.mxu0 %v20450_v17  ;;  %v20475_v28 = vld [vmem:[%s26137_s2 + $0x2d0] ss:$12 sps:$4 sm:$0xff]  }
 0x1c2   :  { %v1350_v1 = vpop.f32.mrb[52].mxu1  ;;  %4619 = vmatprep.subr.bf16.mxu0 %v20457_v31 }
 0x1c3   :  { %v1362_v0 = vadd.f32 %v1350_v1, %v1147_v11  ;;  %v19087_v45 = vpop.f32.mrb[53].mxu1  ;;  %v20482_v1 = vld [vmem:[%s26137_s2 + $0x2ec] ss:$12 sps:$4 sm:$0xff]  }
 0x1c4   :  { %v1353_v7 = vpop.f32.mrb[54].mxu1  ;;  %4585 = vmatpush1.bf16.msra.mxu1 %v20422_v57  ;;  %v20480_v45 = vld [vmem:[%s26137_s2 + $0x2e8] ss:$12 sps:$4 sm:$0xff]  }
 0x1c5   :  { %v19088_v9 = vpop.f32.mrb[55].mxu1  ;;  %4586 = vmatprep.subr.bf16.mxu1 %v20430_v2  ;;  %4620 = vmatpush1.bf16.msra.mxu0 %v20455_v44 }
 0x1c6   :  { %v1872_v10 = vpop.f32.mrb[56].mxu0  ;;  %4621 = vmatprep.subr.bf16.mxu0 %v20462_v35 }
 0x1c7   :  { %v2001_v15 = vadd.f32 %v1872_v10, %v1786_v38  ;;  %v1874_v21 = vpop.f32.mrb[57].mxu0 }
 0x1c8   :  { %v2002_v19 = vadd.f32 %v1874_v21, %v1787_v43  ;;  %v1876_v13 = vpop.f32.mrb[58].mxu0  ;;  %4587 = vmatpush1.bf16.msra.mxu1 %v20428_v4 }
 0x1c9   :  { %v1877_v25 = vpop.f32.mrb[59].mxu0  ;;  %4588 = vmatprep.subr.bf16.mxu1 %v20436_v16  ;;  %4622 = vmatpush1.bf16.msra.mxu0 %v20460_v37  ;;  %v20487_v16 = vld [vmem:[%s26137_s2 + $0x304] ss:$12 sps:$4 sm:$0xff]  }
 0x1ca   :  { %v1483_v27 = vpop.f32.mrb[56].mxu1  ;;  %4623 = vmatprep.subr.bf16.mxu0 %v20467_v47 }
 0x1cb   :  { %v1573_v39 = vadd.f32 %v1483_v27, %v1358_v24  ;;  %v1485_v29 = vpop.f32.mrb[57].mxu1 }
 0x1cc   :  { %v1574_v22 = vadd.f32 %v1485_v29, %v1359_v54  ;;  %v1487_v30 = vpop.f32.mrb[58].mxu1  ;;  %4589 = vmatpush1.bf16.msra.mxu1 %v20434_v56 }
 0x1cd   :  { %v1488_v11 = vpop.f32.mrb[59].mxu1  ;;  %18768 = vmatprep.subr.bf16.mxu1 %v20443_v23  ;;  %4624 = vmatpush1.bf16.msra.mxu0 %v20465_v50 }
 0x1ce   :  { %v1954_v32 = vpop.f32.mrb[60].mxu0  ;;  %4625 = vmatprep.subr.bf16.mxu0 %v20472_v52 }
 0x1cf   :  { %v2005_v33 = vadd.f32 %v1954_v32, %v1790_v55  ;;  %v1956_v34 = vpop.f32.mrb[61].mxu0 }
 0x1d0   :  { %v2006_v12 = vadd.f32 %v1956_v34, %v1791_v26  ;;  %v1958_v14 = vpop.f32.mrb[62].mxu0 }
 0x1d1   :  { %v1959_v38 = vpop.f32.mrb[63].mxu0  ;;  %4626 = vmatpush1.bf16.msra.mxu0 %v20470_v58 }
 0x1d2   :  { %v1565_v41 = vpop.f32.mrb[60].mxu1  ;;  %4627 = vmatprep.subr.bf16.mxu0 %v20477_v62 }
 0x1d3   :  { %v1577_v43 = vadd.f32 %v1565_v41, %v1362_v0  ;;  %v19093_v40 = vpop.f32.mrb[61].mxu1 }
 0x1d4   :  { %v1568_v49 = vpop.f32.mrb[62].mxu1 }
 0x1d5   :  { %v19094_v48 = vpop.f32.mrb[63].mxu1  ;;  %4628 = vmatpush1.bf16.msra.mxu0 %v20475_v28 }
 0x1d6   :  { %v2087_v51 = vpop.f32.mrb[64].mxu0  ;;  %4629 = vmatprep.subr.bf16.mxu0 %v20482_v1 }
 0x1d7   :  { %v2216_v18 = vadd.f32 %v2087_v51, %v2001_v15  ;;  %v2089_v24 = vpop.f32.mrb[65].mxu0 }
 0x1d8   :  { %v2217_v54 = vadd.f32 %v2089_v24, %v2002_v19  ;;  %v2091_v42 = vpop.f32.mrb[66].mxu0 }
 0x1d9   :  { %v2092_v59 = vpop.f32.mrb[67].mxu0  ;;  %4630 = vmatpush1.bf16.msra.mxu0 %v20480_v45 }
 0x1da   :  { %v1698_v53 = vpop.f32.mrb[64].mxu1  ;;  %4640 = vmatprep.subr.bf16.mxu0 %v20487_v16 }
 0x1db   :  { %v1788_v36 = vadd.f32 %v1698_v53, %v1573_v39  ;;  %v1700_v46 = vpop.f32.mrb[65].mxu1 }
 0x1dc   :  { %v1789_v61 = vadd.f32 %v1700_v46, %v1574_v22  ;;  %v1702_v55 = vpop.f32.mrb[66].mxu1 }
 0x1dd   :  { %v1703_v26 = vpop.f32.mrb[67].mxu1 }
 0x1de   :  { %v2169_v57 = vpop.f32.mrb[68].mxu0 }
 0x1df   :  { %v2220_v63 = vadd.f32 %v2169_v57, %v2005_v33  ;;  %v2171_v60 = vpop.f32.mrb[69].mxu0 }
 0x1e0   :  { %v2221_v2 = vadd.f32 %v2171_v60, %v2006_v12  ;;  %v2173_v6 = vpop.f32.mrb[70].mxu0 }
 0x1e1   :  { %v2174_v0 = vpop.f32.mrb[71].mxu0 }
 0x1e2   :  { %v1780_v7 = vpop.f32.mrb[68].mxu1 }
 0x1e3   :  { %v1792_v4 = vadd.f32 %v1780_v7, %v1577_v43  ;;  %v19099_v8 = vpop.f32.mrb[69].mxu1 }
 0x1e4   :  { %v1783_v9 = vpop.f32.mrb[70].mxu1 }
 0x1e5   :  { %v19100_v20 = vpop.f32.mrb[71].mxu1 }
 0x1e6   :  { %v2302_v10 = vpop.f32.mrb[72].mxu0 }
 0x1e7   :  { %v2431_v15 = vadd.f32 %v2302_v10, %v2216_v18  ;;  %v2304_v21 = vpop.f32.mrb[73].mxu0 }
 0x1e8   :  { %v2432_v56 = vadd.f32 %v2304_v21, %v2217_v54  ;;  %v2306_v5 = vpop.f32.mrb[74].mxu0 }
 0x1e9   :  { %v2307_v19 = vpop.f32.mrb[75].mxu0 }
 0x1ea   :  { %v1913_v13 = vpop.f32.mrb[72].mxu1 }
 0x1eb   :  { %v2003_v17 = vadd.f32 %v1913_v13, %v1788_v36  ;;  %v1915_v25 = vpop.f32.mrb[73].mxu1 }
 0x1ec   :  { %v2004_v23 = vadd.f32 %v1915_v25, %v1789_v61  ;;  %v1917_v27 = vpop.f32.mrb[74].mxu1 }
 0x1ed   :  { %v1918_v39 = vpop.f32.mrb[75].mxu1 }
 0x1ee   :  { %v2384_v29 = vpop.f32.mrb[76].mxu0 }
 0x1ef   :  { %v2435_v22 = vadd.f32 %v2384_v29, %v2220_v63  ;;  %v2386_v30 = vpop.f32.mrb[77].mxu0 }
 0x1f0   :  { %v2436_v31 = vadd.f32 %v2386_v30, %v2221_v2  ;;  %v2388_v11 = vpop.f32.mrb[78].mxu0 }
 0x1f1   :  { %v2389_v44 = vpop.f32.mrb[79].mxu0 }
 0x1f2   :  { %v1995_v32 = vpop.f32.mrb[76].mxu1 }
 0x1f3   :  { %v2007_v33 = vadd.f32 %v1995_v32, %v1792_v4  ;;  %v19105_v34 = vpop.f32.mrb[77].mxu1 }
 0x1f4   :  { %v1998_v35 = vpop.f32.mrb[78].mxu1 }
 0x1f5   :  { %v19106_v12 = vpop.f32.mrb[79].mxu1 }
 0x1f6   :  { %v2517_v14 = vpop.f32.mrb[80].mxu0 }
 0x1f7   :  { %v2646_v37 = vadd.f32 %v2517_v14, %v2431_v15  ;;  %v2519_v38 = vpop.f32.mrb[81].mxu0 }
 0x1f8   :  { %v2647_v41 = vadd.f32 %v2519_v38, %v2432_v56  ;;  %v2521_v43 = vpop.f32.mrb[82].mxu0 }
 0x1f9   :  { %v2522_v40 = vpop.f32.mrb[83].mxu0 }
 0x1fa   :  { %v2128_v49 = vpop.f32.mrb[80].mxu1 }
 0x1fb   :  { %v2218_v47 = vadd.f32 %v2128_v49, %v2003_v17  ;;  %v2130_v48 = vpop.f32.mrb[81].mxu1 }
 0x1fc   :  { %v2219_v50 = vadd.f32 %v2130_v48, %v2004_v23  ;;  %v2132_v51 = vpop.f32.mrb[82].mxu1 }
 0x1fd   :  { %v2133_v18 = vpop.f32.mrb[83].mxu1 }
 0x1fe   :  { %v2599_v24 = vpop.f32.mrb[84].mxu0 }
 0x1ff   :  { %v2650_v52 = vadd.f32 %v2599_v24, %v2435_v22  ;;  %v2601_v54 = vpop.f32.mrb[85].mxu0 }
 0x200   :  { %v2651_v42 = vadd.f32 %v2601_v54, %v2436_v31  ;;  %v2603_v58 = vpop.f32.mrb[86].mxu0 }
 0x201   :  { %v2604_v59 = vpop.f32.mrb[87].mxu0 }
 0x202   :  { %v2210_v53 = vpop.f32.mrb[84].mxu1 }
 0x203   :  { %v2222_v36 = vadd.f32 %v2210_v53, %v2007_v33  ;;  %v19111_v46 = vpop.f32.mrb[85].mxu1 }
 0x204   :  { %v2213_v61 = vpop.f32.mrb[86].mxu1 }
 0x205   :  { %v19112_v55 = vpop.f32.mrb[87].mxu1 }
 0x206   :  { %v2732_v62 = vpop.f32.mrb[88].mxu0 }
 0x207   :  { %v2861_v26 = vadd.f32 %v2732_v62, %v2646_v37  ;;  %v2734_v28 = vpop.f32.mrb[89].mxu0 }
 0x208   :  { %v2862_v57 = vadd.f32 %v2734_v28, %v2647_v41  ;;  %v2736_v63 = vpop.f32.mrb[90].mxu0 }
 0x209   :  { %v2737_v60 = vpop.f32.mrb[91].mxu0 }
 0x20a   :  { %v2343_v2 = vpop.f32.mrb[88].mxu1 }
 0x20b   :  { %v2433_v6 = vadd.f32 %v2343_v2, %v2218_v47  ;;  %v2345_v1 = vpop.f32.mrb[89].mxu1 }
 0x20c   :  { %v2434_v0 = vadd.f32 %v2345_v1, %v2219_v50  ;;  %v2347_v45 = vpop.f32.mrb[90].mxu1 }
 0x20d   :  { %v2348_v7 = vpop.f32.mrb[91].mxu1 }
 0x20e   :  { %v2814_v4 = vpop.f32.mrb[92].mxu0 }
 0x20f   :  { %v2865_v8 = vadd.f32 %v2814_v4, %v2650_v52  ;;  %v2816_v9 = vpop.f32.mrb[93].mxu0 }
 0x210   :  { %v2866_v16 = vadd.f32 %v2816_v9, %v2651_v42  ;;  %v2818_v20 = vpop.f32.mrb[94].mxu0 }
 0x211   :  { %v2819_v10 = vpop.f32.mrb[95].mxu0 }
 0x212   :  { %v2425_v15 = vpop.f32.mrb[92].mxu1 }
 0x213   :  { %v2437_v21 = vadd.f32 %v2425_v15, %v2222_v36  ;;  %v19117_v56 = vpop.f32.mrb[93].mxu1 }
 0x214   :  { %v2428_v5 = vpop.f32.mrb[94].mxu1 }
 0x215   :  { %v19118_v19 = vpop.f32.mrb[95].mxu1 }
 0x216   :  { %v2947_v13 = vpop.f32.mrb[96].mxu0 }
 0x217   :  { %v3076_v17 = vadd.f32 %v2947_v13, %v2861_v26  ;;  %v2949_v25 = vpop.f32.mrb[97].mxu0 }
 0x218   :  { %v3077_v23 = vadd.f32 %v2949_v25, %v2862_v57  ;;  %v2951_v27 = vpop.f32.mrb[98].mxu0 }
 0x219   :  { %v2952_v39 = vpop.f32.mrb[99].mxu0 }
 0x21a   :  { %v2558_v29 = vpop.f32.mrb[96].mxu1 }
 0x21b   :  { %v2648_v22 = vadd.f32 %v2558_v29, %v2433_v6  ;;  %v2560_v30 = vpop.f32.mrb[97].mxu1  ;;  %v22199_v6 = vpop.permute.xlu1 %3516  ;;  %v20444_v29 = vld [vmem:[%s26137_s2 + $0x8] ss:$12 sps:$4 sm:$0xff]  }
 0x21c   :  { %v2649_v31 = vadd.f32 %v2560_v30, %v2434_v0  ;;  %v2562_v11 = vpop.f32.mrb[98].mxu1 }
 0x21d   :  { %v2563_v44 = vpop.f32.mrb[99].mxu1 }
 0x21e   :  { %v3029_v32 = vpop.f32.mrb[100].mxu0 }
 0x21f   :  { %v3080_v33 = vadd.f32 %v3029_v32, %v2865_v8  ;;  %v3031_v34 = vpop.f32.mrb[101].mxu0 }
 0x220   :  { %v3081_v35 = vadd.f32 %v3031_v34, %v2866_v16  ;;  %v3033_v12 = vpop.f32.mrb[102].mxu0 }
 0x221   :  { %v3034_v14 = vpop.f32.mrb[103].mxu0 }
 0x222   :  { %v2640_v37 = vpop.f32.mrb[100].mxu1  ;;  %v20453_v14 = vld [vmem:[%s26137_s2 + $0xf8] ss:$12 sps:$4 sm:$0xff]  }
 0x223   :  { %v2652_v38 = vadd.f32 %v2640_v37, %v2437_v21  ;;  %v19123_v41 = vpop.f32.mrb[101].mxu1 }
 0x224   :  { %v2643_v43 = vpop.f32.mrb[102].mxu1  ;;  %v20458_v41 = vld [vmem:[%s26137_s2 + $0x110] ss:$12 sps:$4 sm:$0xff]  }
 0x225   :  { %v19124_v40 = vpop.f32.mrb[103].mxu1 }
 0x226   :  { %v3162_v49 = vpop.f32.mrb[104].mxu0 }
 0x227   :  { %v3291_v47 = vadd.f32 %v3162_v49, %v3076_v17  ;;  %v3164_v48 = vpop.f32.mrb[105].mxu0 }
 0x228   :  { %v3292_v50 = vadd.f32 %v3164_v48, %v3077_v23  ;;  %v3166_v51 = vpop.f32.mrb[106].mxu0 }
 0x229   :  { %v3167_v18 = vpop.f32.mrb[107].mxu0  ;;  %v20463_v51 = vld [vmem:[%s26137_s2 + $0x128] ss:$12 sps:$4 sm:$0xff]  }
 0x22a   :  { %v2773_v24 = vpop.f32.mrb[104].mxu1 }
 0x22b   :  { %v2863_v52 = vadd.f32 %v2773_v24, %v2648_v22  ;;  %v2775_v54 = vpop.f32.mrb[105].mxu1  ;;  %v20464_v24 = vld [vmem:[%s26137_s2 + $0x68] ss:$12 sps:$4 sm:$0xff]  }
 0x22c   :  { %v2864_v42 = vadd.f32 %v2775_v54, %v2649_v31  ;;  %v2777_v58 = vpop.f32.mrb[106].mxu1  ;;  %v20448_v31 = vld [vmem:[%s26137_s2 + $0xe0] ss:$12 sps:$4 sm:$0xff]  }
 0x22d   :  { %v2778_v59 = vpop.f32.mrb[107].mxu1 }
 0x22e   :  { %v3244_v53 = vpop.f32.mrb[108].mxu0  ;;  %v20469_v59 = vld [vmem:[%s26137_s2 + $0x80] ss:$12 sps:$4 sm:$0xff]  }
 0x22f   :  { %v3295_v36 = vadd.f32 %v3244_v53, %v3080_v33  ;;  %v3246_v46 = vpop.f32.mrb[109].mxu0 }
 0x230   :  { %v3296_v61 = vadd.f32 %v3246_v46, %v3081_v35  ;;  %v3248_v55 = vpop.f32.mrb[110].mxu0  ;;  %v20449_v35 = vld [vmem:[%s26137_s2 + $0x20] ss:$12 sps:$4 sm:$0xff]  }
 0x231   :  { %v3249_v62 = vpop.f32.mrb[111].mxu0  ;;  %v20478_v55 = vld [vmem:[%s26137_s2 + $0x170] ss:$12 sps:$4 sm:$0xff]  }
 0x232   :  { %v2855_v26 = vpop.f32.mrb[108].mxu1 }
 0x233   :  { %v2867_v28 = vadd.f32 %v2855_v26, %v2652_v38  ;;  %v19129_v57 = vpop.f32.mrb[109].mxu1  ;;  %v20454_v38 = vld [vmem:[%s26137_s2 + $0x38] ss:$12 sps:$4 sm:$0xff]  }
 0x234   :  { %v2858_v63 = vpop.f32.mrb[110].mxu1 }
 0x235   :  { %v19130_v60 = vpop.f32.mrb[111].mxu1  ;;  %v20479_v63 = vld [vmem:[%s26137_s2 + $0xb0] ss:$12 sps:$4 sm:$0xff]  }
 0x236   :  { %v3377_v2 = vpop.f32.mrb[112].mxu0 }
 0x237   :  { %v3506_v1 = vadd.f32 %v3377_v2, %v3291_v47  ;;  %v3379_v0 = vpop.f32.mrb[113].mxu0  ;;  %v20459_v47 = vld [vmem:[%s26137_s2 + $0x50] ss:$12 sps:$4 sm:$0xff]  }
 0x238   :  { %v3507_v45 = vadd.f32 %v3379_v0, %v3292_v50  ;;  %v3381_v7 = vpop.f32.mrb[114].mxu0 }
 0x239   :  { %v3382_v4 = vpop.f32.mrb[115].mxu0  ;;  %v3519_v8 = vadd.f32 %v22199_v6, %v3506_v1  ;;  %v20483_v1 = vld [vmem:[%s26137_s2 + $0x248] ss:$12 sps:$4 sm:$0xff]  }
 0x23a   :  { %v2988_v9 = vpop.f32.mrb[112].mxu1  ;;  %v3520_v16 = vadd.f32 %v22199_v6, %v3507_v45  ;;  %v20484_v4 = vld [vmem:[%s26137_s2 + $0x188] ss:$12 sps:$4 sm:$0xff]  }
 0x23b   :  { %v3078_v20 = vadd.f32 %v2988_v9, %v2863_v52  ;;  %v2990_v10 = vpop.f32.mrb[113].mxu1  ;;  %vm3526_vm0 = vcmp.gt.f32.partialorder %v3519_v8, 0.0  ;;  %v3533_v15 = vmul.f32 0.2, %v3519_v8  ;;  %v20468_v52 = vld [vmem:[%s26137_s2 + $0x140] ss:$12 sps:$4 sm:$0xff]  }
 0x23c   :  { %v3079_v21 = vadd.f32 %v2990_v10, %v2864_v42  ;;  %v2992_v56 = vpop.f32.mrb[114].mxu1  ;;  %vm3527_vm1 = vcmp.gt.f32.partialorder %v3520_v16, 0.0  ;;  %v3534_v5 = vmul.f32 0.2, %v3520_v16 }
 0x23d   :  { %v2993_v19 = vpop.f32.mrb[115].mxu1  ;;  %v3540_v13 = vsel %vm3526_vm0, %v3519_v8, %v3533_v15 }
 0x23e   :  { %v3459_v17 = vpop.f32.mrb[116].mxu0  ;;  %v3541_v25 = vsel %vm3527_vm1, %v3520_v16, %v3534_v5  ;;  %v22208_v30 = vpack.c.bf16 %v3540_v13, %v3540_v13  ;;  %v20485_v19 = vld [vmem:[%s26137_s2 + $0x300] ss:$12 sps:$4 sm:$0xff]  }
 0x23f   :  { %v22203_v23 = vadd.f32 %v3459_v17, %v3295_v36  ;;  %v3461_v27 = vpop.f32.mrb[117].mxu0  ;;  %v3548_v39 = vpack.c.bf16 %v3541_v25, %v3541_v25  ;;  %v20473_v36 = vld [vmem:[%s26137_s2 + $0x158] ss:$12 sps:$4 sm:$0xff]   ;;  %v20489_v13 = vld [vmem:[%s26137_s2 + $0x1a0] ss:$12 sps:$4 sm:$0xff]  }
 0x240   :  { %v3511_v22 = vadd.f32 %v3461_v27, %v3296_v61  ;;  %v3463_v11 = vpop.f32.mrb[118].mxu0  ;;  %v20474_v61 = vld [vmem:[%s26137_s2 + $0x98] ss:$12 sps:$4 sm:$0xff]  }
 0x241   :  { %4590 = vmatprep.mubr.bf16.mxu1 %v3548_v39  ;;  %v3464_v44 = vpop.f32.mrb[119].mxu0  ;;  %v20490_v11 = vld [vmem:[%s26137_s2 + $0x318] ss:$12 sps:$4 sm:$0xff]  }
 0x242   :  { %v3070_v32 = vpop.f32.mrb[116].mxu1  ;;  %4591 = vmatmul.mubr.bf16.vlgmr.msra.gmra.mrb[136].mxu1 %v22208_v30  ;;  %v3524_v26 = vadd.f32 %v22199_v6, %v3511_v22  ;;  %v20493_v22 = vld [vmem:[%s26137_s2 + $0x278] ss:$12 sps:$4 sm:$0xff]  }
 0x243   :  { %v3082_v33 = vadd.f32 %v3070_v32, %v2867_v28  ;;  %18769 = vmatpush3.bf16.msra.mxu1 %v20444_v29  ;;  %v19135_v34 = vpop.f32.mrb[117].mxu1  ;;  %4754 = vmatprep.mubr.bf16.mxu1 %v3548_v39  ;;  %v20492_v39 = vld [vmem:[%s26137_s2 + $0x31c] ss:$12 sps:$4 sm:$0xff]   ;;  %v20494_v44 = vld [vmem:[%s26137_s2 + $0x1b8] ss:$12 sps:$4 sm:$0xff]  }
 0x244   :  { %v3073_v12 = vpop.f32.mrb[118].mxu1  ;;  %18770 = vmatprep.subr.bf16.mxu1 %v20448_v31  ;;  %v3538_v8 = vmul.f32 0.2, %v3524_v26  ;;  %vm3531_vm13 = vcmp.gt.f32.partialorder %v3524_v26, 0.0  ;;  %v20497_v32 = vld [vmem:[%s26137_s2 + $0x334] ss:$12 sps:$4 sm:$0xff]  }
 0x245   :  { %v19136_v37 = vpop.f32.mrb[119].mxu1  ;;  %v20495_v34 = vld [vmem:[%s26137_s2 + $0x330] ss:$12 sps:$4 sm:$0xff]   ;;  %v20502_v12 = vld [vmem:[%s26137_s2 + $0x34c] ss:$12 sps:$4 sm:$0xff]  }
 0x246   :  { %v3545_v17 = vsel %vm3531_vm13, %v3524_v26, %v3538_v8  ;;  %v20500_v37 = vld [vmem:[%s26137_s2 + $0x348] ss:$12 sps:$4 sm:$0xff]   ;;  %v20533_v26 = vld [vmem:[%s26137_s2 + $0x3f8] ss:$12 sps:$4 sm:$0xff]  }
 0x247   :  { %18771 = vmatpush3.bf16.msra.mxu1 %v20449_v35  ;;  %v3552_v31 = vpack.c.bf16 %v3545_v17, %v3545_v17  ;;  %v20499_v35 = vld [vmem:[%s26137_s2 + $0x1d0] ss:$12 sps:$4 sm:$0xff]  }
 0x248   :  { %18772 = vmatprep.subr.bf16.mxu1 %v20453_v14  ;;  %v20503_v14 = vld [vmem:[%s26137_s2 + $0x2a8] ss:$12 sps:$4 sm:$0xff]   ;;  %v20547_v8 = vld [vmem:[%s26137_s2 + $0x424] ss:$12 sps:$4 sm:$0xff]  }
 0x24a   :  { %v3203_v43 = vpop.f32.mrb[120].mxu1 }
 0x24b   :  { %v3293_v40 = vadd.f32 %v3203_v43, %v3078_v20  ;;  %18773 = vmatpush3.bf16.msra.mxu1 %v20454_v38  ;;  %v3205_v49 = vpop.f32.mrb[121].mxu1  ;;  %v20488_v20 = vld [vmem:[%s26137_s2 + $0x260] ss:$12 sps:$4 sm:$0xff]   ;;  %v20504_v38 = vld [vmem:[%s26137_s2 + $0x1e8] ss:$12 sps:$4 sm:$0xff]  }
 0x24c   :  { %v3294_v48 = vadd.f32 %v3205_v49, %v3079_v21  ;;  %v3207_v50 = vpop.f32.mrb[122].mxu1  ;;  %18774 = vmatprep.subr.bf16.mxu1 %v20458_v41  ;;  %v20507_v41 = vld [vmem:[%s26137_s2 + $0x364] ss:$12 sps:$4 sm:$0xff]   ;;  %v20508_v43 = vld [vmem:[%s26137_s2 + $0x2c0] ss:$12 sps:$4 sm:$0xff]  }
 0x24d   :  { %v3208_v18 = vpop.f32.mrb[123].mxu1  ;;  %v20509_v49 = vld [vmem:[%s26137_s2 + $0x200] ss:$12 sps:$4 sm:$0xff]   ;;  %v20510_v50 = vld [vmem:[%s26137_s2 + $0x378] ss:$12 sps:$4 sm:$0xff]  }
 0x24e   :  { %v20517_v18 = vld [vmem:[%s26137_s2 + $0x394] ss:$12 sps:$4 sm:$0xff]  }
 0x24f   :  { %18775 = vmatpush3.bf16.msra.mxu1 %v20459_v47  ;;  %v20512_v47 = vld [vmem:[%s26137_s2 + $0x37c] ss:$12 sps:$4 sm:$0xff]  }
 0x250   :  { %18776 = vmatprep.subr.bf16.mxu1 %v20463_v51  ;;  %v20514_v51 = vld [vmem:[%s26137_s2 + $0x218] ss:$12 sps:$4 sm:$0xff]  }
 0x252   :  { %v3285_v54 = vpop.f32.mrb[124].mxu1 }
 0x253   :  { %v3297_v42 = vadd.f32 %v3285_v54, %v3082_v33  ;;  %18777 = vmatpush3.bf16.msra.mxu1 %v20464_v24  ;;  %v19141_v58 = vpop.f32.mrb[125].mxu1  ;;  %v20498_v33 = vld [vmem:[%s26137_s2 + $0x290] ss:$12 sps:$4 sm:$0xff]  }
 0x254   :  { %v3288_v53 = vpop.f32.mrb[126].mxu1  ;;  %18778 = vmatprep.subr.bf16.mxu1 %v20468_v52  ;;  %v20518_v24 = vld [vmem:[%s26137_s2 + $0x2f0] ss:$12 sps:$4 sm:$0xff]   ;;  %v20523_v58 = vld [vmem:[%s26137_s2 + $0x3c8] ss:$12 sps:$4 sm:$0xff]  }
 0x255   :  { %v19142_v46 = vpop.f32.mrb[127].mxu1  ;;  %v20515_v52 = vld [vmem:[%s26137_s2 + $0x390] ss:$12 sps:$4 sm:$0xff]   ;;  %v20524_v53 = vld [vmem:[%s26137_s2 + $0x308] ss:$12 sps:$4 sm:$0xff]  }
 0x256   :  { %v20519_v54 = vld [vmem:[%s26137_s2 + $0x230] ss:$12 sps:$4 sm:$0xff]   ;;  %v20528_v46 = vld [vmem:[%s26137_s2 + $0x3e0] ss:$12 sps:$4 sm:$0xff]  }
 0x257   :  { %18779 = vmatpush3.bf16.msra.mxu1 %v20469_v59  ;;  %v20520_v59 = vld [vmem:[%s26137_s2 + $0x3a8] ss:$12 sps:$4 sm:$0xff]  }
 0x258   :  { %18780 = vmatprep.subr.bf16.mxu1 %v20473_v36  ;;  %v20527_v36 = vld [vmem:[%s26137_s2 + $0x3c4] ss:$12 sps:$4 sm:$0xff]  }
 0x25a   :  { %v3418_v62 = vpop.f32.mrb[128].mxu1 }
 0x25b   :  { %v3508_v28 = vadd.f32 %v3418_v62, %v3293_v40  ;;  %18781 = vmatpush3.bf16.msra.mxu1 %v20474_v61  ;;  %v3420_v57 = vpop.f32.mrb[129].mxu1  ;;  %v20505_v40 = vld [vmem:[%s26137_s2 + $0x360] ss:$12 sps:$4 sm:$0xff]   ;;  %v20532_v62 = vld [vmem:[%s26137_s2 + $0x3dc] ss:$12 sps:$4 sm:$0xff]  }
 0x25c   :  { %v3509_v60 = vadd.f32 %v3420_v57, %v3294_v48  ;;  %v3422_v2 = vpop.f32.mrb[130].mxu1  ;;  %18782 = vmatprep.subr.bf16.mxu1 %v20478_v55  ;;  %v20513_v48 = vld [vmem:[%s26137_s2 + $0x2d8] ss:$12 sps:$4 sm:$0xff]   ;;  %v20525_v61 = vld [vmem:[%s26137_s2 + $0x3c0] ss:$12 sps:$4 sm:$0xff]  }
 0x25d   :  { %v3521_v0 = vadd.f32 %v22199_v6, %v3508_v28  ;;  %v3423_v45 = vpop.f32.mrb[131].mxu1  ;;  %v20529_v55 = vld [vmem:[%s26137_s2 + $0x320] ss:$12 sps:$4 sm:$0xff]   ;;  %v20530_v28 = vld [vmem:[%s26137_s2 + $0x3d8] ss:$12 sps:$4 sm:$0xff]  }
 0x25e   :  { %v3522_v7 = vadd.f32 %v22199_v6, %v3509_v60  ;;  %v20534_v57 = vld [vmem:[%s26137_s2 + $0x338] ss:$12 sps:$4 sm:$0xff]   ;;  %v20538_v60 = vld [vmem:[%s26137_s2 + $0x410] ss:$12 sps:$4 sm:$0xff]   ;;  %v20543_v45 = vld [vmem:[%s26137_s2 + $0x428] ss:$12 sps:$4 sm:$0xff]  }
 0x25f   :  { %vm3528_vm0 = vcmp.gt.f32.partialorder %v3521_v0, 0.0  ;;  %v3535_v9 = vmul.f32 0.2, %v3521_v0  ;;  %18783 = vmatpush3.bf16.msra.mxu1 %v20479_v63  ;;  %v20537_v63 = vld [vmem:[%s26137_s2 + $0x3f4] ss:$12 sps:$4 sm:$0xff]  }
 0x260   :  { %v3536_v16 = vmul.f32 0.2, %v3522_v7  ;;  %18790 = vmatprep.subr.bf16.mxu1 %v20483_v1  ;;  %vm3529_vm1 = vcmp.gt.f32.partialorder %v3522_v7, 0.0  ;;  %v20535_v2 = vld [vmem:[%s26137_s2 + $0x3f0] ss:$12 sps:$4 sm:$0xff]  }
 0x261   :  { %v3542_v10 = vsel %vm3528_vm0, %v3521_v0, %v3535_v9  ;;  %v20539_v1 = vld [vmem:[%s26137_s2 + $0x350] ss:$12 sps:$4 sm:$0xff]   ;;  %v20542_v0 = vld [vmem:[%s26137_s2 + $0x40c] ss:$12 sps:$4 sm:$0xff]  }
 0x262   :  { %4755 = vmatmul.mubr.bf16.vlgmr.msra.gmra.mrb[140].mxu1 %v22208_v30  ;;  %v3500_v15 = vpop.f32.mrb[132].mxu1  ;;  %v3543_v21 = vsel %vm3529_vm1, %v3522_v7, %v3536_v16  ;;  %v22274_v27 = vpack.c.bf16 %v3542_v10, %v3542_v10  ;;  %v20540_v7 = vld [vmem:[%s26137_s2 + $0x408] ss:$12 sps:$4 sm:$0xff]   ;;  %v20548_v9 = vld [vmem:[%s26137_s2 + $0x440] ss:$12 sps:$4 sm:$0xff]   ;;  %vm4554_vm1 = vcmask 261120  }
 0x263   :  { %v22266_v56 = vadd.f32 %v3500_v15, %v3297_v42  ;;  %18791 = vmatpush3.bf16.msra.mxu1 %v20484_v4  ;;  %v3550_v5 = vpack.c.bf16 %v3543_v21, %v3543_v21  ;;  %v19147_v25 = vpop.f32.mrb[133].mxu1  ;;  %v20522_v42 = vld [vmem:[%s26137_s2 + $0x3ac] ss:$12 sps:$4 sm:$0xff]   ;;  %v20544_v4 = vld [vmem:[%s26137_s2 + $0x368] ss:$12 sps:$4 sm:$0xff]   ;;  %v3523_v21 = vadd.f32 %v22199_v6, %v22203_v23 }
 0x264   :  { %18792 = vmatprep.subr.bf16.mxu1 %v20488_v20  ;;  %v3503_v29 = vpop.f32.mrb[134].mxu1  ;;  %v20545_v16 = vld [vmem:[%s26137_s2 + $0x420] ss:$12 sps:$4 sm:$0xff]   ;;  %v20552_v10 = vld [vmem:[%s26137_s2 + $0x43c] ss:$12 sps:$4 sm:$0xff]  }
 0x265   :  { %4631 = vmatprep.mubr.bf16.mxu0 %v3550_v5  ;;  %4794 = vmatprep.mubr.bf16.mxu1 %v3550_v5  ;;  %v19148_v30 = vpop.f32.mrb[135].mxu1  ;;  %v20549_v20 = vld [vmem:[%s26137_s2 + $0x380] ss:$12 sps:$4 sm:$0xff]   ;;  %v20553_v15 = vld [vmem:[%s26137_s2 + $0x458] ss:$12 sps:$4 sm:$0xff]   ;;  %vm3530_vm13 = vcmp.gt.f32.partialorder %v3523_v21, 0.0 }
 0x266   :  { %4632 = vmatmul.mubr.bf16.vlgmr.msra.gmra.mrb[120].mxu0 %v22274_v27  ;;  %v20550_v5 = vld [vmem:[%s26137_s2 + $0x438] ss:$12 sps:$4 sm:$0xff]   ;;  %v20558_v23 = vld [vmem:[%s26137_s2 + $0x470] ss:$12 sps:$4 sm:$0xff]   ;;  %v3537_v17 = vmul.f32 0.2, %v3523_v21 }
 0x267   :  { %4641 = vmatpush1.bf16.msra.mxu0 %v20485_v19  ;;  %18793 = vmatpush3.bf16.msra.mxu1 %v20489_v13  ;;  %v20554_v19 = vld [vmem:[%s26137_s2 + $0x398] ss:$12 sps:$4 sm:$0xff]   ;;  %v20557_v13 = vld [vmem:[%s26137_s2 + $0x454] ss:$12 sps:$4 sm:$0xff]   ;;  %v20555_v25 = vld [vmem:[%s26137_s2 + $0x450] ss:$12 sps:$4 sm:$0xff]  }
 0x268   :  { %4672 = vmatprep.mubr.bf16.mxu0 %v3552_v31  ;;  %4642 = vmatprep.subr.bf16.mxu0 %v20492_v39  ;;  %v20562_v39 = vld [vmem:[%s26137_s2 + $0x46c] ss:$12 sps:$4 sm:$0xff]   ;;  %v3544_v29 = vsel %vm3530_vm13, %v3523_v21, %v3537_v17  ;;  %v20560_v30 = vld [vmem:[%s26137_s2 + $0x468] ss:$12 sps:$4 sm:$0xff]   ;;  %vm26126_vm13 = vcmask 1043456   ;;  %v20572_v17 = vld [vmem:[%s26051_s4] sm:$0xff]  }
 0x269   :  { %18794 = vmatprep.subr.bf16.mxu1 %v20493_v22  ;;  %v3525_v22 = vadd.f32 %v22199_v6, %v22266_v56  ;;  %v20567_v6 = vld [vmem:[%s26137_s2 + $0x484] ss:$12 sps:$4 sm:$0xff]   ;;  %v20564_v56 = vld [vmem:[%s26137_s2 + $0x4a0] ss:$12 sps:$4 sm:$0xff]  }
 0x26b   :  { %4643 = vmatpush1.bf16.msra.mxu0 %v20490_v11  ;;  %18795 = vmatpush3.bf16.msra.mxu1 %v20494_v44  ;;  %v3551_v11 = vpack.c.bf16 %v3544_v29, %v3544_v29  ;;  %v22459_v44 = vld [vmem:[#allocation2] sm:$0xff]  ;;  %vm3532_vm0 = vcmp.gt.f32.partialorder %v3525_v22, 0.0 }
 0x26c   :  { %4644 = vmatprep.subr.bf16.mxu0 %v20497_v32  ;;  %18796 = vmatprep.subr.bf16.mxu1 %v20498_v33  ;;  %v3539_v32 = vmul.f32 0.2, %v3525_v22  ;;  %v20565_v33 = vld [vmem:[%s26137_s2 + $0x480] ss:$12 sps:$4 sm:$0xff]  }
 0x26f   :  { %4645 = vmatpush1.bf16.msra.mxu0 %v20495_v34  ;;  %18797 = vmatpush3.bf16.msra.mxu1 %v20499_v35  ;;  %v20570_v34 = vld [vmem:[%s26137_s2 + $0x49c] ss:$12 sps:$4 sm:$0xff]   ;;  %v3546_v35 = vsel %vm3532_vm0, %v3525_v22, %v3539_v32  ;;  %vm26125_vm0 = vcmask 64512  }
 0x270   :  { %4646 = vmatprep.subr.bf16.mxu0 %v20502_v12  ;;  %18798 = vmatprep.subr.bf16.mxu1 %v20503_v14  ;;  %v20568_v12 = vld [vmem:[%s26137_s2 + $0x498] ss:$12 sps:$4 sm:$0xff]   ;;  %v3553_v14 = vpack.c.bf16 %v3546_v35, %v3546_v35 }
 0x273   :  { %4647 = vmatpush1.bf16.msra.mxu0 %v20500_v37  ;;  %18799 = vmatpush3.bf16.msra.mxu1 %v20504_v38 }
 0x274   :  { %4648 = vmatprep.subr.bf16.mxu0 %v20507_v41  ;;  %18800 = vmatprep.subr.bf16.mxu1 %v20508_v43 }
 0x277   :  { %4649 = vmatpush1.bf16.msra.mxu0 %v20505_v40  ;;  %18801 = vmatpush3.bf16.msra.mxu1 %v20509_v49 }
 0x278   :  { %4650 = vmatprep.subr.bf16.mxu0 %v20512_v47  ;;  %18802 = vmatprep.subr.bf16.mxu1 %v20513_v48 }
 0x27b   :  { %4651 = vmatpush1.bf16.msra.mxu0 %v20510_v50  ;;  %18803 = vmatpush3.bf16.msra.mxu1 %v20514_v51 }
 0x27c   :  { %4652 = vmatprep.subr.bf16.mxu0 %v20517_v18  ;;  %18804 = vmatprep.subr.bf16.mxu1 %v20518_v24 }
 0x27f   :  { %4653 = vmatpush1.bf16.msra.mxu0 %v20515_v52  ;;  %18805 = vmatpush3.bf16.msra.mxu1 %v20519_v54 }
 0x280   :  { %4654 = vmatprep.subr.bf16.mxu0 %v20522_v42  ;;  %18812 = vmatprep.subr.bf16.mxu1 %v20523_v58 }
 0x282   :  { %4795 = vmatmul.mubr.bf16.vlgmr.msra.gmra.mrb[144].mxu1 %v22274_v27  ;;  %v20559_v27 = vld [vmem:[%s26137_s2 + $0x3b0] ss:$12 sps:$4 sm:$0xff]  }
 0x283   :  { %4655 = vmatpush1.bf16.msra.mxu0 %v20520_v59  ;;  %18813 = vmatpush3.bf16.msra.mxu1 %v20524_v53 }
 0x284   :  { %4834 = vmatprep.mubr.bf16.mxu1 %v3552_v31  ;;  %4656 = vmatprep.subr.bf16.mxu0 %v20527_v36  ;;  %v20563_v31 = vld [vmem:[%s26137_s2 + $0x488] ss:$12 sps:$4 sm:$0xff]   ;;  %s20932_s2 = smov 116  }
 0x285   :  { %18814 = vmatprep.subr.bf16.mxu1 %v20528_v46 }
 0x287   :  { %4657 = vmatpush1.bf16.msra.mxu0 %v20525_v61  ;;  %18815 = vmatpush3.bf16.msra.mxu1 %v20529_v55 }
 0x288   :  { %4658 = vmatprep.subr.bf16.mxu0 %v20532_v62  ;;  %18816 = vmatprep.subr.bf16.mxu1 %v20533_v26 }
 0x28b   :  { %4659 = vmatpush1.bf16.msra.mxu0 %v20530_v28  ;;  %18817 = vmatpush3.bf16.msra.mxu1 %v20534_v57 }
 0x28c   :  { %4660 = vmatprep.subr.bf16.mxu0 %v20537_v63  ;;  %18818 = vmatprep.subr.bf16.mxu1 %v20538_v60 }
 0x28f   :  { %4661 = vmatpush1.bf16.msra.mxu0 %v20535_v2  ;;  %18819 = vmatpush3.bf16.msra.mxu1 %v20539_v1 }
 0x290   :  { %4662 = vmatprep.subr.bf16.mxu0 %v20542_v0  ;;  %18820 = vmatprep.subr.bf16.mxu1 %v20543_v45 }
 0x293   :  { %4663 = vmatpush1.bf16.msra.mxu0 %v20540_v7  ;;  %18821 = vmatpush3.bf16.msra.mxu1 %v20544_v4 }
 0x294   :  { %4664 = vmatprep.subr.bf16.mxu0 %v20547_v8  ;;  %18822 = vmatprep.subr.bf16.mxu1 %v20548_v9 }
 0x297   :  { %4665 = vmatpush1.bf16.msra.mxu0 %v20545_v16  ;;  %18823 = vmatpush3.bf16.msra.mxu1 %v20549_v20 }
 0x298   :  { %4666 = vmatprep.subr.bf16.mxu0 %v20552_v10  ;;  %18824 = vmatprep.subr.bf16.mxu1 %v20553_v15 }
 0x29b   :  { %4667 = vmatpush1.bf16.msra.mxu0 %v20550_v5  ;;  %18825 = vmatpush3.bf16.msra.mxu1 %v20554_v19  ;;  %v20571_v5 = vld [vmem:[%s26051_s4 + $0x8] sm:$0xff]  }
 0x29c   :  { %4668 = vmatprep.subr.bf16.mxu0 %v20557_v13  ;;  %18826 = vmatprep.subr.bf16.mxu1 %v20558_v23 }
 0x29f   :  { %4669 = vmatpush1.bf16.msra.mxu0 %v20555_v25  ;;  %18827 = vmatpush3.bf16.msra.mxu1 %v20559_v27 }
 0x2a0   :  { %4670 = vmatprep.subr.bf16.mxu0 %v20562_v39  ;;  %19149 = vmatprep.subr.bf16.mxu1 %v22459_v44 }
 0x2a2   :  { %4835 = vmatmul.mubr.bf16.vlgmr.msra.gmra.mrb[148].mxu1 %v3551_v11 }
 0x2a3   :  { %4671 = vmatpush1.bf16.msra.mxu0 %v20560_v30  ;;  %19150 = vmatpush3.bf16.msra.mxu1 %v20563_v31 }
 0x2a4   :  { %19151 = vmatprep.subr.bf16.mxu1 %v22459_v44  ;;  %19153 = vmatprep.mubr.msk.bf16.mxu1 %vm20927_vm5, %v22459_v44 }
 0x2a5   :  { %4681 = vmatprep.subr.bf16.mxu0 %v20567_v6 }
 0x2a6   :  { %4673 = vmatmul.mubr.bf16.vlgmr.msra.gmra.mrb[120].mxu0 %v3551_v11  ;;  %v20573_v11 = vld [vmem:[%s26051_s4 + $0x10] sm:$0xff]  }
 0x2a7   :  { %19152 = vmatpush3.bf16.msra.mxu1 %v20564_v56  ;;  %4682 = vmatpush1.bf16.msra.mxu0 %v20565_v33 }
 0x2a8   :  { %4683 = vmatprep.subr.bf16.mxu0 %v20570_v34  ;;  %4713 = vmatprep.mubr.bf16.mxu0 %v20914_v3 }
 0x2aa   :  { %19154 = vmatmul.mubr.msk.bf16.vlgmr.msra.gmra.mrb[152].mxu1 %vm4554_vm1, %v3553_v14 }
 0x2ab   :  { %4684 = vmatpush1.bf16.msra.mxu0 %v20568_v12  ;;  %4979 = vmatprep.mubr.bf16.mxu1 %v20914_v3 }
 0x2b2   :  { %18218 = vmatmul.mubr.msk.bf16.vlgmr.msra.gmra.mrb[120].mxu0 %vm4554_vm1, %v3553_v14  ;;  %v20574_v14 = vld [vmem:[%s26051_s4 + $0x18] sm:$0xff]  }
 0x315   :  { %v4592_v37 = vpop.f32.mrb[136].mxu1 }
 0x316   :  { %v4594_v38 = vpop.f32.mrb[137].mxu1 }
 0x317   :  { %v4596_v41 = vpop.f32.mrb[138].mxu1 }
 0x318   :  { %v4597_v43 = vpop.f32.mrb[139].mxu1 }
 0x335   :  { %v18784_v40 = vpop.f32.mrb[140].mxu1 }
 0x336   :  { %v18785_v49 = vpop.f32.mrb[141].mxu1 }
 0x337   :  { %v18786_v47 = vadd.f32 %v18785_v49, %v18784_v40  ;;  %v18787_v48 = vpop.f32.mrb[142].mxu1 }
 0x338   :  { %v18788_v50 = vpop.f32.mrb[143].mxu1  ;;  %v20575_v48 = vld [vmem:[%s26051_s4 + $0x20] sm:$0xff]  }
 0x355   :  { %v18806_v51 = vpop.f32.mrb[144].mxu1 }
 0x356   :  { %v18807_v18 = vpop.f32.mrb[145].mxu1 }
 0x357   :  { %v18808_v24 = vadd.f32 %v18807_v18, %v18806_v51  ;;  %v18809_v52 = vpop.f32.mrb[146].mxu1 }
 0x358   :  { %v18810_v54 = vpop.f32.mrb[147].mxu1 }
 0x359   :  { %v4797_v42 = vadd.f32 %v18808_v24, %v18786_v47 }
 0x375   :  { %v18828_v58 = vpop.f32.mrb[148].mxu1 }
 0x376   :  { %v18829_v59 = vpop.f32.mrb[149].mxu1 }
 0x377   :  { %v18830_v53 = vadd.f32 %v18829_v59, %v18828_v58  ;;  %v18831_v36 = vpop.f32.mrb[150].mxu1  ;;  %v20576_v58 = vld [vmem:[%s26051_s4 + $0x28] sm:$0xff]  }
 0x378   :  { %v18832_v46 = vpop.f32.mrb[151].mxu1 }
 0x379   :  { %v4837_v61 = vadd.f32 %v18830_v53, %v4797_v42 }
 0x37d   :  { %v4876_v55 = vpop.f32.mrb[152].mxu1 }
 0x37e   :  { %v22484_v62 = vadd.f32 %v4876_v55, %v4837_v61  ;;  %v19155_v26 = vpop.f32.mrb[153].mxu1 }
 0x37f   :  { %v4879_v28 = vpop.f32.mrb[154].mxu1 }
 0x380   :  { %v19156_v57 = vpop.f32.mrb[155].mxu1  ;;  %v22504_v8 = vpack.c.bf16 %v22484_v62, %v22484_v62  ;;  %v20577_v28 = vld [vmem:[%s26051_s4 + $0x30] sm:$0xff]  }
 0x382   :  { %v5046_v39 = vsel %vm26126_vm13, %v22504_v8, 0 }
 0x385   :  { %v4715_v63 = vpop.f32.mrb[120].mxu0 }
 0x386   :  { %v22486_v60 = vadd.f32 %v4715_v63, %v4592_v37  ;;  %v4717_v2 = vpop.f32.mrb[121].mxu0 }
 0x387   :  { %v22488_v1 = vadd.f32 %v4717_v2, %v4594_v38  ;;  %v4719_v0 = vpop.f32.mrb[122].mxu0 }
 0x388   :  { %v22492_v45 = vpack.c.bf16 %v22486_v60, %v22486_v60  ;;  %v4720_v7 = vpop.f32.mrb[123].mxu0 }
 0x389   :  { %v22496_v4 = vpack.c.bf16 %v22488_v1, %v22488_v1 }
 0x38a   :  { %4925 = vrot.lane.b32.xlu0 %v22492_v45, %s20915_s23  ;;  %v5040_v23 = vsel %vm26126_vm13, %v22492_v45, 0 }
 0x38b   :  { %4927 = vrot.lane.b32.xlu1 %v22496_v4, %s20915_s23 }
 0x38e   :  { %4929 = vrot.lane.b32.xlu0 %v22504_v8, %s20915_s23 }
 0x38f   :  { %5137 = vrot.lane.b32.xlu1 %v22492_v45, %s20917_s28 }
 0x392   :  { %5139 = vrot.lane.b32.xlu0 %v22496_v4, %s20917_s28 }
 0x393   :  { %5141 = vrot.lane.b32.xlu1 %v22504_v8, %s20917_s28 }
 0x396   :  { %5252 = vrot.lane.b32.xlu0 %v22492_v45, %s20918_s29 }
 0x397   :  { %5254 = vrot.lane.b32.xlu1 %v22496_v4, %s20918_s29 }
 0x39a   :  { %5256 = vrot.lane.b32.xlu0 %v22504_v8, %s20918_s29 }
 0x39b   :  { %5367 = vrot.lane.b32.xlu1 %v22492_v45, %s20932_s2 }
 0x39e   :  { %5369 = vrot.lane.b32.xlu0 %v22496_v4, %s20932_s2 }
 0x39f   :  { %5371 = vrot.lane.b32.xlu1 %v22504_v8, %s20932_s2 }
 0x3a2   :  { %5483 = vrot.lane.b32.xlu0 %v22492_v45, %s20933_s22 }
 0x3a3   :  { %5485 = vrot.lane.b32.xlu1 %v22496_v4, %s20933_s22 }
 0x3a6   :  { %5487 = vrot.lane.b32.xlu0 %v22504_v8, %s20933_s22 }
 0x3a7   :  { %5599 = vrot.lane.b32.xlu1 %v22492_v45, %s20934_s21 }
 0x3aa   :  { %5601 = vrot.lane.b32.xlu0 %v22496_v4, %s20934_s21 }
 0x3ab   :  { %5603 = vrot.lane.b32.xlu1 %v22504_v8, %s20934_s21 }
 0x3ae   :  { %5715 = vrot.lane.b32.xlu0 %v22492_v45, %s20935_s30 }
 0x3af   :  { %5717 = vrot.lane.b32.xlu1 %v22496_v4, %s20935_s30 }
 0x3b2   :  { %5719 = vrot.lane.b32.xlu0 %v22504_v8, %s20935_s30 }
 0x3b3   :  { %5831 = vrot.lane.b32.xlu1 %v22492_v45, %s26123_s25 }
 0x3b6   :  { %5833 = vrot.lane.b32.xlu0 %v22496_v4, %s26123_s25 }
 0x3b7   :  { %5835 = vrot.lane.b32.xlu1 %v22504_v8, %s26123_s25  ;;  %s26275_s25 = smov 65  }
 0x3ba   :  { %5947 = vrot.lane.b32.xlu0 %v22492_v45, %s26121_s20 }
 0x3bb   :  { %5949 = vrot.lane.b32.xlu1 %v22496_v4, %s26121_s20 }
 0x3be   :  { %5951 = vrot.lane.b32.xlu0 %v22504_v8, %s26121_s20  ;;  %s26139_s20 = smov 103  }
 0x3bf   :  { %6063 = vrot.lane.b32.xlu1 %v22492_v45, %s26119_s26 }
 0x3c2   :  { %6065 = vrot.lane.b32.xlu0 %v22496_v4, %s26119_s26 }
 0x3c3   :  { %6067 = vrot.lane.b32.xlu1 %v22504_v8, %s26119_s26  ;;  %s26143_s26 = smov 91  }
 0x3c6   :  { %6179 = vrot.lane.b32.xlu0 %v22492_v45, %s26117_s3 }
 0x3c7   :  { %6181 = vrot.lane.b32.xlu1 %v22496_v4, %s26117_s3 }
 0x3ca   :  { %6183 = vrot.lane.b32.xlu0 %v22504_v8, %s26117_s3  ;;  %s26144_s3 = smov 90  }
 0x3cb   :  { %6295 = vrot.lane.b32.xlu1 %v22492_v45, %s26115_s1 }
 0x3ce   :  { %6297 = vrot.lane.b32.xlu0 %v22496_v4, %s26115_s1 }
 0x3cf   :  { %6299 = vrot.lane.b32.xlu1 %v22504_v8, %s26115_s1  ;;  %s26145_s1 = smov 89  }
 0x3d2   :  { %6411 = vrot.lane.b32.xlu0 %v22492_v45, %s26099_s27 }
 0x3d3   :  { %6413 = vrot.lane.b32.xlu1 %v22496_v4, %s26099_s27 }
 0x3d6   :  { %6415 = vrot.lane.b32.xlu0 %v22504_v8, %s26099_s27  ;;  %s26227_s27 = smov 68  }
 0x3d7   :  { %6527 = vrot.lane.b32.xlu1 %v22492_v45, %s26097_s24 }
 0x3da   :  { %6529 = vrot.lane.b32.xlu0 %v22496_v4, %s26097_s24 }
 0x3db   :  { %6531 = vrot.lane.b32.xlu1 %v22504_v8, %s26097_s24 }
 0x3de   :  { %6643 = vrot.lane.b32.xlu0 %v22492_v45, %s26113_s0 }
 0x3df   :  { %6645 = vrot.lane.b32.xlu1 %v22496_v4, %s26113_s0 }
 0x3e2   :  { %6647 = vrot.lane.b32.xlu0 %v22504_v8, %s26113_s0  ;;  %v20578_v8 = vld [vmem:[%s26051_s4 + $0x38] sm:$0xff]   ;;  %s26141_s0 = smov 101  }
 0x3fc   :  { %v4926_v9 = vpop.permute.xlu0 %4925 }
 0x3fd   :  { %v4928_v16 = vpop.permute.xlu1 %4927 }
 0x3fe   :  { %v4931_v20 = vsel %vm120_vm2, %v4926_v9, %v4928_v16 }
 0x3ff   :  { %v4939_v21 = vsel %vm26126_vm13, %v4931_v20, 0 }
 0x400   :  { %v4930_v10 = vpop.permute.xlu0 %4929 }
 0x401   :  { %v4932_v15 = vsel %vm120_vm2, %v4928_v16, %v4930_v10  ;;  %v4945_v19 = vsel %vm26126_vm13, %v4930_v10, 0  ;;  %v5138_v13 = vpop.permute.xlu1 %5137 }
 0x402   :  { %18221 = vmatprep.subr.msk.bf16.mxu1 %vm26126_vm13, %v4932_v15 }
 0x403   :  { %4948 = vmatpush1.bf16.msra.mxu1 %v4939_v21 }
 0x404   :  { %19157 = vmatprep.subr.bf16.mxu1 %v22459_v44  ;;  %v5140_v25 = vpop.permute.xlu0 %5139 }
 0x405   :  { %v5142_v27 = vpop.permute.xlu1 %5141  ;;  %v5143_v22 = vsel %vm517_vm3, %v5138_v13, %v5140_v25 }
 0x406   :  { %18222 = vmatmul.mubr.msk.bf16.vlgmr.msra.gmra.mrb[156].mxu1 %vm26125_vm0, %v20571_v5  ;;  %v5144_v29 = vsel %vm517_vm3, %v5140_v25, %v5142_v27  ;;  %v5149_v31 = vsel %vm26126_vm13, %v5143_v22, 0  ;;  %v5155_v56 = vsel %vm26126_vm13, %v5142_v27, 0  ;;  %v20580_v22 = vld [vmem:[%s26051_s4 + $0x48] sm:$0xff]  }
 0x407   :  { %19158 = vmatpush3.bf16.msra.mxu1 %v4945_v19  ;;  %19159 = vmatprep.mubr.msk.bf16.mxu1 %vm20927_vm5, %v22459_v44  ;;  %v20579_v19 = vld [vmem:[%s26051_s4 + $0x40] sm:$0xff]  }
 0x408   :  { %18225 = vmatprep.subr.msk.bf16.mxu1 %vm26126_vm13, %v22496_v4  ;;  %v5253_v30 = vpop.permute.xlu0 %5252 }
 0x409   :  { %v5255_v6 = vpop.permute.xlu1 %5254 }
 0x40a   :  { %v5258_v34 = vsel %vm732_vm4, %v5253_v30, %v5255_v6 }
 0x40b   :  { %v5264_v12 = vsel %vm26126_vm13, %v5258_v34, 0  ;;  %v20581_v34 = vld [vmem:[%s26051_s4 + $0x50] sm:$0xff]  }
 0x40c   :  { %v5257_v32 = vpop.permute.xlu0 %5256 }
 0x40d   :  { %v5259_v33 = vsel %vm732_vm4, %v5255_v6, %v5257_v32  ;;  %v5368_v35 = vpop.permute.xlu1 %5367  ;;  %v5270_v41 = vsel %vm26126_vm13, %v5257_v32, 0 }
 0x40e   :  { %19160 = vmatmul.mubr.msk.bf16.vlgmr.msra.gmra.mrb[160].mxu1 %vm26125_vm0, %v20571_v5 }
 0x40f   :  { %5049 = vmatpush1.bf16.msra.mxu1 %v5040_v23  ;;  %5080 = vmatprep.mubr.bf16.mxu1 %v20914_v3 }
 0x410   :  { %19163 = vmatprep.subr.bf16.mxu1 %v22459_v44  ;;  %v5370_v37 = vpop.permute.xlu0 %5369 }
 0x411   :  { %v5372_v38 = vpop.permute.xlu1 %5371  ;;  %v5374_v40 = vsel %vm5373_vm12, %v5368_v35, %v5370_v37 }
 0x412   :  { %v5375_v43 = vsel %vm5373_vm12, %v5370_v37, %v5372_v38  ;;  %v5380_v47 = vsel %vm26126_vm13, %v5374_v40, 0  ;;  %v5386_v18 = vsel %vm26126_vm13, %v5372_v38, 0  ;;  %v20582_v40 = vld [vmem:[%s26051_s4 + $0x58] sm:$0xff]  }
 0x414   :  { %v5484_v49 = vpop.permute.xlu0 %5483 }
 0x415   :  { %v5486_v51 = vpop.permute.xlu1 %5485 }
 0x416   :  { %18226 = vmatmul.mubr.msk.bf16.vlgmr.msra.gmra.mrb[156].mxu1 %vm26125_vm0, %v20572_v17  ;;  %v5490_v52 = vsel %vm5489_vm15, %v5484_v49, %v5486_v51 }
 0x417   :  { %19164 = vmatpush3.bf16.msra.mxu1 %v5046_v39  ;;  %19165 = vmatprep.mubr.msk.bf16.mxu1 %vm20927_vm5, %v22459_v44  ;;  %v5496_v42 = vsel %vm26126_vm13, %v5490_v52, 0  ;;  %v20583_v52 = vld [vmem:[%s26051_s4 + $0x60] sm:$0xff]  }
 0x418   :  { %18229 = vmatprep.subr.msk.bf16.mxu1 %vm26126_vm13, %v5144_v29  ;;  %v5488_v50 = vpop.permute.xlu0 %5487 }
 0x419   :  { %v5491_v24 = vsel %vm5489_vm15, %v5486_v51, %v5488_v50  ;;  %v5600_v54 = vpop.permute.xlu1 %5599  ;;  %v5502_v36 = vsel %vm26126_vm13, %v5488_v50, 0 }
 0x41c   :  { %v5602_v59 = vpop.permute.xlu0 %5601 }
 0x41d   :  { %v5604_v53 = vpop.permute.xlu1 %5603  ;;  %v5606_v61 = vsel %vm5605_vm14, %v5600_v54, %v5602_v59 }
 0x41e   :  { %19166 = vmatmul.mubr.msk.bf16.vlgmr.msra.gmra.mrb[160].mxu1 %vm26125_vm0, %v20572_v17  ;;  %v5607_v46 = vsel %vm5605_vm14, %v5602_v59, %v5604_v53  ;;  %v5612_v26 = vsel %vm26126_vm13, %v5606_v61, 0  ;;  %v5618_v2 = vsel %vm26126_vm13, %v5604_v53, 0  ;;  %v20584_v61 = vld [vmem:[%s26051_s4 + $0x68] sm:$0xff]  }
 0x41f   :  { %5158 = vmatpush1.bf16.msra.mxu1 %v5149_v31  ;;  %5189 = vmatprep.mubr.bf16.mxu1 %v20914_v3 }
 0x420   :  { %19169 = vmatprep.subr.bf16.mxu1 %v22459_v44  ;;  %v5716_v55 = vpop.permute.xlu0 %5715 }
 0x421   :  { %v5718_v63 = vpop.permute.xlu1 %5717 }
 0x422   :  { %v5722_v45 = vsel %vm5721_vm11, %v5716_v55, %v5718_v63 }
 0x423   :  { %v5728_v4 = vsel %vm26126_vm13, %v5722_v45, 0  ;;  %v20585_v45 = vld [vmem:[%s26051_s4 + $0x70] sm:$0xff]  }
 0x424   :  { %v5720_v57 = vpop.permute.xlu0 %5719 }
 0x425   :  { %v5723_v0 = vsel %vm5721_vm11, %v5718_v63, %v5720_v57  ;;  %v5832_v7 = vpop.permute.xlu1 %5831  ;;  %v5734_v20 = vsel %vm26126_vm13, %v5720_v57, 0 }
 0x426   :  { %18230 = vmatmul.mubr.msk.bf16.vlgmr.msra.gmra.mrb[156].mxu1 %vm26125_vm0, %v20573_v11 }
 0x427   :  { %19170 = vmatpush3.bf16.msra.mxu1 %v5155_v56  ;;  %19171 = vmatprep.mubr.msk.bf16.mxu1 %vm20927_vm5, %v22459_v44 }
 0x428   :  { %18233 = vmatprep.subr.msk.bf16.mxu1 %vm26126_vm13, %v5259_v33  ;;  %v5834_v9 = vpop.permute.xlu0 %5833 }
 0x429   :  { %v5836_v16 = vpop.permute.xlu1 %5835  ;;  %v5838_v15 = vsel %vm5837_vm10, %v5832_v7, %v5834_v9 }
 0x42a   :  { %v5839_v10 = vsel %vm5837_vm10, %v5834_v9, %v5836_v16  ;;  %v5844_v5 = vsel %vm26126_vm13, %v5838_v15, 0  ;;  %v5850_v17 = vsel %vm26126_vm13, %v5836_v16, 0 }
 0x42c   :  { %v5948_v21 = vpop.permute.xlu0 %5947 }
 0x42d   :  { %v5950_v23 = vpop.permute.xlu1 %5949 }
 0x42e   :  { %19172 = vmatmul.mubr.msk.bf16.vlgmr.msra.gmra.mrb[160].mxu1 %vm26125_vm0, %v20573_v11  ;;  %v5954_v27 = vsel %vm5953_vm9, %v5948_v21, %v5950_v23  ;;  %v6756_v21 = vlaneseq }
 0x42f   :  { %5273 = vmatpush1.bf16.msra.mxu1 %v5264_v12  ;;  %5304 = vmatprep.mubr.bf16.mxu1 %v20914_v3  ;;  %v5960_v29 = vsel %vm26126_vm13, %v5954_v27, 0 }
 0x430   :  { %19175 = vmatprep.subr.bf16.mxu1 %v22459_v44  ;;  %v5952_v13 = vpop.permute.xlu0 %5951 }
 0x431   :  { %v5955_v25 = vsel %vm5953_vm9, %v5950_v23, %v5952_v13  ;;  %v6064_v39 = vpop.permute.xlu1 %6063  ;;  %v5966_v11 = vsel %vm26126_vm13, %v5952_v13, 0  ;;  %v6754_v13 = vld [vmem:[%s26052_s6] sm:$0x7] }
 0x434   :  { %v6066_v30 = vpop.permute.xlu0 %6065 }
 0x435   :  { %v6068_v31 = vpop.permute.xlu1 %6067  ;;  %v6070_v6 = vsel %vm26129_vm8, %v6064_v39, %v6066_v30 }
 0x436   :  { %18234 = vmatmul.mubr.msk.bf16.vlgmr.msra.gmra.mrb[156].mxu1 %vm26125_vm0, %v20574_v14  ;;  %v6071_v32 = vsel %vm26129_vm8, %v6066_v30, %v6068_v31  ;;  %v6076_v33 = vsel %vm26126_vm13, %v6070_v6, 0 }
 0x437   :  { %19176 = vmatpush3.bf16.msra.mxu1 %v5270_v41  ;;  %19177 = vmatprep.mubr.msk.bf16.mxu1 %vm20927_vm5, %v22459_v44 }
 0x438   :  { %18237 = vmatprep.subr.msk.bf16.mxu1 %vm26126_vm13, %v5375_v43  ;;  %v6180_v56 = vpop.permute.xlu0 %6179 }
 0x439   :  { %v6182_v12 = vpop.permute.xlu1 %6181 }
 0x43a   :  { %v6186_v38 = vsel %vm26110_vm7, %v6180_v56, %v6182_v12 }
 0x43b   :  { %v6192_v43 = vsel %vm26126_vm13, %v6186_v38, 0 }
 0x43c   :  { %v6184_v35 = vpop.permute.xlu0 %6183 }
 0x43d   :  { %v6187_v37 = vsel %vm26110_vm7, %v6182_v12, %v6184_v35  ;;  %v6296_v41 = vpop.permute.xlu1 %6295  ;;  %vm26112_vm7 = vcmask 744448  }
 0x43e   :  { %19178 = vmatmul.mubr.msk.bf16.vlgmr.msra.gmra.mrb[160].mxu1 %vm26125_vm0, %v20574_v14  ;;  %v6082_v14 = vsel %vm26126_vm13, %v6068_v31, 0 }
 0x43f   :  { %5389 = vmatpush1.bf16.msra.mxu1 %v5380_v47  ;;  %5420 = vmatprep.mubr.bf16.mxu1 %v20914_v3 }
 0x440   :  { %19181 = vmatprep.subr.bf16.mxu1 %v22459_v44  ;;  %v6298_v49 = vpop.permute.xlu0 %6297 }
 0x441   :  { %v6300_v47 = vpop.permute.xlu1 %6299  ;;  %v6302_v51 = vsel %vm26111_vm6, %v6296_v41, %v6298_v49 }
 0x442   :  { %v6303_v50 = vsel %vm26111_vm6, %v6298_v49, %v6300_v47  ;;  %vm26128_vm6 = vcmask 736256  }
 0x446   :  { %18238 = vmatmul.mubr.msk.bf16.vlgmr.msra.gmra.mrb[156].mxu1 %vm26125_vm0, %v20575_v48 }
 0x447   :  { %19182 = vmatpush3.bf16.msra.mxu1 %v5386_v18  ;;  %19183 = vmatprep.mubr.msk.bf16.mxu1 %vm20927_vm5, %v22459_v44  ;;  %v6412_v18 = vpop.permute.xlu0 %6411 }
 0x448   :  { %18241 = vmatprep.subr.msk.bf16.mxu1 %vm26126_vm13, %v5491_v24  ;;  %v6308_v24 = vsel %vm26126_vm13, %v6302_v51, 0  ;;  %v20590_v51 = vld [vmem:[%s26053_s5 + $0x8] sm:$0xff]  }
 0x44b   :  { %v6416_v54 = vpop.permute.xlu0 %6415 }
 0x44e   :  { %19184 = vmatmul.mubr.msk.bf16.vlgmr.msra.gmra.mrb[160].mxu1 %vm26125_vm0, %v20575_v48  ;;  %v6198_v48 = vsel %vm26126_vm13, %v6184_v35, 0 }
 0x44f   :  { %5505 = vmatpush1.bf16.msra.mxu1 %v5496_v42  ;;  %5536 = vmatprep.mubr.bf16.mxu1 %v20914_v3  ;;  %v6414_v42 = vpop.permute.xlu1 %6413  ;;  %v6530_v55 = vpop.permute.xlu0 %6529 }
 0x450   :  { %19187 = vmatprep.subr.bf16.mxu1 %v22459_v44  ;;  %v6419_v59 = vsel %vm26112_vm7, %v6414_v42, %v6416_v54  ;;  %v6418_v53 = vsel %vm26112_vm7, %v6412_v18, %v6414_v42  ;;  %vm26127_vm7 = vcmask 728064  }
 0x456   :  { %18242 = vmatmul.mubr.msk.bf16.vlgmr.msra.gmra.mrb[156].mxu1 %vm26125_vm0, %v20576_v58 }
 0x457   :  { %19188 = vmatpush3.bf16.msra.mxu1 %v5502_v36  ;;  %19189 = vmatprep.mubr.msk.bf16.mxu1 %vm20927_vm5, %v22459_v44  ;;  %v6528_v36 = vpop.permute.xlu1 %6527 }
 0x458   :  { %18245 = vmatprep.subr.msk.bf16.mxu1 %vm26126_vm13, %v5607_v46  ;;  %v6424_v46 = vsel %vm26126_vm13, %v6418_v53, 0  ;;  %v6534_v63 = vsel %vm26128_vm6, %v6528_v36, %v6530_v55 }
 0x45e   :  { %19190 = vmatmul.mubr.msk.bf16.vlgmr.msra.gmra.mrb[160].mxu1 %vm26125_vm0, %v20576_v58  ;;  %v6314_v58 = vsel %vm26126_vm13, %v6300_v47, 0  ;;  %v20587_v47 = vld [vmem:[%s26053_s5 + $0x40] sm:$0xff]  }
 0x45f   :  { %5621 = vmatpush1.bf16.msra.mxu1 %v5612_v26  ;;  %5652 = vmatprep.mubr.bf16.mxu1 %v20914_v3  ;;  %v6532_v26 = vpop.permute.xlu1 %6531 }
 0x460   :  { %19193 = vmatprep.subr.bf16.mxu1 %v22459_v44  ;;  %v6535_v57 = vsel %vm26128_vm6, %v6530_v55, %v6532_v26  ;;  %18869 = vmatprep.subr.bf16.mxu0 %v20587_v47 }
 0x466   :  { %18246 = vmatmul.mubr.msk.bf16.vlgmr.msra.gmra.mrb[156].mxu1 %vm26125_vm0, %v20577_v28 }
 0x467   :  { %19194 = vmatpush3.bf16.msra.mxu1 %v5618_v2  ;;  %19195 = vmatprep.mubr.msk.bf16.mxu1 %vm20927_vm5, %v22459_v44  ;;  %v6644_v2 = vpop.permute.xlu0 %6643 }
 0x468   :  { %18249 = vmatprep.subr.msk.bf16.mxu1 %vm26126_vm13, %v5723_v0  ;;  %v6540_v0 = vsel %vm26126_vm13, %v6534_v63, 0 }
 0x46b   :  { %v6648_v7 = vpop.permute.xlu0 %6647 }
 0x46c   :  { %v6662_v15 = vsel %vm26126_vm13, %v6648_v7, 0 }
 0x46e   :  { %19196 = vmatmul.mubr.msk.bf16.vlgmr.msra.gmra.mrb[160].mxu1 %vm26125_vm0, %v20577_v28  ;;  %v6430_v28 = vsel %vm26126_vm13, %v6416_v54, 0 }
 0x46f   :  { %5737 = vmatpush1.bf16.msra.mxu1 %v5728_v4  ;;  %5768 = vmatprep.mubr.bf16.mxu1 %v20914_v3  ;;  %v6646_v4 = vpop.permute.xlu1 %6645 }
 0x470   :  { %19199 = vmatprep.subr.bf16.mxu1 %v22459_v44  ;;  %v6651_v9 = vsel %vm26127_vm7, %v6646_v4, %v6648_v7  ;;  %v6650_v16 = vsel %vm26127_vm7, %v6644_v2, %v6646_v4 }
 0x476   :  { %18250 = vmatmul.mubr.msk.bf16.vlgmr.msra.gmra.mrb[156].mxu1 %vm26125_vm0, %v20578_v8 }
 0x477   :  { %19200 = vmatpush3.bf16.msra.mxu1 %v5734_v20  ;;  %19201 = vmatprep.mubr.msk.bf16.mxu1 %vm20927_vm5, %v22459_v44  ;;  %v6656_v20 = vsel %vm26126_vm13, %v6650_v16, 0 }
 0x478   :  { %18253 = vmatprep.subr.msk.bf16.mxu1 %vm26126_vm13, %v5839_v10  ;;  %v20586_v10 = vld [vmem:[%s26051_s4 + $0x78] sm:$0xff]  }
 0x47e   :  { %19202 = vmatmul.mubr.msk.bf16.vlgmr.msra.gmra.mrb[160].mxu1 %vm26125_vm0, %v20578_v8  ;;  %v6546_v8 = vsel %vm26126_vm13, %v6532_v26, 0 }
 0x47f   :  { %5853 = vmatpush1.bf16.msra.mxu1 %v5844_v5  ;;  %5884 = vmatprep.mubr.bf16.mxu1 %v20914_v3  ;;  %v22817_v5 = vshrl.u32 %v6756_v21, 7 }
 0x480   :  { %19205 = vmatprep.subr.bf16.mxu1 %v22459_v44 }
 0x481   :  { %v22826_v23 = vsub.s32 1, %v22817_v5 }
 0x486   :  { %18254 = vmatmul.mubr.msk.bf16.vlgmr.msra.gmra.mrb[156].mxu1 %vm26125_vm0, %v20579_v19 }
 0x487   :  { %19206 = vmatpush3.bf16.msra.mxu1 %v5850_v17  ;;  %19207 = vmatprep.mubr.msk.bf16.mxu1 %vm20927_vm5, %v22459_v44 }
 0x488   :  { %18257 = vmatprep.subr.msk.bf16.mxu1 %vm26126_vm13, %v5955_v25 }
 0x48e   :  { %19208 = vmatmul.mubr.msk.bf16.vlgmr.msra.gmra.mrb[160].mxu1 %vm26125_vm0, %v20579_v19  ;;  %v22820_v19 = vsub.s32 0, %v22817_v5 }
 0x48f   :  { %5969 = vmatpush1.bf16.msra.mxu1 %v5960_v29  ;;  %6000 = vmatprep.mubr.bf16.mxu1 %v20914_v3  ;;  %v22831_v29 = vsub.s32 2, %v22817_v5 }
 0x490   :  { %19211 = vmatprep.subr.bf16.mxu1 %v22459_v44  ;;  %v6759_v17 = vrot.slane %v6754_v13, %v22820_v19 }
 0x491   :  { %v6767_v56 = vrot.slane %v6754_v13, %v22831_v29 }
 0x496   :  { %18258 = vmatmul.mubr.msk.bf16.vlgmr.msra.gmra.mrb[156].mxu1 %vm26125_vm0, %v20580_v22 }
 0x497   :  { %19212 = vmatpush3.bf16.msra.mxu1 %v5966_v11  ;;  %19213 = vmatprep.mubr.msk.bf16.mxu1 %vm20927_vm5, %v22459_v44 }
 0x498   :  { %18261 = vmatprep.subr.msk.bf16.mxu1 %vm26126_vm13, %v6071_v32 }
 0x49e   :  { %19214 = vmatmul.mubr.msk.bf16.vlgmr.msra.gmra.mrb[160].mxu1 %vm26125_vm0, %v20580_v22 }
 0x49f   :  { %6085 = vmatpush1.bf16.msra.mxu1 %v6076_v33  ;;  %6116 = vmatprep.mubr.bf16.mxu1 %v20914_v3 }
 0x4a0   :  { %19217 = vmatprep.subr.bf16.mxu1 %v22459_v44 }
 0x4a6   :  { %18262 = vmatmul.mubr.msk.bf16.vlgmr.msra.gmra.mrb[156].mxu1 %vm26125_vm0, %v20581_v34 }
 0x4a7   :  { %19218 = vmatpush3.bf16.msra.mxu1 %v6082_v14  ;;  %19219 = vmatprep.mubr.msk.bf16.mxu1 %vm20927_vm5, %v22459_v44 }
 0x4a8   :  { %18265 = vmatprep.subr.msk.bf16.mxu1 %vm26126_vm13, %v6187_v37 }
 0x4ae   :  { %19220 = vmatmul.mubr.msk.bf16.vlgmr.msra.gmra.mrb[160].mxu1 %vm26125_vm0, %v20581_v34 }
 0x4af   :  { %6201 = vmatpush1.bf16.msra.mxu1 %v6192_v43  ;;  %6232 = vmatprep.mubr.bf16.mxu1 %v20914_v3 }
 0x4b0   :  { %19223 = vmatprep.subr.bf16.mxu1 %v22459_v44 }
 0x4b6   :  { %18266 = vmatmul.mubr.msk.bf16.vlgmr.msra.gmra.mrb[156].mxu1 %vm26125_vm0, %v20582_v40 }
 0x4b7   :  { %19224 = vmatpush3.bf16.msra.mxu1 %v6198_v48  ;;  %19225 = vmatprep.mubr.msk.bf16.mxu1 %vm20927_vm5, %v22459_v44  ;;  %v20588_v48 = vld [vmem:[%s26053_s5] sm:$0xff]  }
 0x4b8   :  { %18269 = vmatprep.subr.msk.bf16.mxu1 %vm26126_vm13, %v6303_v50  ;;  %v20589_v50 = vld [vmem:[%s26053_s5 + $0x48] sm:$0xff]   ;;  %18870 = vmatpush3.bf16.msra.mxu0 %v20588_v48 }
 0x4b9   :  { %18871 = vmatprep.subr.bf16.mxu0 %v20589_v50 }
 0x4bc   :  { %18872 = vmatpush3.bf16.msra.mxu0 %v20590_v51 }
 0x4be   :  { %19226 = vmatmul.mubr.msk.bf16.vlgmr.msra.gmra.mrb[160].mxu1 %vm26125_vm0, %v20582_v40 }
 0x4bf   :  { %6317 = vmatpush1.bf16.msra.mxu1 %v6308_v24  ;;  %6348 = vmatprep.mubr.bf16.mxu1 %v20914_v3 }
 0x4c0   :  { %19229 = vmatprep.subr.bf16.mxu1 %v22459_v44 }
 0x4c6   :  { %18270 = vmatmul.mubr.msk.bf16.vlgmr.msra.gmra.mrb[156].mxu1 %vm26125_vm0, %v20583_v52 }
 0x4c7   :  { %19230 = vmatpush3.bf16.msra.mxu1 %v6314_v58  ;;  %19231 = vmatprep.mubr.msk.bf16.mxu1 %vm20927_vm5, %v22459_v44 }
 0x4c8   :  { %18273 = vmatprep.subr.msk.bf16.mxu1 %vm26126_vm13, %v6419_v59 }
 0x4ce   :  { %19232 = vmatmul.mubr.msk.bf16.vlgmr.msra.gmra.mrb[160].mxu1 %vm26125_vm0, %v20583_v52 }
 0x4cf   :  { %6433 = vmatpush1.bf16.msra.mxu1 %v6424_v46  ;;  %6464 = vmatprep.mubr.bf16.mxu1 %v20914_v3 }
 0x4d0   :  { %19235 = vmatprep.subr.bf16.mxu1 %v22459_v44 }
 0x4d6   :  { %18274 = vmatmul.mubr.msk.bf16.vlgmr.msra.gmra.mrb[156].mxu1 %vm26125_vm0, %v20584_v61 }
 0x4d7   :  { %19236 = vmatpush3.bf16.msra.mxu1 %v6430_v28  ;;  %19237 = vmatprep.mubr.msk.bf16.mxu1 %vm20927_vm5, %v22459_v44 }
 0x4d8   :  { %18277 = vmatprep.subr.msk.bf16.mxu1 %vm26126_vm13, %v6535_v57 }
 0x4de   :  { %19238 = vmatmul.mubr.msk.bf16.vlgmr.msra.gmra.mrb[160].mxu1 %vm26125_vm0, %v20584_v61 }
 0x4df   :  { %6549 = vmatpush1.bf16.msra.mxu1 %v6540_v0  ;;  %6580 = vmatprep.mubr.bf16.mxu1 %v20914_v3 }
 0x4e0   :  { %19241 = vmatprep.subr.bf16.mxu1 %v22459_v44 }
 0x4e6   :  { %18278 = vmatmul.mubr.msk.bf16.vlgmr.msra.gmra.mrb[156].mxu1 %vm26125_vm0, %v20585_v45 }
 0x4e7   :  { %19242 = vmatpush3.bf16.msra.mxu1 %v6546_v8  ;;  %19243 = vmatprep.mubr.msk.bf16.mxu1 %vm20927_vm5, %v22459_v44 }
 0x4e8   :  { %18281 = vmatprep.subr.msk.bf16.mxu1 %vm26126_vm13, %v6651_v9 }
 0x4ee   :  { %19244 = vmatmul.mubr.msk.bf16.vlgmr.msra.gmra.mrb[160].mxu1 %vm26125_vm0, %v20585_v45 }
 0x4ef   :  { %6665 = vmatpush1.bf16.msra.mxu1 %v6656_v20  ;;  %6696 = vmatprep.mubr.bf16.mxu1 %v20914_v3 }
 0x4f0   :  { %19247 = vmatprep.subr.bf16.mxu1 %v22459_v44 }
 0x4f6   :  { %18282 = vmatmul.mubr.msk.bf16.vlgmr.msra.gmra.mrb[156].mxu1 %vm26125_vm0, %v20586_v10 }
 0x4f7   :  { %19248 = vmatpush3.bf16.msra.mxu1 %v6662_v15  ;;  %19249 = vmatprep.mubr.msk.bf16.mxu1 %vm20927_vm5, %v22459_v44  ;;  %v6763_v44 = vrot.slane %v6754_v13, %v22826_v23  ;;  %v20591_v13 = vld [vmem:[%s26053_s5 + $0x50] sm:$0xff]  }
 0x4f8   :  { %18873 = vmatprep.subr.bf16.mxu0 %v20591_v13 }
 0x4fe   :  { %19250 = vmatmul.mubr.msk.bf16.vlgmr.msra.gmra.mrb[160].mxu1 %vm26125_vm0, %v20586_v10 }
 0x4ff   :  { %9178 = vmatprep.mubr.bf16.mxu1 %v20914_v3 }
 0x5c9   :  { %v6698_v25 = vpop.f32.mrb[156].mxu1 }
 0x5ca   :  { %v6771_v27 = vmul.f32 %v6759_v17, %v6698_v25  ;;  %v6700_v39 = vpop.f32.mrb[157].mxu1 }
 0x5cb   :  { %v6772_v22 = vmul.f32 %v6763_v44, %v6700_v39  ;;  %v6702_v30 = vpop.f32.mrb[158].mxu1 }
 0x5cc   :  { %v6774_v31 = vmul.f32 %v6759_v17, %v6702_v30  ;;  %v6704_v11 = vpop.f32.mrb[159].mxu1 }
 0x5cd   :  { %v6777_v32 = vadd.f32 %v6772_v22, %v6771_v27  ;;  %v6775_v6 = vmul.f32 %v6763_v44, %v6704_v11  ;;  %v20595_v27 = vld [vmem:[%s26053_s5 + $0x60] sm:$0xff]   ;;  %v20597_v22 = vld [vmem:[%s26053_s5 + $0x68] sm:$0xff]  }
 0x5cf   :  { %v6782_v33 = vadd.f32 %v6775_v6, %v6774_v31  ;;  %v20599_v31 = vld [vmem:[%s26053_s5 + $0x70] sm:$0xff]   ;;  %v20602_v6 = vld [vmem:[%s26053_s5 + $0x38] sm:$0xff]  }
 0x5d1   :  { %v6741_v34 = vpop.f32.mrb[160].mxu1 }
 0x5d2   :  { %v6773_v35 = vmul.f32 %v6767_v56, %v6741_v34  ;;  %v19251_v12 = vpop.f32.mrb[161].mxu1 }
 0x5d3   :  { %v6744_v14 = vpop.f32.mrb[162].mxu1 }
 0x5d4   :  { %v6778_v37 = vsel %vm4554_vm1, %v6773_v35, 0.0  ;;  %v6776_v38 = vmul.f32 %v6767_v56, %v6744_v14  ;;  %v19252_v41 = vpop.f32.mrb[163].mxu1 }
 0x5d5   :  { %v6779_v43 = vadd.f32 %v6778_v37, %v6777_v32  ;;  %v20601_v32 = vld [vmem:[%s26053_s5 + $0x78] sm:$0xff]  }
 0x5d6   :  { %v6783_v40 = vsel %vm4554_vm1, %v6776_v38, 0.0 }
 0x5d7   :  { %6780 = vadd.xlane.f32.xlu1 %v6779_v43  ;;  %v6784_v49 = vadd.f32 %v6783_v40, %v6782_v33 }
 0x5d9   :  { %6785 = vadd.xlane.f32.xlu0 %v6784_v49 }
 0x664   :  { %v6781_v18 = vpop.xlane.xlu1 %6780 }
 0x665   :  { %v6787_v24 = vmul.f32 0.03125, %v6781_v18 }
 0x666   :  { %v6786_v52 = vpop.xlane.xlu0 %6785 }
 0x667   :  { %v22848_v54 = vsub.f32 %v6698_v25, %v6787_v24  ;;  %v6790_v42 = vsub.f32 %v6700_v39, %v6787_v24  ;;  %v22850_v58 = vsub.f32 %v6741_v34, %v6787_v24  ;;  %v6788_v59 = vmul.f32 0.03125, %v6786_v52  ;;  %v20592_v25 = vld [vmem:[%s26053_s5 + $0x10] sm:$0xff]   ;;  %v20596_v39 = vld [vmem:[%s26053_s5 + $0x20] sm:$0xff]  }
 0x668   :  { %18874 = vmatpush3.bf16.msra.mxu0 %v20592_v25 }
 0x669   :  { %v6795_v53 = vmul.f32 %v22848_v54, %v22848_v54  ;;  %v6796_v36 = vmul.f32 %v6790_v42, %v6790_v42  ;;  %v6797_v46 = vmul.f32 %v22850_v58, %v22850_v58  ;;  %v6792_v61 = vsub.f32 %v6702_v30, %v6788_v59  ;;  %v20598_v30 = vld [vmem:[%s26053_s5 + $0x28] sm:$0xff]  }
 0x66a   :  { %v6793_v55 = vsub.f32 %v6704_v11, %v6788_v59  ;;  %v22856_v26 = vsub.f32 %v6744_v14, %v6788_v59  ;;  %v20600_v11 = vld [vmem:[%s26053_s5 + $0x30] sm:$0xff]  }
 0x66b   :  { %v6798_v28 = vmul.f32 %v6792_v61, %v6792_v61  ;;  %v6801_v57 = vmul.f32 %v6795_v53, %v6759_v17  ;;  %v6802_v63 = vmul.f32 %v6796_v36, %v6763_v44  ;;  %v6803_v2 = vmul.f32 %v6797_v46, %v6767_v56 }
 0x66c   :  { %v6799_v0 = vmul.f32 %v6793_v55, %v6793_v55  ;;  %v6800_v45 = vmul.f32 %v22856_v26, %v22856_v26 }
 0x66d   :  { %v6807_v7 = vadd.f32 %v6802_v63, %v6801_v57  ;;  %v6808_v4 = vsel %vm4554_vm1, %v6803_v2, 0.0  ;;  %v6804_v8 = vmul.f32 %v6798_v28, %v6759_v17  ;;  %v20593_v17 = vld [vmem:[%s26053_s5 + $0x58] sm:$0xff]   ;;  %v20605_v2 = vld [vmem:[%s26054_s8] ss:$12 sps:$4 sm:$0xff]  }
 0x66e   :  { %v6805_v9 = vmul.f32 %v6799_v0, %v6763_v44  ;;  %v6806_v16 = vmul.f32 %v6800_v45, %v6767_v56  ;;  %v20594_v44 = vld [vmem:[%s26053_s5 + $0x18] sm:$0xff]   ;;  %18875 = vmatprep.subr.bf16.mxu0 %v20593_v17  ;;  %v22898_v56 = vld [vmem:[#allocation2] sm:$0xff] }
 0x66f   :  { %v6809_v20 = vadd.f32 %v6808_v4, %v6807_v7  ;;  %18876 = vmatpush3.bf16.msra.mxu0 %v20594_v44  ;;  %v20607_v0 = vld [vmem:[%s26054_s8 + $0x4] ss:$12 sps:$4 sm:$0xff]   ;;  %v20610_v45 = vld [vmem:[%s26054_s8 + $0x1c] ss:$12 sps:$4 sm:$0xff]  }
 0x670   :  { %v6812_v10 = vadd.f32 %v6805_v9, %v6804_v8  ;;  %v6813_v15 = vsel %vm4554_vm1, %v6806_v16, 0.0  ;;  %18877 = vmatprep.subr.bf16.mxu0 %v20595_v27  ;;  %v20608_v7 = vld [vmem:[%s26054_s8 + $0x18] ss:$12 sps:$4 sm:$0xff]   ;;  %v20611_v27 = vld [vmem:[%s26054_s8 + $0x8] ss:$12 sps:$4 sm:$0xff]  }
 0x671   :  { %6810 = vadd.xlane.f32.xlu0 %v6809_v20 }
 0x672   :  { %v6814_v21 = vadd.f32 %v6813_v15, %v6812_v10 }
 0x673   :  { %18878 = vmatpush3.bf16.msra.mxu0 %v20596_v39 }
 0x674   :  { %6815 = vadd.xlane.f32.xlu1 %v6814_v21  ;;  %18879 = vmatprep.subr.bf16.mxu0 %v20597_v22  ;;  %v20612_v22 = vld [vmem:[%s26054_s8 + $0x20] ss:$12 sps:$4 sm:$0xff]   ;;  %s26138_s8 = smov 104  }
 0x677   :  { %18880 = vmatpush3.bf16.msra.mxu0 %v20598_v30 }
 0x678   :  { %18881 = vmatprep.subr.bf16.mxu0 %v20599_v31 }
 0x67b   :  { %18882 = vmatpush3.bf16.msra.mxu0 %v20600_v11 }
 0x67c   :  { %18883 = vmatprep.subr.bf16.mxu0 %v20601_v32 }
 0x67f   :  { %18884 = vmatpush3.bf16.msra.mxu0 %v20602_v6 }
 0x680   :  { %19253 = vmatprep.subr.bf16.mxu0 %v22898_v56 }
 0x6fe   :  { %v6811_v33 = vpop.xlane.xlu0 %6810 }
 0x6ff   :  { %v6817_v34 = vmul.f32 0.03125, %v6811_v33 }
 0x701   :  { %v6819_v35 = vadd.f32 1e-05, %v6817_v34  ;;  %v6816_v12 = vpop.xlane.xlu1 %6815 }
 0x702   :  { %v6818_v14 = vmul.f32 0.03125, %v6816_v12 }
 0x703   :  { %20878 = vrsqrt.f32 %v6819_v35 }
 0x704   :  { %v6820_v37 = vadd.f32 1e-05, %v6818_v14 }
 0x706   :  { %20880 = vrsqrt.f32 %v6820_v37 }
 0x70d   :  { %v20879_v38 = vpop.eup %20878 }
 0x70e   :  { %v6824_v41 = vmul.f32 %v20879_v38, %v6790_v42  ;;  %v6823_v43 = vmul.f32 %v20879_v38, %v22848_v54  ;;  %v20603_v54 = vld [vmem:[%s26053_s5 + $0x80] sm:$0xff]  }
 0x710   :  { %v20881_v40 = vpop.eup %20880  ;;  %v6836_v47 = vmul.f32 0.2, %v6824_v41  ;;  %v6835_v50 = vmul.f32 0.2, %v6823_v43  ;;  %vm6830_vm0 = vcmp.gt.f32.partialorder %v6824_v41, 0.0  ;;  %vm6829_vm13 = vcmp.gt.f32.partialorder %v6823_v43, 0.0 }
 0x711   :  { %v6827_v49 = vmul.f32 %v20881_v40, %v6793_v55  ;;  %v6826_v48 = vmul.f32 %v20881_v40, %v6792_v61  ;;  %v6828_v24 = vmul.f32 %v20881_v40, %v22856_v26  ;;  %v6825_v61 = vmul.f32 %v20879_v38, %v22850_v58  ;;  %v20604_v26 = vld [vmem:[%s26053_s5 + $0x88] sm:$0xff]   ;;  %s26140_s5 = smov 102  }
 0x712   :  { %v6842_v52 = vsel %vm6830_vm0, %v6824_v41, %v6836_v47  ;;  %v6841_v53 = vsel %vm6829_vm13, %v6823_v43, %v6835_v50  ;;  %v20613_v47 = vld [vmem:[%s26055_s7 + $0x8] sm:$0xff]   ;;  %vm26148_vm13 = vcmask 826368  }
 0x713   :  { %vm6833_vm7 = vcmp.gt.f32.partialorder %v6827_v49, 0.0  ;;  %v6839_v51 = vmul.f32 0.2, %v6827_v49  ;;  %vm6832_vm6 = vcmp.gt.f32.partialorder %v6826_v48, 0.0  ;;  %v6838_v18 = vmul.f32 0.2, %v6826_v48  ;;  %vm26149_vm0 = vmmov %vm26148_vm13 }
 0x714   :  { %v6840_v55 = vmul.f32 0.2, %v6828_v24  ;;  %vm6834_vm8 = vcmp.gt.f32.partialorder %v6828_v24, 0.0  ;;  %v6837_v28 = vmul.f32 0.2, %v6825_v61 }
 0x715   :  { %v6845_v59 = vsel %vm6833_vm7, %v6827_v49, %v6839_v51  ;;  %v6844_v36 = vsel %vm6832_vm6, %v6826_v48, %v6838_v18  ;;  %vm6831_vm6 = vcmp.gt.f32.partialorder %v6825_v61, 0.0  ;;  %vm7261_vm7 = vcmask 130048   ;;  %v20614_v48 = vld [vmem:[%s26055_s7] sm:$0xff]  }
 0x716   :  { %v6848_v42 = vpack.c.bf16 %v6845_v59, %v6842_v52  ;;  %v6847_v46 = vpack.c.bf16 %v6844_v36, %v6841_v53  ;;  %v6846_v57 = vsel %vm6834_vm8, %v6828_v24, %v6840_v55  ;;  %v6843_v63 = vsel %vm6831_vm6, %v6825_v61, %v6837_v28  ;;  %v20615_v59 = vld [vmem:[%s26055_s7 + $0x10] sm:$0xff]   ;;  %v20616_v61 = vld [vmem:[%s26055_s7 + $0x18] sm:$0xff]  }
 0x717   :  { %v6849_v58 = vpack.c.bf16 %v6846_v57, %v6843_v63  ;;  %vm26146_vm8 = vcmask 834560   ;;  %vm26150_vm6 = vcmask 752640  }
 0x718   :  { %7029 = vmatprep.mubr.bf16.mxu0 %v6848_v42 }
 0x719   :  { %7030 = vmatmul.mubr.bf16.vlgmr.msra.gmra.mrb[124].mxu0 %v6847_v46 }
 0x71a   :  { %19254 = vmatpush3.bf16.msra.mxu0 %v20603_v54  ;;  %19257 = vmatprep.mubr.msk.bf16.mxu0 %vm20927_vm5, %v22898_v56 }
 0x71b   :  { %19255 = vmatprep.subr.bf16.mxu0 %v22898_v56 }
 0x71e   :  { %19256 = vmatpush3.bf16.msra.mxu0 %v20604_v26 }
 0x71f   :  { %7123 = vmatprep.subr.bf16.mxu0 %v20607_v0 }
 0x721   :  { %19258 = vmatmul.mubr.msk.bf16.vlgmr.msra.gmra.mrb[128].mxu0 %vm4554_vm1, %v6849_v58  ;;  %v20617_v58 = vld [vmem:[%s26055_s7 + $0x20] sm:$0xff]  }
 0x722   :  { %7155 = vmatprep.mubr.bf16.mxu0 %v20914_v3  ;;  %7124 = vmatpush1.bf16.msra.mxu0 %v20605_v2 }
 0x723   :  { %7125 = vmatprep.subr.bf16.mxu0 %v20610_v45 }
 0x726   :  { %7126 = vmatpush1.bf16.msra.mxu0 %v20608_v7 }
 0x727   :  { %19261 = vmatprep.subr.bf16.mxu0 %v22898_v56 }
 0x7ec   :  { %v18885_v4 = vpop.f32.mrb[124].mxu0 }
 0x7ed   :  { %v18886_v8 = vpop.f32.mrb[125].mxu0 }
 0x7ee   :  { %v18887_v9 = vadd.f32 %v18886_v8, %v18885_v4  ;;  %v18888_v16 = vpop.f32.mrb[126].mxu0  ;;  %v20618_v8 = vld [vmem:[%s26055_s7 + $0x28] sm:$0xff]  }
 0x7ef   :  { %v18889_v20 = vpop.f32.mrb[127].mxu0 }
 0x7f0   :  { %v18890_v10 = vadd.f32 %v18889_v20, %v18888_v16 }
 0x7f4   :  { %v7072_v15 = vpop.f32.mrb[128].mxu0 }
 0x7f5   :  { %v7073_v21 = vadd.f32 %v18887_v9, %v7072_v15  ;;  %v19259_v13 = vpop.f32.mrb[129].mxu0 }
 0x7f6   :  { %v7075_v25 = vpop.f32.mrb[130].mxu0 }
 0x7f7   :  { %v7076_v17 = vadd.f32 %v18890_v10, %v7075_v25  ;;  %v19260_v44 = vpop.f32.mrb[131].mxu0 }
 0x7f9   :  { %v7079_v39 = vpack.c.bf16 %v7076_v17, %v7073_v21  ;;  %v20619_v21 = vld [vmem:[%s26055_s7 + $0x30] sm:$0xff]  }
 0x7fb   :  { %18309 = vmatmul.mubr.msk.bf16.vlgmr.msra.gmra.mrb[132].mxu0 %vm4554_vm1, %v7079_v39 }
 0x7fc   :  { %19262 = vmatpush3.bf16.msra.mxu0 %v20611_v27  ;;  %19265 = vmatprep.mubr.msk.bf16.mxu0 %vm20927_vm5, %v22898_v56 }
 0x7fd   :  { %19263 = vmatprep.subr.bf16.mxu0 %v22898_v56 }
 0x800   :  { %19264 = vmatpush3.bf16.msra.mxu0 %v20612_v22 }
 0x803   :  { %19266 = vmatmul.mubr.msk.bf16.vlgmr.msra.gmra.mrb[136].mxu0 %vm4554_vm1, %v7079_v39  ;;  %v20620_v39 = vld [vmem:[%s26055_s7 + $0x38] sm:$0xff]  }
 0x804   :  { %7297 = vmatprep.mubr.bf16.mxu0 %v20914_v3 }
 0x8ce   :  { %v7157_v30 = vpop.f32.mrb[132].mxu0 }
 0x8cf   :  { %v7159_v31 = vpop.f32.mrb[133].mxu0 }
 0x8d0   :  { %v7161_v11 = vpop.f32.mrb[134].mxu0 }
 0x8d1   :  { %v22940_v32 = vpack.c.bf16 %v7161_v11, %v7157_v30  ;;  %v7163_v6 = vpop.f32.mrb[135].mxu0 }
 0x8d2   :  { %v22942_v33 = vpack.c.bf16 %v7163_v6, %v7159_v31  ;;  %v20621_v6 = vld [vmem:[%s26055_s7 + $0x40] sm:$0xff]  }
 0x8d4   :  { %7252 = vrot.lane.b32.xlu0 %v22942_v33, %s20915_s23 }
 0x8d6   :  { %v7200_v34 = vpop.f32.mrb[136].mxu0 }
 0x8d7   :  { %v19267_v35 = vpop.f32.mrb[137].mxu0 }
 0x8d8   :  { %7448 = vrot.lane.b32.xlu0 %v22942_v33, %s20917_s28  ;;  %v7203_v12 = vpop.f32.mrb[138].mxu0 }
 0x8d9   :  { %v22948_v14 = vpack.c.bf16 %v7203_v12, %v7200_v34  ;;  %v19268_v37 = vpop.f32.mrb[139].mxu0 }
 0x8da   :  { %v20622_v37 = vld [vmem:[%s26055_s7 + $0x48] sm:$0xff]  }
 0x8db   :  { %7254 = vrot.lane.b32.xlu1 %v22948_v14, %s20915_s23 }
 0x8dc   :  { %7446 = vrot.lane.b32.xlu0 %v22940_v32, %s20917_s28 }
 0x8df   :  { %7250 = vrot.lane.b32.xlu1 %v22940_v32, %s20915_s23 }
 0x8e0   :  { %7559 = vrot.lane.b32.xlu0 %v22948_v14, %s20918_s29 }
 0x8e3   :  { %7450 = vrot.lane.b32.xlu1 %v22948_v14, %s20917_s28 }
 0x8e4   :  { %7666 = vrot.lane.b32.xlu0 %v22942_v33, %s20932_s2 }
 0x8e7   :  { %7557 = vrot.lane.b32.xlu1 %v22942_v33, %s20918_s29 }
 0x8e8   :  { %7664 = vrot.lane.b32.xlu0 %v22940_v32, %s20932_s2 }
 0x8eb   :  { %7555 = vrot.lane.b32.xlu1 %v22940_v32, %s20918_s29 }
 0x8ec   :  { %7777 = vrot.lane.b32.xlu0 %v22948_v14, %s20933_s22 }
 0x8ef   :  { %7668 = vrot.lane.b32.xlu1 %v22948_v14, %s20932_s2 }
 0x8f0   :  { %7884 = vrot.lane.b32.xlu0 %v22942_v33, %s20934_s21 }
 0x8f3   :  { %7775 = vrot.lane.b32.xlu1 %v22942_v33, %s20933_s22 }
 0x8f4   :  { %7882 = vrot.lane.b32.xlu0 %v22940_v32, %s20934_s21 }
 0x8f7   :  { %7773 = vrot.lane.b32.xlu1 %v22940_v32, %s20933_s22 }
 0x8f8   :  { %7995 = vrot.lane.b32.xlu0 %v22948_v14, %s20935_s30 }
 0x8fb   :  { %7886 = vrot.lane.b32.xlu1 %v22948_v14, %s20934_s21 }
 0x8fc   :  { %8102 = vrot.lane.b32.xlu0 %v22942_v33, %s26138_s8 }
 0x8ff   :  { %7993 = vrot.lane.b32.xlu1 %v22942_v33, %s20935_s30 }
 0x900   :  { %8100 = vrot.lane.b32.xlu0 %v22940_v32, %s26138_s8 }
 0x903   :  { %7991 = vrot.lane.b32.xlu1 %v22940_v32, %s20935_s30  ;;  %s26142_s30 = smov 92  }
 0x904   :  { %8213 = vrot.lane.b32.xlu0 %v22948_v14, %s26139_s20 }
 0x907   :  { %8104 = vrot.lane.b32.xlu1 %v22948_v14, %s26138_s8 }
 0x908   :  { %8320 = vrot.lane.b32.xlu0 %v22942_v33, %s26140_s5 }
 0x90b   :  { %8211 = vrot.lane.b32.xlu1 %v22942_v33, %s26139_s20 }
 0x90c   :  { %8318 = vrot.lane.b32.xlu0 %v22940_v32, %s26140_s5 }
 0x90f   :  { %8209 = vrot.lane.b32.xlu1 %v22940_v32, %s26139_s20 }
 0x910   :  { %8431 = vrot.lane.b32.xlu0 %v22948_v14, %s26141_s0 }
 0x913   :  { %8322 = vrot.lane.b32.xlu1 %v22948_v14, %s26140_s5 }
 0x914   :  { %8538 = vrot.lane.b32.xlu0 %v22942_v33, %s26142_s30 }
 0x917   :  { %8429 = vrot.lane.b32.xlu1 %v22942_v33, %s26141_s0 }
 0x918   :  { %8536 = vrot.lane.b32.xlu0 %v22940_v32, %s26142_s30 }
 0x91b   :  { %8427 = vrot.lane.b32.xlu1 %v22940_v32, %s26141_s0 }
 0x91c   :  { %8649 = vrot.lane.b32.xlu0 %v22948_v14, %s26143_s26 }
 0x91f   :  { %8540 = vrot.lane.b32.xlu1 %v22948_v14, %s26142_s30  ;;  %s26192_s30 = smov 86  }
 0x920   :  { %8756 = vrot.lane.b32.xlu0 %v22942_v33, %s26144_s3 }
 0x923   :  { %8647 = vrot.lane.b32.xlu1 %v22942_v33, %s26143_s26 }
 0x924   :  { %8754 = vrot.lane.b32.xlu0 %v22940_v32, %s26144_s3 }
 0x927   :  { %8645 = vrot.lane.b32.xlu1 %v22940_v32, %s26143_s26 }
 0x928   :  { %8867 = vrot.lane.b32.xlu0 %v22948_v14, %s26145_s1 }
 0x92b   :  { %8758 = vrot.lane.b32.xlu1 %v22948_v14, %s26144_s3 }
 0x92f   :  { %8865 = vrot.lane.b32.xlu1 %v22942_v33, %s26145_s1 }
 0x933   :  { %8863 = vrot.lane.b32.xlu1 %v22940_v32, %s26145_s1  ;;  %s20945_s1 = smov 13  }
 0x946   :  { %v7253_v38 = vpop.permute.xlu0 %7252 }
 0x94a   :  { %v7449_v51 = vpop.permute.xlu0 %7448 }
 0x94d   :  { %v7255_v41 = vpop.permute.xlu1 %7254 }
 0x94e   :  { %v7257_v43 = vsel %vm120_vm2, %v7253_v38, %v7255_v41  ;;  %v7447_v24 = vpop.permute.xlu0 %7446 }
 0x94f   :  { %7265 = vmatprep.subr.bf16.mxu0 %v7257_v43  ;;  %v7452_v52 = vsel %vm517_vm3, %v7447_v24, %v7449_v51 }
 0x951   :  { %v7251_v40 = vpop.permute.xlu1 %7250 }
 0x952   :  { %v7256_v49 = vsel %vm120_vm2, %v7251_v40, %v7253_v38  ;;  %v7560_v36 = vpop.permute.xlu0 %7559 }
 0x953   :  { %7266 = vmatpush1.bf16.msra.mxu0 %v7256_v49 }
 0x954   :  { %19269 = vmatprep.subr.bf16.mxu0 %v22898_v56 }
 0x955   :  { %v7451_v50 = vpop.permute.xlu1 %7450 }
 0x956   :  { %18312 = vmatmul.mubr.msk.bf16.vlgmr.msra.gmra.mrb[140].mxu0 %vm7261_vm7, %v20613_v47  ;;  %v7453_v18 = vsel %vm517_vm3, %v7449_v51, %v7451_v50  ;;  %v7667_v26 = vpop.permute.xlu0 %7666 }
 0x957   :  { %19270 = vmatpush3.bf16.msra.mxu0 %v7255_v41  ;;  %19271 = vmatprep.mubr.msk.bf16.mxu0 %vm20927_vm5, %v22898_v56 }
 0x958   :  { %7357 = vmatprep.subr.bf16.mxu0 %v22942_v33 }
 0x959   :  { %v7558_v53 = vpop.permute.xlu1 %7557 }
 0x95a   :  { %v7562_v42 = vsel %vm732_vm4, %v7558_v53, %v7560_v36  ;;  %v7665_v57 = vpop.permute.xlu0 %7664 }
 0x95b   :  { %v7670_v63 = vsel %vm5373_vm12, %v7665_v57, %v7667_v26 }
 0x95d   :  { %v7556_v46 = vpop.permute.xlu1 %7555 }
 0x95e   :  { %19272 = vmatmul.mubr.msk.bf16.vlgmr.msra.gmra.mrb[144].mxu0 %vm7261_vm7, %v20613_v47  ;;  %v7561_v54 = vsel %vm732_vm4, %v7556_v46, %v7558_v53  ;;  %v7778_v0 = vpop.permute.xlu0 %7777  ;;  %v20623_v47 = vld [vmem:[%s26055_s7 + $0x50] sm:$0xff]  }
 0x95f   :  { %7358 = vmatpush1.bf16.msra.mxu0 %v22940_v32  ;;  %7389 = vmatprep.mubr.bf16.mxu0 %v20914_v3 }
 0x960   :  { %19275 = vmatprep.subr.bf16.mxu0 %v22898_v56 }
 0x961   :  { %v7669_v55 = vpop.permute.xlu1 %7668 }
 0x962   :  { %v7671_v28 = vsel %vm5373_vm12, %v7667_v26, %v7669_v55  ;;  %v7885_v16 = vpop.permute.xlu0 %7884 }
 0x965   :  { %v7776_v2 = vpop.permute.xlu1 %7775 }
 0x966   :  { %18315 = vmatmul.mubr.msk.bf16.vlgmr.msra.gmra.mrb[140].mxu0 %vm7261_vm7, %v20614_v48  ;;  %v7780_v45 = vsel %vm5489_vm15, %v7776_v2, %v7778_v0  ;;  %v7883_v10 = vpop.permute.xlu0 %7882 }
 0x967   :  { %19276 = vmatpush3.bf16.msra.mxu0 %v22948_v14  ;;  %19277 = vmatprep.mubr.msk.bf16.mxu0 %vm20927_vm5, %v22898_v56  ;;  %v7888_v15 = vsel %vm5605_vm14, %v7883_v10, %v7885_v16 }
 0x968   :  { %7460 = vmatprep.subr.bf16.mxu0 %v7453_v18 }
 0x969   :  { %v7774_v7 = vpop.permute.xlu1 %7773 }
 0x96a   :  { %v7779_v4 = vsel %vm5489_vm15, %v7774_v7, %v7776_v2  ;;  %v7996_v25 = vpop.permute.xlu0 %7995 }
 0x96d   :  { %v7887_v9 = vpop.permute.xlu1 %7886 }
 0x96e   :  { %19278 = vmatmul.mubr.msk.bf16.vlgmr.msra.gmra.mrb[144].mxu0 %vm7261_vm7, %v20614_v48  ;;  %v7889_v20 = vsel %vm5605_vm14, %v7885_v16, %v7887_v9  ;;  %v8103_v30 = vpop.permute.xlu0 %8102 }
 0x96f   :  { %7461 = vmatpush1.bf16.msra.mxu0 %v7452_v52  ;;  %7492 = vmatprep.mubr.bf16.mxu0 %v20914_v3  ;;  %v20624_v52 = vld [vmem:[%s26055_s7 + $0x58] sm:$0xff]  }
 0x970   :  { %19281 = vmatprep.subr.bf16.mxu0 %v22898_v56 }
 0x971   :  { %v7994_v13 = vpop.permute.xlu1 %7993 }
 0x972   :  { %v7998_v17 = vsel %vm5721_vm11, %v7994_v13, %v7996_v25  ;;  %v8101_v11 = vpop.permute.xlu0 %8100 }
 0x973   :  { %v8106_v32 = vsel %vm5837_vm10, %v8101_v11, %v8103_v30 }
 0x975   :  { %v7992_v44 = vpop.permute.xlu1 %7991 }
 0x976   :  { %18318 = vmatmul.mubr.msk.bf16.vlgmr.msra.gmra.mrb[140].mxu0 %vm7261_vm7, %v20615_v59  ;;  %v7997_v27 = vsel %vm5721_vm11, %v7992_v44, %v7994_v13  ;;  %v8214_v34 = vpop.permute.xlu0 %8213  ;;  %vm26147_vm11 = vmmov %vm26146_vm8 }
 0x977   :  { %19282 = vmatpush3.bf16.msra.mxu0 %v7451_v50  ;;  %19283 = vmatprep.mubr.msk.bf16.mxu0 %vm20927_vm5, %v22898_v56 }
 0x978   :  { %7569 = vmatprep.subr.bf16.mxu0 %v7562_v42 }
 0x979   :  { %v8105_v22 = vpop.permute.xlu1 %8104 }
 0x97a   :  { %v8107_v31 = vsel %vm5837_vm10, %v8103_v30, %v8105_v22  ;;  %v8321_v41 = vpop.permute.xlu0 %8320 }
 0x97d   :  { %v8212_v33 = vpop.permute.xlu1 %8211 }
 0x97e   :  { %19284 = vmatmul.mubr.msk.bf16.vlgmr.msra.gmra.mrb[144].mxu0 %vm7261_vm7, %v20615_v59  ;;  %v8216_v35 = vsel %vm5953_vm9, %v8212_v33, %v8214_v34  ;;  %v8319_v40 = vpop.permute.xlu0 %8318 }
 0x97f   :  { %7570 = vmatpush1.bf16.msra.mxu0 %v7561_v54  ;;  %7601 = vmatprep.mubr.bf16.mxu0 %v20914_v3  ;;  %v8324_v49 = vsel %vm26147_vm11, %v8319_v40, %v8321_v41  ;;  %v20625_v54 = vld [vmem:[%s26055_s7 + $0x60] sm:$0xff]   ;;  %vm26152_vm11 = vcmask 744448  }
 0x980   :  { %19287 = vmatprep.subr.bf16.mxu0 %v22898_v56 }
 0x981   :  { %v8210_v12 = vpop.permute.xlu1 %8209 }
 0x982   :  { %v8215_v14 = vsel %vm5953_vm9, %v8210_v12, %v8212_v33  ;;  %v8432_v50 = vpop.permute.xlu0 %8431 }
 0x985   :  { %v8323_v38 = vpop.permute.xlu1 %8322 }
 0x986   :  { %18321 = vmatmul.mubr.msk.bf16.vlgmr.msra.gmra.mrb[140].mxu0 %vm7261_vm7, %v20616_v61  ;;  %v8325_v43 = vsel %vm26146_vm8, %v8321_v41, %v8323_v38  ;;  %v8539_v53 = vpop.permute.xlu0 %8538  ;;  %vm26151_vm8 = vmmov %vm26150_vm6 }
 0x987   :  { %19288 = vmatpush3.bf16.msra.mxu0 %v7560_v36  ;;  %19289 = vmatprep.mubr.msk.bf16.mxu0 %vm20927_vm5, %v22898_v56 }
 0x988   :  { %7678 = vmatprep.subr.bf16.mxu0 %v7671_v28 }
 0x989   :  { %v8430_v48 = vpop.permute.xlu1 %8429 }
 0x98a   :  { %v8434_v51 = vsel %vm26148_vm13, %v8430_v48, %v8432_v50  ;;  %v8537_v42 = vpop.permute.xlu0 %8536  ;;  %vm26153_vm13 = vmmov %vm26152_vm11 }
 0x98b   :  { %v8542_v46 = vsel %vm26151_vm8, %v8537_v42, %v8539_v53  ;;  %vm26156_vm8 = vcmask 728064  }
 0x98d   :  { %v8428_v18 = vpop.permute.xlu1 %8427 }
 0x98e   :  { %19290 = vmatmul.mubr.msk.bf16.vlgmr.msra.gmra.mrb[144].mxu0 %vm7261_vm7, %v20616_v61  ;;  %v8433_v24 = vsel %vm26149_vm0, %v8428_v18, %v8430_v48  ;;  %vm26154_vm0 = vcmask 736256  }
 0x98f   :  { %7679 = vmatpush1.bf16.msra.mxu0 %v7670_v63  ;;  %7710 = vmatprep.mubr.bf16.mxu0 %v20914_v3  ;;  %v20626_v63 = vld [vmem:[%s26055_s7 + $0x68] sm:$0xff]  }
 0x990   :  { %19293 = vmatprep.subr.bf16.mxu0 %v22898_v56 }
 0x991   :  { %v8541_v59 = vpop.permute.xlu1 %8540 }
 0x992   :  { %v8543_v36 = vsel %vm26150_vm6, %v8539_v53, %v8541_v59  ;;  %vm26155_vm6 = vmmov %vm26154_vm0 }
 0x995   :  { %v8648_v61 = vpop.permute.xlu1 %8647 }
 0x996   :  { %18324 = vmatmul.mubr.msk.bf16.vlgmr.msra.gmra.mrb[140].mxu0 %vm7261_vm7, %v20617_v58 }
 0x997   :  { %19294 = vmatpush3.bf16.msra.mxu0 %v7669_v55  ;;  %19295 = vmatprep.mubr.msk.bf16.mxu0 %vm20927_vm5, %v22898_v56  ;;  %v8650_v55 = vpop.permute.xlu0 %8649 }
 0x998   :  { %7787 = vmatprep.subr.bf16.mxu0 %v7780_v45  ;;  %v8652_v26 = vsel %vm26152_vm11, %v8648_v61, %v8650_v55  ;;  %vm26157_vm11 = vmmov %vm26156_vm8 }
 0x999   :  { %v8646_v28 = vpop.permute.xlu1 %8645 }
 0x99a   :  { %v8651_v57 = vsel %vm26153_vm13, %v8646_v28, %v8648_v61  ;;  %vm9078_vm13 = vcmask 211968  }
 0x99b   :  { %v8757_v2 = vpop.permute.xlu0 %8756 }
 0x99e   :  { %19296 = vmatmul.mubr.msk.bf16.vlgmr.msra.gmra.mrb[144].mxu0 %vm7261_vm7, %v20617_v58  ;;  %v8759_v58 = vpop.permute.xlu1 %8758 }
 0x99f   :  { %7788 = vmatpush1.bf16.msra.mxu0 %v7779_v4  ;;  %7819 = vmatprep.mubr.bf16.mxu0 %v20914_v3  ;;  %v8755_v45 = vpop.permute.xlu0 %8754  ;;  %v20627_v4 = vld [vmem:[%s26055_s7 + $0x70] sm:$0xff]  }
 0x9a0   :  { %19299 = vmatprep.subr.bf16.mxu0 %v22898_v56  ;;  %v8760_v7 = vsel %vm26155_vm6, %v8755_v45, %v8757_v2  ;;  %vm9092_vm6 = vcmask 474112  }
 0x9a6   :  { %18327 = vmatmul.mubr.msk.bf16.vlgmr.msra.gmra.mrb[140].mxu0 %vm7261_vm7, %v20618_v8 }
 0x9a7   :  { %19300 = vmatpush3.bf16.msra.mxu0 %v7778_v0  ;;  %19301 = vmatprep.mubr.msk.bf16.mxu0 %vm20927_vm5, %v22898_v56  ;;  %v8761_v0 = vsel %vm26154_vm0, %v8757_v2, %v8759_v58  ;;  %vm9089_vm0 = vcmask 1047760  }
 0x9a8   :  { %7896 = vmatprep.subr.bf16.mxu0 %v7889_v20 }
 0x9ae   :  { %19302 = vmatmul.mubr.msk.bf16.vlgmr.msra.gmra.mrb[144].mxu0 %vm7261_vm7, %v20618_v8  ;;  %v8866_v8 = vpop.permute.xlu1 %8865 }
 0x9af   :  { %7897 = vmatpush1.bf16.msra.mxu0 %v7888_v15  ;;  %7928 = vmatprep.mubr.bf16.mxu0 %v20914_v3  ;;  %v20628_v15 = vld [vmem:[%s26055_s7 + $0x78] sm:$0xff]   ;;  %s20944_s7 = smov 26  }
 0x9b0   :  { %19305 = vmatprep.subr.bf16.mxu0 %v22898_v56 }
 0x9b2   :  { %v8864_v20 = vpop.permute.xlu1 %8863 }
 0x9b3   :  { %v8869_v10 = vsel %vm26157_vm11, %v8864_v20, %v8866_v8 }
 0x9b6   :  { %18330 = vmatmul.mubr.msk.bf16.vlgmr.msra.gmra.mrb[140].mxu0 %vm7261_vm7, %v20619_v21 }
 0x9b7   :  { %19306 = vmatpush3.bf16.msra.mxu0 %v7887_v9  ;;  %19307 = vmatprep.mubr.msk.bf16.mxu0 %vm20927_vm5, %v22898_v56  ;;  %v8868_v9 = vpop.permute.xlu0 %8867 }
 0x9b8   :  { %8005 = vmatprep.subr.bf16.mxu0 %v7998_v17  ;;  %v8870_v16 = vsel %vm26156_vm8, %v8866_v8, %v8868_v9 }
 0x9be   :  { %19308 = vmatmul.mubr.msk.bf16.vlgmr.msra.gmra.mrb[144].mxu0 %vm7261_vm7, %v20619_v21  ;;  %v8967_v21 = vld [vmem:[%s26056_s9] sm:$0x7]  ;;  %s26162_s9 = smov 108  }
 0x9bf   :  { %8006 = vmatpush1.bf16.msra.mxu0 %v7997_v27  ;;  %8037 = vmatprep.mubr.bf16.mxu0 %v20914_v3  ;;  %v23216_v13 = vrot.slane %v8967_v21, %v22820_v19 }
 0x9c0   :  { %19311 = vmatprep.subr.bf16.mxu0 %v22898_v56 }
 0x9c6   :  { %18333 = vmatmul.mubr.msk.bf16.vlgmr.msra.gmra.mrb[140].mxu0 %vm7261_vm7, %v20620_v39 }
 0x9c7   :  { %19312 = vmatpush3.bf16.msra.mxu0 %v7996_v25  ;;  %19313 = vmatprep.mubr.msk.bf16.mxu0 %vm20927_vm5, %v22898_v56  ;;  %v23219_v25 = vrot.slane %v8967_v21, %v22826_v23 }
 0x9c8   :  { %8114 = vmatprep.subr.bf16.mxu0 %v8107_v31 }
 0x9ce   :  { %19314 = vmatmul.mubr.msk.bf16.vlgmr.msra.gmra.mrb[144].mxu0 %vm7261_vm7, %v20620_v39 }
 0x9cf   :  { %8115 = vmatpush1.bf16.msra.mxu0 %v8106_v32  ;;  %8146 = vmatprep.mubr.bf16.mxu0 %v20914_v3  ;;  %v23226_v32 = vrot.slane %v8967_v21, %v22831_v29 }
 0x9d0   :  { %19317 = vmatprep.subr.bf16.mxu0 %v22898_v56 }
 0x9d6   :  { %18336 = vmatmul.mubr.msk.bf16.vlgmr.msra.gmra.mrb[140].mxu0 %vm7261_vm7, %v20621_v6 }
 0x9d7   :  { %19318 = vmatpush3.bf16.msra.mxu0 %v8105_v22  ;;  %19319 = vmatprep.mubr.msk.bf16.mxu0 %vm20927_vm5, %v22898_v56 }
 0x9d8   :  { %8223 = vmatprep.subr.bf16.mxu0 %v8216_v35 }
 0x9de   :  { %19320 = vmatmul.mubr.msk.bf16.vlgmr.msra.gmra.mrb[144].mxu0 %vm7261_vm7, %v20621_v6 }
 0x9df   :  { %8224 = vmatpush1.bf16.msra.mxu0 %v8215_v14  ;;  %8255 = vmatprep.mubr.bf16.mxu0 %v20914_v3 }
 0x9e0   :  { %19323 = vmatprep.subr.bf16.mxu0 %v22898_v56 }
 0x9e6   :  { %18339 = vmatmul.mubr.msk.bf16.vlgmr.msra.gmra.mrb[140].mxu0 %vm7261_vm7, %v20622_v37 }
 0x9e7   :  { %19324 = vmatpush3.bf16.msra.mxu0 %v8214_v34  ;;  %19325 = vmatprep.mubr.msk.bf16.mxu0 %vm20927_vm5, %v22898_v56 }
 0x9e8   :  { %8332 = vmatprep.subr.bf16.mxu0 %v8325_v43 }
 0x9ee   :  { %19326 = vmatmul.mubr.msk.bf16.vlgmr.msra.gmra.mrb[144].mxu0 %vm7261_vm7, %v20622_v37 }
 0x9ef   :  { %8333 = vmatpush1.bf16.msra.mxu0 %v8324_v49  ;;  %8364 = vmatprep.mubr.bf16.mxu0 %v20914_v3 }
 0x9f0   :  { %19329 = vmatprep.subr.bf16.mxu0 %v22898_v56 }
 0x9f6   :  { %18342 = vmatmul.mubr.msk.bf16.vlgmr.msra.gmra.mrb[140].mxu0 %vm7261_vm7, %v20623_v47 }
 0x9f7   :  { %19330 = vmatpush3.bf16.msra.mxu0 %v8323_v38  ;;  %19331 = vmatprep.mubr.msk.bf16.mxu0 %vm20927_vm5, %v22898_v56 }
 0x9f8   :  { %8441 = vmatprep.subr.bf16.mxu0 %v8434_v51 }
 0x9fe   :  { %19332 = vmatmul.mubr.msk.bf16.vlgmr.msra.gmra.mrb[144].mxu0 %vm7261_vm7, %v20623_v47 }
 0x9ff   :  { %8442 = vmatpush1.bf16.msra.mxu0 %v8433_v24  ;;  %8473 = vmatprep.mubr.bf16.mxu0 %v20914_v3 }
 0xa00   :  { %19335 = vmatprep.subr.bf16.mxu0 %v22898_v56 }
 0xa06   :  { %18345 = vmatmul.mubr.msk.bf16.vlgmr.msra.gmra.mrb[140].mxu0 %vm7261_vm7, %v20624_v52 }
 0xa07   :  { %19336 = vmatpush3.bf16.msra.mxu0 %v8432_v50  ;;  %19337 = vmatprep.mubr.msk.bf16.mxu0 %vm20927_vm5, %v22898_v56 }
 0xa08   :  { %8550 = vmatprep.subr.bf16.mxu0 %v8543_v36 }
 0xa0e   :  { %19338 = vmatmul.mubr.msk.bf16.vlgmr.msra.gmra.mrb[144].mxu0 %vm7261_vm7, %v20624_v52 }
 0xa0f   :  { %8551 = vmatpush1.bf16.msra.mxu0 %v8542_v46  ;;  %8582 = vmatprep.mubr.bf16.mxu0 %v20914_v3 }
 0xa10   :  { %19341 = vmatprep.subr.bf16.mxu0 %v22898_v56 }
 0xa16   :  { %18348 = vmatmul.mubr.msk.bf16.vlgmr.msra.gmra.mrb[140].mxu0 %vm7261_vm7, %v20625_v54 }
 0xa17   :  { %19342 = vmatpush3.bf16.msra.mxu0 %v8541_v59  ;;  %19343 = vmatprep.mubr.msk.bf16.mxu0 %vm20927_vm5, %v22898_v56 }
 0xa18   :  { %8659 = vmatprep.subr.bf16.mxu0 %v8652_v26 }
 0xa1e   :  { %19344 = vmatmul.mubr.msk.bf16.vlgmr.msra.gmra.mrb[144].mxu0 %vm7261_vm7, %v20625_v54 }
 0xa1f   :  { %8660 = vmatpush1.bf16.msra.mxu0 %v8651_v57  ;;  %8691 = vmatprep.mubr.bf16.mxu0 %v20914_v3 }
 0xa20   :  { %19347 = vmatprep.subr.bf16.mxu0 %v22898_v56 }
 0xa26   :  { %18351 = vmatmul.mubr.msk.bf16.vlgmr.msra.gmra.mrb[140].mxu0 %vm7261_vm7, %v20626_v63 }
 0xa27   :  { %19348 = vmatpush3.bf16.msra.mxu0 %v8650_v55  ;;  %19349 = vmatprep.mubr.msk.bf16.mxu0 %vm20927_vm5, %v22898_v56 }
 0xa28   :  { %8768 = vmatprep.subr.bf16.mxu0 %v8761_v0 }
 0xa2e   :  { %19350 = vmatmul.mubr.msk.bf16.vlgmr.msra.gmra.mrb[144].mxu0 %vm7261_vm7, %v20626_v63 }
 0xa2f   :  { %8769 = vmatpush1.bf16.msra.mxu0 %v8760_v7  ;;  %8800 = vmatprep.mubr.bf16.mxu0 %v20914_v3 }
 0xa30   :  { %19353 = vmatprep.subr.bf16.mxu0 %v22898_v56 }
 0xa36   :  { %18354 = vmatmul.mubr.msk.bf16.vlgmr.msra.gmra.mrb[140].mxu0 %vm7261_vm7, %v20627_v4 }
 0xa37   :  { %19354 = vmatpush3.bf16.msra.mxu0 %v8759_v58  ;;  %19355 = vmatprep.mubr.msk.bf16.mxu0 %vm20927_vm5, %v22898_v56 }
 0xa38   :  { %8877 = vmatprep.subr.bf16.mxu0 %v8870_v16 }
 0xa3e   :  { %19356 = vmatmul.mubr.msk.bf16.vlgmr.msra.gmra.mrb[144].mxu0 %vm7261_vm7, %v20627_v4 }
 0xa3f   :  { %8878 = vmatpush1.bf16.msra.mxu0 %v8869_v10  ;;  %8909 = vmatprep.mubr.bf16.mxu0 %v20914_v3 }
 0xa40   :  { %19359 = vmatprep.subr.bf16.mxu0 %v22898_v56 }
 0xa46   :  { %18357 = vmatmul.mubr.msk.bf16.vlgmr.msra.gmra.mrb[140].mxu0 %vm7261_vm7, %v20628_v15 }
 0xa47   :  { %19360 = vmatpush3.bf16.msra.mxu0 %v8868_v9  ;;  %19361 = vmatprep.mubr.msk.bf16.mxu0 %vm20927_vm5, %v22898_v56 }
 0xa4e   :  { %19362 = vmatmul.mubr.msk.bf16.vlgmr.msra.gmra.mrb[144].mxu0 %vm7261_vm7, %v20628_v15 }
 0xb19   :  { %v8911_v17 = vpop.f32.mrb[140].mxu0 }
 0xb1a   :  { %v8984_v44 = vmul.f32 %v23216_v13, %v8911_v17  ;;  %v8913_v27 = vpop.f32.mrb[141].mxu0 }
 0xb1b   :  { %v8985_v39 = vmul.f32 %v23219_v25, %v8913_v27  ;;  %v8915_v22 = vpop.f32.mrb[142].mxu0 }
 0xb1c   :  { %v8987_v56 = vmul.f32 %v23216_v13, %v8915_v22  ;;  %v8917_v30 = vpop.f32.mrb[143].mxu0 }
 0xb1d   :  { %v8990_v31 = vadd.f32 %v8985_v39, %v8984_v44  ;;  %v8988_v11 = vmul.f32 %v23219_v25, %v8917_v30 }
 0xb1f   :  { %v8995_v6 = vadd.f32 %v8988_v11, %v8987_v56 }
 0xb21   :  { %v8954_v33 = vpop.f32.mrb[144].mxu0 }
 0xb22   :  { %v8986_v34 = vmul.f32 %v23226_v32, %v8954_v33  ;;  %v19363_v35 = vpop.f32.mrb[145].mxu0 }
 0xb23   :  { %v8957_v12 = vpop.f32.mrb[146].mxu0 }
 0xb24   :  { %v8991_v14 = vsel %vm4554_vm1, %v8986_v34, 0.0  ;;  %v8989_v37 = vmul.f32 %v23226_v32, %v8957_v12  ;;  %v19364_v38 = vpop.f32.mrb[147].mxu0 }
 0xb25   :  { %v8992_v41 = vadd.f32 %v8991_v14, %v8990_v31 }
 0xb26   :  { %v8996_v43 = vsel %vm4554_vm1, %v8989_v37, 0.0 }
 0xb27   :  { %8993 = vadd.xlane.f32.xlu0 %v8992_v41  ;;  %v8997_v40 = vadd.f32 %v8996_v43, %v8995_v6 }
 0xb29   :  { %8998 = vadd.xlane.f32.xlu1 %v8997_v40 }
 0xbb4   :  { %v8994_v49 = vpop.xlane.xlu0 %8993 }
 0xbb5   :  { %v9000_v47 = vmul.f32 0.0078125, %v8994_v49 }
 0xbb6   :  { %v8999_v48 = vpop.xlane.xlu1 %8998 }
 0xbb7   :  { %v9002_v50 = vsub.f32 %v8911_v17, %v9000_v47  ;;  %v9003_v51 = vsub.f32 %v8913_v27, %v9000_v47  ;;  %v9004_v18 = vsub.f32 %v8954_v33, %v9000_v47  ;;  %v9001_v24 = vmul.f32 0.0078125, %v8999_v48 }
 0xbb9   :  { %v9008_v52 = vmul.f32 %v9002_v50, %v9002_v50  ;;  %v9009_v59 = vmul.f32 %v9003_v51, %v9003_v51  ;;  %v9010_v53 = vmul.f32 %v9004_v18, %v9004_v18  ;;  %v9005_v36 = vsub.f32 %v8915_v22, %v9001_v24 }
 0xbba   :  { %v9006_v42 = vsub.f32 %v8917_v30, %v9001_v24  ;;  %v9007_v46 = vsub.f32 %v8957_v12, %v9001_v24 }
 0xbbb   :  { %v9011_v54 = vmul.f32 %v9005_v36, %v9005_v36  ;;  %v9014_v61 = vmul.f32 %v9008_v52, %v23216_v13  ;;  %v9015_v55 = vmul.f32 %v9009_v59, %v23219_v25  ;;  %v9016_v26 = vmul.f32 %v9010_v53, %v23226_v32 }
 0xbbc   :  { %v9012_v28 = vmul.f32 %v9006_v42, %v9006_v42  ;;  %v9013_v57 = vmul.f32 %v9007_v46, %v9007_v46 }
 0xbbd   :  { %v9020_v63 = vadd.f32 %v9015_v55, %v9014_v61  ;;  %v9021_v58 = vsel %vm4554_vm1, %v9016_v26, 0.0  ;;  %v9017_v2 = vmul.f32 %v9011_v54, %v23216_v13 }
 0xbbe   :  { %v9018_v0 = vmul.f32 %v9012_v28, %v23219_v25  ;;  %v9019_v45 = vmul.f32 %v9013_v57, %v23226_v32 }
 0xbbf   :  { %v9022_v7 = vadd.f32 %v9021_v58, %v9020_v63  ;;  %v20629_v58 = vld [vmem:[%s26057_s10 + $0x8] sm:$0xff]  }
 0xbc0   :  { %v9025_v4 = vadd.f32 %v9018_v0, %v9017_v2  ;;  %v9026_v8 = vsel %vm4554_vm1, %v9019_v45, 0.0  ;;  %v23279_v2 = vld [vmem:[#allocation3] sm:$0xff]  ;;  %v20630_v0 = vld [vmem:[%s26057_s10] sm:$0xff]  }
 0xbc1   :  { %9023 = vadd.xlane.f32.xlu0 %v9022_v7 }
 0xbc2   :  { %v9027_v9 = vadd.f32 %v9026_v8, %v9025_v4 }
 0xbc5   :  { %9028 = vadd.xlane.f32.xlu0 %v9027_v9 }
 0xc4e   :  { %v9024_v16 = vpop.xlane.xlu0 %9023 }
 0xc4f   :  { %v9030_v20 = vmul.f32 0.0078125, %v9024_v16  ;;  %v20631_v16 = vld [vmem:[%s26057_s10 + $0x10] sm:$0xff]  }
 0xc51   :  { %v9032_v10 = vadd.f32 1e-05, %v9030_v20 }
 0xc52   :  { %v9029_v15 = vpop.xlane.xlu0 %9028 }
 0xc53   :  { %20882 = vrsqrt.f32 %v9032_v10  ;;  %v9031_v21 = vmul.f32 0.0078125, %v9029_v15 }
 0xc55   :  { %v9033_v17 = vadd.f32 1e-05, %v9031_v21 }
 0xc57   :  { %20884 = vrsqrt.f32 %v9033_v17 }
 0xc5d   :  { %v20883_v44 = vpop.eup %20882 }
 0xc5e   :  { %v9036_v27 = vmul.f32 %v20883_v44, %v9002_v50  ;;  %v9037_v39 = vmul.f32 %v20883_v44, %v9003_v51  ;;  %v9038_v22 = vmul.f32 %v20883_v44, %v9004_v18  ;;  %v20632_v44 = vld [vmem:[%s26057_s10 + $0x18] sm:$0xff]  }
 0xc60   :  { %v9042_v56 = vmax.f32 %v9036_v27, 0.0  ;;  %v9043_v30 = vmax.f32 %v9037_v39, 0.0  ;;  %v9044_v33 = vmax.f32 %v9038_v22, 0.0 }
 0xc61   :  { %v20885_v31 = vpop.eup %20884 }
 0xc62   :  { %v9048_v11 = vmul.f32 %v9042_v56, %v23216_v13  ;;  %v9049_v6 = vmul.f32 %v9043_v30, %v23219_v25  ;;  %v9040_v34 = vmul.f32 %v20885_v31, %v9006_v42  ;;  %v9039_v35 = vmul.f32 %v20885_v31, %v9005_v36 }
 0xc63   :  { %v9050_v14 = vmul.f32 %v9044_v33, %v23226_v32  ;;  %v9041_v41 = vmul.f32 %v20885_v31, %v9007_v46  ;;  %v20633_v31 = vld [vmem:[%s26057_s10 + $0x20] sm:$0xff]  }
 0xc64   :  { %9066 = vrot.lane.b32.xlu1 %v9048_v11, %s20944_s7  ;;  %9068 = vrot.lane.b32.xlu0 %v9049_v6, %s20944_s7  ;;  %v9046_v12 = vmax.f32 %v9040_v34, 0.0  ;;  %v9045_v38 = vmax.f32 %v9039_v35, 0.0 }
 0xc65   :  { %v9047_v40 = vmax.f32 %v9041_v41, 0.0 }
 0xc66   :  { %v9052_v37 = vmul.f32 %v9046_v12, %v23219_v25  ;;  %v9051_v43 = vmul.f32 %v9045_v38, %v23216_v13  ;;  %v20634_v12 = vld [vmem:[%s26057_s10 + $0x28] sm:$0xff]  }
 0xc67   :  { %v9053_v49 = vmul.f32 %v9047_v40, %v23226_v32  ;;  %v20635_v40 = vld [vmem:[%s26057_s10 + $0x30] sm:$0xff]  }
 0xc68   :  { %9070 = vrot.lane.b32.xlu1 %v9050_v14, %s20944_s7  ;;  %9074 = vrot.lane.b32.xlu0 %v9052_v37, %s20944_s7 }
 0xc6c   :  { %9072 = vrot.lane.b32.xlu1 %v9051_v43, %s20944_s7 }
 0xc70   :  { %9076 = vrot.lane.b32.xlu1 %v9053_v49, %s20944_s7  ;;  %s26243_s7 = smov 67  }
 0xcd6   :  { %v9069_v47 = vpop.permute.xlu0 %9068  ;;  %v9067_v48 = vpop.permute.xlu1 %9066 }
 0xcd7   :  { %v9079_v50 = vsel %vm9078_vm13, %v9067_v48, %v9069_v47  ;;  %9090 = vst.msk [vmem:[#allocation2] sm:$0xff] %vm9089_vm0, %v9067_v48 }
 0xcda   :  { %v9071_v25 = vpop.permute.xlu1 %9070  ;;  %v9075_v18 = vpop.permute.xlu0 %9074 }
 0xcdb   :  { %v9080_v51 = vsel %vm9078_vm13, %v9069_v47, %v9071_v25 }
 0xcdc   :  { %9093 = vst.msk [vmem:[#allocation2 + $0x10] sm:$0xff] %vm9092_vm6, %v9080_v51  ;;  %v20636_v51 = vld [vmem:[%s26057_s10 + $0x38] sm:$0xff]  }
 0xcde   :  { %v9073_v24 = vpop.permute.xlu1 %9072  ;;  %v9097_v53 = vld [vmem:[#allocation2] sm:$0xff] }
 0xcdf   :  { %v9081_v13 = vsel %vm9078_vm13, %v9073_v24, %v9075_v18  ;;  %9094 = vst.msk [vmem:[#allocation2 + $0x18] sm:$0xff] %vm9089_vm0, %v9073_v24  ;;  %vm10213_vm0 = vcmask 1047656  }
 0xce0   :  { %v9122_v52 = vpack.c.bf16 %v9081_v13, %v9079_v50 }
 0xce2   :  { %v9077_v32 = vpop.permute.xlu1 %9076  ;;  %9134 = vrot.lane.b32.xlu0 %v9122_v52, %s20915_s23 }
 0xce3   :  { %v9082_v59 = vsel %vm9078_vm13, %v9075_v18, %v9077_v32  ;;  %v9099_v46 = vld [vmem:[#allocation2 + $0x10] sm:$0xff]  ;;  %vm10202_vm13 = vcmask 105472  }
 0xce4   :  { %9096 = vst.msk [vmem:[#allocation2 + $0x28] sm:$0xff] %vm9092_vm6, %v9082_v59  ;;  %v20637_v59 = vld [vmem:[%s26057_s10 + $0x40] sm:$0xff]   ;;  %vm10216_vm6 = vcmask 367616  }
 0xce6   :  { %v9100_v36 = vld [vmem:[#allocation2 + $0x18] sm:$0xff] }
 0xce7   :  { %v9121_v42 = vpack.c.bf16 %v9100_v36, %v9097_v53  ;;  %v10085_v53 = vld [vmem:[%s26058_s11] sm:$0x7] }
 0xce8   :  { %v10090_v36 = vrot.slane %v10085_v53, %v22820_v19 }
 0xce9   :  { %9132 = vrot.lane.b32.xlu0 %v9121_v42, %s20915_s23 }
 0xceb   :  { %v9102_v54 = vld [vmem:[#allocation2 + $0x28] sm:$0xff] }
 0xcec   :  { %v9123_v61 = vpack.c.bf16 %v9102_v54, %v9099_v46 }
 0xcee   :  { %9136 = vrot.lane.b32.xlu1 %v9123_v61, %s20915_s23  ;;  %9331 = vrot.lane.b32.xlu0 %v9123_v61, %s20917_s28 }
 0xcf2   :  { %9329 = vrot.lane.b32.xlu1 %v9122_v52, %s20917_s28  ;;  %9438 = vrot.lane.b32.xlu0 %v9122_v52, %s20932_s2 }
 0xcf6   :  { %9327 = vrot.lane.b32.xlu1 %v9121_v42, %s20917_s28  ;;  %9436 = vrot.lane.b32.xlu0 %v9121_v42, %s20932_s2 }
 0xcfa   :  { %9440 = vrot.lane.b32.xlu1 %v9123_v61, %s20932_s2  ;;  %9549 = vrot.lane.b32.xlu0 %v9123_v61, %s20933_s22  ;;  %s26166_s2 = smov 106  }
 0xcfe   :  { %9547 = vrot.lane.b32.xlu1 %v9122_v52, %s20933_s22  ;;  %9656 = vrot.lane.b32.xlu0 %v9122_v52, %s20934_s21 }
 0xd02   :  { %9545 = vrot.lane.b32.xlu1 %v9121_v42, %s20933_s22  ;;  %9654 = vrot.lane.b32.xlu0 %v9121_v42, %s20934_s21  ;;  %s26172_s22 = smov 105  }
 0xd06   :  { %9658 = vrot.lane.b32.xlu1 %v9123_v61, %s20934_s21  ;;  %9767 = vrot.lane.b32.xlu0 %v9123_v61, %s26138_s8  ;;  %s26180_s21 = smov 88  }
 0xd0a   :  { %9765 = vrot.lane.b32.xlu1 %v9122_v52, %s26138_s8  ;;  %9874 = vrot.lane.b32.xlu0 %v9122_v52, %s26139_s20 }
 0xd0e   :  { %9763 = vrot.lane.b32.xlu1 %v9121_v42, %s26138_s8  ;;  %9872 = vrot.lane.b32.xlu0 %v9121_v42, %s26139_s20 }
 0xd12   :  { %9876 = vrot.lane.b32.xlu1 %v9123_v61, %s26139_s20  ;;  %9985 = vrot.lane.b32.xlu0 %v9123_v61, %s26140_s5 }
 0xd16   :  { %9983 = vrot.lane.b32.xlu1 %v9122_v52, %s26140_s5 }
 0xd1a   :  { %9981 = vrot.lane.b32.xlu1 %v9121_v42, %s26140_s5  ;;  %s26185_s5 = smov 87  }
 0xd54   :  { %v9135_v55 = vpop.permute.xlu0 %9134 }
 0xd5b   :  { %v9133_v26 = vpop.permute.xlu0 %9132 }
 0xd5c   :  { %v9138_v63 = vsel %vm120_vm2, %v9133_v26, %v9135_v55 }
 0xd60   :  { %v9137_v28 = vpop.permute.xlu1 %9136  ;;  %v9332_v7 = vpop.permute.xlu0 %9331 }
 0xd61   :  { %v9139_v57 = vsel %vm120_vm2, %v9135_v55, %v9137_v28 }
 0xd62   :  { %9146 = vmatprep.subr.bf16.mxu1 %v9139_v57 }
 0xd63   :  { %9147 = vmatpush1.bf16.msra.mxu1 %v9138_v63 }
 0xd64   :  { %19365 = vmatprep.subr.bf16.mxu1 %v23279_v2  ;;  %v9330_v45 = vpop.permute.xlu1 %9329  ;;  %v9439_v10 = vpop.permute.xlu0 %9438 }
 0xd65   :  { %v9334_v4 = vsel %vm517_vm3, %v9330_v45, %v9332_v7 }
 0xd66   :  { %18360 = vmatmul.mubr.msk.bf16.vlgmr.msra.gmra.mrb[164].mxu1 %vm7261_vm7, %v20629_v58 }
 0xd67   :  { %19366 = vmatpush3.bf16.msra.mxu1 %v9137_v28  ;;  %19367 = vmatprep.mubr.msk.bf16.mxu1 %vm20927_vm5, %v23279_v2 }
 0xd68   :  { %9238 = vmatprep.subr.bf16.mxu1 %v9122_v52  ;;  %v9328_v8 = vpop.permute.xlu1 %9327  ;;  %v9437_v21 = vpop.permute.xlu0 %9436 }
 0xd69   :  { %v9333_v9 = vsel %vm517_vm3, %v9328_v8, %v9330_v45  ;;  %v9442_v17 = vsel %vm5373_vm12, %v9437_v21, %v9439_v10 }
 0xd6c   :  { %v9441_v20 = vpop.permute.xlu1 %9440  ;;  %v9550_v39 = vpop.permute.xlu0 %9549 }
 0xd6d   :  { %v9443_v15 = vsel %vm5373_vm12, %v9439_v10, %v9441_v20 }
 0xd6e   :  { %19368 = vmatmul.mubr.msk.bf16.vlgmr.msra.gmra.mrb[168].mxu1 %vm7261_vm7, %v20629_v58 }
 0xd6f   :  { %9239 = vmatpush1.bf16.msra.mxu1 %v9121_v42  ;;  %9270 = vmatprep.mubr.bf16.mxu1 %v20914_v3  ;;  %v10094_v42 = vrot.slane %v10085_v53, %v22826_v23 }
 0xd70   :  { %19371 = vmatprep.subr.bf16.mxu1 %v23279_v2  ;;  %v9548_v27 = vpop.permute.xlu1 %9547  ;;  %v9657_v6 = vpop.permute.xlu0 %9656 }
 0xd71   :  { %v9552_v22 = vsel %vm5489_vm15, %v9548_v27, %v9550_v39 }
 0xd74   :  { %v9546_v56 = vpop.permute.xlu1 %9545  ;;  %v9655_v34 = vpop.permute.xlu0 %9654 }
 0xd75   :  { %v9551_v30 = vsel %vm5489_vm15, %v9546_v56, %v9548_v27  ;;  %v9660_v35 = vsel %vm5605_vm14, %v9655_v34, %v9657_v6 }
 0xd76   :  { %18363 = vmatmul.mubr.msk.bf16.vlgmr.msra.gmra.mrb[164].mxu1 %vm7261_vm7, %v20630_v0 }
 0xd77   :  { %19372 = vmatpush3.bf16.msra.mxu1 %v9123_v61  ;;  %19373 = vmatprep.mubr.msk.bf16.mxu1 %vm20927_vm5, %v23279_v2 }
 0xd78   :  { %9341 = vmatprep.subr.bf16.mxu1 %v9334_v4  ;;  %v9659_v11 = vpop.permute.xlu1 %9658  ;;  %v9768_v37 = vpop.permute.xlu0 %9767 }
 0xd79   :  { %v9661_v33 = vsel %vm5605_vm14, %v9657_v6, %v9659_v11 }
 0xd7c   :  { %v9766_v14 = vpop.permute.xlu1 %9765  ;;  %v9875_v47 = vpop.permute.xlu0 %9874 }
 0xd7d   :  { %v9770_v38 = vsel %vm5837_vm10, %v9766_v14, %v9768_v37 }
 0xd7e   :  { %19374 = vmatmul.mubr.msk.bf16.vlgmr.msra.gmra.mrb[168].mxu1 %vm7261_vm7, %v20630_v0 }
 0xd7f   :  { %9342 = vmatpush1.bf16.msra.mxu1 %v9333_v9  ;;  %9373 = vmatprep.mubr.bf16.mxu1 %v20914_v3 }
 0xd80   :  { %19377 = vmatprep.subr.bf16.mxu1 %v23279_v2  ;;  %v9764_v41 = vpop.permute.xlu1 %9763  ;;  %v9873_v50 = vpop.permute.xlu0 %9872 }
 0xd81   :  { %v9769_v43 = vsel %vm5837_vm10, %v9764_v41, %v9766_v14  ;;  %v9878_v25 = vsel %vm5953_vm9, %v9873_v50, %v9875_v47  ;;  %vm26158_vm10 = vcmask 834560  }
 0xd84   :  { %v9877_v49 = vpop.permute.xlu1 %9876  ;;  %v9986_v24 = vpop.permute.xlu0 %9985 }
 0xd85   :  { %v9879_v48 = vsel %vm5953_vm9, %v9875_v47, %v9877_v49  ;;  %vm26159_vm9 = vmmov %vm26158_vm10 }
 0xd86   :  { %18366 = vmatmul.mubr.msk.bf16.vlgmr.msra.gmra.mrb[164].mxu1 %vm7261_vm7, %v20631_v16 }
 0xd87   :  { %19378 = vmatpush3.bf16.msra.mxu1 %v9332_v7  ;;  %19379 = vmatprep.mubr.msk.bf16.mxu1 %vm20927_vm5, %v23279_v2 }
 0xd88   :  { %9450 = vmatprep.subr.bf16.mxu1 %v9443_v15  ;;  %v9984_v18 = vpop.permute.xlu1 %9983 }
 0xd89   :  { %v9988_v13 = vsel %vm26158_vm10, %v9984_v18, %v9986_v24  ;;  %vm26160_vm10 = vcmask 1043456  }
 0xd8c   :  { %v9982_v52 = vpop.permute.xlu1 %9981 }
 0xd8d   :  { %v9987_v32 = vsel %vm26159_vm9, %v9982_v52, %v9984_v18  ;;  %v20640_v52 = vld [vmem:[%s26059_s13 + $0x4] ss:$28 sps:$4 sm:$0xff]   ;;  %vm26161_vm9 = vmmov %vm26160_vm10 }
 0xd8e   :  { %19380 = vmatmul.mubr.msk.bf16.vlgmr.msra.gmra.mrb[168].mxu1 %vm7261_vm7, %v20631_v16 }
 0xd8f   :  { %9451 = vmatpush1.bf16.msra.mxu1 %v9442_v17  ;;  %9482 = vmatprep.mubr.bf16.mxu1 %v20914_v3 }
 0xd90   :  { %19383 = vmatprep.subr.bf16.mxu1 %v23279_v2 }
 0xd96   :  { %18369 = vmatmul.mubr.msk.bf16.vlgmr.msra.gmra.mrb[164].mxu1 %vm7261_vm7, %v20632_v44 }
 0xd97   :  { %19384 = vmatpush3.bf16.msra.mxu1 %v9441_v20  ;;  %19385 = vmatprep.mubr.msk.bf16.mxu1 %vm20927_vm5, %v23279_v2 }
 0xd98   :  { %9559 = vmatprep.subr.bf16.mxu1 %v9552_v22 }
 0xd9e   :  { %19386 = vmatmul.mubr.msk.bf16.vlgmr.msra.gmra.mrb[168].mxu1 %vm7261_vm7, %v20632_v44 }
 0xd9f   :  { %9560 = vmatpush1.bf16.msra.mxu1 %v9551_v30  ;;  %9591 = vmatprep.mubr.bf16.mxu1 %v20914_v3 }
 0xda0   :  { %19389 = vmatprep.subr.bf16.mxu1 %v23279_v2 }
 0xda6   :  { %18372 = vmatmul.mubr.msk.bf16.vlgmr.msra.gmra.mrb[164].mxu1 %vm7261_vm7, %v20633_v31 }
 0xda7   :  { %19390 = vmatpush3.bf16.msra.mxu1 %v9550_v39  ;;  %19391 = vmatprep.mubr.msk.bf16.mxu1 %vm20927_vm5, %v23279_v2 }
 0xda8   :  { %9668 = vmatprep.subr.bf16.mxu1 %v9661_v33 }
 0xdae   :  { %19392 = vmatmul.mubr.msk.bf16.vlgmr.msra.gmra.mrb[168].mxu1 %vm7261_vm7, %v20633_v31 }
 0xdaf   :  { %9669 = vmatpush1.bf16.msra.mxu1 %v9660_v35  ;;  %9700 = vmatprep.mubr.bf16.mxu1 %v20914_v3 }
 0xdb0   :  { %19395 = vmatprep.subr.bf16.mxu1 %v23279_v2 }
 0xdb6   :  { %18375 = vmatmul.mubr.msk.bf16.vlgmr.msra.gmra.mrb[164].mxu1 %vm7261_vm7, %v20634_v12 }
 0xdb7   :  { %19396 = vmatpush3.bf16.msra.mxu1 %v9659_v11  ;;  %19397 = vmatprep.mubr.msk.bf16.mxu1 %vm20927_vm5, %v23279_v2 }
 0xdb8   :  { %9777 = vmatprep.subr.bf16.mxu1 %v9770_v38 }
 0xdbe   :  { %19398 = vmatmul.mubr.msk.bf16.vlgmr.msra.gmra.mrb[168].mxu1 %vm7261_vm7, %v20634_v12 }
 0xdbf   :  { %9778 = vmatpush1.bf16.msra.mxu1 %v9769_v43  ;;  %9809 = vmatprep.mubr.bf16.mxu1 %v20914_v3 }
 0xdc0   :  { %19401 = vmatprep.subr.bf16.mxu1 %v23279_v2 }
 0xdc6   :  { %18378 = vmatmul.mubr.msk.bf16.vlgmr.msra.gmra.mrb[164].mxu1 %vm7261_vm7, %v20635_v40 }
 0xdc7   :  { %19402 = vmatpush3.bf16.msra.mxu1 %v9768_v37  ;;  %19403 = vmatprep.mubr.msk.bf16.mxu1 %vm20927_vm5, %v23279_v2 }
 0xdc8   :  { %9886 = vmatprep.subr.bf16.mxu1 %v9879_v48 }
 0xdce   :  { %19404 = vmatmul.mubr.msk.bf16.vlgmr.msra.gmra.mrb[168].mxu1 %vm7261_vm7, %v20635_v40 }
 0xdcf   :  { %9887 = vmatpush1.bf16.msra.mxu1 %v9878_v25  ;;  %9918 = vmatprep.mubr.bf16.mxu1 %v20914_v3 }
 0xdd0   :  { %19407 = vmatprep.subr.bf16.mxu1 %v23279_v2 }
 0xdd6   :  { %18381 = vmatmul.mubr.msk.bf16.vlgmr.msra.gmra.mrb[164].mxu1 %vm7261_vm7, %v20636_v51 }
 0xdd7   :  { %19408 = vmatpush3.bf16.msra.mxu1 %v9877_v49  ;;  %19409 = vmatprep.mubr.msk.bf16.mxu1 %vm20927_vm5, %v23279_v2 }
 0xdd8   :  { %9995 = vmatprep.subr.bf16.mxu1 %v9988_v13  ;;  %v20638_v13 = vld [vmem:[%s26059_s13] ss:$28 sps:$4 sm:$0xff]  }
 0xdde   :  { %19410 = vmatmul.mubr.msk.bf16.vlgmr.msra.gmra.mrb[168].mxu1 %vm7261_vm7, %v20636_v51 }
 0xddf   :  { %9996 = vmatpush1.bf16.msra.mxu1 %v9987_v32  ;;  %10027 = vmatprep.mubr.bf16.mxu1 %v20914_v3  ;;  %v20641_v32 = vld [vmem:[%s26059_s13 + $0x8] ss:$28 sps:$4 sm:$0xff]  }
 0xde0   :  { %19413 = vmatprep.subr.bf16.mxu1 %v23279_v2 }
 0xde6   :  { %18384 = vmatmul.mubr.msk.bf16.vlgmr.msra.gmra.mrb[164].mxu1 %vm7261_vm7, %v20637_v59 }
 0xde7   :  { %19414 = vmatpush3.bf16.msra.mxu1 %v9986_v24  ;;  %19415 = vmatprep.mubr.msk.bf16.mxu1 %vm20927_vm5, %v23279_v2  ;;  %v10098_v2 = vrot.slane %v10085_v53, %v22831_v29  ;;  %v20644_v53 = vld [vmem:[%s26059_s13 + $0x38] ss:$28 sps:$4 sm:$0xff]  }
 0xde8   :  { %11289 = vmatprep.subr.bf16.mxu1 %v20640_v52  ;;  %v20713_v52 = vld [vmem:[%s26059_s13 + $0x2a8] ss:$28 sps:$4 sm:$0xff]  }
 0xdee   :  { %19416 = vmatmul.mubr.msk.bf16.vlgmr.msra.gmra.mrb[168].mxu1 %vm7261_vm7, %v20637_v59  ;;  %v20643_v59 = vld [vmem:[%s26059_s13 + $0xc] ss:$28 sps:$4 sm:$0xff]  }
 0xdef   :  { %11391 = vmatprep.subr.bf16.mxu0 %v20643_v59  ;;  %11290 = vmatpush1.bf16.msra.mxu1 %v20638_v13  ;;  %v20710_v13 = vld [vmem:[%s26059_s13 + $0x2a0] ss:$28 sps:$4 sm:$0xff]  }
 0xdf0   :  { %11392 = vmatpush1.bf16.msra.mxu0 %v20641_v32  ;;  %v20718_v32 = vld [vmem:[%s26059_s13 + $0x2dc] ss:$28 sps:$4 sm:$0xff]   ;;  %v20721_v59 = vld [vmem:[%s26059_s13 + $0x2e4] ss:$28 sps:$4 sm:$0xff]  }
 0xeb9   :  { %v10029_v46 = vpop.f32.mrb[164].mxu1 }
 0xeba   :  { %v10102_v54 = vmul.f32 %v10090_v36, %v10029_v46  ;;  %v10031_v61 = vpop.f32.mrb[165].mxu1 }
 0xebb   :  { %v10103_v55 = vmul.f32 %v10094_v42, %v10031_v61  ;;  %v10033_v26 = vpop.f32.mrb[166].mxu1 }
 0xebc   :  { %v10105_v28 = vmul.f32 %v10090_v36, %v10033_v26  ;;  %v10035_v57 = vpop.f32.mrb[167].mxu1 }
 0xebd   :  { %v10108_v63 = vadd.f32 %v10103_v55, %v10102_v54  ;;  %v10106_v58 = vmul.f32 %v10094_v42, %v10035_v57  ;;  %v20652_v54 = vld [vmem:[%s26059_s13 + $0x74] ss:$28 sps:$4 sm:$0xff]   ;;  %v20655_v55 = vld [vmem:[%s26059_s13 + $0x7c] ss:$28 sps:$4 sm:$0xff]  }
 0xebf   :  { %v10113_v0 = vadd.f32 %v10106_v58, %v10105_v28  ;;  %v20658_v28 = vld [vmem:[%s26059_s13 + $0xac] ss:$28 sps:$4 sm:$0xff]  }
 0xec0   :  { %v20659_v58 = vld [vmem:[%s26059_s13 + $0xb0] ss:$28 sps:$4 sm:$0xff]  }
 0xec1   :  { %v10072_v45 = vpop.f32.mrb[168].mxu1 }
 0xec2   :  { %v10104_v7 = vmul.f32 %v10098_v2, %v10072_v45  ;;  %v19417_v4 = vpop.f32.mrb[169].mxu1 }
 0xec3   :  { %v10075_v8 = vpop.f32.mrb[170].mxu1  ;;  %v20670_v4 = vld [vmem:[%s26059_s13 + $0x11c] ss:$28 sps:$4 sm:$0xff]  }
 0xec4   :  { %v10109_v9 = vsel %vm4554_vm1, %v10104_v7, 0.0  ;;  %v10107_v16 = vmul.f32 %v10098_v2, %v10075_v8  ;;  %v19418_v20 = vpop.f32.mrb[171].mxu1  ;;  %v20665_v7 = vld [vmem:[%s26059_s13 + $0xe8] ss:$28 sps:$4 sm:$0xff]  }
 0xec5   :  { %v10110_v10 = vadd.f32 %v10109_v9, %v10108_v63  ;;  %v20656_v63 = vld [vmem:[%s26059_s13 + $0xa8] ss:$28 sps:$4 sm:$0xff]   ;;  %v20668_v9 = vld [vmem:[%s26059_s13 + $0x118] ss:$28 sps:$4 sm:$0xff]  }
 0xec6   :  { %v10114_v15 = vsel %vm4554_vm1, %v10107_v16, 0.0  ;;  %v20671_v16 = vld [vmem:[%s26059_s13 + $0x120] ss:$28 sps:$4 sm:$0xff]   ;;  %v20676_v20 = vld [vmem:[%s26059_s13 + $0x154] ss:$28 sps:$4 sm:$0xff]  }
 0xec7   :  { %10111 = vadd.xlane.f32.xlu0 %v10110_v10  ;;  %v10115_v21 = vadd.f32 %v10114_v15, %v10113_v0  ;;  %v20667_v0 = vld [vmem:[%s26059_s13 + $0xec] ss:$28 sps:$4 sm:$0xff]   ;;  %v20679_v10 = vld [vmem:[%s26059_s13 + $0x15c] ss:$28 sps:$4 sm:$0xff]  }
 0xec8   :  { %v20674_v15 = vld [vmem:[%s26059_s13 + $0x150] ss:$28 sps:$4 sm:$0xff]  }
 0xec9   :  { %10116 = vadd.xlane.f32.xlu1 %v10115_v21  ;;  %v20677_v21 = vld [vmem:[%s26059_s13 + $0x158] ss:$28 sps:$4 sm:$0xff]  }
 0xf54   :  { %v10112_v17 = vpop.xlane.xlu0 %10111 }
 0xf55   :  { %v10118_v44 = vmul.f32 0.0078125, %v10112_v17  ;;  %v20682_v17 = vld [vmem:[%s26059_s13 + $0x18c] ss:$28 sps:$4 sm:$0xff]  }
 0xf56   :  { %v10117_v27 = vpop.xlane.xlu1 %10116 }
 0xf57   :  { %v23380_v39 = vsub.f32 %v10029_v46, %v10118_v44  ;;  %v23382_v22 = vsub.f32 %v10031_v61, %v10118_v44  ;;  %v23384_v56 = vsub.f32 %v10072_v45, %v10118_v44  ;;  %v10119_v30 = vmul.f32 0.0078125, %v10117_v27  ;;  %v20649_v46 = vld [vmem:[%s26059_s13 + $0x44] ss:$28 sps:$4 sm:$0xff]   ;;  %v20650_v61 = vld [vmem:[%s26059_s13 + $0x70] ss:$28 sps:$4 sm:$0xff]  }
 0xf58   :  { %11393 = vmatprep.subr.bf16.mxu0 %v20649_v46  ;;  %v20662_v45 = vld [vmem:[%s26059_s13 + $0xe0] ss:$28 sps:$4 sm:$0xff]   ;;  %v20685_v44 = vld [vmem:[%s26059_s13 + $0x194] ss:$28 sps:$4 sm:$0xff]   ;;  %v20680_v27 = vld [vmem:[%s26059_s13 + $0x188] ss:$28 sps:$4 sm:$0xff]  }
 0xf59   :  { %v10126_v31 = vmul.f32 %v23380_v39, %v23380_v39  ;;  %v10127_v11 = vmul.f32 %v23382_v22, %v23382_v22  ;;  %v10128_v6 = vmul.f32 %v23384_v56, %v23384_v56  ;;  %v23392_v33 = vsub.f32 %v10033_v26, %v10119_v30  ;;  %v20653_v26 = vld [vmem:[%s26059_s13 + $0x78] ss:$28 sps:$4 sm:$0xff]  }
 0xf5a   :  { %v23394_v34 = vsub.f32 %v10035_v57, %v10119_v30  ;;  %v23396_v35 = vsub.f32 %v10075_v8, %v10119_v30  ;;  %v20661_v57 = vld [vmem:[%s26059_s13 + $0xb4] ss:$28 sps:$4 sm:$0xff]   ;;  %v20673_v8 = vld [vmem:[%s26059_s13 + $0x124] ss:$28 sps:$4 sm:$0xff]  }
 0xf5b   :  { %v10129_v12 = vmul.f32 %v23392_v33, %v23392_v33  ;;  %v10132_v14 = vmul.f32 %v10126_v31, %v10090_v36  ;;  %v10133_v37 = vmul.f32 %v10127_v11, %v10094_v42  ;;  %v10134_v38 = vmul.f32 %v10128_v6, %v10098_v2  ;;  %v20683_v30 = vld [vmem:[%s26059_s13 + $0x190] ss:$28 sps:$4 sm:$0xff]   ;;  %v20688_v31 = vld [vmem:[%s26059_s13 + $0x1c4] ss:$28 sps:$4 sm:$0xff]  }
 0xf5c   :  { %v10130_v41 = vmul.f32 %v23394_v34, %v23394_v34  ;;  %v10131_v43 = vmul.f32 %v23396_v35, %v23396_v35  ;;  %v20691_v11 = vld [vmem:[%s26059_s13 + $0x1cc] ss:$28 sps:$4 sm:$0xff]   ;;  %v20686_v6 = vld [vmem:[%s26059_s13 + $0x1c0] ss:$28 sps:$4 sm:$0xff]  }
 0xf5d   :  { %v10138_v40 = vadd.f32 %v10133_v37, %v10132_v14  ;;  %v10139_v49 = vsel %vm4554_vm1, %v10134_v38, 0.0  ;;  %v10135_v47 = vmul.f32 %v10129_v12, %v10090_v36  ;;  %v20646_v36 = vld [vmem:[%s26059_s13 + $0x3c] ss:$28 sps:$4 sm:$0xff]   ;;  %v20689_v12 = vld [vmem:[%s26059_s13 + $0x1c8] ss:$28 sps:$4 sm:$0xff]  }
 0xf5e   :  { %v10136_v48 = vmul.f32 %v10130_v41, %v10094_v42  ;;  %v10137_v50 = vmul.f32 %v10131_v43, %v10098_v2  ;;  %v20647_v42 = vld [vmem:[%s26059_s13 + $0x40] ss:$28 sps:$4 sm:$0xff]   ;;  %11291 = vmatprep.subr.bf16.mxu1 %v20646_v36  ;;  %v20692_v38 = vld [vmem:[%s26059_s13 + $0x1f8] ss:$28 sps:$4 sm:$0xff]  }
 0xf5f   :  { %v10140_v25 = vadd.f32 %v10139_v49, %v10138_v40  ;;  %11292 = vmatpush1.bf16.msra.mxu1 %v20644_v53  ;;  %11394 = vmatpush1.bf16.msra.mxu0 %v20647_v42  ;;  %v20664_v2 = vld [vmem:[%s26059_s13 + $0xe4] ss:$28 sps:$4 sm:$0xff]   ;;  %v20694_v14 = vld [vmem:[%s26059_s13 + $0x1fc] ss:$28 sps:$4 sm:$0xff]   ;;  %v20700_v43 = vld [vmem:[%s26059_s13 + $0x234] ss:$28 sps:$4 sm:$0xff]  }
 0xf60   :  { %v10143_v51 = vadd.f32 %v10136_v48, %v10135_v47  ;;  %v10144_v18 = vsel %vm4554_vm1, %v10137_v50, 0.0  ;;  %11293 = vmatprep.subr.bf16.mxu1 %v20652_v54  ;;  %11395 = vmatprep.subr.bf16.mxu0 %v20655_v55  ;;  %v20697_v37 = vld [vmem:[%s26059_s13 + $0x204] ss:$28 sps:$4 sm:$0xff]   ;;  %v20703_v40 = vld [vmem:[%s26059_s13 + $0x23c] ss:$28 sps:$4 sm:$0xff]  }
 0xf61   :  { %10141 = vadd.xlane.f32.xlu0 %v10140_v25  ;;  %v20695_v41 = vld [vmem:[%s26059_s13 + $0x200] ss:$28 sps:$4 sm:$0xff]   ;;  %v20698_v49 = vld [vmem:[%s26059_s13 + $0x230] ss:$28 sps:$4 sm:$0xff]   ;;  %v20701_v47 = vld [vmem:[%s26059_s13 + $0x238] ss:$28 sps:$4 sm:$0xff]  }
 0xf62   :  { %v10145_v24 = vadd.f32 %v10144_v18, %v10143_v51  ;;  %v20706_v48 = vld [vmem:[%s26059_s13 + $0x26c] ss:$28 sps:$4 sm:$0xff]   ;;  %v20709_v50 = vld [vmem:[%s26059_s13 + $0x274] ss:$28 sps:$4 sm:$0xff]   ;;  %v20712_v18 = vld [vmem:[%s26059_s13 + $0x2a4] ss:$28 sps:$4 sm:$0xff]  }
 0xf63   :  { %11294 = vmatpush1.bf16.msra.mxu1 %v20650_v61  ;;  %11396 = vmatpush1.bf16.msra.mxu0 %v20653_v26  ;;  %v20704_v25 = vld [vmem:[%s26059_s13 + $0x268] ss:$28 sps:$4 sm:$0xff]   ;;  %v20707_v51 = vld [vmem:[%s26059_s13 + $0x270] ss:$28 sps:$4 sm:$0xff]   ;;  %v20716_v53 = vld [vmem:[%s26059_s13 + $0x2d8] ss:$28 sps:$4 sm:$0xff]  }
 0xf64   :  { %11295 = vmatprep.subr.bf16.mxu1 %v20658_v28  ;;  %11397 = vmatprep.subr.bf16.mxu0 %v20661_v57  ;;  %v20719_v36 = vld [vmem:[%s26059_s13 + $0x2e0] ss:$28 sps:$4 sm:$0xff]   ;;  %v20724_v28 = vld [vmem:[%s26059_s13 + $0x314] ss:$28 sps:$4 sm:$0xff]  }
 0xf65   :  { %10146 = vadd.xlane.f32.xlu0 %v10145_v24  ;;  %v20715_v24 = vld [vmem:[%s26059_s13 + $0x2ac] ss:$28 sps:$4 sm:$0xff]   ;;  %v20727_v57 = vld [vmem:[%s26059_s13 + $0x31c] ss:$28 sps:$4 sm:$0xff]  }
 0xf67   :  { %11296 = vmatpush1.bf16.msra.mxu1 %v20656_v63  ;;  %11398 = vmatpush1.bf16.msra.mxu0 %v20659_v58  ;;  %v20722_v63 = vld [vmem:[%s26059_s13 + $0x310] ss:$28 sps:$4 sm:$0xff]   ;;  %v20725_v58 = vld [vmem:[%s26059_s13 + $0x318] ss:$28 sps:$4 sm:$0xff]  }
 0xf68   :  { %11297 = vmatprep.subr.bf16.mxu1 %v20664_v2  ;;  %11399 = vmatprep.subr.bf16.mxu0 %v20667_v0  ;;  %v20730_v2 = vld [vmem:[%s26059_s13 + $0x34c] ss:$28 sps:$4 sm:$0xff]   ;;  %v20733_v0 = vld [vmem:[%s26059_s13 + $0x354] ss:$28 sps:$4 sm:$0xff]  }
 0xf6b   :  { %11298 = vmatpush1.bf16.msra.mxu1 %v20662_v45  ;;  %11400 = vmatpush1.bf16.msra.mxu0 %v20665_v7  ;;  %v20728_v45 = vld [vmem:[%s26059_s13 + $0x348] ss:$28 sps:$4 sm:$0xff]   ;;  %v20731_v7 = vld [vmem:[%s26059_s13 + $0x350] ss:$28 sps:$4 sm:$0xff]  }
 0xf6c   :  { %11299 = vmatprep.subr.bf16.mxu1 %v20670_v4  ;;  %11401 = vmatprep.subr.bf16.mxu0 %v20673_v8 }
 0xf6f   :  { %11300 = vmatpush1.bf16.msra.mxu1 %v20668_v9  ;;  %11402 = vmatpush1.bf16.msra.mxu0 %v20671_v16 }
 0xf70   :  { %11301 = vmatprep.subr.bf16.mxu1 %v20676_v20  ;;  %11403 = vmatprep.subr.bf16.mxu0 %v20679_v10  ;;  %v20736_v20 = vld [vmem:[%s26059_s13 + $0x384] ss:$28 sps:$4 sm:$0xff]   ;;  %v20739_v10 = vld [vmem:[%s26059_s13 + $0x38c] ss:$28 sps:$4 sm:$0xff]  }
 0xf73   :  { %11302 = vmatpush1.bf16.msra.mxu1 %v20674_v15  ;;  %11404 = vmatpush1.bf16.msra.mxu0 %v20677_v21 }
 0xf74   :  { %11303 = vmatprep.subr.bf16.mxu1 %v20682_v17  ;;  %11405 = vmatprep.subr.bf16.mxu0 %v20685_v44 }
 0xf77   :  { %11304 = vmatpush1.bf16.msra.mxu1 %v20680_v27  ;;  %11406 = vmatpush1.bf16.msra.mxu0 %v20683_v30 }
 0xf78   :  { %11305 = vmatprep.subr.bf16.mxu1 %v20688_v31  ;;  %11407 = vmatprep.subr.bf16.mxu0 %v20691_v11 }
 0xf7b   :  { %11306 = vmatpush1.bf16.msra.mxu1 %v20686_v6  ;;  %11408 = vmatpush1.bf16.msra.mxu0 %v20689_v12 }
 0xf7c   :  { %11307 = vmatprep.subr.bf16.mxu1 %v20694_v14  ;;  %11409 = vmatprep.subr.bf16.mxu0 %v20697_v37 }
 0xf7f   :  { %11308 = vmatpush1.bf16.msra.mxu1 %v20692_v38  ;;  %11410 = vmatpush1.bf16.msra.mxu0 %v20695_v41 }
 0xf80   :  { %11309 = vmatprep.subr.bf16.mxu1 %v20700_v43  ;;  %11411 = vmatprep.subr.bf16.mxu0 %v20703_v40 }
 0xf83   :  { %11310 = vmatpush1.bf16.msra.mxu1 %v20698_v49  ;;  %11412 = vmatpush1.bf16.msra.mxu0 %v20701_v47 }
 0xf84   :  { %11311 = vmatprep.subr.bf16.mxu1 %v20706_v48  ;;  %11413 = vmatprep.subr.bf16.mxu0 %v20709_v50  ;;  %v20734_v48 = vld [vmem:[%s26059_s13 + $0x380] ss:$28 sps:$4 sm:$0xff]  }
 0xf87   :  { %11312 = vmatpush1.bf16.msra.mxu1 %v20704_v25  ;;  %11414 = vmatpush1.bf16.msra.mxu0 %v20707_v51 }
 0xf88   :  { %11313 = vmatprep.subr.bf16.mxu1 %v20712_v18  ;;  %11415 = vmatprep.subr.bf16.mxu0 %v20715_v24  ;;  %v20742_v18 = vld [vmem:[%s26059_s13 + $0x3bc] ss:$28 sps:$4 sm:$0xff]   ;;  %v20745_v24 = vld [vmem:[%s26059_s13 + $0x3c4] ss:$28 sps:$4 sm:$0xff]  }
 0xf8b   :  { %11314 = vmatpush1.bf16.msra.mxu1 %v20710_v13  ;;  %11416 = vmatpush1.bf16.msra.mxu0 %v20713_v52 }
 0xf8c   :  { %11315 = vmatprep.subr.bf16.mxu1 %v20718_v32  ;;  %11417 = vmatprep.subr.bf16.mxu0 %v20721_v59  ;;  %v20743_v32 = vld [vmem:[%s26059_s13 + $0x3c0] ss:$28 sps:$4 sm:$0xff]  }
 0xf8f   :  { %11316 = vmatpush1.bf16.msra.mxu1 %v20716_v53  ;;  %11418 = vmatpush1.bf16.msra.mxu0 %v20719_v36  ;;  %v20748_v53 = vld [vmem:[%s26059_s13 + $0x3f4] ss:$28 sps:$4 sm:$0xff]   ;;  %v20751_v36 = vld [vmem:[%s26059_s13 + $0x3fc] ss:$28 sps:$4 sm:$0xff]  }
 0xf90   :  { %11317 = vmatprep.subr.bf16.mxu1 %v20724_v28  ;;  %11419 = vmatprep.subr.bf16.mxu0 %v20727_v57  ;;  %v20752_v28 = vld [vmem:[%s26059_s13 + $0x428] ss:$28 sps:$4 sm:$0xff]   ;;  %v20755_v57 = vld [vmem:[%s26059_s13 + $0x430] ss:$28 sps:$4 sm:$0xff]  }
 0xf93   :  { %11318 = vmatpush1.bf16.msra.mxu1 %v20722_v63  ;;  %11420 = vmatpush1.bf16.msra.mxu0 %v20725_v58  ;;  %v20760_v63 = vld [vmem:[%s26059_s13 + $0x464] ss:$28 sps:$4 sm:$0xff]   ;;  %v20763_v58 = vld [vmem:[%s26059_s13 + $0x46c] ss:$28 sps:$4 sm:$0xff]  }
 0xf94   :  { %11319 = vmatprep.subr.bf16.mxu1 %v20730_v2  ;;  %11421 = vmatprep.subr.bf16.mxu0 %v20733_v0  ;;  %v20758_v2 = vld [vmem:[%s26059_s13 + $0x460] ss:$28 sps:$4 sm:$0xff]   ;;  %v20761_v0 = vld [vmem:[%s26059_s13 + $0x468] ss:$28 sps:$4 sm:$0xff]  }
 0xf97   :  { %11320 = vmatpush1.bf16.msra.mxu1 %v20728_v45  ;;  %11422 = vmatpush1.bf16.msra.mxu0 %v20731_v7  ;;  %v20766_v45 = vld [vmem:[%s26059_s13 + $0x49c] ss:$28 sps:$4 sm:$0xff]   ;;  %v20769_v7 = vld [vmem:[%s26059_s13 + $0x4a4] ss:$28 sps:$4 sm:$0xff]  }
 0xf98   :  { %11340 = vmatprep.subr.bf16.mxu1 %v20736_v20  ;;  %11442 = vmatprep.subr.bf16.mxu0 %v20739_v10  ;;  %v20770_v20 = vld [vmem:[%s26059_s13 + $0x4d0] ss:$28 sps:$4 sm:$0xff]   ;;  %v20773_v10 = vld [vmem:[%s26059_s13 + $0x4d8] ss:$28 sps:$4 sm:$0xff]  }
 0xfee   :  { %v10142_v42 = vpop.xlane.xlu0 %10141 }
 0xfef   :  { %v10148_v46 = vmul.f32 0.0078125, %v10142_v42 }
 0xff1   :  { %v10150_v54 = vadd.f32 1e-05, %v10148_v46  ;;  %v20746_v46 = vld [vmem:[%s26059_s13 + $0x3f0] ss:$28 sps:$4 sm:$0xff]  }
 0xff2   :  { %v10147_v61 = vpop.xlane.xlu0 %10146 }
 0xff3   :  { %20886 = vrsqrt.f32 %v10150_v54  ;;  %v10149_v55 = vmul.f32 0.0078125, %v10147_v61  ;;  %v20749_v54 = vld [vmem:[%s26059_s13 + $0x3f8] ss:$28 sps:$4 sm:$0xff]  }
 0xff5   :  { %v10151_v26 = vadd.f32 1e-05, %v10149_v55  ;;  %v20754_v55 = vld [vmem:[%s26059_s13 + $0x42c] ss:$28 sps:$4 sm:$0xff]  }
 0xff7   :  { %20888 = vrsqrt.f32 %v10151_v26  ;;  %v20757_v26 = vld [vmem:[%s26059_s13 + $0x434] ss:$28 sps:$4 sm:$0xff]  }
 0xffd   :  { %v20887_v4 = vpop.eup %20886 }
 0xffe   :  { %v10154_v8 = vmul.f32 %v20887_v4, %v23380_v39  ;;  %v10155_v9 = vmul.f32 %v20887_v4, %v23382_v22  ;;  %v10156_v16 = vmul.f32 %v20887_v4, %v23384_v56  ;;  %v20764_v4 = vld [vmem:[%s26059_s13 + $0x498] ss:$28 sps:$4 sm:$0xff]  }
0x1000   :  { %vm10160_vm12 = vcmp.gt.f32.partialorder %v10154_v8, 0.0  ;;  %v10166_v15 = vmul.f32 0.2, %v10154_v8  ;;  %vm10161_vm14 = vcmp.gt.f32.partialorder %v10155_v9, 0.0  ;;  %v10167_v21 = vmul.f32 0.2, %v10155_v9 }
0x1001   :  { %v20889_v17 = vpop.eup %20888  ;;  %v10168_v39 = vmul.f32 0.2, %v10156_v16  ;;  %vm10162_vm15 = vcmp.gt.f32.partialorder %v10156_v16, 0.0 }
0x1002   :  { %v10172_v44 = vsel %vm10160_vm12, %v10154_v8, %v10166_v15  ;;  %v10173_v22 = vsel %vm10161_vm14, %v10155_v9, %v10167_v21  ;;  %v10157_v56 = vmul.f32 %v20889_v17, %v23392_v33  ;;  %v10158_v27 = vmul.f32 %v20889_v17, %v23394_v34  ;;  %v20767_v8 = vld [vmem:[%s26059_s13 + $0x4a0] ss:$28 sps:$4 sm:$0xff]   ;;  %v20772_v9 = vld [vmem:[%s26059_s13 + $0x4d4] ss:$28 sps:$4 sm:$0xff]   ;;  %v20778_v15 = vld [vmem:[%s26059_s13 + $0x50c] ss:$28 sps:$4 sm:$0xff]  }
0x1003   :  { %10190 = vrot.lane.b32.xlu1 %v10172_v44, %s20945_s1  ;;  %10192 = vrot.lane.b32.xlu0 %v10173_v22, %s20945_s1  ;;  %v10174_v31 = vsel %vm10162_vm15, %v10156_v16, %v10168_v39  ;;  %v10159_v12 = vmul.f32 %v20889_v17, %v23396_v35  ;;  %v20775_v16 = vld [vmem:[%s26059_s13 + $0x4dc] ss:$28 sps:$4 sm:$0xff]   ;;  %v20781_v21 = vld [vmem:[%s26059_s13 + $0x514] ss:$28 sps:$4 sm:$0xff]   ;;  %vm11782_vm12 = vcmask 195584   ;;  %vm26164_vm14 = vmmov %vm26161_vm9 }
0x1004   :  { %vm10163_vm7 = vcmp.gt.f32.partialorder %v10157_v56, 0.0  ;;  %v10169_v30 = vmul.f32 0.2, %v10157_v56  ;;  %v10170_v6 = vmul.f32 0.2, %v10158_v27  ;;  %vm10164_vm8 = vcmp.gt.f32.partialorder %v10158_v27, 0.0  ;;  %vm26165_vm15 = vmmov %vm26161_vm9 }
0x1005   :  { %v10171_v37 = vmul.f32 0.2, %v10159_v12  ;;  %vm10165_vm11 = vcmp.gt.f32.partialorder %v10159_v12, 0.0  ;;  %v20776_v17 = vld [vmem:[%s26059_s13 + $0x508] ss:$28 sps:$4 sm:$0xff]  }
0x1006   :  { %v10175_v11 = vsel %vm10163_vm7, %v10157_v56, %v10169_v30  ;;  %v10176_v14 = vsel %vm10164_vm8, %v10158_v27, %v10170_v6  ;;  %v20779_v39 = vld [vmem:[%s26059_s13 + $0x510] ss:$28 sps:$4 sm:$0xff]   ;;  %v20785_v22 = vld [vmem:[%s26059_s13 + $0x1d8] ss:$28 sps:$4 sm:$0xff]   ;;  %vm26167_vm7 = vmmov %vm26161_vm9 }
0x1007   :  { %10194 = vrot.lane.b32.xlu0 %v10174_v31, %s20945_s1  ;;  %10196 = vrot.lane.b32.xlu1 %v10175_v11, %s20945_s1  ;;  %v10177_v33 = vsel %vm10165_vm11, %v10159_v12, %v10171_v37  ;;  %v20784_v44 = vld [vmem:[%s26059_s13 + $0x14] ss:$28 sps:$4 sm:$0xff]   ;;  %v20789_v11 = vld [vmem:[%s26059_s13 + $0x4c] ss:$28 sps:$4 sm:$0xff]   ;;  %vm26168_vm8 = vmmov %vm26167_vm7 }
0x1008   :  { %v20782_v27 = vld [vmem:[%s26059_s13 + $0x10] ss:$28 sps:$4 sm:$0xff]   ;;  %v20786_v30 = vld [vmem:[%s26059_s13 + $0x18] ss:$28 sps:$4 sm:$0xff]   ;;  %v20795_v37 = vld [vmem:[%s26059_s13 + $0x248] ss:$28 sps:$4 sm:$0xff]  }
0x1009   :  { %v20790_v6 = vld [vmem:[%s26059_s13 + $0x210] ss:$28 sps:$4 sm:$0xff]   ;;  %vm26169_vm11 = vmmov %vm26167_vm7 }
0x100a   :  { %v20791_v12 = vld [vmem:[%s26059_s13 + $0x50] ss:$28 sps:$4 sm:$0xff]  }
0x100b   :  { %10198 = vrot.lane.b32.xlu1 %v10176_v14, %s20945_s1  ;;  %v20794_v14 = vld [vmem:[%s26059_s13 + $0x84] ss:$28 sps:$4 sm:$0xff]  }
0x100f   :  { %10200 = vrot.lane.b32.xlu1 %v10177_v33, %s20945_s1  ;;  %s26210_s1 = smov 85  }
0x1075   :  { %v10193_v34 = vpop.permute.xlu0 %10192  ;;  %v10191_v38 = vpop.permute.xlu1 %10190 }
0x1076   :  { %v10203_v41 = vsel %vm10202_vm13, %v10191_v38, %v10193_v34  ;;  %10214 = vst.msk [vmem:[#allocation3] sm:$0xff] %vm10213_vm0, %v10191_v38 }
0x1077   :  { %v23612_v43 = vpack.c.bf16 %v10203_v41, %v22488_v1  ;;  %v20737_v1 = vld [vmem:[%s26059_s13 + $0x388] ss:$28 sps:$4 sm:$0xff]  }
0x1078   :  { %v20796_v41 = vld [vmem:[%s26059_s13 + $0x88] ss:$28 sps:$4 sm:$0xff]  }
0x1079   :  { %v10195_v35 = vpop.permute.xlu0 %10194  ;;  %v10197_v40 = vpop.permute.xlu1 %10196  ;;  %11321 = vmatprep.mubr.bf16.mxu1 %v23612_v43  ;;  %11423 = vmatprep.mubr.bf16.mxu0 %v23612_v43 }
0x107a   :  { %v10204_v49 = vsel %vm10202_vm13, %v10193_v34, %v10195_v35  ;;  %10218 = vst.msk [vmem:[#allocation3 + $0x18] sm:$0xff] %vm10213_vm0, %v10197_v40  ;;  %v20792_v34 = vld [vmem:[%s26059_s13 + $0x80] ss:$28 sps:$4 sm:$0xff]   ;;  %vm26171_vm0 = vmmov %vm26167_vm7 }
0x107b   :  { %10217 = vst.msk [vmem:[#allocation3 + $0x10] sm:$0xff] %vm10216_vm6, %v10204_v49  ;;  %v20799_v35 = vld [vmem:[%s26059_s13 + $0xbc] ss:$28 sps:$4 sm:$0xff]  }
0x107c   :  { %v20797_v49 = vld [vmem:[%s26059_s13 + $0xb8] ss:$28 sps:$4 sm:$0xff]  }
0x107d   :  { %v10199_v47 = vpop.permute.xlu1 %10198  ;;  %v10221_v50 = vld [vmem:[#allocation3] sm:$0xff] }
0x107e   :  { %v10205_v25 = vsel %vm10202_vm13, %v10197_v40, %v10199_v47  ;;  %v23626_v51 = vpack.c.bf16 %v10221_v50, %v22486_v60  ;;  %v20740_v60 = vld [vmem:[%s26059_s13 + $0x3b8] ss:$28 sps:$4 sm:$0xff]   ;;  %v20800_v40 = vld [vmem:[%s26059_s13 + $0x280] ss:$28 sps:$4 sm:$0xff]   ;;  %v20802_v50 = vld [vmem:[%s26059_s13 + $0xf0] ss:$28 sps:$4 sm:$0xff]  }
0x107f   :  { %v23634_v13 = vpack.c.bf16 %v10205_v25, %v10205_v25  ;;  %v20809_v25 = vld [vmem:[%s26059_s13 + $0x12c] ss:$28 sps:$4 sm:$0xff]  }
0x1080   :  { %11322 = vmatmul.mubr.bf16.vlgmr.msra.gmra.mrb[172].mxu1 %v23626_v51  ;;  %11424 = vmatmul.mubr.bf16.vlgmr.msra.gmra.mrb[148].mxu0 %v23626_v51 }
0x1081   :  { %v10201_v52 = vpop.permute.xlu1 %10200  ;;  %11341 = vmatpush1.bf16.msra.mxu1 %v20734_v48  ;;  %11443 = vmatpush1.bf16.msra.mxu0 %v20737_v1  ;;  %v10224_v42 = vld [vmem:[#allocation3 + $0x18] sm:$0xff]  ;;  %v20804_v48 = vld [vmem:[%s26059_s13 + $0xf4] ss:$28 sps:$4 sm:$0xff]  }
0x1082   :  { %v10206_v59 = vsel %vm10202_vm13, %v10199_v47, %v10201_v52  ;;  %11342 = vmatprep.subr.bf16.mxu1 %v20742_v18  ;;  %11444 = vmatprep.subr.bf16.mxu0 %v20745_v24  ;;  %v23660_v61 = vpack.c.bf16 %v10224_v42, %v10224_v42  ;;  %v10223_v56 = vld [vmem:[#allocation3 + $0x10] sm:$0xff]  ;;  %v20805_v1 = vld [vmem:[%s26059_s13 + $0x2b8] ss:$28 sps:$4 sm:$0xff]   ;;  %v20810_v18 = vld [vmem:[%s26059_s13 + $0x2f0] ss:$28 sps:$4 sm:$0xff]  }
0x1083   :  { %10220 = vst.msk [vmem:[#allocation3 + $0x28] sm:$0xff] %vm10216_vm6, %v10206_v59  ;;  %11331 = vmatprep.mubr.bf16.mxu1 %v23634_v13  ;;  %11433 = vmatprep.mubr.bf16.mxu0 %v23634_v13  ;;  %v23739_v31 = vpack.c.bf16 %v10223_v56, %v22484_v62  ;;  %v20787_v62 = vld [vmem:[%s26059_s13 + $0x48] ss:$28 sps:$4 sm:$0xff]   ;;  %v20801_v47 = vld [vmem:[%s26059_s13 + $0xc0] ss:$28 sps:$4 sm:$0xff]   ;;  %vm26170_vm13 = vmmov %vm26167_vm7 }
0x1084   :  { %v20807_v24 = vld [vmem:[%s26059_s13 + $0x128] ss:$28 sps:$4 sm:$0xff]   ;;  %v20811_v52 = vld [vmem:[%s26059_s13 + $0x130] ss:$28 sps:$4 sm:$0xff]   ;;  %v20812_v59 = vld [vmem:[%s26059_s13 + $0x160] ss:$28 sps:$4 sm:$0xff]  }
0x1085   :  { %11343 = vmatpush1.bf16.msra.mxu1 %v20740_v60  ;;  %11445 = vmatpush1.bf16.msra.mxu0 %v20743_v32  ;;  %v20814_v60 = vld [vmem:[%s26059_s13 + $0x164] ss:$28 sps:$4 sm:$0xff]   ;;  %vm26173_vm6 = vmmov %vm26171_vm0 }
0x1086   :  { %11344 = vmatprep.subr.bf16.mxu1 %v20748_v53  ;;  %11446 = vmatprep.subr.bf16.mxu0 %v20751_v36  ;;  %v20815_v32 = vld [vmem:[%s26059_s13 + $0x328] ss:$28 sps:$4 sm:$0xff]   ;;  %v20819_v36 = vld [vmem:[%s26059_s13 + $0x19c] ss:$28 sps:$4 sm:$0xff]  }
0x1087   :  { %v20816_v53 = vld [vmem:[%s26059_s13 + $0x168] ss:$28 sps:$4 sm:$0xff]   ;;  %v20820_v42 = vld [vmem:[%s26059_s13 + $0x360] ss:$28 sps:$4 sm:$0xff]  }
0x1088   :  { %11332 = vmatmul.mubr.bf16.gmra.mrb[176].mxu1 %v23660_v61  ;;  %11434 = vmatmul.mubr.bf16.gmra.mrb[152].mxu0 %v23660_v61  ;;  %v20853_v56 = vld [vmem:[%s26059_s13 + $0x520] ss:$28 sps:$4 sm:$0xff]  }
0x1089   :  { %11345 = vmatpush1.bf16.msra.mxu1 %v20746_v46  ;;  %11447 = vmatpush1.bf16.msra.mxu0 %v20749_v54  ;;  %v20817_v46 = vld [vmem:[%s26059_s13 + $0x198] ss:$28 sps:$4 sm:$0xff]   ;;  %v20821_v54 = vld [vmem:[%s26059_s13 + $0x1a0] ss:$28 sps:$4 sm:$0xff]  }
0x108a   :  { %11346 = vmatprep.subr.bf16.mxu1 %v20754_v55  ;;  %11448 = vmatprep.subr.bf16.mxu0 %v20757_v26  ;;  %v10226_v33 = vld [vmem:[#allocation3 + $0x28] sm:$0xff]  ;;  %v20824_v55 = vld [vmem:[%s26059_s13 + $0x1d4] ss:$28 sps:$4 sm:$0xff]  }
0x108b   :  { %11372 = vmatprep.mubr.bf16.mxu1 %v20914_v3  ;;  %11474 = vmatprep.mubr.bf16.mxu0 %v20914_v3  ;;  %v23766_v38 = vpack.c.bf16 %v10226_v33, %v10226_v33  ;;  %v20825_v26 = vld [vmem:[%s26059_s13 + $0x398] ss:$28 sps:$4 sm:$0xff]   ;;  %v20866_v33 = vld [vmem:[%s26059_s13 + $0x470] ss:$28 sps:$4 sm:$0xff]  }
0x108d   :  { %11347 = vmatpush1.bf16.msra.mxu1 %v20752_v28  ;;  %11449 = vmatpush1.bf16.msra.mxu0 %v20755_v57  ;;  %v20822_v28 = vld [vmem:[%s26059_s13 + $0x1d0] ss:$28 sps:$4 sm:$0xff]  }
0x108e   :  { %11348 = vmatprep.subr.bf16.mxu1 %v20760_v63  ;;  %11450 = vmatprep.subr.bf16.mxu0 %v20763_v58  ;;  %v20828_v57 = vld [vmem:[%s26059_s13 + $0x20c] ss:$28 sps:$4 sm:$0xff]  }
0x108f   :  { %v20829_v63 = vld [vmem:[%s26059_s13 + $0x3d0] ss:$28 sps:$4 sm:$0xff]   ;;  %v20826_v58 = vld [vmem:[%s26059_s13 + $0x208] ss:$28 sps:$4 sm:$0xff]  }
0x1091   :  { %11349 = vmatpush1.bf16.msra.mxu1 %v20758_v2  ;;  %11451 = vmatpush1.bf16.msra.mxu0 %v20761_v0  ;;  %v20832_v2 = vld [vmem:[%s26059_s13 + $0x244] ss:$28 sps:$4 sm:$0xff]  }
0x1092   :  { %11350 = vmatprep.subr.bf16.mxu1 %v20766_v45  ;;  %11452 = vmatprep.subr.bf16.mxu0 %v20769_v7  ;;  %v20833_v0 = vld [vmem:[%s26059_s13 + $0x408] ss:$28 sps:$4 sm:$0xff]   ;;  %v20830_v45 = vld [vmem:[%s26059_s13 + $0x240] ss:$28 sps:$4 sm:$0xff]  }
0x1093   :  { %v20836_v7 = vld [vmem:[%s26059_s13 + $0x27c] ss:$28 sps:$4 sm:$0xff]  }
0x1095   :  { %11351 = vmatpush1.bf16.msra.mxu1 %v20764_v4  ;;  %11453 = vmatpush1.bf16.msra.mxu0 %v20767_v8  ;;  %v20837_v4 = vld [vmem:[%s26059_s13 + $0x440] ss:$28 sps:$4 sm:$0xff]   ;;  %v20834_v8 = vld [vmem:[%s26059_s13 + $0x278] ss:$28 sps:$4 sm:$0xff]  }
0x1096   :  { %11352 = vmatprep.subr.bf16.mxu1 %v20772_v9  ;;  %11454 = vmatprep.subr.bf16.mxu0 %v20775_v16  ;;  %v20840_v9 = vld [vmem:[%s26059_s13 + $0x2b4] ss:$28 sps:$4 sm:$0xff]  }
0x1097   :  { %v20841_v16 = vld [vmem:[%s26059_s13 + $0x478] ss:$28 sps:$4 sm:$0xff]  }
0x1099   :  { %11353 = vmatpush1.bf16.msra.mxu1 %v20770_v20  ;;  %11455 = vmatpush1.bf16.msra.mxu0 %v20773_v10  ;;  %v20838_v20 = vld [vmem:[%s26059_s13 + $0x2b0] ss:$28 sps:$4 sm:$0xff]  }
0x109a   :  { %11354 = vmatprep.subr.bf16.mxu1 %v20778_v15  ;;  %11456 = vmatprep.subr.bf16.mxu0 %v20781_v21  ;;  %v20844_v10 = vld [vmem:[%s26059_s13 + $0x2ec] ss:$28 sps:$4 sm:$0xff]  }
0x109b   :  { %v20845_v15 = vld [vmem:[%s26059_s13 + $0x4b0] ss:$28 sps:$4 sm:$0xff]   ;;  %v20842_v21 = vld [vmem:[%s26059_s13 + $0x2e8] ss:$28 sps:$4 sm:$0xff]  }
0x109d   :  { %11355 = vmatpush1.bf16.msra.mxu1 %v20776_v17  ;;  %11457 = vmatpush1.bf16.msra.mxu0 %v20779_v39  ;;  %v20848_v17 = vld [vmem:[%s26059_s13 + $0x324] ss:$28 sps:$4 sm:$0xff]  }
0x109e   :  { %11493 = vmatprep.subr.bf16.mxu1 %v20784_v44  ;;  %18947 = vmatprep.subr.bf16.mxu0 %v20785_v22  ;;  %v20849_v39 = vld [vmem:[%s26059_s13 + $0x4e8] ss:$28 sps:$4 sm:$0xff]   ;;  %v20846_v44 = vld [vmem:[%s26059_s13 + $0x320] ss:$28 sps:$4 sm:$0xff]  }
0x109f   :  { %v20852_v22 = vld [vmem:[%s26059_s13 + $0x35c] ss:$28 sps:$4 sm:$0xff]  }
0x10a0   :  { %11373 = vmatmul.mubr.bf16.vlgmr.msra.gmra.mrb[172].mxu1 %v23739_v31  ;;  %11475 = vmatmul.mubr.bf16.vlgmr.msra.gmra.mrb[148].mxu0 %v23739_v31 }
0x10a1   :  { %11494 = vmatpush1.bf16.msra.mxu1 %v20782_v27  ;;  %18948 = vmatpush3.bf16.msra.mxu0 %v20786_v30  ;;  %v20850_v27 = vld [vmem:[%s26059_s13 + $0x358] ss:$28 sps:$4 sm:$0xff]  }
0x10a2   :  { %11495 = vmatprep.subr.bf16.mxu1 %v20789_v11  ;;  %18949 = vmatprep.subr.bf16.mxu0 %v20790_v6  ;;  %v20856_v30 = vld [vmem:[%s26059_s13 + $0x394] ss:$28 sps:$4 sm:$0xff]   ;;  %v20859_v6 = vld [vmem:[%s26059_s13 + $0x3cc] ss:$28 sps:$4 sm:$0xff]  }
0x10a3   :  { %11382 = vmatprep.mubr.bf16.mxu1 %v20914_v3  ;;  %11484 = vmatprep.mubr.bf16.mxu0 %v20914_v3  ;;  %v20854_v11 = vld [vmem:[%s26059_s13 + $0x390] ss:$28 sps:$4 sm:$0xff]  }
0x10a5   :  { %11496 = vmatpush1.bf16.msra.mxu1 %v20787_v62  ;;  %18950 = vmatpush3.bf16.msra.mxu0 %v20791_v12  ;;  %v20857_v62 = vld [vmem:[%s26059_s13 + $0x3c8] ss:$28 sps:$4 sm:$0xff]  }
0x10a6   :  { %11497 = vmatprep.subr.bf16.mxu1 %v20794_v14  ;;  %18951 = vmatprep.subr.bf16.mxu0 %v20795_v37  ;;  %v20862_v12 = vld [vmem:[%s26059_s13 + $0x404] ss:$28 sps:$4 sm:$0xff]   ;;  %v20863_v14 = vld [vmem:[%s26059_s13 + $0x438] ss:$28 sps:$4 sm:$0xff]  }
0x10a7   :  { %v20868_v37 = vld [vmem:[%s26059_s13 + $0x474] ss:$28 sps:$4 sm:$0xff]  }
0x10a8   :  { %11383 = vmatmul.mubr.bf16.gmra.mrb[176].mxu1 %v23766_v38  ;;  %11485 = vmatmul.mubr.bf16.gmra.mrb[152].mxu0 %v23766_v38 }
0x10a9   :  { %11498 = vmatpush1.bf16.msra.mxu1 %v20792_v34  ;;  %11525 = vmatprep.mubr.bf16.mxu1 %v23612_v43  ;;  %v20869_v34 = vld [vmem:[%s26059_s13 + $0x4a8] ss:$28 sps:$4 sm:$0xff]  }
0x10aa   :  { %18952 = vmatpush3.bf16.msra.mxu0 %v20796_v41  ;;  %11627 = vmatprep.mubr.bf16.mxu0 %v23612_v43  ;;  %v20806_v43 = vld [vmem:[%s26059_s13 + $0xf8] ss:$28 sps:$4 sm:$0xff]   ;;  %v20874_v41 = vld [vmem:[%s26059_s13 + $0x4e4] ss:$28 sps:$4 sm:$0xff]  }
0x10ab   :  { %11499 = vmatprep.subr.bf16.mxu1 %v20799_v35  ;;  %18953 = vmatprep.subr.bf16.mxu0 %v20800_v40  ;;  %v20872_v35 = vld [vmem:[%s26059_s13 + $0x4e0] ss:$28 sps:$4 sm:$0xff]  }
0x10ac   :  { %v20877_v40 = vld [vmem:[%s26059_s13 + $0x51c] ss:$28 sps:$4 sm:$0xff]  }
0x10ad   :  { %11500 = vmatpush1.bf16.msra.mxu1 %v20797_v49  ;;  %v20875_v49 = vld [vmem:[%s26059_s13 + $0x518] ss:$28 sps:$4 sm:$0xff]  }
0x10ae   :  { %18954 = vmatpush3.bf16.msra.mxu0 %v20801_v47  ;;  %11501 = vmatprep.subr.bf16.mxu1 %v20804_v48 }
0x10af   :  { %18955 = vmatprep.subr.bf16.mxu0 %v20805_v1 }
0x10b1   :  { %11502 = vmatpush1.bf16.msra.mxu1 %v20802_v50 }
0x10b2   :  { %18956 = vmatpush3.bf16.msra.mxu0 %v20806_v43  ;;  %11503 = vmatprep.subr.bf16.mxu1 %v20809_v25 }
0x10b3   :  { %18957 = vmatprep.subr.bf16.mxu0 %v20810_v18 }
0x10b5   :  { %11504 = vmatpush1.bf16.msra.mxu1 %v20807_v24 }
0x10b6   :  { %18958 = vmatpush3.bf16.msra.mxu0 %v20811_v52  ;;  %11505 = vmatprep.subr.bf16.mxu1 %v20814_v60 }
0x10b7   :  { %18959 = vmatprep.subr.bf16.mxu0 %v20815_v32 }
0x10b9   :  { %11506 = vmatpush1.bf16.msra.mxu1 %v20812_v59 }
0x10ba   :  { %18960 = vmatpush3.bf16.msra.mxu0 %v20816_v53  ;;  %11507 = vmatprep.subr.bf16.mxu1 %v20819_v36 }
0x10bb   :  { %18961 = vmatprep.subr.bf16.mxu0 %v20820_v42 }
0x10bd   :  { %11508 = vmatpush1.bf16.msra.mxu1 %v20817_v46 }
0x10be   :  { %18962 = vmatpush3.bf16.msra.mxu0 %v20821_v54  ;;  %11509 = vmatprep.subr.bf16.mxu1 %v20824_v55 }
0x10bf   :  { %19419 = vmatprep.subr.bf16.mxu0 %v20825_v26 }
0x10c1   :  { %11628 = vmatmul.mubr.bf16.vlgmr.msra.gmra.mrb[156].mxu0 %v23626_v51  ;;  %11510 = vmatpush1.bf16.msra.mxu1 %v20822_v28 }
0x10c2   :  { %11635 = vmatprep.mubr.bf16.mxu0 %v23634_v13  ;;  %19420 = vmatpush3.bf16.msra.mxu0 %v20825_v26 }
0x10c3   :  { %11511 = vmatprep.subr.bf16.mxu1 %v20828_v57  ;;  %19421 = vmatprep.subr.bf16.mxu0 %v20829_v63 }
0x10c5   :  { %11512 = vmatpush1.bf16.msra.mxu1 %v20826_v58 }
0x10c6   :  { %19422 = vmatpush3.bf16.msra.mxu0 %v20829_v63  ;;  %11513 = vmatprep.subr.bf16.mxu1 %v20832_v2 }
0x10c7   :  { %19423 = vmatprep.subr.bf16.mxu0 %v20833_v0 }
0x10c9   :  { %11636 = vmatmul.mubr.bf16.gmra.mrb[160].mxu0 %v23660_v61  ;;  %11514 = vmatpush1.bf16.msra.mxu1 %v20830_v45 }
0x10ca   :  { %19424 = vmatpush3.bf16.msra.mxu0 %v20833_v0  ;;  %19435 = vmatprep.mubr.bf16.mxu0 %v23739_v31 }
0x10cb   :  { %11515 = vmatprep.subr.bf16.mxu1 %v20836_v7  ;;  %19425 = vmatprep.subr.bf16.mxu0 %v20837_v4 }
0x10cd   :  { %11516 = vmatpush1.bf16.msra.mxu1 %v20834_v8 }
0x10ce   :  { %19426 = vmatpush3.bf16.msra.mxu0 %v20837_v4  ;;  %11517 = vmatprep.subr.bf16.mxu1 %v20840_v9 }
0x10cf   :  { %19427 = vmatprep.subr.bf16.mxu0 %v20841_v16 }
0x10d1   :  { %11518 = vmatpush1.bf16.msra.mxu1 %v20838_v20 }
0x10d2   :  { %19428 = vmatpush3.bf16.msra.mxu0 %v20841_v16  ;;  %11519 = vmatprep.subr.bf16.mxu1 %v20844_v10 }
0x10d3   :  { %19429 = vmatprep.subr.bf16.mxu0 %v20845_v15 }
0x10d5   :  { %11520 = vmatpush1.bf16.msra.mxu1 %v20842_v21 }
0x10d6   :  { %19430 = vmatpush3.bf16.msra.mxu0 %v20845_v15  ;;  %11521 = vmatprep.subr.bf16.mxu1 %v20848_v17 }
0x10d7   :  { %19431 = vmatprep.subr.bf16.mxu0 %v20849_v39 }
0x10d9   :  { %11522 = vmatpush1.bf16.msra.mxu1 %v20846_v44 }
0x10da   :  { %19432 = vmatpush3.bf16.msra.mxu0 %v20849_v39  ;;  %11523 = vmatprep.subr.bf16.mxu1 %v20852_v22 }
0x10db   :  { %19433 = vmatprep.subr.bf16.mxu0 %v20853_v56 }
0x10dd   :  { %11524 = vmatpush1.bf16.msra.mxu1 %v20850_v27 }
0x10de   :  { %19434 = vmatpush3.bf16.msra.mxu0 %v20853_v56  ;;  %11544 = vmatprep.subr.bf16.mxu1 %v20856_v30 }
0x10e0   :  { %11526 = vmatmul.mubr.bf16.vlgmr.msra.gmra.mrb[180].mxu1 %v23626_v51  ;;  %v20860_v51 = vld [vmem:[%s26059_s13 + $0x400] ss:$28 sps:$4 sm:$0xff]  }
0x10e1   :  { %19436 = vmatmul.mubr.bf16.vlgmr.msra.gmra.mrb[164].mxu0 %v23766_v38  ;;  %11535 = vmatprep.mubr.bf16.mxu1 %v23634_v13  ;;  %v20865_v13 = vld [vmem:[%s26059_s13 + $0x43c] ss:$28 sps:$4 sm:$0xff]  }
0x10e2   :  { %11545 = vmatpush1.bf16.msra.mxu1 %v20854_v11  ;;  %11839 = vmatprep.mubr.bf16.mxu0 %v20914_v3 }
0x10e3   :  { %11546 = vmatprep.subr.bf16.mxu1 %v20859_v6 }
0x10e6   :  { %11547 = vmatpush1.bf16.msra.mxu1 %v20857_v62 }
0x10e7   :  { %11548 = vmatprep.subr.bf16.mxu1 %v20862_v12 }
0x10e8   :  { %11536 = vmatmul.mubr.bf16.gmra.mrb[184].mxu1 %v23660_v61  ;;  %v20871_v61 = vld [vmem:[%s26059_s13 + $0x4ac] ss:$28 sps:$4 sm:$0xff]  }
0x10e9   :  { %11576 = vmatprep.mubr.bf16.mxu1 %v20914_v3 }
0x10ea   :  { %11549 = vmatpush1.bf16.msra.mxu1 %v20860_v51 }
0x10eb   :  { %11550 = vmatprep.subr.bf16.mxu1 %v20865_v13 }
0x10ee   :  { %11551 = vmatpush1.bf16.msra.mxu1 %v20863_v14 }
0x10ef   :  { %11552 = vmatprep.subr.bf16.mxu1 %v20868_v37 }
0x10f2   :  { %11553 = vmatpush1.bf16.msra.mxu1 %v20866_v33 }
0x10f3   :  { %11554 = vmatprep.subr.bf16.mxu1 %v20871_v61 }
0x10f6   :  { %11555 = vmatpush1.bf16.msra.mxu1 %v20869_v34 }
0x10f7   :  { %11556 = vmatprep.subr.bf16.mxu1 %v20874_v41 }
0x10fa   :  { %11557 = vmatpush1.bf16.msra.mxu1 %v20872_v35 }
0x10fb   :  { %11558 = vmatprep.subr.bf16.mxu1 %v20877_v40 }
0x10fe   :  { %11559 = vmatpush1.bf16.msra.mxu1 %v20875_v49 }
0x1101   :  { %11577 = vmatmul.mubr.bf16.vlgmr.msra.gmra.mrb[180].mxu1 %v23739_v31 }
0x1102   :  { %11586 = vmatprep.mubr.bf16.mxu1 %v20914_v3 }
0x1109   :  { %11587 = vmatmul.mubr.bf16.gmra.mrb[184].mxu1 %v23766_v38 }
0x110a   :  { %15796 = vmatprep.mubr.bf16.mxu1 %v20914_v3 }
0x1173   :  { %v11374_v47 = vpop.f32.mrb[172].mxu1  ;;  %v11476_v48 = vpop.f32.mrb[148].mxu0 }
0x1174   :  { %v11376_v1 = vpop.f32.mrb[173].mxu1  ;;  %v11478_v50 = vpop.f32.mrb[149].mxu0 }
0x1175   :  { %v11378_v43 = vpop.f32.mrb[174].mxu1  ;;  %v11480_v25 = vpop.f32.mrb[150].mxu0 }
0x1176   :  { %v23969_v18 = vpack.c.bf16 %v11378_v43, %v11374_v47  ;;  %v23971_v24 = vpack.c.bf16 %v11480_v25, %v11476_v48  ;;  %v11380_v52 = vpop.f32.mrb[175].mxu1  ;;  %v11482_v60 = vpop.f32.mrb[151].mxu0 }
0x1177   :  { %v23973_v32 = vpack.c.bf16 %v11380_v52, %v11376_v1  ;;  %v23975_v31 = vpack.c.bf16 %v11482_v60, %v11478_v50 }
0x1178   :  { %11739 = vrot.lane.b32.xlu1 %v23971_v24, %s20915_s23  ;;  %11735 = vrot.lane.b32.xlu0 %v23969_v18, %s20915_s23 }
0x117b   :  { %v11384_v38 = vpop.f32.mrb[176].mxu1  ;;  %v11486_v59 = vpop.f32.mrb[152].mxu0 }
0x117c   :  { %v23981_v53 = vpack.c.bf16 %v11384_v38, %v11384_v38  ;;  %v11488_v36 = vpop.f32.mrb[153].mxu0  ;;  %11737 = vrot.lane.b32.xlu0 %v23973_v32, %s20915_s23  ;;  %v11386_v42 = vpop.f32.mrb[177].mxu1  ;;  %v23989_v57 = vpack.c.bf16 %v11486_v59, %v11486_v59  ;;  %v24058_v38 = vld [vmem:[%s26060_s12 + $0x4] sm:$0xf] }
0x117d   :  { %v23985_v46 = vpack.c.bf16 %v11386_v42, %v11386_v42  ;;  %v11388_v54 = vpop.f32.mrb[178].mxu1  ;;  %v11490_v55 = vpop.f32.mrb[154].mxu0  ;;  %v23997_v63 = vpack.c.bf16 %v11488_v36, %v11488_v36 }
0x117e   :  { %v11491_v26 = vpop.f32.mrb[155].mxu0  ;;  %11749 = vrot.lane.b32.xlu1 %v23981_v53, %s20915_s23  ;;  %v11389_v28 = vpop.f32.mrb[179].mxu1 }
0x1180   :  { %11751 = vrot.lane.b32.xlu0 %v23985_v46, %s20915_s23 }
0x1182   :  { %11753 = vrot.lane.b32.xlu1 %v23989_v57, %s20915_s23 }
0x1184   :  { %11741 = vrot.lane.b32.xlu0 %v23975_v31, %s20915_s23 }
0x1188   :  { %11755 = vrot.lane.b32.xlu0 %v23997_v63, %s20915_s23 }
0x1194   :  { %v18963_v58 = vpop.f32.mrb[156].mxu0 }
0x1195   :  { %v18964_v2 = vpop.f32.mrb[157].mxu0 }
0x1196   :  { %v18965_v0 = vadd.f32 %v18964_v2, %v18963_v58  ;;  %v18966_v45 = vpop.f32.mrb[158].mxu0 }
0x1197   :  { %v18967_v7 = vpop.f32.mrb[159].mxu0 }
0x1198   :  { %v18968_v4 = vadd.f32 %v18967_v7, %v18966_v45 }
0x119c   :  { %v18969_v8 = vpop.f32.mrb[160].mxu0 }
0x119d   :  { %v18970_v9 = vpop.f32.mrb[161].mxu0 }
0x119e   :  { %v18971_v16 = vadd.f32 %v18970_v9, %v18969_v8  ;;  %v18972_v20 = vpop.f32.mrb[162].mxu0 }
0x119f   :  { %v18973_v10 = vpop.f32.mrb[163].mxu0 }
0x11b4   :  { %v19437_v15 = vpop.f32.mrb[164].mxu0 }
0x11b5   :  { %v11686_v21 = vadd.f32 %v19437_v15, %v18971_v16  ;;  %v11677_v17 = vpop.f32.mrb[165].mxu0 }
0x11b6   :  { %v11678_v39 = vadd.f32 %v18965_v0, %v11677_v17  ;;  %v19438_v44 = vpop.f32.mrb[166].mxu0 }
0x11b7   :  { %v11680_v22 = vpop.f32.mrb[167].mxu0  ;;  %v24023_v41 = vpack.c.bf16 %v11686_v21, %v11686_v21  ;;  %v24190_v44 = vld [vmem:[#allocation4] sm:$0xff] }
0x11b8   :  { %v11681_v56 = vadd.f32 %v18968_v4, %v11680_v22 }
0x11ba   :  { %v24001_v27 = vpack.c.bf16 %v11681_v56, %v11678_v39 }
0x11d4   :  { %v11578_v30 = vpop.f32.mrb[180].mxu1 }
0x11d5   :  { %v11580_v11 = vpop.f32.mrb[181].mxu1 }
0x11d6   :  { %v11582_v6 = vpop.f32.mrb[182].mxu1 }
0x11d7   :  { %v24003_v62 = vpack.c.bf16 %v11582_v6, %v11578_v30  ;;  %v11584_v12 = vpop.f32.mrb[183].mxu1 }
0x11d8   :  { %v24005_v51 = vpack.c.bf16 %v11584_v12, %v11580_v11 }
0x11d9   :  { %11743 = vrot.lane.b32.xlu1 %v24003_v62, %s20915_s23 }
0x11da   :  { %11745 = vrot.lane.b32.xlu0 %v24005_v51, %s20915_s23 }
0x11dc   :  { %v11588_v13 = vpop.f32.mrb[184].mxu1 }
0x11dd   :  { %v24011_v14 = vpack.c.bf16 %v11588_v13, %v11588_v13  ;;  %v11590_v37 = vpop.f32.mrb[185].mxu1 }
0x11de   :  { %v24013_v33 = vpack.c.bf16 %v11590_v37, %v11590_v37  ;;  %v11592_v61 = vpop.f32.mrb[186].mxu1  ;;  %v11974_v37 = vsel %vm26171_vm0, %v23981_v53, 0 }
0x11df   :  { %11757 = vrot.lane.b32.xlu1 %v24011_v14, %s20915_s23  ;;  %v11593_v34 = vpop.f32.mrb[187].mxu1 }
0x11e0   :  { %11759 = vrot.lane.b32.xlu0 %v24013_v33, %s20915_s23  ;;  %v11691_v34 = vld [vmem:[%s26060_s12] sm:$0xf] }
0x11e3   :  { %11747 = vrot.lane.b32.xlu1 %v24001_v27, %s20915_s23 }
0x11e4   :  { %12159 = vrot.lane.b32.xlu0 %v23973_v32, %s20917_s28 }
0x11e7   :  { %11761 = vrot.lane.b32.xlu1 %v24023_v41, %s20915_s23 }
0x11e8   :  { %12157 = vrot.lane.b32.xlu0 %v23969_v18, %s20917_s28 }
0x11ea   :  { %v11736_v35 = vpop.permute.xlu0 %11735  ;;  %v24031_v40 = vpop.permute.xlu1 %11739 }
0x11eb   :  { %12161 = vrot.lane.b32.xlu1 %v23971_v24, %s20917_s28 }
0x11ec   :  { %12173 = vrot.lane.b32.xlu0 %v23985_v46, %s20917_s28 }
0x11ee   :  { %v11738_v49 = vpop.permute.xlu0 %11737 }
0x11ef   :  { %12171 = vrot.lane.b32.xlu1 %v23981_v53, %s20917_s28  ;;  %v11764_v47 = vsel %vm120_vm2, %v11738_v49, %v24031_v40  ;;  %v11763_v48 = vsel %vm120_vm2, %v11736_v35, %v11738_v49 }
0x11f0   :  { %12163 = vrot.lane.b32.xlu0 %v23975_v31, %s20917_s28  ;;  %11807 = vmatprep.subr.bf16.mxu0 %v11764_v47  ;;  %v11750_v1 = vpop.permute.xlu1 %11749 }
0x11f1   :  { %11808 = vmatpush1.bf16.msra.mxu0 %v11763_v48 }
0x11f2   :  { %v11752_v50 = vpop.permute.xlu0 %11751 }
0x11f3   :  { %v11769_v43 = vsel %vm120_vm2, %v11750_v1, %v11752_v50  ;;  %12175 = vrot.lane.b32.xlu1 %v23989_v57, %s20917_s28 }
0x11f4   :  { %12177 = vrot.lane.b32.xlu0 %v23997_v63, %s20917_s28  ;;  %v24047_v25 = vpop.permute.xlu1 %11753  ;;  %v11787_v60 = vsel %vm26161_vm9, %v11769_v43, 0  ;;  %vm26175_vm9 = vmmov %vm26171_vm0 }
0x11f5   :  { %v11770_v52 = vsel %vm120_vm2, %v11752_v50, %v24047_v25 }
0x11f6   :  { %18554 = vmatprep.subr.msk.bf16.mxu0 %vm26160_vm10, %v11770_v52  ;;  %v11742_v59 = vpop.permute.xlu0 %11741  ;;  %vm26174_vm10 = vmmov %vm26171_vm0 }
0x11f7   :  { %12165 = vrot.lane.b32.xlu1 %v24003_v62, %s20917_s28  ;;  %11810 = vmatpush1.bf16.msra.mxu0 %v11787_v60  ;;  %v11765_v55 = vsel %vm120_vm2, %v24031_v40, %v11742_v59  ;;  %v11980_v47 = vsel %vm26174_vm10, %v23989_v57, 0  ;;  %vm26184_vm10 = vmmov %vm26171_vm0 }
0x11f8   :  { %12167 = vrot.lane.b32.xlu0 %v24005_v51, %s20917_s28 }
0x11fa   :  { %18555 = vmatmul.mubr.msk.bf16.vlgmr.msra.gmra.mrb[168].mxu0 %vm11782_vm12, %v24058_v38  ;;  %v11756_v36 = vpop.permute.xlu0 %11755 }
0x11fb   :  { %12179 = vrot.lane.b32.xlu1 %v24011_v14, %s20917_s28  ;;  %11880 = vmatprep.mubr.bf16.mxu0 %v20914_v3  ;;  %v11771_v28 = vsel %vm120_vm2, %v24047_v25, %v11756_v36 }
0x11fc   :  { %12181 = vrot.lane.b32.xlu0 %v24013_v33, %s20917_s28  ;;  %v11793_v45 = vsel %vm26165_vm15, %v11771_v28, 0  ;;  %vm26177_vm15 = vmmov %vm26171_vm0 }
0x11ff   :  { %12169 = vrot.lane.b32.xlu1 %v24001_v27, %s20917_s28 }
0x1200   :  { %12400 = vrot.lane.b32.xlu0 %v23973_v32, %s20918_s29 }
0x1203   :  { %12183 = vrot.lane.b32.xlu1 %v24023_v41, %s20917_s28 }
0x1204   :  { %12398 = vrot.lane.b32.xlu0 %v23969_v18, %s20918_s29 }
0x1207   :  { %12402 = vrot.lane.b32.xlu1 %v23971_v24, %s20918_s29 }
0x1208   :  { %12414 = vrot.lane.b32.xlu0 %v23985_v46, %s20918_s29 }
0x120b   :  { %12412 = vrot.lane.b32.xlu1 %v23981_v53, %s20918_s29 }
0x120c   :  { %12404 = vrot.lane.b32.xlu0 %v23975_v31, %s20918_s29 }
0x120f   :  { %12416 = vrot.lane.b32.xlu1 %v23989_v57, %s20918_s29 }
0x1210   :  { %12418 = vrot.lane.b32.xlu0 %v23997_v63, %s20918_s29 }
0x1213   :  { %12406 = vrot.lane.b32.xlu1 %v24003_v62, %s20918_s29 }
0x1214   :  { %12408 = vrot.lane.b32.xlu0 %v24005_v51, %s20918_s29 }
0x1217   :  { %12420 = vrot.lane.b32.xlu1 %v24011_v14, %s20918_s29 }
0x1218   :  { %12422 = vrot.lane.b32.xlu0 %v24013_v33, %s20918_s29 }
0x121b   :  { %12410 = vrot.lane.b32.xlu1 %v24001_v27, %s20918_s29 }
0x121c   :  { %12641 = vrot.lane.b32.xlu0 %v23973_v32, %s26162_s9 }
0x121f   :  { %12424 = vrot.lane.b32.xlu1 %v24023_v41, %s20918_s29  ;;  %s26163_s29 = smov 107  }
0x1220   :  { %12639 = vrot.lane.b32.xlu0 %v23969_v18, %s26162_s9 }
0x1223   :  { %12643 = vrot.lane.b32.xlu1 %v23971_v24, %s26162_s9 }
0x1224   :  { %12655 = vrot.lane.b32.xlu0 %v23985_v46, %s26162_s9 }
0x1227   :  { %12653 = vrot.lane.b32.xlu1 %v23981_v53, %s26162_s9 }
0x1228   :  { %12645 = vrot.lane.b32.xlu0 %v23975_v31, %s26162_s9 }
0x122b   :  { %12657 = vrot.lane.b32.xlu1 %v23989_v57, %s26162_s9 }
0x122c   :  { %12659 = vrot.lane.b32.xlu0 %v23997_v63, %s26162_s9 }
0x122f   :  { %12647 = vrot.lane.b32.xlu1 %v24003_v62, %s26162_s9 }
0x1230   :  { %12649 = vrot.lane.b32.xlu0 %v24005_v51, %s26162_s9 }
0x1233   :  { %12661 = vrot.lane.b32.xlu1 %v24011_v14, %s26162_s9 }
0x1234   :  { %12663 = vrot.lane.b32.xlu0 %v24013_v33, %s26162_s9 }
0x1237   :  { %12651 = vrot.lane.b32.xlu1 %v24001_v27, %s26162_s9 }
0x1238   :  { %12882 = vrot.lane.b32.xlu0 %v23973_v32, %s26163_s29 }
0x123b   :  { %12665 = vrot.lane.b32.xlu1 %v24023_v41, %s26162_s9 }
0x123c   :  { %12880 = vrot.lane.b32.xlu0 %v23969_v18, %s26163_s29 }
0x123f   :  { %12884 = vrot.lane.b32.xlu1 %v23971_v24, %s26163_s29 }
0x1240   :  { %12896 = vrot.lane.b32.xlu0 %v23985_v46, %s26163_s29 }
0x1243   :  { %12894 = vrot.lane.b32.xlu1 %v23981_v53, %s26163_s29 }
0x1244   :  { %12886 = vrot.lane.b32.xlu0 %v23975_v31, %s26163_s29 }
0x1247   :  { %12898 = vrot.lane.b32.xlu1 %v23989_v57, %s26163_s29 }
0x1248   :  { %12900 = vrot.lane.b32.xlu0 %v23997_v63, %s26163_s29 }
0x124b   :  { %v11744_v42 = vpop.permute.xlu1 %11743  ;;  %12888 = vrot.lane.b32.xlu1 %v24003_v62, %s26163_s29 }
0x124c   :  { %12890 = vrot.lane.b32.xlu0 %v24005_v51, %s26163_s29  ;;  %v11766_v54 = vsel %vm120_vm2, %v11742_v59, %v11744_v42  ;;  %v11746_v26 = vpop.permute.xlu0 %11745 }
0x124d   :  { %11848 = vmatprep.subr.bf16.mxu0 %v11766_v54  ;;  %v11767_v9 = vsel %vm120_vm2, %v11744_v42, %v11746_v26 }
0x124e   :  { %11849 = vmatpush1.bf16.msra.mxu0 %v11765_v55 }
0x124f   :  { %12902 = vrot.lane.b32.xlu1 %v24011_v14, %s26163_s29 }
0x1250   :  { %12904 = vrot.lane.b32.xlu0 %v24013_v33, %s26163_s29 }
0x1251   :  { %v11758_v58 = vpop.permute.xlu1 %11757 }
0x1252   :  { %v11760_v2 = vpop.permute.xlu0 %11759  ;;  %v11772_v0 = vsel %vm120_vm2, %v11756_v36, %v11758_v58  ;;  %v11992_v36 = vsel %vm26177_vm15, %v24023_v41, 0  ;;  %vm26188_vm15 = vmmov %vm26171_vm0 }
0x1253   :  { %12892 = vrot.lane.b32.xlu1 %v24001_v27, %s26163_s29  ;;  %18556 = vmatprep.subr.msk.bf16.mxu0 %vm26164_vm14, %v11772_v0  ;;  %v11773_v16 = vsel %vm120_vm2, %v11758_v58, %v11760_v2  ;;  %vm26176_vm14 = vmmov %vm26171_vm0 }
0x1254   :  { %11851 = vmatpush1.bf16.msra.mxu0 %v11793_v45  ;;  %13123 = vrot.lane.b32.xlu0 %v23973_v32, %s26166_s2  ;;  %v11799_v21 = vsel %vm26168_vm8, %v11773_v16, 0  ;;  %v11986_v25 = vsel %vm26176_vm14, %v24011_v14, 0  ;;  %vm26179_vm8 = vmmov %vm26171_vm0 }
0x1255   :  { %v11748_v7 = vpop.permute.xlu1 %11747  ;;  %vm26187_vm14 = vmmov %vm26171_vm0 }
0x1256   :  { %v24165_v4 = vpop.permute.xlu0 %12159  ;;  %v11768_v8 = vsel %vm120_vm2, %v11746_v26, %v11748_v7 }
0x1257   :  { %12906 = vrot.lane.b32.xlu1 %v24023_v41, %s26163_s29  ;;  %18557 = vmatmul.mubr.msk.bf16.vlgmr.msra.gmra.mrb[172].mxu0 %vm11782_vm12, %v24058_v38 }
0x1258   :  { %11889 = vmatprep.subr.bf16.mxu0 %v11768_v8  ;;  %13121 = vrot.lane.b32.xlu0 %v23969_v18, %s26166_s2  ;;  %v11693_v8 = vld [vmem:[%s26060_s12 + $0x8] sm:$0xf] }
0x1259   :  { %11890 = vmatpush1.bf16.msra.mxu0 %v11767_v9  ;;  %v11762_v20 = vpop.permute.xlu1 %11761  ;;  %11921 = vmatprep.mubr.bf16.mxu0 %v20914_v3 }
0x125a   :  { %v24177_v10 = vpop.permute.xlu0 %12157  ;;  %v11774_v15 = vsel %vm120_vm2, %v11760_v2, %v11762_v20  ;;  %v11805_v30 = vsel %vm26169_vm11, %v11762_v20, 0  ;;  %vm26181_vm11 = vmmov %vm26171_vm0 }
0x125b   :  { %13125 = vrot.lane.b32.xlu1 %v23971_v24, %s26166_s2  ;;  %18558 = vmatprep.subr.msk.bf16.mxu0 %vm26167_vm7, %v11774_v15  ;;  %v12185_v26 = vsel %vm517_vm3, %v24177_v10, %v24165_v4  ;;  %vm26178_vm7 = vmmov %vm26171_vm0 }
0x125c   :  { %13137 = vrot.lane.b32.xlu0 %v23985_v46, %s26166_s2 }
0x125d   :  { %11892 = vmatpush1.bf16.msra.mxu0 %v11799_v21  ;;  %v24186_v17 = vpop.permute.xlu1 %12161 }
0x125e   :  { %v24188_v39 = vpop.permute.xlu0 %12173  ;;  %19439 = vmatprep.subr.bf16.mxu0 %v24190_v44  ;;  %v12186_v54 = vsel %vm517_vm3, %v24165_v4, %v24186_v17 }
0x125f   :  { %13135 = vrot.lane.b32.xlu1 %v23981_v53, %s26166_s2 }
0x1260   :  { %18559 = vmatmul.mubr.msk.bf16.vlgmr.msra.gmra.mrb[176].mxu0 %vm11782_vm12, %v24058_v38  ;;  %13127 = vrot.lane.b32.xlu0 %v23975_v31, %s26166_s2 }
0x1261   :  { %19440 = vmatpush3.bf16.msra.mxu0 %v11748_v7  ;;  %v24199_v22 = vpop.permute.xlu1 %12171  ;;  %19443 = vmatprep.mubr.msk.bf16.mxu0 %vm20927_vm5, %v24190_v44 }
0x1262   :  { %v24203_v56 = vpop.permute.xlu0 %12163  ;;  %19441 = vmatprep.subr.bf16.mxu0 %v24190_v44  ;;  %v12191_v28 = vsel %vm517_vm3, %v24199_v22, %v24188_v39 }
0x1263   :  { %13139 = vrot.lane.b32.xlu1 %v23989_v57, %s26166_s2  ;;  %v12208_v45 = vsel %vm26179_vm8, %v12191_v28, 0  ;;  %v12187_v16 = vsel %vm517_vm3, %v24186_v17, %v24203_v56  ;;  %vm26190_vm8 = vmmov %vm26171_vm0 }
0x1264   :  { %13141 = vrot.lane.b32.xlu0 %v23997_v63, %s26166_s2 }
0x1265   :  { %19442 = vmatpush3.bf16.msra.mxu0 %v11805_v30  ;;  %v24211_v11 = vpop.permute.xlu1 %12175 }
0x1266   :  { %11994 = vmatprep.subr.bf16.mxu0 %v23973_v32  ;;  %v24214_v6 = vpop.permute.xlu0 %12177  ;;  %v12192_v2 = vsel %vm517_vm3, %v24188_v39, %v24211_v11 }
0x1267   :  { %13129 = vrot.lane.b32.xlu1 %v24003_v62, %s26166_s2  ;;  %v12193_v20 = vsel %vm517_vm3, %v24211_v11, %v24214_v6 }
0x1268   :  { %19444 = vmatmul.mubr.msk.bf16.vlgmr.msra.gmra.mrb[180].mxu0 %vm11782_vm12, %v24058_v38  ;;  %13131 = vrot.lane.b32.xlu0 %v24005_v51, %s26166_s2 }
0x1269   :  { %11995 = vmatpush1.bf16.msra.mxu0 %v23969_v18  ;;  %v24223_v12 = vpop.permute.xlu1 %12165  ;;  %12026 = vmatprep.mubr.bf16.mxu0 %v20914_v3 }
0x126a   :  { %18561 = vmatprep.subr.msk.bf16.mxu0 %vm26170_vm13, %v23985_v46  ;;  %v24228_v13 = vpop.permute.xlu0 %12167  ;;  %v12188_v4 = vsel %vm517_vm3, %v24203_v56, %v24223_v12  ;;  %vm26182_vm13 = vmmov %vm26171_vm0 }
0x126b   :  { %13143 = vrot.lane.b32.xlu1 %v24011_v14, %s26166_s2  ;;  %v12214_v17 = vsel %vm26182_vm13, %v12193_v20, 0  ;;  %v12189_v30 = vsel %vm517_vm3, %v24223_v12, %v24228_v13  ;;  %vm26194_vm13 = vcmask 883712  }
0x126c   :  { %13145 = vrot.lane.b32.xlu0 %v24013_v33, %s26166_s2 }
0x126d   :  { %11997 = vmatpush1.bf16.msra.mxu0 %v11974_v37  ;;  %v24236_v61 = vpop.permute.xlu1 %12179 }
0x126e   :  { %12035 = vmatprep.subr.bf16.mxu0 %v23975_v31  ;;  %v24242_v35 = vpop.permute.xlu0 %12181  ;;  %v12194_v15 = vsel %vm517_vm3, %v24214_v6, %v24236_v61 }
0x126f   :  { %13133 = vrot.lane.b32.xlu1 %v24001_v27, %s26166_s2  ;;  %v12195_v11 = vsel %vm517_vm3, %v24236_v61, %v24242_v35 }
0x1270   :  { %18562 = vmatmul.mubr.msk.bf16.vlgmr.msra.gmra.mrb[168].mxu0 %vm11782_vm12, %v11691_v34  ;;  %13364 = vrot.lane.b32.xlu0 %v23973_v32, %s26172_s22 }
0x1271   :  { %12036 = vmatpush1.bf16.msra.mxu0 %v23971_v24  ;;  %v24250_v40 = vpop.permute.xlu1 %12169  ;;  %12067 = vmatprep.mubr.bf16.mxu0 %v20914_v3 }
0x1272   :  { %18563 = vmatprep.subr.msk.bf16.mxu0 %vm26173_vm6, %v23997_v63  ;;  %v24255_v49 = vpop.permute.xlu0 %12400  ;;  %v12190_v22 = vsel %vm517_vm3, %v24228_v13, %v24250_v40  ;;  %vm26183_vm6 = vmmov %vm26171_vm0 }
0x1273   :  { %13147 = vrot.lane.b32.xlu1 %v24023_v41, %s26166_s2  ;;  %v12220_v12 = vsel %vm26183_vm6, %v12195_v11, 0 }
0x1274   :  { %13362 = vrot.lane.b32.xlu0 %v23969_v18, %s26172_s22 }
0x1275   :  { %12038 = vmatpush1.bf16.msra.mxu0 %v11980_v47  ;;  %v24263_v48 = vpop.permute.xlu1 %12183 }
0x1276   :  { %12076 = vmatprep.subr.bf16.mxu0 %v24005_v51  ;;  %v24266_v1 = vpop.permute.xlu0 %12398  ;;  %v12196_v37 = vsel %vm517_vm3, %v24242_v35, %v24263_v48 }
0x1277   :  { %13366 = vrot.lane.b32.xlu1 %v23971_v24, %s26172_s22 }
0x1278   :  { %18564 = vmatmul.mubr.msk.bf16.vlgmr.msra.gmra.mrb[172].mxu0 %vm11782_vm12, %v11691_v34  ;;  %13378 = vrot.lane.b32.xlu0 %v23985_v46, %s26172_s22 }
0x1279   :  { %12077 = vmatpush1.bf16.msra.mxu0 %v24003_v62  ;;  %v24274_v50 = vpop.permute.xlu1 %12402  ;;  %12108 = vmatprep.mubr.bf16.mxu0 %v20914_v3 }
0x127a   :  { %18565 = vmatprep.subr.msk.bf16.mxu0 %vm26175_vm9, %v24013_v33  ;;  %v24279_v43 = vpop.permute.xlu0 %12414  ;;  %vm26186_vm9 = vmmov %vm26171_vm0 }
0x127b   :  { %13376 = vrot.lane.b32.xlu1 %v23981_v53, %s26172_s22 }
0x127c   :  { %13368 = vrot.lane.b32.xlu0 %v23975_v31, %s26172_s22 }
0x127d   :  { %12079 = vmatpush1.bf16.msra.mxu0 %v11986_v25  ;;  %v24287_v52 = vpop.permute.xlu1 %12412  ;;  %v12226_v25 = vsel %vm26184_vm10, %v24263_v48, 0 }
0x127e   :  { %v24289_v60 = vpop.permute.xlu0 %12404  ;;  %19447 = vmatprep.subr.bf16.mxu0 %v24190_v44  ;;  %v12432_v48 = vsel %vm732_vm4, %v24287_v52, %v24279_v43 }
0x127f   :  { %13380 = vrot.lane.b32.xlu1 %v23989_v57, %s26172_s22 }
0x1280   :  { %18566 = vmatmul.mubr.msk.bf16.vlgmr.msra.gmra.mrb[176].mxu0 %vm11782_vm12, %v11691_v34  ;;  %13382 = vrot.lane.b32.xlu0 %v23997_v63, %s26172_s22 }
0x1281   :  { %19448 = vmatpush3.bf16.msra.mxu0 %v24001_v27  ;;  %v24298_v38 = vpop.permute.xlu1 %12416  ;;  %19451 = vmatprep.mubr.msk.bf16.mxu0 %vm20927_vm5, %v24190_v44 }
0x1282   :  { %v24302_v59 = vpop.permute.xlu0 %12418  ;;  %19449 = vmatprep.subr.bf16.mxu0 %v24190_v44 }
0x1283   :  { %13370 = vrot.lane.b32.xlu1 %v24003_v62, %s26172_s22 }
0x1284   :  { %13372 = vrot.lane.b32.xlu0 %v24005_v51, %s26172_s22 }
0x1285   :  { %19450 = vmatpush3.bf16.msra.mxu0 %v11992_v36  ;;  %v24311_v42 = vpop.permute.xlu1 %12406  ;;  %v12427_v36 = vsel %vm732_vm4, %v24255_v49, %v24274_v50 }
0x1286   :  { %12228 = vmatprep.subr.bf16.mxu0 %v12186_v54  ;;  %v24316_v55 = vpop.permute.xlu0 %12408 }
0x1287   :  { %13384 = vrot.lane.b32.xlu1 %v24011_v14, %s26172_s22 }
0x1288   :  { %19452 = vmatmul.mubr.msk.bf16.vlgmr.msra.gmra.mrb[180].mxu0 %vm11782_vm12, %v11691_v34  ;;  %13386 = vrot.lane.b32.xlu0 %v24013_v33, %s26172_s22 }
0x1289   :  { %12229 = vmatpush1.bf16.msra.mxu0 %v12185_v26  ;;  %v24329_v58 = vpop.permute.xlu1 %12420  ;;  %12260 = vmatprep.mubr.bf16.mxu0 %v20914_v3  ;;  %v12426_v26 = vsel %vm732_vm4, %v24266_v1, %v24255_v49  ;;  %v12449_v1 = vsel %vm26187_vm14, %v12432_v48, 0 }
0x128a   :  { %18568 = vmatprep.subr.msk.bf16.mxu0 %vm26178_vm7, %v12192_v2  ;;  %v24336_v0 = vpop.permute.xlu0 %12422  ;;  %v12433_v2 = vsel %vm732_vm4, %v24279_v43, %v24298_v38  ;;  %v12429_v43 = vsel %vm732_vm4, %v24289_v60, %v24311_v42  ;;  %vm26189_vm7 = vmmov %vm26171_vm0 }
0x128b   :  { %13374 = vrot.lane.b32.xlu1 %v24001_v27, %s26172_s22 }
0x128c   :  { %13605 = vrot.lane.b32.xlu0 %v23973_v32, %s26180_s21 }
0x128d   :  { %12231 = vmatpush1.bf16.msra.mxu0 %v12208_v45  ;;  %v24343_v7 = vpop.permute.xlu1 %12410  ;;  %v11694_v45 = vld [vmem:[%s26060_s12 + $0xc] sm:$0xf] }
0x128e   :  { %12269 = vmatprep.subr.bf16.mxu0 %v12188_v4  ;;  %v24351_v9 = vpop.permute.xlu0 %12641 }
0x128f   :  { %13388 = vrot.lane.b32.xlu1 %v24023_v41, %s26172_s22  ;;  %s26259_s22 = smov 66  }
0x1290   :  { %18569 = vmatmul.mubr.msk.bf16.vlgmr.msra.gmra.mrb[168].mxu0 %vm11782_vm12, %v11693_v8  ;;  %13603 = vrot.lane.b32.xlu0 %v23969_v18, %s26180_s21 }
0x1291   :  { %12270 = vmatpush1.bf16.msra.mxu0 %v12187_v16  ;;  %v24364_v10 = vpop.permute.xlu1 %12424  ;;  %12301 = vmatprep.mubr.bf16.mxu0 %v20914_v3  ;;  %v12434_v16 = vsel %vm732_vm4, %v24298_v38, %v24302_v59  ;;  %v12431_v38 = vsel %vm732_vm4, %v24316_v55, %v24343_v7 }
0x1292   :  { %18570 = vmatprep.subr.msk.bf16.mxu0 %vm26181_vm11, %v12194_v15  ;;  %v24371_v21 = vpop.permute.xlu0 %12639  ;;  %v12435_v15 = vsel %vm732_vm4, %v24302_v59, %v24329_v58  ;;  %vm26191_vm11 = vmmov %vm26171_vm0 }
0x1293   :  { %13607 = vrot.lane.b32.xlu1 %v23971_v24, %s26180_s21 }
0x1294   :  { %13619 = vrot.lane.b32.xlu0 %v23985_v46, %s26180_s21 }
0x1295   :  { %12272 = vmatpush1.bf16.msra.mxu0 %v12214_v17  ;;  %v24378_v39 = vpop.permute.xlu1 %12643 }
0x1296   :  { %12310 = vmatprep.subr.bf16.mxu0 %v12190_v22  ;;  %v24383_v56 = vpop.permute.xlu0 %12655  ;;  %v12430_v22 = vsel %vm732_vm4, %v24311_v42, %v24316_v55 }
0x1297   :  { %13617 = vrot.lane.b32.xlu1 %v23981_v53, %s26180_s21 }
0x1298   :  { %18571 = vmatmul.mubr.msk.bf16.vlgmr.msra.gmra.mrb[172].mxu0 %vm11782_vm12, %v11693_v8  ;;  %13609 = vrot.lane.b32.xlu0 %v23975_v31, %s26180_s21 }
0x1299   :  { %12311 = vmatpush1.bf16.msra.mxu0 %v12189_v30  ;;  %v24396_v6 = vpop.permute.xlu1 %12653  ;;  %12342 = vmatprep.mubr.bf16.mxu0 %v20914_v3  ;;  %v12436_v30 = vsel %vm732_vm4, %v24329_v58, %v24336_v0 }
0x129a   :  { %18572 = vmatprep.subr.msk.bf16.mxu0 %vm26171_vm0, %v12196_v37  ;;  %v24403_v34 = vpop.permute.xlu0 %12645  ;;  %v12437_v37 = vsel %vm732_vm4, %v24336_v0, %v24364_v10  ;;  %v12461_v42 = vsel %vm26191_vm11, %v12436_v30, 0 }
0x129b   :  { %13621 = vrot.lane.b32.xlu1 %v23989_v57, %s26180_s21 }
0x129c   :  { %13623 = vrot.lane.b32.xlu0 %v23997_v63, %s26180_s21 }
0x129d   :  { %12313 = vmatpush1.bf16.msra.mxu0 %v12220_v12  ;;  %v24410_v13 = vpop.permute.xlu1 %12657 }
0x129e   :  { %v24412_v61 = vpop.permute.xlu0 %12659  ;;  %19455 = vmatprep.subr.bf16.mxu0 %v24190_v44 }
0x129f   :  { %13611 = vrot.lane.b32.xlu1 %v24003_v62, %s26180_s21 }
0x12a0   :  { %18573 = vmatmul.mubr.msk.bf16.vlgmr.msra.gmra.mrb[176].mxu0 %vm11782_vm12, %v11693_v8  ;;  %13613 = vrot.lane.b32.xlu0 %v24005_v51, %s26180_s21 }
0x12a1   :  { %19456 = vmatpush3.bf16.msra.mxu0 %v24250_v40  ;;  %v24421_v35 = vpop.permute.xlu1 %12647  ;;  %19459 = vmatprep.mubr.msk.bf16.mxu0 %vm20927_vm5, %v24190_v44 }
0x12a2   :  { %v24425_v47 = vpop.permute.xlu0 %12649  ;;  %19457 = vmatprep.subr.bf16.mxu0 %v24190_v44 }
0x12a3   :  { %13625 = vrot.lane.b32.xlu1 %v24011_v14, %s26180_s21 }
0x12a4   :  { %13627 = vrot.lane.b32.xlu0 %v24013_v33, %s26180_s21 }
0x12a5   :  { %19458 = vmatpush3.bf16.msra.mxu0 %v12226_v25  ;;  %v24434_v40 = vpop.permute.xlu1 %12661 }
0x12a6   :  { %12469 = vmatprep.subr.bf16.mxu0 %v12427_v36  ;;  %v24439_v54 = vpop.permute.xlu0 %12663 }
0x12a7   :  { %13615 = vrot.lane.b32.xlu1 %v24001_v27, %s26180_s21 }
0x12a8   :  { %19460 = vmatmul.mubr.msk.bf16.vlgmr.msra.gmra.mrb[180].mxu0 %vm11782_vm12, %v11693_v8  ;;  %13846 = vrot.lane.b32.xlu0 %v23973_v32, %s26185_s5  ;;  %v12428_v8 = vsel %vm732_vm4, %v24274_v50, %v24289_v60  ;;  %v12455_v50 = vsel %vm26189_vm7, %v12434_v16, 0  ;;  %vm26193_vm4 = vmmov %vm26171_vm0 }
0x12a9   :  { %12470 = vmatpush1.bf16.msra.mxu0 %v12426_v26  ;;  %v24452_v28 = vpop.permute.xlu1 %12651  ;;  %12501 = vmatprep.mubr.bf16.mxu0 %v20914_v3  ;;  %v12467_v36 = vsel %vm26193_vm4, %v24364_v10, 0  ;;  %v12668_v26 = vsel %vm26194_vm13, %v24351_v9, %v24378_v39  ;;  %vm26195_vm0 = vmmov %vm26194_vm13 }
0x12aa   :  { %18575 = vmatprep.subr.msk.bf16.mxu0 %vm26186_vm9, %v12433_v2  ;;  %v24459_v49 = vpop.permute.xlu0 %12882  ;;  %v12667_v2 = vsel %vm26195_vm0, %v24371_v21, %v24351_v9  ;;  %vm26196_vm6 = vmmov %vm26195_vm0 }
0x12ab   :  { %13629 = vrot.lane.b32.xlu1 %v24023_v41, %s26180_s21  ;;  %v12673_v10 = vsel %vm26196_vm6, %v24396_v6, %v24383_v56  ;;  %vm26197_vm10 = vmmov %vm26195_vm0 }
0x12ac   :  { %13844 = vrot.lane.b32.xlu0 %v23969_v18, %s26185_s5  ;;  %vm26198_vm9 = vmmov %vm26193_vm4 }
0x12ad   :  { %12472 = vmatpush1.bf16.msra.mxu0 %v12449_v1  ;;  %v24466_v52 = vpop.permute.xlu1 %12665  ;;  %vm26199_vm14 = vmmov %vm26193_vm4 }
0x12ae   :  { %12510 = vmatprep.subr.bf16.mxu0 %v12429_v43  ;;  %v24474_v4 = vpop.permute.xlu0 %12880  ;;  %v12674_v43 = vsel %vm26197_vm10, %v24383_v56, %v24410_v13  ;;  %v12690_v21 = vsel %vm26199_vm14, %v12673_v10, 0  ;;  %vm26201_vm7 = vmmov %vm26195_vm0 }
0x12af   :  { %13848 = vrot.lane.b32.xlu1 %v23971_v24, %s26185_s5  ;;  %v12669_v16 = vsel %vm26201_vm7, %v24378_v39, %v24403_v34  ;;  %vm26203_vm11 = vmmov %vm26195_vm0 }
0x12b0   :  { %18576 = vmatmul.mubr.msk.bf16.vlgmr.msra.gmra.mrb[168].mxu0 %vm11782_vm12, %v11694_v45  ;;  %13860 = vrot.lane.b32.xlu0 %v23985_v46, %s26185_s5  ;;  %vm26204_vm13 = vmmov %vm26193_vm4 }
0x12b1   :  { %12511 = vmatpush1.bf16.msra.mxu0 %v12428_v8  ;;  %v24487_v20 = vpop.permute.xlu1 %12884  ;;  %12542 = vmatprep.mubr.bf16.mxu0 %v20914_v3  ;;  %vm26205_vm6 = vmmov %vm26195_vm0 }
0x12b2   :  { %18577 = vmatprep.subr.msk.bf16.mxu0 %vm26188_vm15, %v12435_v15  ;;  %v24494_v17 = vpop.permute.xlu0 %12896  ;;  %vm26200_vm15 = vmmov %vm26195_vm0  ;;  %v12671_v30 = vsel %vm26205_vm6, %v24421_v35, %v24425_v47 }
0x12b3   :  { %13858 = vrot.lane.b32.xlu1 %v23981_v53, %s26185_s5  ;;  %v12670_v56 = vsel %vm26200_vm15, %v24403_v34, %v24421_v35  ;;  %vm26206_vm10 = vmmov %vm26195_vm0 }
0x12b4   :  { %13850 = vrot.lane.b32.xlu0 %v23975_v31, %s26185_s5  ;;  %vm26208_vm14 = vmmov %vm26193_vm4 }
0x12b5   :  { %12513 = vmatpush1.bf16.msra.mxu0 %v12455_v50  ;;  %v24501_v60 = vpop.permute.xlu1 %12894  ;;  %vm26209_vm15 = vmmov %vm26193_vm4 }
0x12b6   :  { %12551 = vmatprep.subr.bf16.mxu0 %v12431_v38  ;;  %v24506_v59 = vpop.permute.xlu0 %12886  ;;  %v12676_v38 = vsel %vm26203_vm11, %v24412_v61, %v24434_v40  ;;  %vm26211_vm7 = vmmov %vm26193_vm4 }
0x12b7   :  { %13862 = vrot.lane.b32.xlu1 %v23989_v57, %s26185_s5  ;;  %v12708_v10 = vsel %vm26211_vm7, %v24466_v52, 0 }
0x12b8   :  { %18578 = vmatmul.mubr.msk.bf16.vlgmr.msra.gmra.mrb[172].mxu0 %vm11782_vm12, %v11694_v45  ;;  %13864 = vrot.lane.b32.xlu0 %v23997_v63, %s26185_s5 }
0x12b9   :  { %12552 = vmatpush1.bf16.msra.mxu0 %v12430_v22  ;;  %v24519_v11 = vpop.permute.xlu1 %12898  ;;  %12583 = vmatprep.mubr.bf16.mxu0 %v20914_v3 }
0x12ba   :  { %18579 = vmatprep.subr.msk.bf16.mxu0 %vm26190_vm8, %v12437_v37  ;;  %v24526_v12 = vpop.permute.xlu0 %12900  ;;  %vm26202_vm8 = vmmov %vm26195_vm0  ;;  %v12677_v37 = vsel %vm26206_vm10, %v24434_v40, %v24439_v54 }
0x12bb   :  { %13852 = vrot.lane.b32.xlu1 %v24003_v62, %s26185_s5  ;;  %v12675_v15 = vsel %vm26202_vm8, %v24410_v13, %v24412_v61  ;;  %v12672_v13 = vsel %vm26195_vm0, %v24425_v47, %v24452_v28  ;;  %v12702_v35 = vsel %vm26209_vm15, %v12677_v37, 0  ;;  %vm26212_vm8 = vcmask 875520  }
0x12bc   :  { %13854 = vrot.lane.b32.xlu0 %v24005_v51, %s26185_s5  ;;  %v12696_v39 = vsel %vm26204_vm13, %v12675_v15, 0  ;;  %vm26213_vm11 = vmmov %vm26212_vm8 }
0x12bd   :  { %12554 = vmatpush1.bf16.msra.mxu0 %v12461_v42  ;;  %v24533_v55 = vpop.permute.xlu1 %12888 }
0x12be   :  { %v24535_v58 = vpop.permute.xlu0 %12890  ;;  %19463 = vmatprep.subr.bf16.mxu0 %v24190_v44 }
0x12bf   :  { %13866 = vrot.lane.b32.xlu1 %v24011_v14, %s26185_s5 }
0x12c0   :  { %18580 = vmatmul.mubr.msk.bf16.vlgmr.msra.gmra.mrb[176].mxu0 %vm11782_vm12, %v11694_v45  ;;  %13868 = vrot.lane.b32.xlu0 %v24013_v33, %s26185_s5 }
0x12c1   :  { %19464 = vmatpush3.bf16.msra.mxu0 %v24343_v7  ;;  %v24544_v0 = vpop.permute.xlu1 %12902  ;;  %19467 = vmatprep.mubr.msk.bf16.mxu0 %vm20927_vm5, %v24190_v44 }
0x12c2   :  { %v24548_v25 = vpop.permute.xlu0 %12904  ;;  %19465 = vmatprep.subr.bf16.mxu0 %v24190_v44 }
0x12c3   :  { %13856 = vrot.lane.b32.xlu1 %v24001_v27, %s26185_s5 }
0x12c4   :  { %14087 = vrot.lane.b32.xlu0 %v23973_v32, %s26192_s30 }
0x12c5   :  { %19466 = vmatpush3.bf16.msra.mxu0 %v12467_v36  ;;  %v24557_v7 = vpop.permute.xlu1 %12892 }
0x12c6   :  { %12710 = vmatprep.subr.bf16.mxu0 %v12668_v26  ;;  %v24562_v48 = vpop.permute.xlu0 %13123 }
0x12c7   :  { %13870 = vrot.lane.b32.xlu1 %v24023_v41, %s26185_s5 }
0x12c8   :  { %19468 = vmatmul.mubr.msk.bf16.vlgmr.msra.gmra.mrb[180].mxu0 %vm11782_vm12, %v11694_v45  ;;  %14085 = vrot.lane.b32.xlu0 %v23969_v18, %s26192_s30  ;;  %v11695_v45 = vld [vmem:[%s26060_s12 + $0x10] sm:$0xf] }
0x12c9   :  { %12711 = vmatpush1.bf16.msra.mxu0 %v12667_v2  ;;  %v24575_v1 = vpop.permute.xlu1 %12906  ;;  %12742 = vmatprep.mubr.bf16.mxu0 %v20914_v3 }
0x12ca   :  { %18582 = vmatprep.subr.msk.bf16.mxu0 %vm26198_vm9, %v12674_v43  ;;  %v24582_v9 = vpop.permute.xlu0 %13121  ;;  %vm26207_vm9 = vmmov %vm26195_vm0  ;;  %v12909_v43 = vsel %vm26212_vm8, %v24459_v49, %v24487_v20 }
0x12cb   :  { %14089 = vrot.lane.b32.xlu1 %v23971_v24, %s26192_s30  ;;  %v12678_v36 = vsel %vm26207_vm9, %v24439_v54, %v24466_v52  ;;  %vm26216_vm0 = vmmov %vm26211_vm7 }
0x12cc   :  { %14101 = vrot.lane.b32.xlu0 %v23985_v46, %s26192_s30  ;;  %vm26217_vm6 = vmmov %vm26216_vm0 }
0x12cd   :  { %12713 = vmatpush1.bf16.msra.mxu0 %v12690_v21  ;;  %v24589_v6 = vpop.permute.xlu1 %13125  ;;  %vm26222_vm7 = vmmov %vm26216_vm0 }
0x12ce   :  { %12751 = vmatprep.subr.bf16.mxu0 %v12670_v56  ;;  %v24597_v8 = vpop.permute.xlu0 %13137  ;;  %v12908_v56 = vsel %vm26213_vm11, %v24474_v4, %v24459_v49 }
0x12cf   :  { %14099 = vrot.lane.b32.xlu1 %v23981_v53, %s26192_s30 }
0x12d0   :  { %18583 = vmatmul.mubr.msk.bf16.vlgmr.msra.gmra.mrb[168].mxu0 %vm11782_vm12, %v11695_v45  ;;  %14091 = vrot.lane.b32.xlu0 %v23975_v31, %s26192_s30 }
0x12d1   :  { %12752 = vmatpush1.bf16.msra.mxu0 %v12669_v16  ;;  %v24610_v50 = vpop.permute.xlu1 %13135  ;;  %12783 = vmatprep.mubr.bf16.mxu0 %v20914_v3 }
0x12d2   :  { %18584 = vmatprep.subr.msk.bf16.mxu0 %vm26193_vm4, %v12676_v38  ;;  %v24617_v22 = vpop.permute.xlu0 %13127  ;;  %vm26214_vm4 = vmmov %vm26212_vm8 }
0x12d3   :  { %14103 = vrot.lane.b32.xlu1 %v23989_v57, %s26192_s30  ;;  %v12914_v52 = vsel %vm26214_vm4, %v24501_v60, %v24494_v17  ;;  %vm26215_vm13 = vmmov %vm26214_vm4 }
0x12d4   :  { %14105 = vrot.lane.b32.xlu0 %v23997_v63, %s26192_s30  ;;  %v12915_v15 = vsel %vm26215_vm13, %v24494_v17, %v24519_v11  ;;  %v12931_v4 = vsel %vm26217_vm6, %v12914_v52, 0  ;;  %vm26218_vm10 = vmmov %vm26214_vm4 }
0x12d5   :  { %12754 = vmatpush1.bf16.msra.mxu0 %v12696_v39  ;;  %v24624_v34 = vpop.permute.xlu1 %13139  ;;  %v12911_v17 = vsel %vm26218_vm10, %v24506_v59, %v24533_v55  ;;  %vm26219_vm9 = vmmov %vm26214_vm4 }
0x12d6   :  { %12792 = vmatprep.subr.bf16.mxu0 %v12672_v13  ;;  %v24629_v61 = vpop.permute.xlu0 %13141  ;;  %v12910_v39 = vsel %vm26219_vm9, %v24487_v20, %v24506_v59  ;;  %vm26221_vm15 = vmmov %vm26214_vm4 }
0x12d7   :  { %14093 = vrot.lane.b32.xlu1 %v24003_v62, %s26192_s30  ;;  %v12917_v37 = vsel %vm26221_vm15, %v24526_v12, %v24544_v0  ;;  %vm26223_vm8 = vmmov %vm26216_vm0 }
0x12d8   :  { %18585 = vmatmul.mubr.msk.bf16.vlgmr.msra.gmra.mrb[172].mxu0 %vm11782_vm12, %v11695_v45  ;;  %14095 = vrot.lane.b32.xlu0 %v24005_v51, %s26192_s30  ;;  %vm26224_vm11 = vmmov %vm26214_vm4 }
0x12d9   :  { %12793 = vmatpush1.bf16.msra.mxu0 %v12671_v30  ;;  %v24642_v42 = vpop.permute.xlu1 %13129  ;;  %12824 = vmatprep.mubr.bf16.mxu0 %v20914_v3  ;;  %vm26225_vm13 = vmmov %vm26214_vm4 }
0x12da   :  { %18586 = vmatprep.subr.msk.bf16.mxu0 %vm26208_vm14, %v12678_v36  ;;  %v24649_v26 = vpop.permute.xlu0 %13131  ;;  %vm26220_vm14 = vmmov %vm26214_vm4 }
0x12db   :  { %14107 = vrot.lane.b32.xlu1 %v24011_v14, %s26192_s30  ;;  %v12916_v13 = vsel %vm26220_vm14, %v24519_v11, %v24526_v12  ;;  %v12913_v11 = vsel %vm26224_vm11, %v24535_v58, %v24557_v7  ;;  %vm26228_vm10 = vmmov %vm26217_vm6  ;;  %vm26230_vm14 = vcmask 867328  }
0x12dc   :  { %14109 = vrot.lane.b32.xlu0 %v24013_v33, %s26192_s30  ;;  %v12937_v20 = vsel %vm26223_vm8, %v12916_v13, 0  ;;  %vm26229_vm9 = vmmov %vm26217_vm6 }
0x12dd   :  { %12795 = vmatpush1.bf16.msra.mxu0 %v12702_v35  ;;  %v24656_v47 = vpop.permute.xlu1 %13143  ;;  %v12912_v35 = vsel %vm26214_vm4, %v24533_v55, %v24535_v58  ;;  %vm26231_vm15 = vmmov %vm26230_vm14 }
0x12de   :  { %v24658_v40 = vpop.permute.xlu0 %13145  ;;  %19471 = vmatprep.subr.bf16.mxu0 %v24190_v44  ;;  %v13149_v13 = vsel %vm26231_vm15, %v24582_v9, %v24562_v48  ;;  %vm26234_vm11 = vmmov %vm26217_vm6 }
0x12df   :  { %14097 = vrot.lane.b32.xlu1 %v24001_v27, %s26192_s30 }
0x12e0   :  { %18587 = vmatmul.mubr.msk.bf16.vlgmr.msra.gmra.mrb[176].mxu0 %vm11782_vm12, %v11695_v45  ;;  %14328 = vrot.lane.b32.xlu0 %v23973_v32, %s26210_s1 }
0x12e1   :  { %19472 = vmatpush3.bf16.msra.mxu0 %v24452_v28  ;;  %v24667_v54 = vpop.permute.xlu1 %13133  ;;  %19475 = vmatprep.mubr.msk.bf16.mxu0 %vm20927_vm5, %v24190_v44 }
0x12e2   :  { %v24671_v2 = vpop.permute.xlu0 %13364  ;;  %19473 = vmatprep.subr.bf16.mxu0 %v24190_v44 }
0x12e3   :  { %14111 = vrot.lane.b32.xlu1 %v24023_v41, %s26192_s30 }
0x12e4   :  { %14326 = vrot.lane.b32.xlu0 %v23969_v18, %s26210_s1 }
0x12e5   :  { %19474 = vmatpush3.bf16.msra.mxu0 %v12708_v10  ;;  %v24680_v28 = vpop.permute.xlu1 %13147  ;;  %v12918_v10 = vsel %vm26225_vm13, %v24544_v0, %v24548_v25 }
0x12e6   :  { %12951 = vmatprep.subr.bf16.mxu0 %v12909_v43  ;;  %v24685_v21 = vpop.permute.xlu0 %13362  ;;  %v12943_v55 = vsel %vm26228_vm10, %v12918_v10, 0 }
0x12e7   :  { %14330 = vrot.lane.b32.xlu1 %v23971_v24, %s26210_s1 }
0x12e8   :  { %19476 = vmatmul.mubr.msk.bf16.vlgmr.msra.gmra.mrb[180].mxu0 %vm11782_vm12, %v11695_v45  ;;  %14342 = vrot.lane.b32.xlu0 %v23985_v46, %s26210_s1  ;;  %v11696_v45 = vld [vmem:[%s26060_s12 + $0x14] sm:$0xf] }
0x12e9   :  { %12952 = vmatpush1.bf16.msra.mxu0 %v12908_v56  ;;  %v24698_v16 = vpop.permute.xlu1 %13366  ;;  %12983 = vmatprep.mubr.bf16.mxu0 %v20914_v3 }
0x12ea   :  { %18589 = vmatprep.subr.msk.bf16.mxu0 %vm26216_vm0, %v12915_v15  ;;  %v24705_v49 = vpop.permute.xlu0 %13378  ;;  %vm26226_vm0 = vmmov %vm26214_vm4 }
0x12eb   :  { %14340 = vrot.lane.b32.xlu1 %v23981_v53, %s26210_s1  ;;  %v12919_v56 = vsel %vm26226_vm0, %v24548_v25, %v24575_v1  ;;  %vm26235_vm4 = vmmov %vm26217_vm6 }
0x12ec   :  { %14332 = vrot.lane.b32.xlu0 %v23975_v31, %s26210_s1 }
0x12ed   :  { %12954 = vmatpush1.bf16.msra.mxu0 %v12931_v4  ;;  %v24712_v60 = vpop.permute.xlu1 %13376  ;;  %v12949_v4 = vsel %vm26229_vm9, %v24575_v1, 0  ;;  %vm26240_vm9 = vmmov %vm26235_vm4 }
0x12ee   :  { %12992 = vmatprep.subr.bf16.mxu0 %v12911_v17  ;;  %v24720_v38 = vpop.permute.xlu0 %13368  ;;  %v13150_v17 = vsel %vm26230_vm14, %v24562_v48, %v24589_v6 }
0x12ef   :  { %14344 = vrot.lane.b32.xlu1 %v23989_v57, %s26210_s1 }
0x12f0   :  { %18590 = vmatmul.mubr.msk.bf16.vlgmr.msra.gmra.mrb[168].mxu0 %vm11782_vm12, %v11696_v45  ;;  %14346 = vrot.lane.b32.xlu0 %v23997_v63, %s26210_s1 }
0x12f1   :  { %12993 = vmatpush1.bf16.msra.mxu0 %v12910_v39  ;;  %v24733_v30 = vpop.permute.xlu1 %13380  ;;  %13024 = vmatprep.mubr.bf16.mxu0 %v20914_v3 }
0x12f2   :  { %18591 = vmatprep.subr.msk.bf16.mxu0 %vm26222_vm7, %v12917_v37  ;;  %v24740_v36 = vpop.permute.xlu0 %13382  ;;  %vm26232_vm7 = vmmov %vm26230_vm14 }
0x12f3   :  { %14334 = vrot.lane.b32.xlu1 %v24003_v62, %s26210_s1  ;;  %v13155_v1 = vsel %vm26232_vm7, %v24610_v50, %v24597_v8  ;;  %vm26233_vm8 = vmmov %vm26232_vm7 }
0x12f4   :  { %14336 = vrot.lane.b32.xlu0 %v24005_v51, %s26210_s1  ;;  %v13172_v9 = vsel %vm26235_vm4, %v13155_v1, 0  ;;  %vm26236_vm13 = vmmov %vm26232_vm7 }
0x12f5   :  { %12995 = vmatpush1.bf16.msra.mxu0 %v12937_v20  ;;  %v24747_v59 = vpop.permute.xlu1 %13370  ;;  %v13156_v20 = vsel %vm26233_vm8, %v24597_v8, %v24624_v34  ;;  %v13152_v8 = vsel %vm26236_vm13, %v24617_v22, %v24642_v42  ;;  %vm26237_vm0 = vmmov %vm26232_vm7 }
0x12f6   :  { %13033 = vmatprep.subr.bf16.mxu0 %v12913_v11  ;;  %v24752_v12 = vpop.permute.xlu0 %13372  ;;  %vm26239_vm10 = vmmov %vm26237_vm0 }
0x12f7   :  { %14348 = vrot.lane.b32.xlu1 %v24011_v14, %s26210_s1  ;;  %vm26241_vm14 = vmmov %vm26235_vm4 }
0x12f8   :  { %18592 = vmatmul.mubr.msk.bf16.vlgmr.msra.gmra.mrb[172].mxu0 %vm11782_vm12, %v11696_v45  ;;  %14350 = vrot.lane.b32.xlu0 %v24013_v33, %s26210_s1  ;;  %vm26242_vm15 = vmmov %vm26237_vm0 }
0x12f9   :  { %13034 = vmatpush1.bf16.msra.mxu0 %v12912_v35  ;;  %v24765_v43 = vpop.permute.xlu1 %13384  ;;  %13065 = vmatprep.mubr.bf16.mxu0 %v20914_v3  ;;  %v13151_v35 = vsel %vm26237_vm0, %v24589_v6, %v24617_v22  ;;  %vm26244_vm7 = vmmov %vm26237_vm0 }
0x12fa   :  { %18593 = vmatprep.subr.msk.bf16.mxu0 %vm26217_vm6, %v12919_v56  ;;  %v24772_v52 = vpop.permute.xlu0 %13386  ;;  %vm26238_vm6 = vmmov %vm26237_vm0 }
0x12fb   :  { %14338 = vrot.lane.b32.xlu1 %v24001_v27, %s26210_s1  ;;  %v13157_v10 = vsel %vm26238_vm6, %v24624_v34, %v24629_v61  ;;  %v13154_v34 = vsel %vm26242_vm15, %v24649_v26, %v24667_v54  ;;  %vm26245_vm8 = vmmov %vm26237_vm0  ;;  %vm26249_vm6 = vcmask 859136  }
0x12fc   :  { %14569 = vrot.lane.b32.xlu0 %v23973_v32, %s26227_s27  ;;  %v13178_v6 = vsel %vm26241_vm14, %v13157_v10, 0  ;;  %vm26247_vm13 = vmmov %vm26235_vm4  ;;  %v13391_v10 = vsel %vm26249_vm6, %v24671_v2, %v24698_v16 }
0x12fd   :  { %13036 = vmatpush1.bf16.msra.mxu0 %v12943_v55  ;;  %v24779_v58 = vpop.permute.xlu1 %13374  ;;  %v13158_v55 = vsel %vm26239_vm10, %v24629_v61, %v24656_v47  ;;  %vm26250_vm10 = vmmov %vm26249_vm6 }
0x12fe   :  { %v24781_v0 = vpop.permute.xlu0 %13605  ;;  %19479 = vmatprep.subr.bf16.mxu0 %v24190_v44  ;;  %vm26252_vm14 = vmmov %vm26249_vm6 }
0x12ff   :  { %14352 = vrot.lane.b32.xlu1 %v24023_v41, %s26210_s1 }
0x1300   :  { %18594 = vmatmul.mubr.msk.bf16.vlgmr.msra.gmra.mrb[176].mxu0 %vm11782_vm12, %v11696_v45  ;;  %14567 = vrot.lane.b32.xlu0 %v23969_v18, %s26227_s27 }
0x1301   :  { %19480 = vmatpush3.bf16.msra.mxu0 %v24557_v7  ;;  %v24790_v25 = vpop.permute.xlu1 %13388  ;;  %19483 = vmatprep.mubr.msk.bf16.mxu0 %vm20927_vm5, %v24190_v44 }
0x1302   :  { %v24794_v15 = vpop.permute.xlu0 %13603  ;;  %19481 = vmatprep.subr.bf16.mxu0 %v24190_v44 }
0x1303   :  { %14571 = vrot.lane.b32.xlu1 %v23971_v24, %s26227_s27 }
0x1304   :  { %14583 = vrot.lane.b32.xlu0 %v23985_v46, %s26227_s27 }
0x1305   :  { %19482 = vmatpush3.bf16.msra.mxu0 %v12949_v4  ;;  %v24803_v7 = vpop.permute.xlu1 %13607 }
0x1306   :  { %13192 = vmatprep.subr.bf16.mxu0 %v13150_v17  ;;  %v24808_v39 = vpop.permute.xlu0 %13619  ;;  %v13153_v17 = vsel %vm26244_vm7, %v24642_v42, %v24649_v26 }
0x1307   :  { %14581 = vrot.lane.b32.xlu1 %v23981_v53, %s26227_s27 }
0x1308   :  { %19484 = vmatmul.mubr.msk.bf16.vlgmr.msra.gmra.mrb[180].mxu0 %vm11782_vm12, %v11696_v45  ;;  %14573 = vrot.lane.b32.xlu0 %v23975_v31, %s26227_s27  ;;  %v11697_v45 = vld [vmem:[%s26060_s12 + $0x18] sm:$0xf] }
0x1309   :  { %13193 = vmatpush1.bf16.msra.mxu0 %v13149_v13  ;;  %v24821_v37 = vpop.permute.xlu1 %13617  ;;  %13224 = vmatprep.mubr.bf16.mxu0 %v20914_v3  ;;  %v13159_v13 = vsel %vm26245_vm8, %v24656_v47, %v24658_v40  ;;  %vm26255_vm8 = vmmov %vm26249_vm6 }
0x130a   :  { %18596 = vmatprep.subr.msk.bf16.mxu0 %vm26234_vm11, %v13156_v20  ;;  %v24828_v48 = vpop.permute.xlu0 %13609  ;;  %vm26246_vm11 = vmmov %vm26237_vm0  ;;  %v13184_v42 = vsel %vm26247_vm13, %v13159_v13, 0 }
0x130b   :  { %14585 = vrot.lane.b32.xlu1 %v23989_v57, %s26227_s27  ;;  %v13160_v20 = vsel %vm26246_vm11, %v24658_v40, %v24680_v28  ;;  %vm26248_vm0 = vmmov %vm26235_vm4 }
0x130c   :  { %14587 = vrot.lane.b32.xlu0 %v23997_v63, %s26227_s27  ;;  %vm26253_vm15 = vmmov %vm26248_vm0 }
0x130d   :  { %13195 = vmatpush1.bf16.msra.mxu0 %v13172_v9  ;;  %v24835_v50 = vpop.permute.xlu1 %13621  ;;  %vm26254_vm7 = vmmov %vm26248_vm0 }
0x130e   :  { %13233 = vmatprep.subr.bf16.mxu0 %v13152_v8  ;;  %v24843_v11 = vpop.permute.xlu0 %13623  ;;  %vm26256_vm11 = vmmov %vm26249_vm6 }
0x130f   :  { %14575 = vrot.lane.b32.xlu1 %v24003_v62, %s26227_s27  ;;  %v13392_v13 = vsel %vm26256_vm11, %v24698_v16, %v24720_v38  ;;  %vm26267_vm11 = vmmov %vm26248_vm0 }
0x1310   :  { %18597 = vmatmul.mubr.msk.bf16.vlgmr.msra.gmra.mrb[168].mxu0 %vm11782_vm12, %v11697_v45  ;;  %14577 = vrot.lane.b32.xlu0 %v24005_v51, %s26227_s27 }
0x1311   :  { %13234 = vmatpush1.bf16.msra.mxu0 %v13151_v35  ;;  %v24856_v56 = vpop.permute.xlu1 %13611  ;;  %13265 = vmatprep.mubr.bf16.mxu0 %v20914_v3  ;;  %v13190_v35 = vsel %vm26248_vm0, %v24680_v28, 0 }
0x1312   :  { %18598 = vmatprep.subr.msk.bf16.mxu0 %vm26240_vm9, %v13158_v55  ;;  %v24863_v4 = vpop.permute.xlu0 %13613  ;;  %v13390_v55 = vsel %vm26250_vm10, %v24685_v21, %v24671_v2  ;;  %vm26251_vm9 = vmmov %vm26249_vm6 }
0x1313   :  { %14589 = vrot.lane.b32.xlu1 %v24011_v14, %s26227_s27  ;;  %v13396_v28 = vsel %vm26251_vm9, %v24712_v60, %v24705_v49  ;;  %v13393_v60 = vsel %vm26255_vm8, %v24720_v38, %v24747_v59  ;;  %vm26266_vm8 = vmmov %vm26248_vm0 }
0x1314   :  { %14591 = vrot.lane.b32.xlu0 %v24013_v33, %s26227_s27  ;;  %v13413_v2 = vsel %vm26254_vm7, %v13396_v28, 0  ;;  %vm26265_vm7 = vmmov %vm26248_vm0 }
0x1315   :  { %13236 = vmatpush1.bf16.msra.mxu0 %v13178_v6  ;;  %v24870_v22 = vpop.permute.xlu1 %13625 }
0x1316   :  { %13274 = vmatprep.subr.bf16.mxu0 %v13154_v34  ;;  %v24875_v61 = vpop.permute.xlu0 %13627 }
0x1317   :  { %14579 = vrot.lane.b32.xlu1 %v24001_v27, %s26227_s27 }
0x1318   :  { %18599 = vmatmul.mubr.msk.bf16.vlgmr.msra.gmra.mrb[172].mxu0 %vm11782_vm12, %v11697_v45  ;;  %14810 = vrot.lane.b32.xlu0 %v23973_v32, %s26243_s7 }
0x1319   :  { %13275 = vmatpush1.bf16.msra.mxu0 %v13153_v17  ;;  %v24888_v1 = vpop.permute.xlu1 %13615  ;;  %13306 = vmatprep.mubr.bf16.mxu0 %v20914_v3  ;;  %v13397_v17 = vsel %vm26252_vm14, %v24705_v49, %v24733_v30  ;;  %v11698_v49 = vld [vmem:[%s26060_s12 + $0x1c] sm:$0xf] }
0x131a   :  { %18600 = vmatprep.subr.msk.bf16.mxu0 %vm26235_vm4, %v13160_v20  ;;  %v24895_v9 = vpop.permute.xlu0 %13846  ;;  %vm26257_vm4 = vmmov %vm26249_vm6 }
0x131b   :  { %14593 = vrot.lane.b32.xlu1 %v24023_v41, %s26227_s27  ;;  %v13398_v20 = vsel %vm26257_vm4, %v24733_v30, %v24740_v36  ;;  %vm26258_vm13 = vmmov %vm26257_vm4 }
0x131c   :  { %14808 = vrot.lane.b32.xlu0 %v23969_v18, %s26243_s7  ;;  %vm26260_vm6 = vmmov %vm26248_vm0 }
0x131d   :  { %13277 = vmatpush1.bf16.msra.mxu0 %v13184_v42  ;;  %v24902_v26 = vpop.permute.xlu1 %13629  ;;  %v13419_v16 = vsel %vm26260_vm6, %v13398_v20, 0  ;;  %vm26261_vm10 = vmmov %vm26257_vm4 }
0x131e   :  { %v24904_v47 = vpop.permute.xlu0 %13844  ;;  %19487 = vmatprep.subr.bf16.mxu0 %v24190_v44  ;;  %v13395_v30 = vsel %vm26261_vm10, %v24752_v12, %v24779_v58  ;;  %vm26262_vm9 = vmmov %vm26257_vm4 }
0x131f   :  { %14812 = vrot.lane.b32.xlu1 %v23971_v24, %s26243_s7  ;;  %vm26263_vm14 = vmmov %vm26257_vm4 }
0x1320   :  { %18601 = vmatmul.mubr.msk.bf16.vlgmr.msra.gmra.mrb[176].mxu0 %vm11782_vm12, %v11697_v45  ;;  %14824 = vrot.lane.b32.xlu0 %v23985_v46, %s26243_s7  ;;  %vm26272_vm10 = vmmov %vm26265_vm7 }
0x1321   :  { %19488 = vmatpush3.bf16.msra.mxu0 %v24667_v54  ;;  %v24913_v40 = vpop.permute.xlu1 %13848  ;;  %19491 = vmatprep.mubr.msk.bf16.mxu0 %vm20927_vm5, %v24190_v44 }
0x1322   :  { %v24917_v8 = vpop.permute.xlu0 %13860  ;;  %19489 = vmatprep.subr.bf16.mxu0 %v24190_v44 }
0x1323   :  { %14822 = vrot.lane.b32.xlu1 %v23981_v53, %s26243_s7 }
0x1324   :  { %14814 = vrot.lane.b32.xlu0 %v23975_v31, %s26243_s7 }
0x1325   :  { %19490 = vmatpush3.bf16.msra.mxu0 %v13190_v35  ;;  %v24926_v54 = vpop.permute.xlu1 %13858  ;;  %v13399_v35 = vsel %vm26258_vm13, %v24740_v36, %v24765_v43  ;;  %v13394_v36 = vsel %vm26262_vm9, %v24747_v59, %v24752_v12  ;;  %vm26273_vm9 = vmmov %vm26265_vm7 }
0x1326   :  { %13433 = vmatprep.subr.bf16.mxu0 %v13391_v10  ;;  %v24936_v6 = vpop.permute.xlu0 %13850 }
0x1327   :  { %14826 = vrot.lane.b32.xlu1 %v23989_v57, %s26243_s7 }
0x1328   :  { %19492 = vmatmul.mubr.msk.bf16.vlgmr.msra.gmra.mrb[180].mxu0 %vm11782_vm12, %v11697_v45  ;;  %14828 = vrot.lane.b32.xlu0 %v23997_v63, %s26243_s7 }
0x1329   :  { %13434 = vmatpush1.bf16.msra.mxu0 %v13390_v55  ;;  %v24944_v34 = vpop.permute.xlu1 %13862  ;;  %13465 = vmatprep.mubr.bf16.mxu0 %v20914_v3  ;;  %v13400_v55 = vsel %vm26263_vm14, %v24765_v43, %v24772_v52 }
0x132a   :  { %18603 = vmatprep.subr.msk.bf16.mxu0 %vm26253_vm15, %v13397_v17  ;;  %v24964_v45 = vpop.permute.xlu0 %13864  ;;  %vm26264_vm15 = vmmov %vm26257_vm4  ;;  %v13425_v59 = vsel %vm26266_vm8, %v13400_v55, 0  ;;  %vm26268_vm4 = vcmask 719872  }
0x132b   :  { %14816 = vrot.lane.b32.xlu1 %v24003_v62, %s26243_s7  ;;  %v13401_v28 = vsel %vm26264_vm15, %v24772_v52, %v24790_v25  ;;  %v13431_v52 = vsel %vm26267_vm11, %v24790_v25, 0  ;;  %vm26269_vm13 = vmmov %vm26268_vm4 }
0x132c   :  { %14818 = vrot.lane.b32.xlu0 %v24005_v51, %s26243_s7  ;;  %vm26279_vm11 = vmmov %vm26273_vm9 }
0x132d   :  { %13436 = vmatpush1.bf16.msra.mxu0 %v13413_v2  ;;  %v24956_v21 = vpop.permute.xlu1 %13852 }
0x132e   :  { %13474 = vmatprep.subr.bf16.mxu0 %v13393_v60  ;;  %v24986_v10 = vpop.permute.xlu0 %13854  ;;  %v13632_v60 = vsel %vm26268_vm4, %v24781_v0, %v24803_v7 }
0x132f   :  { %14830 = vrot.lane.b32.xlu1 %v24011_v14, %s26243_s7 }
0x1330   :  { %18604 = vmatmul.mubr.msk.bf16.vlgmr.msra.gmra.mrb[168].mxu0 %vm11782_vm12, %v11698_v49  ;;  %14832 = vrot.lane.b32.xlu0 %v24013_v33, %s26243_s7 }
0x1331   :  { %13475 = vmatpush1.bf16.msra.mxu0 %v13392_v13  ;;  %v24977_v42 = vpop.permute.xlu1 %13866  ;;  %13506 = vmatprep.mubr.bf16.mxu0 %v20914_v3 }
0x1332   :  { %18605 = vmatprep.subr.msk.bf16.mxu0 %vm26248_vm0, %v13399_v35  ;;  %v25011_v17 = vpop.permute.xlu0 %13868  ;;  %vm26270_vm0 = vmmov %vm26268_vm4 }
0x1333   :  { %14820 = vrot.lane.b32.xlu1 %v24001_v27, %s26243_s7  ;;  %v13637_v25 = vsel %vm26270_vm0, %v24821_v37, %v24808_v39  ;;  %vm26271_vm6 = vmmov %vm26270_vm0  ;;  %v11699_v37 = vld [vmem:[%s26060_s12 + $0x20] sm:$0xf] }
0x1334   :  { %15051 = vrot.lane.b32.xlu0 %v23973_v32, %s26259_s22  ;;  %v13638_v20 = vsel %vm26271_vm6, %v24808_v39, %v24835_v50  ;;  %vm26274_vm14 = vmmov %vm26270_vm0 }
0x1335   :  { %13477 = vmatpush1.bf16.msra.mxu0 %v13419_v16  ;;  %v24991_v38 = vpop.permute.xlu1 %13856  ;;  %v13634_v39 = vsel %vm26274_vm14, %v24828_v48, %v24856_v56  ;;  %vm26276_vm15 = vmmov %vm26270_vm0 }
0x1336   :  { %13515 = vmatprep.subr.bf16.mxu0 %v13395_v30  ;;  %v25024_v12 = vpop.permute.xlu0 %14087  ;;  %v13633_v35 = vsel %vm26276_vm15, %v24803_v7, %v24828_v48  ;;  %vm26278_vm8 = vmmov %vm26270_vm0 }
0x1337   :  { %14834 = vrot.lane.b32.xlu1 %v24023_v41, %s26243_s7  ;;  %v13640_v30 = vsel %vm26278_vm8, %v24843_v11, %v24870_v22  ;;  %vm26280_vm4 = vmmov %vm26273_vm9 }
0x1338   :  { %18606 = vmatmul.mubr.msk.bf16.vlgmr.msra.gmra.mrb[172].mxu0 %vm11782_vm12, %v11698_v49  ;;  %15049 = vrot.lane.b32.xlu0 %v23969_v18, %s26259_s22  ;;  %vm26282_vm6 = vmmov %vm26270_vm0 }
0x1339   :  { %13516 = vmatpush1.bf16.msra.mxu0 %v13394_v36  ;;  %13547 = vmatprep.mubr.bf16.mxu0 %v20914_v3  ;;  %v25013_v2 = vpop.permute.xlu1 %13870  ;;  %vm26285_vm14 = vmmov %vm26280_vm4 }
0x133a   :  { %18607 = vmatprep.subr.msk.bf16.mxu0 %vm26265_vm7, %v13401_v28  ;;  %vm26277_vm7 = vmmov %vm26270_vm0 }
0x133b   :  { %15053 = vrot.lane.b32.xlu1 %v23971_v24, %s26259_s22  ;;  %v13639_v16 = vsel %vm26277_vm7, %v24835_v50, %v24843_v11  ;;  %v13641_v11 = vsel %vm26282_vm6, %v24870_v22, %v24875_v61  ;;  %v25136_v22 = vld [vmem:[#allocation4] sm:$0xff]  ;;  %vm26286_vm15 = vmmov %vm26280_vm4  ;;  %vm26287_vm7 = vcmask 711680  }
0x133c   :  { %15065 = vrot.lane.b32.xlu0 %v23985_v46, %s26259_s22  ;;  %vm26288_vm8 = vmmov %vm26287_vm7 }
0x133d   :  { %13518 = vmatpush1.bf16.msra.mxu0 %v13425_v59  ;;  %v25026_v43 = vpop.permute.xlu1 %14089 }
0x133e   :  { %19495 = vmatprep.subr.bf16.mxu0 %v24190_v44 }
0x133f   :  { %15063 = vrot.lane.b32.xlu1 %v23981_v53, %s26259_s22 }
0x1340   :  { %18608 = vmatmul.mubr.msk.bf16.vlgmr.msra.gmra.mrb[176].mxu0 %vm11782_vm12, %v11698_v49  ;;  %15055 = vrot.lane.b32.xlu0 %v23975_v31, %s26259_s22 }
0x1341   :  { %19496 = vmatpush3.bf16.msra.mxu0 %v24779_v58  ;;  %19499 = vmatprep.mubr.msk.bf16.mxu0 %vm20927_vm5, %v24190_v44  ;;  %v25044_v58 = vpop.permute.xlu0 %14085  ;;  %v25046_v13 = vpop.permute.xlu1 %14099 }
0x1342   :  { %19497 = vmatprep.subr.bf16.mxu0 %v24190_v44  ;;  %v13631_v44 = vsel %vm26269_vm13, %v24794_v15, %v24781_v0  ;;  %v13654_v0 = vsel %vm26273_vm9, %v13637_v25, 0  ;;  %vm26281_vm13 = vmmov %vm26270_vm0 }
0x1343   :  { %15067 = vrot.lane.b32.xlu1 %v23989_v57, %s26259_s22  ;;  %v13636_v7 = vsel %vm26281_vm13, %v24863_v4, %v24888_v1  ;;  %vm26284_vm9 = vmmov %vm26280_vm4 }
0x1344   :  { %15069 = vrot.lane.b32.xlu0 %v23997_v63, %s26259_s22  ;;  %vm26291_vm13 = vmmov %vm26284_vm9 }
0x1345   :  { %19498 = vmatpush3.bf16.msra.mxu0 %v13431_v52  ;;  %v25067_v15 = vpop.permute.xlu0 %14101 }
0x1346   :  { %13674 = vmatprep.subr.bf16.mxu0 %v13632_v60 }
0x1347   :  { %15057 = vrot.lane.b32.xlu1 %v24003_v62, %s26259_s22 }
0x1348   :  { %19500 = vmatmul.mubr.msk.bf16.vlgmr.msra.gmra.mrb[180].mxu0 %vm11782_vm12, %v11698_v49  ;;  %15059 = vrot.lane.b32.xlu0 %v24005_v51, %s26259_s22  ;;  %v25069_v49 = vpop.permute.xlu1 %14103 }
0x1349   :  { %13675 = vmatpush1.bf16.msra.mxu0 %v13631_v44  ;;  %13706 = vmatprep.mubr.bf16.mxu0 %v20914_v3  ;;  %v25094_v36 = vpop.permute.xlu0 %14091 }
0x134a   :  { %18610 = vmatprep.subr.msk.bf16.mxu0 %vm26272_vm10, %v13638_v20  ;;  %vm26283_vm10 = vmmov %vm26270_vm0 }
0x134b   :  { %15071 = vrot.lane.b32.xlu1 %v24011_v14, %s26259_s22 }
0x134c   :  { %15073 = vrot.lane.b32.xlu0 %v24013_v33, %s26259_s22  ;;  %v25096_v55 = vpop.permute.xlu1 %14093 }
0x134d   :  { %13677 = vmatpush1.bf16.msra.mxu0 %v13654_v0  ;;  %v25109_v48 = vpop.permute.xlu0 %14105 }
0x134e   :  { %13715 = vmatprep.subr.bf16.mxu0 %v13634_v39 }
0x134f   :  { %15061 = vrot.lane.b32.xlu1 %v24001_v27, %s26259_s22 }
0x1350   :  { %18611 = vmatmul.mubr.msk.bf16.vlgmr.msra.gmra.mrb[168].mxu0 %vm11782_vm12, %v11699_v37  ;;  %15292 = vrot.lane.b32.xlu0 %v23973_v32, %s26275_s25  ;;  %v13660_v32 = vsel %vm26280_vm4, %v13639_v16, 0  ;;  %v25111_v50 = vpop.permute.xlu1 %14107  ;;  %vm26290_vm4 = vmmov %vm26287_vm7 }
0x1351   :  { %13716 = vmatpush1.bf16.msra.mxu0 %v13633_v35  ;;  %13747 = vmatprep.mubr.bf16.mxu0 %v20914_v3  ;;  %vm26293_vm6 = vmmov %vm26290_vm4 }
0x1352   :  { %18612 = vmatprep.subr.msk.bf16.mxu0 %vm26279_vm11, %v13640_v30  ;;  %vm26289_vm11 = vmmov %vm26287_vm7 }
0x1353   :  { %15075 = vrot.lane.b32.xlu1 %v24023_v41, %s26259_s22 }
0x1354   :  { %15290 = vrot.lane.b32.xlu0 %v23969_v18, %s26275_s25  ;;  %v13635_v18 = vsel %vm26270_vm0, %v24856_v56, %v24863_v4  ;;  %v25132_v56 = vpop.permute.xlu0 %14095  ;;  %v25134_v4 = vpop.permute.xlu1 %14097  ;;  %vm26292_vm0 = vmmov %vm26284_vm9 }
0x1355   :  { %13718 = vmatpush1.bf16.msra.mxu0 %v13660_v32 }
0x1356   :  { %13756 = vmatprep.subr.bf16.mxu0 %v13636_v7 }
0x1357   :  { %15294 = vrot.lane.b32.xlu1 %v23971_v24, %s26275_s25  ;;  %v13642_v24 = vsel %vm26283_vm10, %v24875_v61, %v24902_v26  ;;  %v13879_v61 = vsel %vm26290_vm4, %v24917_v8, %v24944_v34  ;;  %vm26294_vm10 = vmmov %vm26290_vm4 }
0x1358   :  { %18613 = vmatmul.mubr.msk.bf16.vlgmr.msra.gmra.mrb[172].mxu0 %vm11782_vm12, %v11699_v37  ;;  %15306 = vrot.lane.b32.xlu0 %v23985_v46, %s26275_s25  ;;  %v13666_v46 = vsel %vm26285_vm14, %v13641_v11, 0  ;;  %vm26296_vm14 = vmmov %vm26290_vm4 }
0x1359   :  { %13757 = vmatpush1.bf16.msra.mxu0 %v13635_v18  ;;  %13788 = vmatprep.mubr.bf16.mxu0 %v20914_v3  ;;  %v13881_v28 = vsel %vm26296_vm14, %v24964_v45, %v24977_v42 }
0x135a   :  { %18614 = vmatprep.subr.msk.bf16.mxu0 %vm26284_vm9, %v13642_v24  ;;  %vm26295_vm9 = vmmov %vm26290_vm4 }
0x135b   :  { %15304 = vrot.lane.b32.xlu1 %v23981_v53, %s26275_s25  ;;  %v25152_v53 = vpop.permute.xlu1 %14111 }
0x135c   :  { %15296 = vrot.lane.b32.xlu0 %v23975_v31, %s26275_s25  ;;  %v25150_v31 = vpop.permute.xlu0 %14109 }
0x135d   :  { %13759 = vmatpush1.bf16.msra.mxu0 %v13666_v46 }
0x135e   :  { %19503 = vmatprep.subr.bf16.mxu0 %v25136_v22 }
0x135f   :  { %15308 = vrot.lane.b32.xlu1 %v23989_v57, %s26275_s25  ;;  %v13672_v57 = vsel %vm26286_vm15, %v24902_v26, 0  ;;  %v11700_v26 = vld [vmem:[%s26060_s12 + $0x24] sm:$0xf]  ;;  %vm26297_vm15 = vmmov %vm26292_vm0 }
0x1360   :  { %18615 = vmatmul.mubr.msk.bf16.vlgmr.msra.gmra.mrb[176].mxu0 %vm11782_vm12, %v11699_v37  ;;  %15310 = vrot.lane.b32.xlu0 %v23997_v63, %s26275_s25  ;;  %v13873_v63 = vsel %vm26287_vm7, %v24895_v9, %v24913_v40  ;;  %vm26298_vm7 = vmmov %vm26292_vm0 }
0x1361   :  { %19504 = vmatpush3.bf16.msra.mxu0 %v24888_v1  ;;  %19507 = vmatprep.mubr.msk.bf16.mxu0 %vm20927_vm5, %v25136_v22  ;;  %v25178_v1 = vpop.permute.xlu1 %14330 }
0x1362   :  { %19505 = vmatprep.subr.bf16.mxu0 %v25136_v22 }
0x1363   :  { %15298 = vrot.lane.b32.xlu1 %v24003_v62, %s26275_s25  ;;  %v13872_v62 = vsel %vm26288_vm8, %v24904_v47, %v24895_v9  ;;  %v13875_v9 = vsel %vm26293_vm6, %v24936_v6, %v24956_v21  ;;  %vm26299_vm8 = vmmov %vm26290_vm4 }
0x1364   :  { %15300 = vrot.lane.b32.xlu0 %v24005_v51, %s26275_s25  ;;  %v13878_v51 = vsel %vm26289_vm11, %v24926_v54, %v24917_v8  ;;  %v13880_v54 = vsel %vm26295_vm9, %v24944_v34, %v24964_v45  ;;  %vm26300_vm11 = vmmov %vm26290_vm4  ;;  %v13882_v45 = vsel %vm26290_vm4, %v24977_v42, %v25011_v17  ;;  %vm26304_vm9 = vcmask 703488  }
0x1365   :  { %19506 = vmatpush3.bf16.msra.mxu0 %v13672_v57  ;;  %v25194_v8 = vpop.permute.xlu1 %14340  ;;  %v13876_v34 = vsel %vm26300_vm11, %v24956_v21, %v24986_v10  ;;  %vm26302_vm6 = vmmov %vm26292_vm0 }
0x1366   :  { %13915 = vmatprep.subr.bf16.mxu0 %v13873_v63  ;;  %v13907_v25 = vsel %vm26302_vm6, %v13882_v45, 0  ;;  %vm26305_vm14 = vmmov %vm26304_vm9 }
0x1367   :  { %15312 = vrot.lane.b32.xlu1 %v24011_v14, %s26275_s25  ;;  %v25176_v14 = vpop.permute.xlu0 %14328  ;;  %vm26309_vm11 = vmmov %vm26292_vm0 }
0x1368   :  { %19508 = vmatmul.mubr.msk.bf16.vlgmr.msra.gmra.mrb[180].mxu0 %vm11782_vm12, %v11699_v37  ;;  %15314 = vrot.lane.b32.xlu0 %v24013_v33, %s26275_s25  ;;  %v13895_v33 = vsel %vm26292_vm0, %v13878_v51, 0 }
0x1369   :  { %13916 = vmatpush1.bf16.msra.mxu0 %v13872_v62  ;;  %13947 = vmatprep.mubr.bf16.mxu0 %v20914_v3  ;;  %v25214_v59 = vpop.permute.xlu1 %14344 }
0x136a   :  { %18617 = vmatprep.subr.msk.bf16.mxu0 %vm26291_vm13, %v13879_v61  ;;  %vm26301_vm13 = vmmov %vm26290_vm4 }
0x136b   :  { %15302 = vrot.lane.b32.xlu1 %v24001_v27, %s26275_s25  ;;  %v25192_v47 = vpop.permute.xlu0 %14326  ;;  %v13874_v27 = vsel %vm26294_vm10, %v24913_v40, %v24936_v6  ;;  %v13877_v40 = vsel %vm26299_vm8, %v24986_v10, %v24991_v38  ;;  %v13883_v52 = vsel %vm26301_vm13, %v25011_v17, %v25013_v2  ;;  %vm26303_vm10 = vmmov %vm26292_vm0  ;;  %v14114_v17 = vsel %vm26304_vm9, %v25024_v12, %v25026_v43 }
0x136c   :  { %v13913_v10 = vsel %vm26303_vm10, %v25013_v2, 0  ;;  %vm26308_vm8 = vmmov %vm26292_vm0 }
0x136d   :  { %13918 = vmatpush1.bf16.msra.mxu0 %v13895_v33  ;;  %v25230_v44 = vpop.permute.xlu1 %14334  ;;  %vm26314_vm10 = vmmov %vm26308_vm8 }
0x136e   :  { %13956 = vmatprep.subr.bf16.mxu0 %v13875_v9  ;;  %v11702_v9 = vld [vmem:[%s26060_s12 + $0x2c] sm:$0xf] }
0x136f   :  { %15316 = vrot.lane.b32.xlu1 %v24023_v41, %s26275_s25  ;;  %v13901_v41 = vsel %vm26298_vm7, %v13880_v54, 0  ;;  %v25212_v6 = vpop.permute.xlu0 %14342  ;;  %vm26307_vm7 = vmmov %vm26304_vm9 }
0x1370   :  { %18618 = vmatmul.mubr.msk.bf16.vlgmr.msra.gmra.mrb[168].mxu0 %vm11782_vm12, %v11700_v26  ;;  %v14120_v39 = vsel %vm26307_vm7, %v25067_v15, %v25069_v49  ;;  %vm26310_vm4 = vmmov %vm26307_vm7 }
0x1371   :  { %13957 = vmatpush1.bf16.msra.mxu0 %v13874_v27  ;;  %13988 = vmatprep.mubr.bf16.mxu0 %v20914_v3  ;;  %v25240_v42 = vpop.permute.xlu1 %14348  ;;  %vm26311_vm13 = vmmov %vm26310_vm4 }
0x1372   :  { %18619 = vmatprep.subr.msk.bf16.mxu0 %vm26297_vm15, %v13881_v28  ;;  %vm26306_vm15 = vmmov %vm26304_vm9 }
0x1373   :  { %v25228_v60 = vpop.permute.xlu0 %14332  ;;  %v14119_v2 = vsel %vm26306_vm15, %v25046_v13, %v25067_v15  ;;  %v11701_v13 = vld [vmem:[%s26060_s12 + $0x28] sm:$0xf]  ;;  %v14115_v15 = vsel %vm26311_vm13, %v25026_v43, %v25094_v36  ;;  %vm26315_vm9 = vmmov %vm26308_vm8 }
0x1375   :  { %13959 = vmatpush1.bf16.msra.mxu0 %v13901_v41  ;;  %v25253_v0 = vpop.permute.xlu1 %14338 }
0x1376   :  { %13997 = vmatprep.subr.bf16.mxu0 %v13877_v40 }
0x1377   :  { %v25238_v21 = vpop.permute.xlu0 %14346 }
0x1378   :  { %18620 = vmatmul.mubr.msk.bf16.vlgmr.msra.gmra.mrb[172].mxu0 %vm11782_vm12, %v11700_v26 }
0x1379   :  { %13998 = vmatpush1.bf16.msra.mxu0 %v13876_v34  ;;  %14029 = vmatprep.mubr.bf16.mxu0 %v20914_v3  ;;  %v25273_v35 = vpop.permute.xlu1 %14352 }
0x137a   :  { %18621 = vmatprep.subr.msk.bf16.mxu0 %vm26292_vm0, %v13883_v52  ;;  %vm26312_vm0 = vmmov %vm26310_vm4 }
0x137b   :  { %v25251_v20 = vpop.permute.xlu0 %14336  ;;  %v14121_v16 = vsel %vm26312_vm0, %v25069_v49, %v25109_v48  ;;  %vm26313_vm6 = vmmov %vm26312_vm0 }
0x137c   :  { %v14122_v30 = vsel %vm26313_vm6, %v25109_v48, %v25111_v50  ;;  %v14142_v18 = vsel %vm26315_vm9, %v14121_v16, 0  ;;  %vm26317_vm15 = vmmov %vm26312_vm0 }
0x137d   :  { %14000 = vmatpush1.bf16.msra.mxu0 %v13907_v25  ;;  %v25289_v7 = vpop.permute.xlu1 %14571  ;;  %v14117_v49 = vsel %vm26317_vm15, %v25096_v55, %v25132_v56  ;;  %vm26318_vm7 = vmmov %vm26312_vm0 }
0x137e   :  { %19511 = vmatprep.subr.bf16.mxu0 %v25136_v22 }
0x137f   :  { %v25271_v37 = vpop.permute.xlu0 %14350 }
0x1380   :  { %18622 = vmatmul.mubr.msk.bf16.vlgmr.msra.gmra.mrb[176].mxu0 %vm11782_vm12, %v11700_v26 }
0x1381   :  { %19512 = vmatpush3.bf16.msra.mxu0 %v24991_v38  ;;  %19515 = vmatprep.mubr.msk.bf16.mxu0 %vm20927_vm5, %v25136_v22  ;;  %v14113_v38 = vsel %vm26305_vm14, %v25044_v58, %v25024_v12  ;;  %v14136_v12 = vsel %vm26309_vm11, %v14119_v2, 0  ;;  %v14116_v58 = vsel %vm26310_vm4, %v25094_v36, %v25096_v55  ;;  %vm26316_vm14 = vmmov %vm26312_vm0  ;;  %v14123_v36 = vsel %vm26318_vm7, %v25111_v50, %v25150_v31  ;;  %v25308_v24 = vpop.permute.xlu1 %14581 }
0x1382   :  { %19513 = vmatprep.subr.bf16.mxu0 %v25136_v22  ;;  %v14118_v43 = vsel %vm26316_vm14, %v25132_v56, %v25134_v4  ;;  %vm26320_vm11 = vmmov %vm26315_vm9 }
0x1383   :  { %v25287_v32 = vpop.permute.xlu0 %14569  ;;  %vm26321_vm4 = vmmov %vm26315_vm9 }
0x1384   :  { %v14148_v46 = vsel %vm26321_vm4, %v14123_v36, 0  ;;  %vm26322_vm13 = vmmov %vm26321_vm4 }
0x1385   :  { %19514 = vmatpush3.bf16.msra.mxu0 %v13913_v10  ;;  %v25315_v50 = vpop.permute.xlu1 %14585  ;;  %v14154_v56 = vsel %vm26322_vm13, %v25152_v53, 0  ;;  %vm26327_vm14 = vmmov %vm26321_vm4 }
0x1386   :  { %14156 = vmatprep.subr.bf16.mxu0 %v14114_v17  ;;  %vm26328_vm15 = vmmov %vm26321_vm4 }
0x1387   :  { %v25306_v11 = vpop.permute.xlu0 %14567 }
0x1388   :  { %19516 = vmatmul.mubr.msk.bf16.vlgmr.msra.gmra.mrb[180].mxu0 %vm11782_vm12, %v11700_v26 }
0x1389   :  { %14157 = vmatpush1.bf16.msra.mxu0 %v14113_v38  ;;  %14188 = vmatprep.mubr.bf16.mxu0 %v20914_v3  ;;  %v25329_v63 = vpop.permute.xlu1 %14575 }
0x138a   :  { %18624 = vmatprep.subr.msk.bf16.mxu0 %vm26308_vm8, %v14120_v39  ;;  %vm26319_vm8 = vmmov %vm26312_vm0  ;;  %vm26323_vm0 = vcmask 695296  }
0x138b   :  { %v14124_v48 = vsel %vm26319_vm8, %v25150_v31, %v25152_v53  ;;  %v25313_v55 = vpop.permute.xlu0 %14583  ;;  %v14355_v31 = vsel %vm26323_vm0, %v25176_v14, %v25178_v1  ;;  %vm26324_vm6 = vmmov %vm26323_vm0 }
0x138c   :  { %vm26326_vm9 = vmmov %vm26323_vm0 }
0x138d   :  { %14159 = vmatpush1.bf16.msra.mxu0 %v14136_v12  ;;  %v14361_v62 = vsel %vm26326_vm9, %v25212_v6, %v25214_v59  ;;  %vm26329_vm7 = vmmov %vm26323_vm0  ;;  %v11703_v12 = vld [vmem:[%s26060_s12 + $0x30] sm:$0xf] }
0x138e   :  { %14197 = vmatprep.subr.bf16.mxu0 %v14116_v58  ;;  %v14357_v33 = vsel %vm26329_vm7, %v25228_v60, %v25230_v44  ;;  %vm26330_vm8 = vmmov %vm26323_vm0 }
0x138f   :  { %v25327_v57 = vpop.permute.xlu0 %14573  ;;  %v14356_v26 = vsel %vm26330_vm8, %v25178_v1, %v25228_v60  ;;  %vm26332_vm4 = vmmov %vm26323_vm0 }
0x1390   :  { %18625 = vmatmul.mubr.msk.bf16.vlgmr.msra.gmra.mrb[168].mxu0 %vm11782_vm12, %v11701_v13  ;;  %vm26336_vm9 = vmmov %vm26332_vm4 }
0x1391   :  { %14198 = vmatpush1.bf16.msra.mxu0 %v14115_v15  ;;  %14229 = vmatprep.mubr.bf16.mxu0 %v20914_v3 }
0x1392   :  { %18626 = vmatprep.subr.msk.bf16.mxu0 %vm26314_vm10, %v14122_v30  ;;  %vm26325_vm10 = vmmov %vm26323_vm0 }
0x1393   :  { %v14360_v53 = vsel %vm26325_vm10, %v25194_v8, %v25212_v6  ;;  %v25344_v61 = vpop.permute.xlu0 %14587  ;;  %v14363_v8 = vsel %vm26332_vm4, %v25238_v21, %v25240_v42  ;;  %vm26335_vm10 = vmmov %vm26332_vm4 }
0x1394   :  { %v14377_v51 = vsel %vm26328_vm15, %v14360_v53, 0  ;;  %v14358_v6 = vsel %vm26335_vm10, %v25230_v44, %v25251_v20 }
0x1395   :  { %14200 = vmatpush1.bf16.msra.mxu0 %v14142_v18 }
0x1396   :  { %14238 = vmatprep.subr.bf16.mxu0 %v14118_v43 }
0x1397   :  { %v14578_v27 = vpop.permute.xlu0 %14577 }
0x1398   :  { %18627 = vmatmul.mubr.msk.bf16.vlgmr.msra.gmra.mrb[172].mxu0 %vm11782_vm12, %v11701_v13 }
0x1399   :  { %14239 = vmatpush1.bf16.msra.mxu0 %v14117_v49  ;;  %14270 = vmatprep.mubr.bf16.mxu0 %v20914_v3 }
0x139a   :  { %18628 = vmatprep.subr.msk.bf16.mxu0 %vm26320_vm11, %v14124_v48  ;;  %vm26331_vm11 = vmmov %vm26323_vm0 }
0x139b   :  { %vm26333_vm0 = vmmov %vm26322_vm13  ;;  %v14592_v41 = vpop.permute.xlu0 %14591 }
0x139c   :  { %vm26338_vm15 = vmmov %vm26333_vm0 }
0x139d   :  { %14241 = vmatpush1.bf16.msra.mxu0 %v14148_v46  ;;  %vm26339_vm7 = vmmov %vm26333_vm0 }
0x139e   :  { %19519 = vmatprep.subr.bf16.mxu0 %v25136_v22  ;;  %vm26340_vm8 = vmmov %vm26333_vm0 }
0x139f   :  { %v25387_v52 = vpop.permute.xlu0 %14810 }
0x13a0   :  { %18629 = vmatmul.mubr.msk.bf16.vlgmr.msra.gmra.mrb[176].mxu0 %vm11782_vm12, %v11701_v13 }
0x13a1   :  { %19520 = vmatpush3.bf16.msra.mxu0 %v25134_v4  ;;  %19523 = vmatprep.mubr.msk.bf16.mxu0 %vm20927_vm5, %v25136_v22  ;;  %v14354_v4 = vsel %vm26324_vm6, %v25192_v47, %v25176_v14  ;;  %v25346_v14 = vpop.permute.xlu1 %14589  ;;  %v14362_v47 = vsel %vm26331_vm11, %v25214_v59, %v25238_v21  ;;  %vm26334_vm6 = vmmov %vm26332_vm4  ;;  %v14364_v59 = vsel %vm26336_vm9, %v25240_v42, %v25271_v37  ;;  %v14395_v21 = vsel %vm26340_vm8, %v25273_v35, 0 }
0x13a2   :  { %19521 = vmatprep.subr.bf16.mxu0 %v25136_v22  ;;  %v14383_v28 = vsel %vm26333_vm0, %v14362_v47, 0  ;;  %v14359_v1 = vsel %vm26334_vm6, %v25251_v20, %v25253_v0  ;;  %v14389_v45 = vsel %vm26339_vm7, %v14364_v59, 0  ;;  %vm26341_vm11 = vcmask 556032   ;;  %vm26345_vm6 = vmmov %vm26339_vm7 }
0x13a3   :  { %v14809_v44 = vpop.permute.xlu0 %14808  ;;  %v14596_v42 = vsel %vm26341_vm11, %v25287_v32, %v25289_v7  ;;  %vm26346_vm10 = vmmov %vm26345_vm6 }
0x13a4   :  { %vm26351_vm8 = vmmov %vm26345_vm6 }
0x13a5   :  { %19522 = vmatpush3.bf16.msra.mxu0 %v14154_v56  ;;  %v25365_v54 = vpop.permute.xlu1 %14579 }
0x13a6   :  { %14397 = vmatprep.subr.bf16.mxu0 %v14355_v31 }
0x13a7   :  { %v14825_v20 = vpop.permute.xlu0 %14824 }
0x13a8   :  { %19524 = vmatmul.mubr.msk.bf16.vlgmr.msra.gmra.mrb[180].mxu0 %vm11782_vm12, %v11701_v13 }
0x13a9   :  { %14398 = vmatpush1.bf16.msra.mxu0 %v14354_v4  ;;  %14429 = vmatprep.mubr.bf16.mxu0 %v20914_v3  ;;  %v25372_v40 = vpop.permute.xlu1 %14593 }
0x13aa   :  { %18631 = vmatprep.subr.msk.bf16.mxu0 %vm26327_vm14, %v14361_v62  ;;  %vm26337_vm14 = vmmov %vm26332_vm4 }
0x13ab   :  { %v14365_v34 = vsel %vm26337_vm14, %v25271_v37, %v25273_v35  ;;  %vm26342_vm4 = vmmov %vm26341_vm11  ;;  %v14815_v58 = vpop.permute.xlu0 %14814 }
0x13ac   :  { %v14595_v10 = vsel %vm26342_vm4, %v25306_v11, %v25287_v32  ;;  %vm26344_vm0 = vmmov %vm26342_vm4 }
0x13ad   :  { %14400 = vmatpush1.bf16.msra.mxu0 %v14377_v51  ;;  %v25389_v60 = vpop.permute.xlu1 %14812  ;;  %v14602_v38 = vsel %vm26344_vm0, %v25313_v55, %v25315_v50  ;;  %vm26347_vm9 = vmmov %vm26344_vm0  ;;  %v14605_v43 = vsel %vm26344_vm0, %v25346_v14, %v14592_v41  ;;  %v11704_v51 = vld [vmem:[%s26060_s12 + $0x34] sm:$0xf] }
0x13ae   :  { %14438 = vmatprep.subr.bf16.mxu0 %v14357_v33  ;;  %v14598_v39 = vsel %vm26347_vm9, %v25327_v57, %v25329_v63  ;;  %vm26348_vm14 = vmmov %vm26344_vm0 }
0x13af   :  { %v14597_v37 = vsel %vm26348_vm14, %v25289_v7, %v25327_v57  ;;  %vm26350_vm7 = vmmov %vm26344_vm0  ;;  %v14829_v32 = vpop.permute.xlu0 %14828 }
0x13b0   :  { %18632 = vmatmul.mubr.msk.bf16.vlgmr.msra.gmra.mrb[168].mxu0 %vm11782_vm12, %v11702_v9  ;;  %v14604_v15 = vsel %vm26350_vm7, %v25344_v61, %v25346_v14  ;;  %vm26352_vm11 = vmmov %vm26345_vm6 }
0x13b1   :  { %14439 = vmatpush1.bf16.msra.mxu0 %v14356_v26  ;;  %14470 = vmatprep.mubr.bf16.mxu0 %v20914_v3  ;;  %v14823_v25 = vpop.permute.xlu1 %14822  ;;  %vm26357_vm9 = vmmov %vm26351_vm8 }
0x13b2   :  { %18633 = vmatprep.subr.msk.bf16.mxu0 %vm26322_vm13, %v14363_v8  ;;  %vm26343_vm13 = vmmov %vm26342_vm4  ;;  %v14630_v11 = vsel %vm26357_vm9, %v14605_v43, 0 }
0x13b3   :  { %v14601_v17 = vsel %vm26343_vm13, %v25308_v24, %v25313_v55  ;;  %vm26353_vm4 = vmmov %vm26344_vm0  ;;  %v14819_v36 = vpop.permute.xlu0 %14818 }
0x13b4   :  { %v14618_v2 = vsel %vm26346_vm10, %v14601_v17, 0  ;;  %v14600_v30 = vsel %vm26353_vm4, %v14578_v27, %v25365_v54  ;;  %vm26354_vm13 = vmmov %vm26344_vm0 }
0x13b5   :  { %14441 = vmatpush1.bf16.msra.mxu0 %v14383_v28  ;;  %v14599_v18 = vsel %vm26354_vm13, %v25329_v63, %v14578_v27  ;;  %vm26356_vm10 = vmmov %vm26351_vm8 }
0x13b6   :  { %14479 = vmatprep.subr.bf16.mxu0 %v14359_v1  ;;  %vm26358_vm14 = vmmov %vm26351_vm8 }
0x13b7   :  { %v14833_v24 = vpop.permute.xlu0 %14832  ;;  %v14636_v55 = vsel %vm26358_vm14, %v25372_v40, 0  ;;  %vm26363_vm4 = vmmov %vm26357_vm9 }
0x13b8   :  { %18634 = vmatmul.mubr.msk.bf16.vlgmr.msra.gmra.mrb[172].mxu0 %vm11782_vm12, %v11702_v9  ;;  %vm26364_vm13 = vmmov %vm26363_vm4 }
0x13b9   :  { %14480 = vmatpush1.bf16.msra.mxu0 %v14358_v6  ;;  %14511 = vmatprep.mubr.bf16.mxu0 %v20914_v3  ;;  %vm26369_vm14 = vmmov %vm26363_vm4 }
0x13ba   :  { %18635 = vmatprep.subr.msk.bf16.mxu0 %vm26338_vm15, %v14365_v34  ;;  %vm26349_vm15 = vmmov %vm26344_vm0 }
0x13bb   :  { %v14603_v35 = vsel %vm26349_vm15, %v25315_v50, %v25344_v61  ;;  %vm26359_vm15 = vcmask 547840   ;;  %v15052_v31 = vpop.permute.xlu0 %15051 }
0x13bc   :  { %v14624_v16 = vsel %vm26352_vm11, %v14603_v35, 0  ;;  %v14837_v50 = vsel %vm26359_vm15, %v25387_v52, %v25389_v60  ;;  %vm26360_vm7 = vmmov %vm26359_vm15 }
0x13bd   :  { %14482 = vmatpush1.bf16.msra.mxu0 %v14389_v45  ;;  %v14836_v56 = vsel %vm26360_vm7, %v14809_v44, %v25387_v52  ;;  %vm26362_vm11 = vmmov %vm26360_vm7 }
0x13be   :  { %19527 = vmatprep.subr.bf16.mxu0 %v25136_v22  ;;  %vm26370_vm15 = vmmov %vm26363_vm4 }
0x13bf   :  { %v15050_v61 = vpop.permute.xlu0 %15049 }
0x13c0   :  { %18636 = vmatmul.mubr.msk.bf16.vlgmr.msra.gmra.mrb[176].mxu0 %vm11782_vm12, %v11702_v9 }
0x13c1   :  { %19528 = vmatpush3.bf16.msra.mxu0 %v25253_v0  ;;  %19531 = vmatprep.mubr.msk.bf16.mxu0 %vm20927_vm5, %v25136_v22  ;;  %v25413_v0 = vpop.permute.xlu1 %14826 }
0x13c2   :  { %19529 = vmatprep.subr.bf16.mxu0 %v25136_v22  ;;  %v14843_v4 = vsel %vm26362_vm11, %v14825_v20, %v25413_v0 }
0x13c3   :  { %v15066_v47 = vpop.permute.xlu0 %15065 }
0x13c5   :  { %19530 = vmatpush3.bf16.msra.mxu0 %v14395_v21  ;;  %v25423_v13 = vpop.permute.xlu1 %14816 }
0x13c6   :  { %14638 = vmatprep.subr.bf16.mxu0 %v14596_v42 }
0x13c8   :  { %19532 = vmatmul.mubr.msk.bf16.vlgmr.msra.gmra.mrb[180].mxu0 %vm11782_vm12, %v11702_v9 }
0x13c9   :  { %14639 = vmatpush1.bf16.msra.mxu0 %v14595_v10  ;;  %14670 = vmatprep.mubr.bf16.mxu0 %v20914_v3  ;;  %v14831_v7 = vpop.permute.xlu1 %14830 }
0x13ca   :  { %18638 = vmatprep.subr.msk.bf16.mxu0 %vm26345_vm6, %v14602_v38  ;;  %vm26355_vm6 = vmmov %vm26344_vm0 }
0x13cb   :  { %v14606_v49 = vsel %vm26355_vm6, %v14592_v41, %v25372_v40  ;;  %vm26365_vm0 = vmmov %vm26360_vm7  ;;  %v15056_v40 = vpop.permute.xlu0 %15055 }
0x13cc   :  { %v14839_v62 = vsel %vm26365_vm0, %v14815_v58, %v25423_v13  ;;  %vm26366_vm6 = vmmov %vm26365_vm0 }
0x13cd   :  { %14641 = vmatpush1.bf16.msra.mxu0 %v14618_v2  ;;  %v14821_v48 = vpop.permute.xlu1 %14820  ;;  %v14838_v33 = vsel %vm26366_vm6, %v25389_v60, %v14815_v58  ;;  %vm26368_vm9 = vmmov %vm26365_vm0  ;;  %v11705_v2 = vld [vmem:[%s26060_s12 + $0x38] sm:$0xf] }
0x13ce   :  { %14679 = vmatprep.subr.bf16.mxu0 %v14598_v39  ;;  %v14845_v26 = vsel %vm26368_vm9, %v14829_v32, %v14831_v7  ;;  %vm26373_vm11 = vmmov %vm26365_vm0 }
0x13cf   :  { %v14846_v1 = vsel %vm26373_vm11, %v14831_v7, %v14833_v24  ;;  %v15070_v34 = vpop.permute.xlu0 %15069 }
0x13d0   :  { %18639 = vmatmul.mubr.msk.bf16.vlgmr.msra.gmra.mrb[168].mxu0 %vm11782_vm12, %v11703_v12 }
0x13d1   :  { %14680 = vmatpush1.bf16.msra.mxu0 %v14597_v37  ;;  %14711 = vmatprep.mubr.bf16.mxu0 %v20914_v3  ;;  %v14835_v46 = vpop.permute.xlu1 %14834 }
0x13d2   :  { %18640 = vmatprep.subr.msk.bf16.mxu0 %vm26351_vm8, %v14604_v15  ;;  %vm26361_vm8 = vmmov %vm26360_vm7 }
0x13d3   :  { %v14842_v63 = vsel %vm26361_vm8, %v14823_v25, %v14825_v20  ;;  %vm26371_vm7 = vmmov %vm26365_vm0  ;;  %v15060_v44 = vpop.permute.xlu0 %15059 }
0x13d4   :  { %v14859_v53 = vsel %vm26364_vm13, %v14842_v63, 0  ;;  %vm26372_vm8 = vmmov %vm26365_vm0 }
0x13d5   :  { %14682 = vmatpush1.bf16.msra.mxu0 %v14624_v16  ;;  %v25463_v57 = vpop.permute.xlu1 %15053  ;;  %v14840_v28 = vsel %vm26372_vm8, %v25423_v13, %v14819_v36 }
0x13d6   :  { %14720 = vmatprep.subr.bf16.mxu0 %v14600_v30 }
0x13d7   :  { %v15074_v38 = vpop.permute.xlu0 %15073 }
0x13d8   :  { %18641 = vmatmul.mubr.msk.bf16.vlgmr.msra.gmra.mrb[172].mxu0 %vm11782_vm12, %v11703_v12 }
0x13d9   :  { %14721 = vmatpush1.bf16.msra.mxu0 %v14599_v18  ;;  %14752 = vmatprep.mubr.bf16.mxu0 %v20914_v3  ;;  %v15064_v14 = vpop.permute.xlu1 %15063 }
0x13da   :  { %18642 = vmatprep.subr.msk.bf16.mxu0 %vm26356_vm10, %v14606_v49  ;;  %vm26367_vm10 = vmmov %vm26365_vm0 }
0x13db   :  { %v14844_v9 = vsel %vm26367_vm10, %v25413_v0, %v14829_v32  ;;  %vm26377_vm10 = vcmask 539648   ;;  %v15293_v13 = vpop.permute.xlu0 %15292 }
0x13dc   :  { %v14865_v27 = vsel %vm26370_vm15, %v14844_v9, 0  ;;  %v15078_v60 = vsel %vm26377_vm10, %v15052_v31, %v25463_v57  ;;  %vm26378_vm9 = vmmov %vm26377_vm10 }
0x13dd   :  { %14723 = vmatpush1.bf16.msra.mxu0 %v14630_v11  ;;  %v15068_v8 = vpop.permute.xlu1 %15067  ;;  %v15077_v21 = vsel %vm26378_vm9, %v15050_v61, %v15052_v31  ;;  %vm26380_vm15 = vmmov %vm26378_vm9 }
0x13de   :  { %19535 = vmatprep.subr.bf16.mxu0 %v25136_v22  ;;  %v15084_v10 = vsel %vm26380_vm15, %v15066_v47, %v15068_v8  ;;  %vm26383_vm11 = vmmov %vm26378_vm9 }
0x13df   :  { %v15291_v30 = vpop.permute.xlu0 %15290 }
0x13e0   :  { %18643 = vmatmul.mubr.msk.bf16.vlgmr.msra.gmra.mrb[176].mxu0 %vm11782_vm12, %v11703_v12 }
0x13e1   :  { %19536 = vmatpush3.bf16.msra.mxu0 %v25365_v54  ;;  %19539 = vmatprep.mubr.msk.bf16.mxu0 %vm20927_vm5, %v25136_v22  ;;  %v14841_v54 = vsel %vm26371_vm7, %v14819_v36, %v14821_v48  ;;  %v15058_v6 = vpop.permute.xlu1 %15057 }
0x13e2   :  { %19537 = vmatprep.subr.bf16.mxu0 %v25136_v22  ;;  %v15080_v0 = vsel %vm26383_vm11, %v15056_v40, %v15058_v6 }
0x13e3   :  { %v15307_v49 = vpop.permute.xlu0 %15306 }
0x13e5   :  { %19538 = vmatpush3.bf16.msra.mxu0 %v14636_v55  ;;  %v15072_v45 = vpop.permute.xlu1 %15071 }
0x13e6   :  { %14879 = vmatprep.subr.bf16.mxu0 %v14837_v50 }
0x13e7   :  { %v15297_v11 = vpop.permute.xlu0 %15296 }
0x13e8   :  { %19540 = vmatmul.mubr.msk.bf16.vlgmr.msra.gmra.mrb[180].mxu0 %vm11782_vm12, %v11703_v12 }
0x13e9   :  { %14880 = vmatpush1.bf16.msra.mxu0 %v14836_v56  ;;  %14911 = vmatprep.mubr.bf16.mxu0 %v20914_v3  ;;  %v15062_v25 = vpop.permute.xlu1 %15061 }
0x13ea   :  { %18645 = vmatprep.subr.msk.bf16.mxu0 %vm26363_vm4, %v14843_v4  ;;  %vm26374_vm4 = vmmov %vm26365_vm0 }
0x13eb   :  { %v14847_v41 = vsel %vm26374_vm4, %v14833_v24, %v14835_v46  ;;  %vm26375_vm0 = vmmov %vm26364_vm13  ;;  %v15311_v31 = vpop.permute.xlu0 %15310 }
0x13ec   :  { %v14871_v59 = vsel %vm26375_vm0, %v14846_v1, 0  ;;  %vm26376_vm6 = vmmov %vm26375_vm0 }
0x13ed   :  { %14882 = vmatpush1.bf16.msra.mxu0 %v14859_v53  ;;  %v14877_v52 = vsel %vm26376_vm6, %v14835_v46, 0  ;;  %vm26381_vm7 = vmmov %vm26375_vm0  ;;  %v15076_v20 = vpop.permute.xlu1 %15075  ;;  %v11706_v53 = vld [vmem:[%s26060_s12 + $0x3c] sm:$0xf] }
0x13ee   :  { %14920 = vmatprep.subr.bf16.mxu0 %v14839_v62  ;;  %vm26382_vm8 = vmmov %vm26375_vm0 }
0x13ef   :  { %vm26384_vm4 = vmmov %vm26378_vm9 }
0x13f0   :  { %18646 = vmatmul.mubr.msk.bf16.vlgmr.msra.gmra.mrb[168].mxu0 %vm11782_vm12, %v11704_v51  ;;  %v15079_v39 = vsel %vm26384_vm4, %v25463_v57, %v15056_v40  ;;  %vm26386_vm0 = vmmov %vm26384_vm4  ;;  %v15531_v40 = vld [vmem:[%s26061_s14] sm:$0x7f]  ;;  %s20946_s14 = smov 42  }
0x13f1   :  { %14921 = vmatpush1.bf16.msra.mxu0 %v14838_v33  ;;  %14952 = vmatprep.mubr.bf16.mxu0 %v20914_v3  ;;  %v15086_v58 = vsel %vm26386_vm0, %v15070_v34, %v15072_v45  ;;  %v15295_v37 = vpop.permute.xlu1 %15294  ;;  %vm26387_vm10 = vmmov %vm26376_vm6 }
0x13f2   :  { %18647 = vmatprep.subr.msk.bf16.mxu0 %vm26369_vm14, %v14845_v26  ;;  %vm26379_vm14 = vmmov %vm26378_vm9 }
0x13f3   :  { %v15083_v42 = vsel %vm26379_vm14, %v15064_v14, %v15066_v47  ;;  %vm26388_vm9 = vmmov %vm26386_vm0 }
0x13f4   :  { %v15100_v17 = vsel %vm26382_vm8, %v15083_v42, 0  ;;  %v15082_v15 = vsel %vm26388_vm9, %v15060_v44, %v15062_v25  ;;  %vm26389_vm14 = vmmov %vm26386_vm0 }
0x13f5   :  { %14923 = vmatpush1.bf16.msra.mxu0 %v14865_v27  ;;  %v15081_v16 = vsel %vm26389_vm14, %v15058_v6, %v15060_v44  ;;  %v15305_v32 = vpop.permute.xlu1 %15304  ;;  %vm26390_vm15 = vmmov %vm26386_vm0  ;;  %v25574_v6 = vrot.slane %v15531_v40, %v22820_v19 }
0x13f6   :  { %14961 = vmatprep.subr.bf16.mxu0 %v14841_v54  ;;  %v15087_v7 = vsel %vm26390_vm15, %v15072_v45, %v15074_v38  ;;  %vm26392_vm8 = vmmov %vm26376_vm6 }
0x13f7   :  { %vm26393_vm11 = vmmov %vm26376_vm6 }
0x13f8   :  { %18648 = vmatmul.mubr.msk.bf16.vlgmr.msra.gmra.mrb[172].mxu0 %vm11782_vm12, %v11704_v51  ;;  %v15112_v43 = vsel %vm26393_vm11, %v15087_v7, 0 }
0x13f9   :  { %14962 = vmatpush1.bf16.msra.mxu0 %v14840_v28  ;;  %14993 = vmatprep.mubr.bf16.mxu0 %v20914_v3  ;;  %v15309_v36 = vpop.permute.xlu1 %15308 }
0x13fa   :  { %18649 = vmatprep.subr.msk.bf16.mxu0 %vm26364_vm13, %v14847_v41  ;;  %vm26385_vm13 = vmmov %vm26384_vm4 }
0x13fb   :  { %v15085_v12 = vsel %vm26385_vm13, %v15068_v8, %v15070_v34  ;;  %vm26394_vm4 = vmmov %vm26376_vm6  ;;  %vm26395_vm13 = vcmask 531456  }
0x13fc   :  { %v15106_v35 = vsel %vm26387_vm10, %v15085_v12, 0  ;;  %v15319_v46 = vsel %vm26395_vm13, %v15293_v13, %v15295_v37  ;;  %vm26399_vm9 = vmmov %vm26394_vm4 }
0x13fd   :  { %14964 = vmatpush1.bf16.msra.mxu0 %v14871_v59  ;;  %v15299_v24 = vpop.permute.xlu1 %15298  ;;  %vm26400_vm14 = vmmov %vm26394_vm4  ;;  %v25577_v59 = vrot.slane %v15531_v40, %v22826_v23 }
0x13fe   :  { %19543 = vmatprep.subr.bf16.mxu0 %v25136_v22 }
0x1400   :  { %18650 = vmatmul.mubr.msk.bf16.vlgmr.msra.gmra.mrb[176].mxu0 %vm11782_vm12, %v11704_v51 }
0x1401   :  { %19544 = vmatpush3.bf16.msra.mxu0 %v14821_v48  ;;  %19547 = vmatprep.mubr.msk.bf16.mxu0 %vm20927_vm5, %v25136_v22  ;;  %v15118_v48 = vsel %vm26394_vm4, %v15076_v20, 0  ;;  %v15313_v57 = vpop.permute.xlu1 %15312 }
0x1402   :  { %19545 = vmatprep.subr.bf16.mxu0 %v25136_v22 }
0x1405   :  { %19546 = vmatpush3.bf16.msra.mxu0 %v14877_v52  ;;  %v15303_v61 = vpop.permute.xlu1 %15302 }
0x1406   :  { %15120 = vmatprep.subr.bf16.mxu0 %v15078_v60 }
0x1408   :  { %19548 = vmatmul.mubr.msk.bf16.vlgmr.msra.gmra.mrb[180].mxu0 %vm11782_vm12, %v11704_v51  ;;  %v15301_v51 = vpop.permute.xlu0 %15300 }
0x1409   :  { %15121 = vmatpush1.bf16.msra.mxu0 %v15077_v21  ;;  %15152 = vmatprep.mubr.bf16.mxu0 %v20914_v3  ;;  %v15317_v8 = vpop.permute.xlu1 %15316 }
0x140a   :  { %18652 = vmatprep.subr.msk.bf16.mxu0 %vm26381_vm7, %v15084_v10  ;;  %vm26391_vm7 = vmmov %vm26386_vm0  ;;  %v25583_v10 = vrot.slane %v15531_v40, %v22831_v29 }
0x140b   :  { %v15088_v18 = vsel %vm26391_vm7, %v15074_v38, %v15076_v20  ;;  %vm26396_vm0 = vmmov %vm26395_vm13 }
0x140c   :  { %v15318_v55 = vsel %vm26396_vm0, %v15291_v30, %v15293_v13  ;;  %vm26398_vm10 = vmmov %vm26396_vm0  ;;  %v15323_v26 = vsel %vm26396_vm0, %v15301_v51, %v15303_v61  ;;  %v15315_v47 = vpop.permute.xlu0 %15314 }
0x140d   :  { %15123 = vmatpush1.bf16.msra.mxu0 %v15100_v17  ;;  %v15325_v56 = vsel %vm26398_vm10, %v15307_v49, %v15309_v36  ;;  %vm26401_vm15 = vmmov %vm26396_vm0 }
0x140e   :  { %15161 = vmatprep.subr.bf16.mxu0 %v15080_v0  ;;  %v15321_v4 = vsel %vm26401_vm15, %v15297_v11, %v15299_v24  ;;  %vm26402_vm7 = vmmov %vm26396_vm0 }
0x140f   :  { %v15320_v62 = vsel %vm26402_vm7, %v15295_v37, %v15297_v11  ;;  %vm26404_vm11 = vmmov %vm26396_vm0 }
0x1410   :  { %18653 = vmatmul.mubr.msk.bf16.vlgmr.msra.gmra.mrb[168].mxu0 %vm11782_vm12, %v11705_v2  ;;  %v15327_v33 = vsel %vm26404_vm11, %v15311_v31, %v15313_v57  ;;  %vm26405_vm13 = vmmov %vm26394_vm4  ;;  %vm15688_vm11 = vcmask 605184  }
0x1411   :  { %15162 = vmatpush1.bf16.msra.mxu0 %v15079_v39  ;;  %15193 = vmatprep.mubr.bf16.mxu0 %v20914_v3  ;;  %vm26407_vm10 = vmmov %vm26396_vm0 }
0x1412   :  { %18654 = vmatprep.subr.msk.bf16.mxu0 %vm26376_vm6, %v15086_v58  ;;  %vm26397_vm6 = vmmov %vm26396_vm0  ;;  %v15328_v54 = vsel %vm26407_vm10, %v15313_v57, %v15315_v47  ;;  %v15555_v58 = vsub.s32 5, %v22817_v5 }
0x1413   :  { %v15324_v50 = vsel %vm26397_vm6, %v15305_v32, %v15307_v49  ;;  %vm26406_vm6 = vmmov %vm26396_vm0 }
0x1414   :  { %v15341_v63 = vsel %vm26400_vm14, %v15324_v50, 0  ;;  %v15322_v27 = vsel %vm26406_vm6, %v15299_v24, %v15301_v51  ;;  %vm26409_vm14 = vmmov %vm26394_vm4  ;;  %vm26414_vm6 = vcmask 64512  }
0x1415   :  { %15164 = vmatpush1.bf16.msra.mxu0 %v15106_v35  ;;  %vm26410_vm15 = vmmov %vm26394_vm4 }
0x1416   :  { %15202 = vmatprep.subr.bf16.mxu0 %v15082_v15  ;;  %v15353_v1 = vsel %vm26410_vm15, %v15328_v54, 0  ;;  %vm26411_vm7 = vmmov %vm26394_vm4 }
0x1417   :  { %v15359_v41 = vsel %vm26411_vm7, %v15317_v8, 0  ;;  %vm26418_vm15 = vmmov %vm26414_vm6 }
0x1418   :  { %18655 = vmatmul.mubr.msk.bf16.vlgmr.msra.gmra.mrb[172].mxu0 %vm11782_vm12, %v11705_v2 }
0x1419   :  { %15203 = vmatpush1.bf16.msra.mxu0 %v15081_v16  ;;  %15234 = vmatprep.mubr.bf16.mxu0 %v20914_v3  ;;  %v25599_v16 = vrot.slane %v15531_v40, %v15555_v58 }
0x141a   :  { %18656 = vmatprep.subr.msk.bf16.mxu0 %vm26392_vm8, %v15088_v18  ;;  %vm26403_vm8 = vmmov %vm26396_vm0  ;;  %v15559_v18 = vsub.s32 6, %v22817_v5 }
0x141b   :  { %v15326_v14 = vsel %vm26403_vm8, %v15309_v36, %v15311_v31  ;;  %vm15681_vm8 = vcmask 1047888  }
0x141c   :  { %v15347_v9 = vsel %vm26405_vm13, %v15326_v14, 0  ;;  %v25606_v24 = vrot.slane %v15531_v40, %v15559_v18  ;;  %vm26412_vm13 = vmmov %vm26394_vm4 }
0x141d   :  { %15205 = vmatpush1.bf16.msra.mxu0 %v15112_v43 }
0x141e   :  { %19551 = vmatprep.subr.bf16.mxu0 %v25136_v22 }
0x1420   :  { %18657 = vmatmul.mubr.msk.bf16.vlgmr.msra.gmra.mrb[176].mxu0 %vm11782_vm12, %v11705_v2 }
0x1421   :  { %19552 = vmatpush3.bf16.msra.mxu0 %v15062_v25  ;;  %19555 = vmatprep.mubr.msk.bf16.mxu0 %vm20927_vm5, %v25136_v22  ;;  %v15547_v25 = vsub.s32 3, %v22817_v5 }
0x1422   :  { %19553 = vmatprep.subr.bf16.mxu0 %v25136_v22 }
0x1423   :  { %v25587_v17 = vrot.slane %v15531_v40, %v15547_v25 }
0x1425   :  { %19554 = vmatpush3.bf16.msra.mxu0 %v15118_v48 }
0x1426   :  { %15361 = vmatprep.subr.bf16.mxu0 %v15319_v46 }
0x1428   :  { %19556 = vmatmul.mubr.msk.bf16.vlgmr.msra.gmra.mrb[180].mxu0 %vm11782_vm12, %v11705_v2  ;;  %v15551_v2 = vsub.s32 4, %v22817_v5 }
0x1429   :  { %15362 = vmatpush1.bf16.msra.mxu0 %v15318_v55  ;;  %15393 = vmatprep.mubr.bf16.mxu0 %v20914_v3 }
0x142a   :  { %18659 = vmatprep.subr.msk.bf16.mxu0 %vm26399_vm9, %v15325_v56  ;;  %vm26408_vm9 = vmmov %vm26396_vm0  ;;  %v25595_v15 = vrot.slane %v15531_v40, %v15551_v2 }
0x142b   :  { %v15329_v28 = vsel %vm26408_vm9, %v15315_v47, %v15317_v8  ;;  %vm26413_vm0 = vmmov %vm26394_vm4 }
0x142c   :  { %vm26415_vm10 = vmmov %vm26413_vm0 }
0x142d   :  { %15364 = vmatpush1.bf16.msra.mxu0 %v15341_v63  ;;  %vm26416_vm9 = vmmov %vm26413_vm0 }
0x142e   :  { %15402 = vmatprep.subr.bf16.mxu0 %v15321_v4  ;;  %vm26419_vm7 = vmmov %vm26413_vm0 }
0x1430   :  { %18660 = vmatmul.mubr.msk.bf16.vlgmr.msra.gmra.mrb[168].mxu0 %vm11782_vm12, %v11706_v53 }
0x1431   :  { %15403 = vmatpush1.bf16.msra.mxu0 %v15320_v62  ;;  %15434 = vmatprep.mubr.bf16.mxu0 %v20914_v3 }
0x1432   :  { %18661 = vmatprep.subr.msk.bf16.mxu0 %vm26394_vm4, %v15327_v33 }
0x1435   :  { %15405 = vmatpush1.bf16.msra.mxu0 %v15347_v9 }
0x1436   :  { %15443 = vmatprep.subr.bf16.mxu0 %v15323_v26 }
0x1438   :  { %18662 = vmatmul.mubr.msk.bf16.vlgmr.msra.gmra.mrb[172].mxu0 %vm11782_vm12, %v11706_v53 }
0x1439   :  { %15444 = vmatpush1.bf16.msra.mxu0 %v15322_v27  ;;  %15475 = vmatprep.mubr.bf16.mxu0 %v20914_v3 }
0x143a   :  { %18663 = vmatprep.subr.msk.bf16.mxu0 %vm26409_vm14, %v15329_v28  ;;  %vm26417_vm14 = vmmov %vm26413_vm0 }
0x143d   :  { %15446 = vmatpush1.bf16.msra.mxu0 %v15353_v1 }
0x143e   :  { %19559 = vmatprep.subr.bf16.mxu0 %v25136_v22 }
0x1440   :  { %18664 = vmatmul.mubr.msk.bf16.vlgmr.msra.gmra.mrb[176].mxu0 %vm11782_vm12, %v11706_v53 }
0x1441   :  { %19560 = vmatpush3.bf16.msra.mxu0 %v15303_v61  ;;  %19563 = vmatprep.mubr.msk.bf16.mxu0 %vm20927_vm5, %v25136_v22 }
0x1442   :  { %19561 = vmatprep.subr.bf16.mxu0 %v25136_v22 }
0x1445   :  { %19562 = vmatpush3.bf16.msra.mxu0 %v15359_v41 }
0x1448   :  { %19564 = vmatmul.mubr.msk.bf16.vlgmr.msra.gmra.mrb[180].mxu0 %vm11782_vm12, %v11706_v53  ;;  %vm15667_vm12 = vcmask 343040  }
0x1503   :  { %v15395_v34 = vpop.f32.mrb[168].mxu0 }
0x1504   :  { %v15568_v45 = vmul.f32 %v25574_v6, %v15395_v34  ;;  %v15397_v52 = vpop.f32.mrb[169].mxu0 }
0x1505   :  { %v15569_v60 = vmul.f32 %v25577_v59, %v15397_v52  ;;  %v15399_v44 = vpop.f32.mrb[170].mxu0 }
0x1506   :  { %v15400_v21 = vpop.f32.mrb[171].mxu0 }
0x1507   :  { %v15575_v42 = vadd.f32 %v15569_v60, %v15568_v45 }
0x150b   :  { %v15436_v38 = vpop.f32.mrb[172].mxu0 }
0x150c   :  { %v15570_v20 = vmul.f32 %v25583_v10, %v15436_v38  ;;  %v15438_v0 = vpop.f32.mrb[173].mxu0 }
0x150d   :  { %v15571_v39 = vmul.f32 %v25587_v17, %v15438_v0  ;;  %v15440_v12 = vpop.f32.mrb[174].mxu0 }
0x150e   :  { %v15576_v13 = vadd.f32 %v15575_v42, %v15570_v20  ;;  %v15441_v37 = vpop.f32.mrb[175].mxu0 }
0x1510   :  { %v15577_v35 = vadd.f32 %v15576_v13, %v15571_v39 }
0x1513   :  { %v15477_v30 = vpop.f32.mrb[176].mxu0 }
0x1514   :  { %v15572_v32 = vmul.f32 %v25595_v15, %v15477_v30  ;;  %v15479_v7 = vpop.f32.mrb[177].mxu0 }
0x1515   :  { %v15573_v43 = vmul.f32 %v25599_v16, %v15479_v7  ;;  %v15481_v49 = vpop.f32.mrb[178].mxu0 }
0x1516   :  { %v15578_v36 = vadd.f32 %v15577_v35, %v15572_v32  ;;  %v15482_v48 = vpop.f32.mrb[179].mxu0 }
0x1518   :  { %v15579_v11 = vadd.f32 %v15578_v36, %v15573_v43 }
0x151b   :  { %v15518_v46 = vpop.f32.mrb[180].mxu0 }
0x151c   :  { %v15574_v55 = vmul.f32 %v25606_v24, %v15518_v46  ;;  %v19565_v50 = vpop.f32.mrb[181].mxu0 }
0x151d   :  { %v15521_v56 = vpop.f32.mrb[182].mxu0 }
0x151e   :  { %v15580_v31 = vsel %vm4554_vm1, %v15574_v55, 0.0  ;;  %v19566_v57 = vpop.f32.mrb[183].mxu0 }
0x151f   :  { %v15581_v63 = vadd.f32 %v15580_v31, %v15579_v11 }
0x1521   :  { %15582 = vadd.xlane.f32.xlu0 %v15581_v63 }
0x15ae   :  { %v15583_v4 = vpop.xlane.xlu0 %15582 }
0x15af   :  { %v15584_v53 = vmul.f32 0.001953125, %v15583_v4 }
0x15b1   :  { %v15585_v62 = vsub.f32 %v15395_v34, %v15584_v53  ;;  %v15586_v51 = vsub.f32 %v15397_v52, %v15584_v53  ;;  %v15587_v61 = vsub.f32 %v15436_v38, %v15584_v53  ;;  %v15588_v14 = vsub.f32 %v15438_v0, %v15584_v53 }
0x15b2   :  { %v15589_v33 = vsub.f32 %v15477_v30, %v15584_v53  ;;  %v15591_v8 = vsub.f32 %v15518_v46, %v15584_v53  ;;  %v15590_v27 = vsub.f32 %v15479_v7, %v15584_v53 }
0x15b3   :  { %v15592_v9 = vmul.f32 %v15585_v62, %v15585_v62  ;;  %v15593_v26 = vmul.f32 %v15586_v51, %v15586_v51  ;;  %v15594_v47 = vmul.f32 %v15587_v61, %v15587_v61  ;;  %v15595_v54 = vmul.f32 %v15588_v14, %v15588_v14 }
0x15b4   :  { %v15596_v41 = vmul.f32 %v15589_v33, %v15589_v33  ;;  %v15598_v60 = vmul.f32 %v15591_v8, %v15591_v8  ;;  %v15597_v34 = vmul.f32 %v15590_v27, %v15590_v27 }
0x15b5   :  { %v15599_v28 = vmul.f32 %v15592_v9, %v25574_v6  ;;  %v15600_v1 = vmul.f32 %v15593_v26, %v25577_v59  ;;  %v15601_v40 = vmul.f32 %v15594_v47, %v25583_v10  ;;  %v15602_v52 = vmul.f32 %v15595_v54, %v25587_v17 }
0x15b6   :  { %v15603_v21 = vmul.f32 %v15596_v41, %v25595_v15  ;;  %v15605_v38 = vmul.f32 %v15598_v60, %v25606_v24  ;;  %v15604_v20 = vmul.f32 %v15597_v34, %v25599_v16 }
0x15b7   :  { %v15606_v45 = vadd.f32 %v15600_v1, %v15599_v28 }
0x15b8   :  { %v15611_v12 = vsel %vm4554_vm1, %v15605_v38, 0.0 }
0x15b9   :  { %v15607_v44 = vadd.f32 %v15606_v45, %v15601_v40 }
0x15bb   :  { %v15608_v42 = vadd.f32 %v15607_v44, %v15602_v52 }
0x15bd   :  { %v15609_v0 = vadd.f32 %v15608_v42, %v15603_v21 }
0x15bf   :  { %v15610_v39 = vadd.f32 %v15609_v0, %v15604_v20 }
0x15c1   :  { %v15612_v13 = vadd.f32 %v15611_v12, %v15610_v39 }
0x15c3   :  { %15613 = vadd.xlane.f32.xlu1 %v15612_v13 }
0x1650   :  { %v15614_v37 = vpop.xlane.xlu1 %15613 }
0x1651   :  { %v15615_v35 = vmul.f32 0.001953125, %v15614_v37 }
0x1653   :  { %v15616_v30 = vadd.f32 1e-05, %v15615_v35  ;;  %v15698_v35 = vld [vmem:[%s26062_s15 + $0x4] sm:$0xf] }
0x1655   :  { %20890 = vrsqrt.f32 %v15616_v30 }
0x165f   :  { %v20891_v32 = vpop.eup %20890 }
0x1660   :  { %v15619_v7 = vmul.f32 %v20891_v32, %v15586_v51  ;;  %v15618_v43 = vmul.f32 %v20891_v32, %v15585_v62  ;;  %v15621_v49 = vmul.f32 %v20891_v32, %v15588_v14  ;;  %v15620_v36 = vmul.f32 %v20891_v32, %v15587_v61 }
0x1661   :  { %v15623_v46 = vmul.f32 %v20891_v32, %v15590_v27  ;;  %v15622_v55 = vmul.f32 %v20891_v32, %v15589_v33  ;;  %v15624_v63 = vmul.f32 %v20891_v32, %v15591_v8 }
0x1662   :  { %v15626_v48 = vmax.f32 %v15619_v7, 0.0  ;;  %v15625_v11 = vmax.f32 %v15618_v43, 0.0  ;;  %v15628_v31 = vmax.f32 %v15621_v49, 0.0  ;;  %v15627_v57 = vmax.f32 %v15620_v36, 0.0 }
0x1663   :  { %v15630_v62 = vmax.f32 %v15623_v46, 0.0  ;;  %v15629_v51 = vmax.f32 %v15622_v55, 0.0  ;;  %v15631_v14 = vmax.f32 %v15624_v63, 0.0 }
0x1664   :  { %v15633_v50 = vmul.f32 %v15626_v48, %v25577_v59  ;;  %v15632_v56 = vmul.f32 %v15625_v11, %v25574_v6  ;;  %v15635_v4 = vmul.f32 %v15628_v31, %v25587_v17  ;;  %v15634_v53 = vmul.f32 %v15627_v57, %v25583_v10 }
0x1665   :  { %v15637_v61 = vmul.f32 %v15630_v62, %v25599_v16  ;;  %v15636_v59 = vmul.f32 %v15629_v51, %v25595_v15  ;;  %v15638_v6 = vmul.f32 %v15631_v14, %v25606_v24 }
0x1666   :  { %15655 = vrot.lane.b32.xlu1 %v15633_v50, %s20946_s14  ;;  %15653 = vrot.lane.b32.xlu0 %v15632_v56, %s20946_s14  ;;  %v15697_v50 = vld [vmem:[%s26062_s15] sm:$0xf] }
0x166a   :  { %15659 = vrot.lane.b32.xlu1 %v15635_v4, %s20946_s14  ;;  %15657 = vrot.lane.b32.xlu0 %v15634_v53, %s20946_s14 }
0x166e   :  { %15663 = vrot.lane.b32.xlu1 %v15637_v61, %s20946_s14  ;;  %15661 = vrot.lane.b32.xlu0 %v15636_v59, %s20946_s14 }
0x1672   :  { %15665 = vrot.lane.b32.xlu0 %v15638_v6, %s20946_s14 }
0x16d8   :  { %v15656_v33 = vpop.permute.xlu1 %15655  ;;  %v15654_v17 = vpop.permute.xlu0 %15653 }
0x16d9   :  { %v15668_v10 = vsel %vm15667_vm12, %v15654_v17, %v15656_v33  ;;  %15682 = vst.msk [vmem:[#allocation4] sm:$0xff] %vm15681_vm8, %v15654_v17  ;;  %vm26422_vm8 = vmmov %vm26414_vm6  ;;  %v15699_v17 = vld [vmem:[%s26062_s15 + $0x8] sm:$0xf] }
0x16da   :  { %v25626_v9 = vpack.c.bf16 %v15668_v10, %v15668_v10 }
0x16dc   :  { %v15660_v26 = vpop.permute.xlu1 %15659  ;;  %v15658_v47 = vpop.permute.xlu0 %15657  ;;  %15722 = vrot.lane.b32.xlu0 %v25626_v9, %s20915_s23 }
0x16dd   :  { %v15669_v15 = vsel %vm15667_vm12, %v15656_v33, %v15658_v47  ;;  %v15670_v16 = vsel %vm15667_vm12, %v15658_v47, %v15660_v26 }
0x16de   :  { %v25632_v24 = vpack.c.bf16 %v15670_v16, %v15670_v16  ;;  %v25646_v60 = vpack.c.bf16 %v15669_v15, %v15669_v15 }
0x16e0   :  { %v15690_v8 = vld [vmem:[#allocation4] sm:$0xff]  ;;  %v15664_v27 = vpop.permute.xlu1 %15663  ;;  %v15662_v54 = vpop.permute.xlu0 %15661  ;;  %15726 = vrot.lane.b32.xlu0 %v25632_v24, %s20915_s23  ;;  %v15937_v56 = vsel %vm26413_vm0, %v25646_v60, 0 }
0x16e1   :  { %v25636_v28 = vpack.c.bf16 %v15690_v8, %v15690_v8  ;;  %v15671_v1 = vsel %vm15667_vm12, %v15660_v26, %v15662_v54  ;;  %v15672_v41 = vsel %vm15667_vm12, %v15662_v54, %v15664_v27 }
0x16e2   :  { %v25640_v40 = vpack.c.bf16 %v15672_v41, %v15672_v41  ;;  %v25653_v52 = vpack.c.bf16 %v15671_v1, %v15671_v1 }
0x16e3   :  { %15720 = vrot.lane.b32.xlu1 %v25636_v28, %s20915_s23 }
0x16e4   :  { %v15666_v45 = vpop.permute.xlu0 %15665  ;;  %15730 = vrot.lane.b32.xlu0 %v25640_v40, %s20915_s23 }
0x16e5   :  { %v15673_v34 = vsel %vm15667_vm12, %v15664_v27, %v15666_v45  ;;  %vm26420_vm12 = vmmov %vm26414_vm6 }
0x16e6   :  { %15689 = vst.msk [vmem:[#allocation4 + $0x30] sm:$0xff] %vm15688_vm11, %v15673_v34  ;;  %vm26423_vm11 = vmmov %vm26413_vm0 }
0x16e7   :  { %15724 = vrot.lane.b32.xlu1 %v25646_v60, %s20915_s23  ;;  %v15931_v55 = vsel %vm26423_vm11, %v25636_v28, 0  ;;  %vm26435_vm11 = vmmov %vm26413_vm0 }
0x16e8   :  { %16114 = vrot.lane.b32.xlu0 %v25636_v28, %s20917_s28 }
0x16eb   :  { %15728 = vrot.lane.b32.xlu1 %v25653_v52, %s20915_s23 }
0x16ec   :  { %16118 = vrot.lane.b32.xlu0 %v25646_v60, %s20917_s28 }
0x16ed   :  { %v15696_v44 = vld [vmem:[#allocation4 + $0x30] sm:$0xff] }
0x16ee   :  { %v25659_v21 = vpack.c.bf16 %v15696_v44, %v15696_v44 }
0x16f0   :  { %15732 = vrot.lane.b32.xlu1 %v25659_v21, %s20915_s23  ;;  %16122 = vrot.lane.b32.xlu0 %v25653_v52, %s20917_s28 }
0x16f4   :  { %16116 = vrot.lane.b32.xlu1 %v25626_v9, %s20917_s28  ;;  %16126 = vrot.lane.b32.xlu0 %v25659_v21, %s20917_s28 }
0x16f8   :  { %16120 = vrot.lane.b32.xlu1 %v25632_v24, %s20917_s28  ;;  %16330 = vrot.lane.b32.xlu0 %v25626_v9, %s26162_s9 }
0x16fc   :  { %16124 = vrot.lane.b32.xlu1 %v25640_v40, %s20917_s28  ;;  %16334 = vrot.lane.b32.xlu0 %v25632_v24, %s26162_s9 }
0x1700   :  { %16328 = vrot.lane.b32.xlu1 %v25636_v28, %s26162_s9  ;;  %16338 = vrot.lane.b32.xlu0 %v25640_v40, %s26162_s9 }
0x1704   :  { %16332 = vrot.lane.b32.xlu1 %v25646_v60, %s26162_s9  ;;  %16542 = vrot.lane.b32.xlu0 %v25636_v28, %s26163_s29 }
0x1708   :  { %16336 = vrot.lane.b32.xlu1 %v25653_v52, %s26162_s9  ;;  %16546 = vrot.lane.b32.xlu0 %v25646_v60, %s26163_s29 }
0x170c   :  { %16340 = vrot.lane.b32.xlu1 %v25659_v21, %s26162_s9  ;;  %16550 = vrot.lane.b32.xlu0 %v25653_v52, %s26163_s29 }
0x1710   :  { %16544 = vrot.lane.b32.xlu1 %v25626_v9, %s26163_s29  ;;  %16554 = vrot.lane.b32.xlu0 %v25659_v21, %s26163_s29 }
0x1714   :  { %16548 = vrot.lane.b32.xlu1 %v25632_v24, %s26163_s29  ;;  %16758 = vrot.lane.b32.xlu0 %v25626_v9, %s26166_s2 }
0x1718   :  { %16552 = vrot.lane.b32.xlu1 %v25640_v40, %s26163_s29  ;;  %16762 = vrot.lane.b32.xlu0 %v25632_v24, %s26166_s2 }
0x171c   :  { %16756 = vrot.lane.b32.xlu1 %v25636_v28, %s26166_s2  ;;  %16766 = vrot.lane.b32.xlu0 %v25640_v40, %s26166_s2 }
0x1720   :  { %16760 = vrot.lane.b32.xlu1 %v25646_v60, %s26166_s2  ;;  %16970 = vrot.lane.b32.xlu0 %v25636_v28, %s26180_s21 }
0x1724   :  { %16764 = vrot.lane.b32.xlu1 %v25653_v52, %s26166_s2  ;;  %16974 = vrot.lane.b32.xlu0 %v25646_v60, %s26180_s21 }
0x1728   :  { %16768 = vrot.lane.b32.xlu1 %v25659_v21, %s26166_s2  ;;  %16978 = vrot.lane.b32.xlu0 %v25653_v52, %s26180_s21 }
0x172c   :  { %16972 = vrot.lane.b32.xlu1 %v25626_v9, %s26180_s21  ;;  %16982 = vrot.lane.b32.xlu0 %v25659_v21, %s26180_s21 }
0x1730   :  { %16976 = vrot.lane.b32.xlu1 %v25632_v24, %s26180_s21  ;;  %17186 = vrot.lane.b32.xlu0 %v25626_v9, %s26185_s5 }
0x1734   :  { %16980 = vrot.lane.b32.xlu1 %v25640_v40, %s26180_s21  ;;  %17190 = vrot.lane.b32.xlu0 %v25632_v24, %s26185_s5 }
0x1738   :  { %17184 = vrot.lane.b32.xlu1 %v25636_v28, %s26185_s5  ;;  %17194 = vrot.lane.b32.xlu0 %v25640_v40, %s26185_s5 }
0x173c   :  { %17188 = vrot.lane.b32.xlu1 %v25646_v60, %s26185_s5  ;;  %17398 = vrot.lane.b32.xlu0 %v25636_v28, %s26192_s30 }
0x1740   :  { %17192 = vrot.lane.b32.xlu1 %v25653_v52, %s26185_s5  ;;  %17402 = vrot.lane.b32.xlu0 %v25646_v60, %s26192_s30 }
0x1744   :  { %17196 = vrot.lane.b32.xlu1 %v25659_v21, %s26185_s5  ;;  %17406 = vrot.lane.b32.xlu0 %v25653_v52, %s26192_s30 }
0x1748   :  { %17400 = vrot.lane.b32.xlu1 %v25626_v9, %s26192_s30  ;;  %17410 = vrot.lane.b32.xlu0 %v25659_v21, %s26192_s30 }
0x174c   :  { %17404 = vrot.lane.b32.xlu1 %v25632_v24, %s26192_s30 }
0x174e   :  { %v15723_v38 = vpop.permute.xlu0 %15722 }
0x1750   :  { %17408 = vrot.lane.b32.xlu1 %v25640_v40, %s26192_s30 }
0x1752   :  { %v15727_v13 = vpop.permute.xlu0 %15726 }
0x1755   :  { %v15721_v42 = vpop.permute.xlu1 %15720 }
0x1756   :  { %v15734_v20 = vsel %vm120_vm2, %v15721_v42, %v15723_v38  ;;  %v15731_v43 = vpop.permute.xlu0 %15730 }
0x1757   :  { %v15744_v12 = vsel %vm26394_vm4, %v15734_v20, 0  ;;  %vm26424_vm4 = vmmov %vm26413_vm0 }
0x1759   :  { %v15725_v0 = vpop.permute.xlu1 %15724 }
0x175a   :  { %v15735_v39 = vsel %vm120_vm2, %v15723_v38, %v15725_v0  ;;  %v15736_v37 = vsel %vm120_vm2, %v15725_v0, %v15727_v13  ;;  %v16115_v57 = vpop.permute.xlu0 %16114 }
0x175b   :  { %18666 = vmatprep.subr.msk.bf16.mxu1 %vm26412_vm13, %v15735_v39  ;;  %v15750_v7 = vsel %vm26413_vm0, %v15736_v37, 0  ;;  %vm26425_vm13 = vmmov %vm26414_vm6 }
0x175c   :  { %15765 = vmatpush1.bf16.msra.mxu1 %v15744_v12 }
0x175d   :  { %v15729_v30 = vpop.permute.xlu1 %15728 }
0x175e   :  { %v15737_v32 = vsel %vm120_vm2, %v15727_v13, %v15729_v30  ;;  %v15738_v48 = vsel %vm120_vm2, %v15729_v30, %v15731_v43  ;;  %v16119_v4 = vpop.permute.xlu0 %16118 }
0x175f   :  { %18667 = vmatmul.mubr.msk.bf16.vlgmr.msra.gmra.mrb[188].mxu1 %vm26414_vm6, %v15698_v35  ;;  %18668 = vmatprep.subr.msk.bf16.mxu1 %vm26415_vm10, %v15737_v32  ;;  %v15756_v11 = vsel %vm26417_vm14, %v15738_v48, 0  ;;  %vm26426_vm6 = vmmov %vm26413_vm0  ;;  %v15701_v48 = vld [vmem:[%s26062_s15 + $0x10] sm:$0xf] }
0x1760   :  { %15806 = vmatpush1.bf16.msra.mxu1 %v15750_v7  ;;  %15837 = vmatprep.mubr.bf16.mxu1 %v20914_v3  ;;  %vm26427_vm10 = vmmov %vm26422_vm8 }
0x1761   :  { %vm26429_vm14 = vmmov %vm26422_vm8 }
0x1762   :  { %v15733_v49 = vpop.permute.xlu1 %15732  ;;  %v16123_v14 = vpop.permute.xlu0 %16122 }
0x1763   :  { %v15739_v36 = vsel %vm120_vm2, %v15731_v43, %v15733_v49  ;;  %v15762_v46 = vsel %vm26419_vm7, %v15733_v49, 0  ;;  %vm26421_vm2 = vmmov %vm26413_vm0 }
0x1764   :  { %18670 = vmatprep.subr.msk.bf16.mxu1 %vm26416_vm9, %v15739_v36  ;;  %vm26428_vm9 = vmmov %vm26413_vm0 }
0x1765   :  { %v15943_v31 = vsel %vm26428_vm9, %v25653_v52, 0  ;;  %vm26431_vm7 = vmmov %vm26413_vm0  ;;  %v15700_v52 = vld [vmem:[%s26062_s15 + $0xc] sm:$0xf] }
0x1766   :  { %v16117_v63 = vpop.permute.xlu1 %16116  ;;  %v16127_v26 = vpop.permute.xlu0 %16126 }
0x1767   :  { %18669 = vmatmul.mubr.msk.bf16.vlgmr.msra.gmra.mrb[192].mxu1 %vm26418_vm15, %v15698_v35  ;;  %vm26430_vm15 = vmmov %vm26413_vm0  ;;  %v16129_v62 = vsel %vm517_vm3, %v16117_v63, %v16119_v4  ;;  %v16128_v51 = vsel %vm517_vm3, %v16115_v57, %v16117_v63 }
0x1768   :  { %15847 = vmatpush1.bf16.msra.mxu1 %v15756_v11  ;;  %15878 = vmatprep.mubr.bf16.mxu1 %v20914_v3  ;;  %v15949_v53 = vsel %vm26430_vm15, %v25659_v21, 0 }
0x1769   :  { %19567 = vmatprep.subr.bf16.mxu1 %v25136_v22 }
0x176a   :  { %v16121_v61 = vpop.permute.xlu1 %16120  ;;  %v16331_v54 = vpop.permute.xlu0 %16330 }
0x176b   :  { %v16131_v6 = vsel %vm517_vm3, %v16121_v61, %v16123_v14  ;;  %v16130_v33 = vsel %vm517_vm3, %v16119_v4, %v16121_v61 }
0x176e   :  { %v16125_v10 = vpop.permute.xlu1 %16124  ;;  %v16335_v45 = vpop.permute.xlu0 %16334 }
0x176f   :  { %18671 = vmatmul.mubr.msk.bf16.vlgmr.msra.gmra.mrb[196].mxu1 %vm26420_vm12, %v15698_v35  ;;  %vm26432_vm12 = vmmov %vm26413_vm0  ;;  %v16133_v47 = vsel %vm517_vm3, %v16125_v10, %v16127_v26  ;;  %v16132_v15 = vsel %vm517_vm3, %v16123_v14, %v16125_v10 }
0x1770   :  { %19568 = vmatpush3.bf16.msra.mxu1 %v15762_v46  ;;  %19569 = vmatprep.mubr.msk.bf16.mxu1 %vm20927_vm5, %v25136_v22  ;;  %v16138_v59 = vsel %vm26432_vm12, %v16128_v51, 0  ;;  %v16150_v16 = vsel %vm26413_vm0, %v16132_v15, 0  ;;  %vm26442_vm3 = vmmov %vm26413_vm0 }
0x1771   :  { %18673 = vmatprep.subr.msk.bf16.mxu1 %vm26421_vm2, %v25626_v9  ;;  %vm26433_vm2 = vmmov %vm26422_vm8  ;;  %v16144_v9 = vsel %vm26435_vm11, %v16130_v33, 0 }
0x1772   :  { %vm26440_vm9 = vmmov %vm26433_vm2  ;;  %v16339_v42 = vpop.permute.xlu0 %16338 }
0x1773   :  { %vm26445_vm12 = vmmov %vm26433_vm2 }
0x1776   :  { %v16543_v39 = vpop.permute.xlu0 %16542 }
0x1777   :  { %19570 = vmatmul.mubr.msk.bf16.vlgmr.msra.gmra.mrb[200].mxu1 %vm26422_vm8, %v15698_v35  ;;  %vm26434_vm8 = vmmov %vm26413_vm0 }
0x1778   :  { %15952 = vmatpush1.bf16.msra.mxu1 %v15931_v55  ;;  %15983 = vmatprep.mubr.bf16.mxu1 %v20914_v3 }
0x1779   :  { %18675 = vmatprep.subr.msk.bf16.mxu1 %vm26424_vm4, %v25632_v24  ;;  %vm26436_vm4 = vmmov %vm26433_vm2  ;;  %v16329_v24 = vpop.permute.xlu1 %16328 }
0x177a   :  { %v16547_v37 = vpop.permute.xlu0 %16546 }
0x177d   :  { %v16333_v8 = vpop.permute.xlu1 %16332 }
0x177e   :  { %v16551_v43 = vpop.permute.xlu0 %16550 }
0x177f   :  { %18674 = vmatmul.mubr.msk.bf16.vlgmr.msra.gmra.mrb[188].mxu1 %vm26425_vm13, %v15697_v50  ;;  %vm26437_vm13 = vmmov %vm26413_vm0 }
0x1780   :  { %15993 = vmatpush1.bf16.msra.mxu1 %v15937_v56  ;;  %16024 = vmatprep.mubr.bf16.mxu1 %v20914_v3 }
0x1781   :  { %18677 = vmatprep.subr.msk.bf16.mxu1 %vm26426_vm6, %v25640_v40  ;;  %vm26438_vm6 = vmmov %vm26433_vm2  ;;  %v16337_v41 = vpop.permute.xlu1 %16336 }
0x1782   :  { %v16555_v55 = vpop.permute.xlu0 %16554 }
0x1785   :  { %v16341_v44 = vpop.permute.xlu1 %16340 }
0x1786   :  { %v16370_v13 = vsel %vm26442_vm3, %v16341_v44, 0 }
0x1787   :  { %18676 = vmatmul.mubr.msk.bf16.vlgmr.msra.gmra.mrb[192].mxu1 %vm26427_vm10, %v15697_v50  ;;  %vm26439_vm10 = vmmov %vm26413_vm0 }
0x1788   :  { %16034 = vmatpush1.bf16.msra.mxu1 %v15943_v31  ;;  %16065 = vmatprep.mubr.bf16.mxu1 %v20914_v3  ;;  %v16156_v27 = vsel %vm26439_vm10, %v16127_v26, 0 }
0x1789   :  { %19573 = vmatprep.subr.bf16.mxu1 %v25136_v22  ;;  %v16545_v12 = vpop.permute.xlu1 %16544 }
0x178d   :  { %v16549_v32 = vpop.permute.xlu1 %16548 }
0x178f   :  { %18678 = vmatmul.mubr.msk.bf16.vlgmr.msra.gmra.mrb[196].mxu1 %vm26429_vm14, %v15697_v50  ;;  %vm26441_vm14 = vcmask 883712  }
0x1790   :  { %19574 = vmatpush3.bf16.msra.mxu1 %v15949_v53  ;;  %19575 = vmatprep.mubr.msk.bf16.mxu1 %vm20927_vm5, %v25136_v22  ;;  %v16343_v28 = vsel %vm26441_vm14, %v16331_v54, %v16333_v8  ;;  %vm26443_vm15 = vmmov %vm26441_vm14  ;;  %v16759_v53 = vpop.permute.xlu0 %16758 }
0x1791   :  { %18680 = vmatprep.subr.msk.bf16.mxu1 %vm26431_vm7, %v16129_v62  ;;  %v16342_v1 = vsel %vm26443_vm15, %v16329_v24, %v16331_v54  ;;  %vm26444_vm7 = vmmov %vm26413_vm0  ;;  %v16553_v11 = vpop.permute.xlu1 %16552 }
0x1792   :  { %v16352_v40 = vsel %vm26444_vm7, %v16342_v1, 0  ;;  %vm26456_vm15 = vmmov %vm26445_vm12  ;;  %vm26457_vm7 = vcmask 875520  }
0x1793   :  { %v16557_v35 = vsel %vm26457_vm7, %v16545_v12, %v16547_v37 }
0x1794   :  { %v16763_v14 = vpop.permute.xlu0 %16762 }
0x1795   :  { %v16757_v57 = vpop.permute.xlu1 %16756 }
0x1797   :  { %19576 = vmatmul.mubr.msk.bf16.vlgmr.msra.gmra.mrb[200].mxu1 %vm26433_vm2, %v15697_v50  ;;  %vm26446_vm2 = vmmov %vm26441_vm14 }
0x1798   :  { %16159 = vmatpush1.bf16.msra.mxu1 %v16138_v59  ;;  %16190 = vmatprep.mubr.bf16.mxu1 %v20914_v3  ;;  %v16345_v60 = vsel %vm26446_vm2, %v16335_v45, %v16337_v41  ;;  %vm26448_vm11 = vmmov %vm26446_vm2  ;;  %v16767_v26 = vpop.permute.xlu0 %16766 }
0x1799   :  { %18682 = vmatprep.subr.msk.bf16.mxu1 %vm26434_vm8, %v16131_v6  ;;  %vm26447_vm8 = vmmov %vm26413_vm0  ;;  %v16344_v34 = vsel %vm26448_vm11, %v16333_v8, %v16335_v45  ;;  %v16761_v63 = vpop.permute.xlu1 %16760 }
0x179a   :  { %vm26455_vm14 = vmmov %vm26445_vm12 }
0x179c   :  { %v16971_v24 = vpop.permute.xlu0 %16970 }
0x179d   :  { %v16765_v61 = vpop.permute.xlu1 %16764 }
0x179f   :  { %18681 = vmatmul.mubr.msk.bf16.vlgmr.msra.gmra.mrb[188].mxu1 %vm26436_vm4, %v15699_v17  ;;  %vm26449_vm4 = vmmov %vm26413_vm0 }
0x17a0   :  { %16200 = vmatpush1.bf16.msra.mxu1 %v16144_v9  ;;  %16231 = vmatprep.mubr.bf16.mxu1 %v20914_v3  ;;  %v16358_v21 = vsel %vm26449_vm4, %v16344_v34, 0  ;;  %vm26451_vm0 = vmmov %vm26446_vm2  ;;  %v16975_v54 = vpop.permute.xlu0 %16974 }
0x17a1   :  { %18684 = vmatprep.subr.msk.bf16.mxu1 %vm26437_vm13, %v16133_v47  ;;  %vm26450_vm13 = vmmov %vm26438_vm6  ;;  %v16347_v38 = vsel %vm26451_vm0, %v16339_v42, %v16341_v44  ;;  %v16769_v10 = vpop.permute.xlu1 %16768 }
0x17a2   :  { %vm26453_vm10 = vmmov %vm26451_vm0 }
0x17a3   :  { %v16346_v20 = vsel %vm26453_vm10, %v16337_v41, %v16339_v42  ;;  %vm26459_vm2 = vmmov %vm26457_vm7 }
0x17a4   :  { %v16556_v30 = vsel %vm26459_vm2, %v16543_v39, %v16545_v12  ;;  %vm26461_vm11 = vmmov %vm26450_vm13  ;;  %v16979_v45 = vpop.permute.xlu0 %16978 }
0x17a5   :  { %vm26462_vm4 = vmmov %vm26459_vm2  ;;  %v16973_v8 = vpop.permute.xlu1 %16972 }
0x17a6   :  { %v16559_v49 = vsel %vm26462_vm4, %v16549_v32, %v16551_v43  ;;  %vm26464_vm0 = vmmov %vm26459_vm2 }
0x17a7   :  { %18683 = vmatmul.mubr.msk.bf16.vlgmr.msra.gmra.mrb[192].mxu1 %vm26438_vm6, %v15699_v17  ;;  %vm26452_vm6 = vmmov %vm26442_vm3  ;;  %v16558_v36 = vsel %vm26464_vm0, %v16547_v37, %v16549_v32 }
0x17a8   :  { %16241 = vmatpush1.bf16.msra.mxu1 %v16150_v16  ;;  %16272 = vmatprep.mubr.bf16.mxu1 %v20914_v3  ;;  %vm26466_vm10 = vmmov %vm26461_vm11  ;;  %v16983_v42 = vpop.permute.xlu0 %16982 }
0x17a9   :  { %19579 = vmatprep.subr.bf16.mxu1 %v25136_v22  ;;  %vm26471_vm7 = vmmov %vm26466_vm10  ;;  %v16977_v41 = vpop.permute.xlu1 %16976 }
0x17aa   :  { %vm26473_vm2 = vmmov %vm26471_vm7 }
0x17ac   :  { %v17187_v37 = vpop.permute.xlu0 %17186 }
0x17ad   :  { %v16981_v44 = vpop.permute.xlu1 %16980 }
0x17af   :  { %18685 = vmatmul.mubr.msk.bf16.vlgmr.msra.gmra.mrb[196].mxu1 %vm26440_vm9, %v15699_v17  ;;  %vm26454_vm9 = vmmov %vm26442_vm3 }
0x17b0   :  { %19580 = vmatpush3.bf16.msra.mxu1 %v16156_v27  ;;  %19581 = vmatprep.mubr.msk.bf16.mxu1 %vm20927_vm5, %v25136_v22  ;;  %v16364_v0 = vsel %vm26454_vm9, %v16346_v20, 0  ;;  %vm26467_vm9 = vmmov %vm26464_vm0 }
0x17b1   :  { %18687 = vmatprep.subr.msk.bf16.mxu1 %vm26442_vm3, %v16343_v28  ;;  %v16561_v50 = vsel %vm26467_vm9, %v16553_v11, %v16555_v55  ;;  %v17185_v39 = vpop.permute.xlu1 %17184 }
0x17b5   :  { %v17189_v12 = vpop.permute.xlu1 %17188 }
0x17b7   :  { %19582 = vmatmul.mubr.msk.bf16.vlgmr.msra.gmra.mrb[200].mxu1 %vm26445_vm12, %v15699_v17  ;;  %vm26458_vm12 = vmmov %vm26442_vm3  ;;  %v15702_v17 = vld [vmem:[%s26062_s15 + $0x14] sm:$0xf] }
0x17b8   :  { %16373 = vmatpush1.bf16.msra.mxu1 %v16352_v40  ;;  %16404 = vmatprep.mubr.bf16.mxu1 %v20914_v3 }
0x17b9   :  { %18689 = vmatprep.subr.msk.bf16.mxu1 %vm26447_vm8, %v16345_v60  ;;  %vm26460_vm8 = vmmov %vm26442_vm3  ;;  %v17193_v32 = vpop.permute.xlu1 %17192 }
0x17ba   :  { %v16566_v7 = vsel %vm26460_vm8, %v16556_v30, 0  ;;  %vm26474_vm8 = vcmask 867328  }
0x17bb   :  { %v16771_v62 = vsel %vm26474_vm8, %v16759_v53, %v16761_v63  ;;  %vm26476_vm4 = vmmov %vm26474_vm8 }
0x17bc   :  { %v16770_v51 = vsel %vm26476_vm4, %v16757_v57, %v16759_v53  ;;  %vm26481_vm9 = vmmov %vm26476_vm4 }
0x17bd   :  { %v16772_v33 = vsel %vm26481_vm9, %v16761_v63, %v16763_v14 }
0x17bf   :  { %18688 = vmatmul.mubr.msk.bf16.vlgmr.msra.gmra.mrb[188].mxu1 %vm26450_vm13, %v15700_v52  ;;  %vm26463_vm13 = vmmov %vm26442_vm3 }
0x17c0   :  { %16414 = vmatpush1.bf16.msra.mxu1 %v16358_v21  ;;  %16445 = vmatprep.mubr.bf16.mxu1 %v20914_v3 }
0x17c1   :  { %18691 = vmatprep.subr.msk.bf16.mxu1 %vm26452_vm6, %v16347_v38  ;;  %vm26465_vm6 = vmmov %vm26442_vm3 }
0x17c2   :  { %v16572_v46 = vsel %vm26465_vm6, %v16558_v36, 0 }
0x17c7   :  { %18690 = vmatmul.mubr.msk.bf16.vlgmr.msra.gmra.mrb[192].mxu1 %vm26455_vm14, %v15700_v52  ;;  %vm26468_vm14 = vmmov %vm26442_vm3 }
0x17c8   :  { %16455 = vmatpush1.bf16.msra.mxu1 %v16364_v0  ;;  %16486 = vmatprep.mubr.bf16.mxu1 %v20914_v3  ;;  %vm26469_vm3 = vmmov %vm26464_vm0 }
0x17c9   :  { %19585 = vmatprep.subr.bf16.mxu1 %v25136_v22  ;;  %v16560_v56 = vsel %vm26469_vm3, %v16551_v43, %v16553_v11  ;;  %vm26478_vm0 = vmmov %vm26473_vm2  ;;  %v17191_v43 = vpop.permute.xlu0 %17190  ;;  %v17197_v11 = vpop.permute.xlu1 %17196 }
0x17ca   :  { %vm26483_vm3 = vmmov %vm26478_vm0 }
0x17cb   :  { %vm26488_vm8 = vmmov %vm26478_vm0 }
0x17cc   :  { %vm26495_vm9 = vmmov %vm26483_vm3 }
0x17cd   :  { %v17401_v63 = vpop.permute.xlu1 %17400 }
0x17cf   :  { %18692 = vmatmul.mubr.msk.bf16.vlgmr.msra.gmra.mrb[196].mxu1 %vm26456_vm15, %v15700_v52  ;;  %vm26470_vm15 = vmmov %vm26465_vm6 }
0x17d0   :  { %19586 = vmatpush3.bf16.msra.mxu1 %v16370_v13  ;;  %19587 = vmatprep.mubr.msk.bf16.mxu1 %vm20927_vm5, %v25136_v22  ;;  %v16578_v31 = vsel %vm26470_vm15, %v16560_v56, 0  ;;  %vm26484_vm15 = vmmov %vm26476_vm4 }
0x17d1   :  { %18694 = vmatprep.subr.msk.bf16.mxu1 %vm26458_vm12, %v16557_v35  ;;  %vm26472_vm12 = vmmov %vm26465_vm6  ;;  %v16775_v47 = vsel %vm26484_vm15, %v16767_v26, %v16769_v10 }
0x17d2   :  { %v16584_v4 = vsel %vm26472_vm12, %v16555_v55, 0  ;;  %vm26486_vm12 = vmmov %vm26476_vm4  ;;  %v17195_v55 = vpop.permute.xlu0 %17194 }
0x17d3   :  { %v16774_v15 = vsel %vm26486_vm12, %v16765_v61, %v16767_v26 }
0x17d6   :  { %v17399_v57 = vpop.permute.xlu0 %17398 }
0x17d7   :  { %19588 = vmatmul.mubr.msk.bf16.vlgmr.msra.gmra.mrb[200].mxu1 %vm26461_vm11, %v15700_v52  ;;  %vm26475_vm11 = vmmov %vm26465_vm6  ;;  %v15703_v52 = vld [vmem:[%s26062_s15 + $0x18] sm:$0xf] }
0x17d8   :  { %16587 = vmatpush1.bf16.msra.mxu1 %v16566_v7  ;;  %16618 = vmatprep.mubr.bf16.mxu1 %v20914_v3 }
0x17d9   :  { %18696 = vmatprep.subr.msk.bf16.mxu1 %vm26463_vm13, %v16559_v49  ;;  %vm26477_vm13 = vmmov %vm26465_vm6 }
0x17da   :  { %v16780_v59 = vsel %vm26477_vm13, %v16770_v51, 0  ;;  %vm26479_vm6 = vmmov %vm26476_vm4  ;;  %vm26491_vm13 = vcmask 719872   ;;  %v17403_v53 = vpop.permute.xlu0 %17402 }
0x17db   :  { %v16773_v6 = vsel %vm26479_vm6, %v16763_v14, %v16765_v61  ;;  %vm26490_vm4 = vmmov %vm26478_vm0  ;;  %v16985_v28 = vsel %vm26491_vm13, %v16973_v8, %v16975_v54  ;;  %v17405_v61 = vpop.permute.xlu1 %17404 }
0x17dc   :  { %vm26493_vm6 = vmmov %vm26491_vm13 }
0x17dd   :  { %v16984_v1 = vsel %vm26493_vm6, %v16971_v24, %v16973_v8  ;;  %vm26498_vm15 = vmmov %vm26493_vm6  ;;  %v17612_v8 = vld [vmem:[%s26063_s16] sm:$0x7f] }
0x17de   :  { %v16986_v34 = vsel %vm26498_vm15, %v16975_v54, %v16977_v41  ;;  %vm26500_vm12 = vmmov %vm26490_vm4  ;;  %v17407_v14 = vpop.permute.xlu0 %17406  ;;  %v17621_v54 = vrot.slane %v17612_v8, %v22826_v23 }
0x17df   :  { %18695 = vmatmul.mubr.msk.bf16.vlgmr.msra.gmra.mrb[188].mxu1 %vm26466_vm10, %v15701_v48  ;;  %vm26480_vm10 = vmmov %vm26475_vm11 }
0x17e0   :  { %16628 = vmatpush1.bf16.msra.mxu1 %v16572_v46  ;;  %16659 = vmatprep.mubr.bf16.mxu1 %v20914_v3  ;;  %vm26505_vm13 = vmmov %vm26495_vm9 }
0x17e1   :  { %18698 = vmatprep.subr.msk.bf16.mxu1 %vm26468_vm14, %v16561_v50  ;;  %vm26482_vm14 = vmmov %vm26480_vm10 }
0x17e2   :  { %v16786_v9 = vsel %vm26482_vm14, %v16772_v33, 0  ;;  %vm26496_vm14 = vmmov %vm26493_vm6  ;;  %v17411_v26 = vpop.permute.xlu0 %17410 }
0x17e3   :  { %v16987_v60 = vsel %vm26496_vm14, %v16977_v41, %v16979_v45 }
0x17e7   :  { %18697 = vmatmul.mubr.msk.bf16.vlgmr.msra.gmra.mrb[192].mxu1 %vm26471_vm7, %v15701_v48  ;;  %vm26485_vm7 = vmmov %vm26480_vm10 }
0x17e8   :  { %16669 = vmatpush1.bf16.msra.mxu1 %v16578_v31  ;;  %16700 = vmatprep.mubr.bf16.mxu1 %v20914_v3 }
0x17e9   :  { %19591 = vmatprep.subr.bf16.mxu1 %v25136_v22 }
0x17ef   :  { %18699 = vmatmul.mubr.msk.bf16.vlgmr.msra.gmra.mrb[196].mxu1 %vm26473_vm2, %v15701_v48  ;;  %vm26487_vm2 = vmmov %vm26485_vm7 }
0x17f0   :  { %19592 = vmatpush3.bf16.msra.mxu1 %v16584_v4  ;;  %19593 = vmatprep.mubr.msk.bf16.mxu1 %vm20927_vm5, %v25136_v22  ;;  %v16792_v16 = vsel %vm26487_vm2, %v16774_v15, 0 }
0x17f1   :  { %18701 = vmatprep.subr.msk.bf16.mxu1 %vm26475_vm11, %v16771_v62  ;;  %vm26489_vm11 = vmmov %vm26487_vm2 }
0x17f2   :  { %v16798_v27 = vsel %vm26489_vm11, %v16769_v10, 0  ;;  %v17409_v10 = vpop.permute.xlu1 %17408 }
0x17f7   :  { %19594 = vmatmul.mubr.msk.bf16.vlgmr.msra.gmra.mrb[200].mxu1 %vm26478_vm0, %v15701_v48  ;;  %vm26492_vm0 = vmmov %vm26487_vm2  ;;  %v15704_v48 = vld [vmem:[%s26062_s15 + $0x1c] sm:$0xf] }
0x17f8   :  { %16801 = vmatpush1.bf16.msra.mxu1 %v16780_v59  ;;  %16832 = vmatprep.mubr.bf16.mxu1 %v20914_v3  ;;  %vm26501_vm2 = vmmov %vm26493_vm6  ;;  %v17012_v13 = vsel %vm26492_vm0, %v16983_v42, 0 }
0x17f9   :  { %18703 = vmatprep.subr.msk.bf16.mxu1 %vm26480_vm10, %v16773_v6  ;;  %vm26494_vm10 = vmmov %vm26492_vm0  ;;  %v16989_v38 = vsel %vm26501_vm2, %v16981_v44, %v16983_v42 }
0x17fa   :  { %v16994_v40 = vsel %vm26494_vm10, %v16984_v1, 0  ;;  %vm26503_vm11 = vmmov %vm26501_vm2  ;;  %vm26507_vm10 = vcmask 711680  }
0x17fb   :  { %v16988_v20 = vsel %vm26503_vm11, %v16979_v45, %v16981_v44  ;;  %vm26506_vm6 = vmmov %vm26495_vm9  ;;  %v17199_v35 = vsel %vm26507_vm10, %v17187_v37, %v17189_v12  ;;  %v17629_v44 = vrot.slane %v17612_v8, %v15547_v25 }
0x17fc   :  { %vm26509_vm14 = vmmov %vm26507_vm10 }
0x17fd   :  { %v17198_v30 = vsel %vm26509_vm14, %v17185_v39, %v17187_v37  ;;  %vm26511_vm15 = vmmov %vm26506_vm6 }
0x17fe   :  { %vm26516_vm11 = vmmov %vm26506_vm6 }
0x17ff   :  { %18702 = vmatmul.mubr.msk.bf16.vlgmr.msra.gmra.mrb[188].mxu1 %vm26483_vm3, %v15702_v17  ;;  %vm26497_vm3 = vmmov %vm26492_vm0 }
0x1800   :  { %16842 = vmatpush1.bf16.msra.mxu1 %v16786_v9  ;;  %16873 = vmatprep.mubr.bf16.mxu1 %v20914_v3 }
0x1801   :  { %18705 = vmatprep.subr.msk.bf16.mxu1 %vm26485_vm7, %v16775_v47  ;;  %vm26499_vm7 = vmmov %vm26492_vm0 }
0x1802   :  { %v17000_v21 = vsel %vm26499_vm7, %v16986_v34, 0  ;;  %vm26512_vm7 = vmmov %vm26507_vm10 }
0x1803   :  { %v17201_v49 = vsel %vm26512_vm7, %v17191_v43, %v17193_v32  ;;  %vm26514_vm2 = vmmov %vm26512_vm7 }
0x1804   :  { %v17200_v36 = vsel %vm26514_vm2, %v17189_v12, %v17191_v43  ;;  %vm26521_vm10 = vmmov %vm26516_vm11  ;;  %v17633_v12 = vrot.slane %v17612_v8, %v15551_v2 }
0x1805   :  { %vm26523_vm14 = vmmov %vm26521_vm10 }
0x1807   :  { %18704 = vmatmul.mubr.msk.bf16.vlgmr.msra.gmra.mrb[192].mxu1 %vm26488_vm8, %v15702_v17  ;;  %vm26502_vm8 = vmmov %vm26492_vm0 }
0x1808   :  { %16883 = vmatpush1.bf16.msra.mxu1 %v16792_v16  ;;  %16914 = vmatprep.mubr.bf16.mxu1 %v20914_v3 }
0x1809   :  { %19597 = vmatprep.subr.bf16.mxu1 %v25136_v22 }
0x180f   :  { %18706 = vmatmul.mubr.msk.bf16.vlgmr.msra.gmra.mrb[196].mxu1 %vm26490_vm4, %v15702_v17  ;;  %vm26504_vm4 = vmmov %vm26492_vm0 }
0x1810   :  { %19598 = vmatpush3.bf16.msra.mxu1 %v16798_v27  ;;  %19599 = vmatprep.mubr.msk.bf16.mxu1 %vm20927_vm5, %v25136_v22  ;;  %v17006_v0 = vsel %vm26504_vm4, %v16988_v20, 0  ;;  %vm26517_vm4 = vmmov %vm26514_vm2  ;;  %v17617_v27 = vrot.slane %v17612_v8, %v22820_v19 }
0x1811   :  { %18708 = vmatprep.subr.msk.bf16.mxu1 %vm26492_vm0, %v16985_v28  ;;  %v17203_v50 = vsel %vm26517_vm4, %v17195_v55, %v17197_v11 }
0x1817   :  { %19600 = vmatmul.mubr.msk.bf16.vlgmr.msra.gmra.mrb[200].mxu1 %vm26495_vm9, %v15702_v17  ;;  %vm26508_vm9 = vmmov %vm26492_vm0  ;;  %v15705_v17 = vld [vmem:[%s26062_s15 + $0x20] sm:$0xf] }
0x1818   :  { %17015 = vmatpush1.bf16.msra.mxu1 %v16994_v40  ;;  %17046 = vmatprep.mubr.bf16.mxu1 %v20914_v3 }
0x1819   :  { %18710 = vmatprep.subr.msk.bf16.mxu1 %vm26497_vm3, %v16987_v60  ;;  %vm26510_vm3 = vmmov %vm26492_vm0 }
0x181a   :  { %v17208_v7 = vsel %vm26510_vm3, %v17198_v30, 0 }
0x181f   :  { %18709 = vmatmul.mubr.msk.bf16.vlgmr.msra.gmra.mrb[188].mxu1 %vm26500_vm12, %v15703_v52  ;;  %vm26513_vm12 = vmmov %vm26492_vm0 }
0x1820   :  { %17056 = vmatpush1.bf16.msra.mxu1 %v17000_v21  ;;  %17087 = vmatprep.mubr.bf16.mxu1 %v20914_v3 }
0x1821   :  { %18712 = vmatprep.subr.msk.bf16.mxu1 %vm26502_vm8, %v16989_v38  ;;  %vm26515_vm8 = vmmov %vm26492_vm0 }
0x1822   :  { %v17214_v46 = vsel %vm26515_vm8, %v17200_v36, 0 }
0x1827   :  { %18711 = vmatmul.mubr.msk.bf16.vlgmr.msra.gmra.mrb[192].mxu1 %vm26505_vm13, %v15703_v52  ;;  %vm26518_vm13 = vmmov %vm26492_vm0 }
0x1828   :  { %17097 = vmatpush1.bf16.msra.mxu1 %v17006_v0  ;;  %17128 = vmatprep.mubr.bf16.mxu1 %v20914_v3  ;;  %vm26519_vm0 = vmmov %vm26514_vm2 }
0x1829   :  { %19603 = vmatprep.subr.bf16.mxu1 %v25136_v22  ;;  %v17202_v56 = vsel %vm26519_vm0, %v17193_v32, %v17195_v55  ;;  %vm26528_vm2 = vmmov %vm26521_vm10 }
0x182a   :  { %vm26533_vm0 = vmmov %vm26528_vm2 }
0x182f   :  { %18713 = vmatmul.mubr.msk.bf16.vlgmr.msra.gmra.mrb[196].mxu1 %vm26506_vm6, %v15703_v52  ;;  %vm26520_vm6 = vmmov %vm26510_vm3 }
0x1830   :  { %19604 = vmatpush3.bf16.msra.mxu1 %v17012_v13  ;;  %19605 = vmatprep.mubr.msk.bf16.mxu1 %vm20927_vm5, %v25136_v22  ;;  %v17220_v31 = vsel %vm26520_vm6, %v17202_v56, 0  ;;  %v17637_v13 = vrot.slane %v17612_v8, %v15555_v58 }
0x1831   :  { %18715 = vmatprep.subr.msk.bf16.mxu1 %vm26508_vm9, %v17199_v35  ;;  %vm26522_vm9 = vmmov %vm26510_vm3  ;;  %vm26524_vm3 = vcmask 703488  }
0x1832   :  { %v17226_v4 = vsel %vm26522_vm9, %v17197_v11, 0  ;;  %v17413_v62 = vsel %vm26524_vm3, %v17401_v63, %v17403_v53  ;;  %vm26526_vm7 = vmmov %vm26524_vm3 }
0x1833   :  { %v17412_v51 = vsel %vm26526_vm7, %v17399_v57, %v17401_v63  ;;  %vm26529_vm8 = vmmov %vm26524_vm3 }
0x1834   :  { %v17415_v6 = vsel %vm26529_vm8, %v17405_v61, %v17407_v14  ;;  %vm26531_vm4 = vmmov %vm26524_vm3 }
0x1835   :  { %v17414_v33 = vsel %vm26531_vm4, %v17403_v53, %v17405_v61  ;;  %vm26540_vm7 = vmmov %vm26533_vm0 }
0x1837   :  { %19606 = vmatmul.mubr.msk.bf16.vlgmr.msra.gmra.mrb[200].mxu1 %vm26511_vm15, %v15703_v52  ;;  %vm26525_vm15 = vmmov %vm26520_vm6  ;;  %v17625_v52 = vrot.slane %v17612_v8, %v22831_v29 }
0x1838   :  { %17229 = vmatpush1.bf16.msra.mxu1 %v17208_v7  ;;  %17260 = vmatprep.mubr.bf16.mxu1 %v20914_v3 }
0x1839   :  { %18717 = vmatprep.subr.msk.bf16.mxu1 %vm26513_vm12, %v17201_v49  ;;  %vm26527_vm12 = vmmov %vm26520_vm6  ;;  %v17641_v49 = vrot.slane %v17612_v8, %v15559_v18 }
0x183a   :  { %v17422_v59 = vsel %vm26527_vm12, %v17412_v51, 0  ;;  %vm26541_vm12 = vmmov %vm26533_vm0 }
0x183f   :  { %18716 = vmatmul.mubr.msk.bf16.vlgmr.msra.gmra.mrb[188].mxu1 %vm26516_vm11, %v15704_v48  ;;  %vm26530_vm11 = vmmov %vm26520_vm6 }
0x1840   :  { %17270 = vmatpush1.bf16.msra.mxu1 %v17214_v46  ;;  %17301 = vmatprep.mubr.bf16.mxu1 %v20914_v3 }
0x1841   :  { %18719 = vmatprep.subr.msk.bf16.mxu1 %vm26518_vm13, %v17203_v50  ;;  %vm26532_vm13 = vmmov %vm26520_vm6 }
0x1842   :  { %v17428_v9 = vsel %vm26532_vm13, %v17414_v33, 0  ;;  %vm26534_vm6 = vmmov %vm26524_vm3 }
0x1843   :  { %v17417_v47 = vsel %vm26534_vm6, %v17409_v10, %v17411_v26 }
0x1847   :  { %18718 = vmatmul.mubr.msk.bf16.vlgmr.msra.gmra.mrb[192].mxu1 %vm26521_vm10, %v15704_v48  ;;  %vm26535_vm10 = vmmov %vm26522_vm9 }
0x1848   :  { %17311 = vmatpush1.bf16.msra.mxu1 %v17220_v31  ;;  %17342 = vmatprep.mubr.bf16.mxu1 %v20914_v3  ;;  %vm26536_vm9 = vmmov %vm26524_vm3 }
0x1849   :  { %19609 = vmatprep.subr.bf16.mxu1 %v25136_v22  ;;  %v17416_v15 = vsel %vm26536_vm9, %v17407_v14, %v17409_v10  ;;  %vm26538_vm3 = vmmov %vm26533_vm0 }
0x184a   :  { %vm26542_vm13 = vmmov %vm26535_vm10 }
0x184b   :  { %vm26545_vm9 = vmmov %vm26538_vm3 }
0x184f   :  { %18720 = vmatmul.mubr.msk.bf16.vlgmr.msra.gmra.mrb[196].mxu1 %vm26523_vm14, %v15704_v48  ;;  %vm26537_vm14 = vmmov %vm26535_vm10 }
0x1850   :  { %19610 = vmatpush3.bf16.msra.mxu1 %v17226_v4  ;;  %19611 = vmatprep.mubr.msk.bf16.mxu1 %vm20927_vm5, %v25136_v22  ;;  %v17434_v16 = vsel %vm26537_vm14, %v17416_v15, 0 }
0x1851   :  { %18722 = vmatprep.subr.msk.bf16.mxu1 %vm26525_vm15, %v17413_v62  ;;  %vm26539_vm15 = vmmov %vm26535_vm10 }
0x1852   :  { %v17440_v24 = vsel %vm26539_vm15, %v17411_v26, 0 }
0x1857   :  { %19612 = vmatmul.mubr.msk.bf16.vlgmr.msra.gmra.mrb[200].mxu1 %vm26528_vm2, %v15704_v48 }
0x1858   :  { %17443 = vmatpush1.bf16.msra.mxu1 %v17422_v59  ;;  %17474 = vmatprep.mubr.bf16.mxu1 %v20914_v3 }
0x1859   :  { %18724 = vmatprep.subr.msk.bf16.mxu1 %vm26530_vm11, %v17415_v6 }
0x185f   :  { %18723 = vmatmul.mubr.msk.bf16.vlgmr.msra.gmra.mrb[188].mxu1 %vm26533_vm0, %v15705_v17  ;;  %vm26543_vm0 = vmmov %vm26535_vm10 }
0x1860   :  { %17484 = vmatpush1.bf16.msra.mxu1 %v17428_v9  ;;  %17515 = vmatprep.mubr.bf16.mxu1 %v20914_v3  ;;  %vm26544_vm6 = vmmov %vm26543_vm0 }
0x1861   :  { %18726 = vmatprep.subr.msk.bf16.mxu1 %vm26535_vm10, %v17417_v47  ;;  %vm26546_vm14 = vmmov %vm26543_vm0 }
0x1867   :  { %18725 = vmatmul.mubr.msk.bf16.vlgmr.msra.gmra.mrb[192].mxu1 %vm26538_vm3, %v15705_v17  ;;  %vm26547_vm3 = vmmov %vm26543_vm0 }
0x1868   :  { %17525 = vmatpush1.bf16.msra.mxu1 %v17434_v16  ;;  %17556 = vmatprep.mubr.bf16.mxu1 %v20914_v3 }
0x1869   :  { %19615 = vmatprep.subr.bf16.mxu1 %v25136_v22 }
0x186f   :  { %18727 = vmatmul.mubr.msk.bf16.vlgmr.msra.gmra.mrb[196].mxu1 %vm26540_vm7, %v15705_v17 }
0x1870   :  { %19616 = vmatpush3.bf16.msra.mxu1 %v17440_v24  ;;  %19617 = vmatprep.mubr.msk.bf16.mxu1 %vm20927_vm5, %v25136_v22 }
0x1877   :  { %19618 = vmatmul.mubr.msk.bf16.vlgmr.msra.gmra.mrb[200].mxu1 %vm26541_vm12, %v15705_v17  ;;  %vm26548_vm12 = vmmov %vm26543_vm0 }
0x1878   :  { %17797 = vmatprep.mubr.bf16.mxu1 %v20914_v3 }
0x1932   :  { %v17476_v28 = vpop.f32.mrb[188].mxu1 }
0x1933   :  { %v17649_v1 = vmul.f32 %v17617_v27, %v17476_v28  ;;  %v17478_v41 = vpop.f32.mrb[189].mxu1 }
0x1934   :  { %v17650_v40 = vmul.f32 %v17621_v54, %v17478_v41  ;;  %v17480_v45 = vpop.f32.mrb[190].mxu1 }
0x1935   :  { %v17481_v60 = vpop.f32.mrb[191].mxu1 }
0x1936   :  { %v17656_v34 = vadd.f32 %v17650_v40, %v17649_v1 }
0x193a   :  { %v17517_v21 = vpop.f32.mrb[192].mxu1 }
0x193b   :  { %v17651_v42 = vmul.f32 %v17625_v52, %v17517_v21  ;;  %v17519_v38 = vpop.f32.mrb[193].mxu1 }
0x193c   :  { %v17652_v20 = vmul.f32 %v17629_v44, %v17519_v38  ;;  %v17521_v0 = vpop.f32.mrb[194].mxu1 }
0x193d   :  { %v17657_v19 = vadd.f32 %v17656_v34, %v17651_v42  ;;  %v17522_v39 = vpop.f32.mrb[195].mxu1 }
0x193f   :  { %v17658_v23 = vadd.f32 %v17657_v19, %v17652_v20 }
0x1942   :  { %v17558_v37 = vpop.f32.mrb[196].mxu1 }
0x1943   :  { %v17653_v35 = vmul.f32 %v17633_v12, %v17558_v37  ;;  %v17560_v29 = vpop.f32.mrb[197].mxu1 }
0x1944   :  { %v17654_v30 = vmul.f32 %v17637_v13, %v17560_v29  ;;  %v17562_v32 = vpop.f32.mrb[198].mxu1 }
0x1945   :  { %v17659_v25 = vadd.f32 %v17658_v23, %v17653_v35  ;;  %v17563_v7 = vpop.f32.mrb[199].mxu1 }
0x1947   :  { %v17660_v43 = vadd.f32 %v17659_v25, %v17654_v30 }
0x194a   :  { %v17599_v36 = vpop.f32.mrb[200].mxu1 }
0x194b   :  { %v17655_v48 = vmul.f32 %v17641_v49, %v17599_v36  ;;  %v19619_v11 = vpop.f32.mrb[201].mxu1 }
0x194c   :  { %v17602_v46 = vpop.f32.mrb[202].mxu1 }
0x194d   :  { %v17661_v2 = vsel %vm4554_vm1, %v17655_v48, 0.0  ;;  %v19620_v55 = vpop.f32.mrb[203].mxu1 }
0x194e   :  { %v17662_v50 = vadd.f32 %v17661_v2, %v17660_v43 }
0x1950   :  { %17663 = vadd.xlane.f32.xlu1 %v17662_v50 }
0x19dd   :  { %v17664_v58 = vpop.xlane.xlu1 %17663 }
0x19de   :  { %v17665_v56 = vmul.f32 0.001953125, %v17664_v58 }
0x19e0   :  { %v17666_v31 = vsub.f32 %v17476_v28, %v17665_v56  ;;  %v17667_v57 = vsub.f32 %v17478_v41, %v17665_v56  ;;  %v17668_v63 = vsub.f32 %v17517_v21, %v17665_v56  ;;  %v17669_v4 = vsub.f32 %v17519_v38, %v17665_v56 }
0x19e1   :  { %v17670_v53 = vsub.f32 %v17558_v37, %v17665_v56  ;;  %v26007_v18 = vsub.f32 %v17599_v36, %v17665_v56  ;;  %v17671_v61 = vsub.f32 %v17560_v29, %v17665_v56  ;;  %v17727_v36 = vld [vmem:[%s26065_s17] sm:$0x3] }
0x19e2   :  { %v17673_v62 = vmul.f32 %v17666_v31, %v17666_v31  ;;  %v17674_v51 = vmul.f32 %v17667_v57, %v17667_v57  ;;  %v17675_v5 = vmul.f32 %v17668_v63, %v17668_v63  ;;  %v17676_v59 = vmul.f32 %v17669_v4, %v17669_v4 }
0x19e3   :  { %v17677_v33 = vmul.f32 %v17670_v53, %v17670_v53  ;;  %v17679_v9 = vmul.f32 %v26007_v18, %v26007_v18  ;;  %v17678_v26 = vmul.f32 %v17671_v61, %v17671_v61 }
0x19e4   :  { %v17680_v14 = vmul.f32 %v17673_v62, %v17617_v27  ;;  %v17681_v6 = vmul.f32 %v17674_v51, %v17621_v54  ;;  %v17682_v17 = vmul.f32 %v17675_v5, %v17625_v52  ;;  %v17683_v47 = vmul.f32 %v17676_v59, %v17629_v44  ;;  %v17735_v27 = vld [vmem:[%s26064_s18] sm:$0x7] }
0x19e5   :  { %v17684_v16 = vmul.f32 %v17677_v33, %v17633_v12  ;;  %v17686_v8 = vmul.f32 %v17679_v9, %v17641_v49  ;;  %v17685_v28 = vmul.f32 %v17678_v26, %v17637_v13 }
0x19e6   :  { %v17687_v10 = vadd.f32 %v17681_v6, %v17680_v14 }
0x19e7   :  { %v17692_v40 = vsel %vm4554_vm1, %v17686_v8, 0.0 }
0x19e8   :  { %v17688_v15 = vadd.f32 %v17687_v10, %v17682_v17 }
0x19ea   :  { %v17689_v24 = vadd.f32 %v17688_v15, %v17683_v47 }
0x19ec   :  { %v17690_v1 = vadd.f32 %v17689_v24, %v17684_v16 }
0x19ee   :  { %v17691_v41 = vadd.f32 %v17690_v1, %v17685_v28 }
0x19f0   :  { %v17693_v45 = vadd.f32 %v17692_v40, %v17691_v41 }
0x19f2   :  { %17694 = vadd.xlane.f32.xlu0 %v17693_v45 }
0x1a08   :  { %17738 = vperm.xlu0 %20367, %v17735_v27  }
0x1a7f   :  { %v17695_v54 = vpop.xlane.xlu0 %17694 }
0x1a80   :  { %v17696_v60 = vmul.f32 0.001953125, %v17695_v54 }
0x1a82   :  { %v17697_v34 = vadd.f32 1e-05, %v17696_v60 }
0x1a84   :  { %20892 = vrsqrt.f32 %v17697_v34 }
0x1a8e   :  { %v20893_v52 = vpop.eup %20892 }
0x1a8f   :  { %v17700_v44 = vmul.f32 %v20893_v52, %v17667_v57  ;;  %v17699_v21 = vmul.f32 %v20893_v52, %v17666_v31  ;;  %v17702_v42 = vmul.f32 %v20893_v52, %v17669_v4  ;;  %v17701_v38 = vmul.f32 %v20893_v52, %v17668_v63 }
0x1a90   :  { %v17704_v20 = vmul.f32 %v20893_v52, %v17671_v61  ;;  %v17703_v0 = vmul.f32 %v20893_v52, %v17670_v53  ;;  %v17705_v50 = vmul.f32 %v20893_v52, %v26007_v18  ;;  %v17739_v53 = vpop.permute.xlu0 %17738 }
0x1a91   :  { %vm17707_vm2 = vcmp.gt.f32.partialorder %v17700_v44, 0.0  ;;  %v17714_v19 = vmul.f32 0.2, %v17700_v44  ;;  %vm17706_vm1 = vcmp.gt.f32.partialorder %v17699_v21, 0.0  ;;  %v17713_v39 = vmul.f32 0.2, %v17699_v21 }
0x1a92   :  { %vm17709_vm8 = vcmp.gt.f32.partialorder %v17702_v42, 0.0  ;;  %v17716_v23 = vmul.f32 0.2, %v17702_v42  ;;  %vm17708_vm11 = vcmp.gt.f32.partialorder %v17701_v38, 0.0  ;;  %v17715_v12 = vmul.f32 0.2, %v17701_v38 }
0x1a93   :  { %v17721_v13 = vsel %vm17707_vm2, %v17700_v44, %v17714_v19  ;;  %v17720_v37 = vsel %vm17706_vm1, %v17699_v21, %v17713_v39  ;;  %vm17711_vm4 = vcmp.gt.f32.partialorder %v17704_v20, 0.0  ;;  %v17718_v35 = vmul.f32 0.2, %v17704_v20  ;;  %vm26549_vm2 = vmmov %vm26540_vm7 }
0x1a94   :  { %v17729_v29 = vpack.c.bf16 %v17721_v13, %v17721_v13  ;;  %v17728_v30 = vpack.c.bf16 %v17720_v37, %v17720_v37  ;;  %v17723_v32 = vsel %vm17709_vm8, %v17702_v42, %v17716_v23  ;;  %v17722_v25 = vsel %vm17708_vm11, %v17701_v38, %v17715_v12  ;;  %vm26550_vm1 = vmmov %vm26543_vm0 }
0x1a95   :  { %v17731_v43 = vpack.c.bf16 %v17723_v32, %v17723_v32  ;;  %v17730_v49 = vpack.c.bf16 %v17722_v25, %v17722_v25  ;;  %v17725_v48 = vsel %vm17711_vm4, %v17704_v20, %v17718_v35  ;;  %v17717_v11 = vmul.f32 0.2, %v17703_v0  ;;  %vm26551_vm8 = vmmov %vm26549_vm2 }
0x1a96   :  { %18729 = vmatprep.subr.msk.bf16.mxu1 %vm26542_vm13, %v17729_v29  ;;  %v17745_v7 = vsel %vm26543_vm0, %v17728_v30, 0  ;;  %vm17710_vm10 = vcmp.gt.f32.partialorder %v17703_v0, 0.0  ;;  %v17733_v2 = vpack.c.bf16 %v17725_v48, %v17725_v48  ;;  %v17719_v56 = vmul.f32 0.2, %v17705_v50 }
0x1a97   :  { %17766 = vmatpush1.bf16.msra.mxu1 %v17745_v7  ;;  %v17751_v46 = vsel %vm26546_vm14, %v17730_v49, 0  ;;  %v17724_v55 = vsel %vm17710_vm10, %v17703_v0, %v17717_v11  ;;  %vm17712_vm15 = vcmp.gt.f32.partialorder %v17705_v50, 0.0 }
0x1a98   :  { %18731 = vmatprep.subr.msk.bf16.mxu1 %vm26544_vm6, %v17731_v43  ;;  %v17732_v58 = vpack.c.bf16 %v17724_v55, %v17724_v55  ;;  %v17726_v57 = vsel %vm17712_vm15, %v17705_v50, %v17719_v56 }
0x1a99   :  { %v17734_v63 = vpack.c.bf16 %v17726_v57, %v17726_v57 }
0x1a9a   :  { %18730 = vmatmul.mubr.msk.bf16.vlgmr.msra.gmra.mrb[204].mxu1 %vm26545_vm9, %v17727_v36  ;;  %v17757_v31 = vsel %vm26548_vm12, %v17732_v58, 0 }
0x1a9b   :  { %17807 = vmatpush1.bf16.msra.mxu1 %v17751_v46  ;;  %17838 = vmatprep.mubr.bf16.mxu1 %v20914_v3  ;;  %v17763_v4 = vsel %vm26550_vm1, %v17734_v63, 0 }
0x1a9c   :  { %18733 = vmatprep.subr.msk.bf16.mxu1 %vm26547_vm3, %v17733_v2 }
0x1aa2   :  { %18732 = vmatmul.mubr.msk.bf16.vlgmr.msra.gmra.mrb[208].mxu1 %vm26540_vm7, %v17727_v36 }
0x1aa3   :  { %17848 = vmatpush1.bf16.msra.mxu1 %v17757_v31  ;;  %17879 = vmatprep.mubr.bf16.mxu1 %v20914_v3 }
0x1aa4   :  { %19621 = vmatprep.subr.bf16.mxu1 %v25136_v22 }
0x1aaa   :  { %18734 = vmatmul.mubr.msk.bf16.vlgmr.msra.gmra.mrb[212].mxu1 %vm26549_vm2, %v17727_v36 }
0x1aab   :  { %19622 = vmatpush3.bf16.msra.mxu1 %v17763_v4  ;;  %19623 = vmatprep.mubr.msk.bf16.mxu1 %vm20927_vm5, %v25136_v22  ;;  %vm17950_vm5 = vcmask 256000  }
0x1ab2   :  { %19624 = vmatmul.mubr.msk.bf16.vlgmr.msra.gmra.mrb[216].mxu1 %vm26551_vm8, %v17727_v36 }
0x1b6d   :  { %v17799_v62 = vpop.f32.mrb[204].mxu1 }
0x1b6e   :  { %v17801_v51 = vpop.f32.mrb[205].mxu1  ;;  %v17800_v5 = vadd.f32 %v17799_v62, %v17739_v53 }
0x1b6f   :  { %v17803_v18 = vpop.f32.mrb[206].mxu1  ;;  %v17802_v3 = vadd.f32 %v17801_v51, %v17739_v53 }
0x1b70   :  { %20894 = vtanh.f32 %v17800_v5  ;;  %v17804_v61 = vpop.f32.mrb[207].mxu1 }
0x1b71   :  { %20896 = vtanh.f32 %v17802_v3 }
0x1b75   :  { %v17840_v59 = vpop.f32.mrb[208].mxu1 }
0x1b76   :  { %v17841_v14 = vadd.f32 %v17840_v59, %v17739_v53  ;;  %v17842_v6 = vpop.f32.mrb[209].mxu1 }
0x1b77   :  { %v17843_v33 = vadd.f32 %v17842_v6, %v17739_v53  ;;  %v17844_v17 = vpop.f32.mrb[210].mxu1 }
0x1b78   :  { %20898 = vtanh.f32 %v17841_v14  ;;  %v17845_v10 = vpop.f32.mrb[211].mxu1 }
0x1b79   :  { %20900 = vtanh.f32 %v17843_v33 }
0x1b7a   :  { %v20895_v22 = vpop.eup %20894 }
0x1b7b   :  { %v20897_v9 = vpop.eup %20896 }
0x1b7c   :  { %v17941_v26 = vcombine.low %v20895_v22, %v20897_v9 }
0x1b7d   :  { %v17881_v47 = vpop.f32.mrb[212].mxu1 }
0x1b7e   :  { %17947 = vst [vmem:[%s26066_s19] sm:$0x77] %v17941_v26  ;;  %v17882_v15 = vadd.f32 %v17881_v47, %v17739_v53  ;;  %v17883_v16 = vpop.f32.mrb[213].mxu1 }
0x1b7f   :  { %v17884_v24 = vadd.f32 %v17883_v16, %v17739_v53  ;;  %v17885_v8 = vpop.f32.mrb[214].mxu1 }
0x1b80   :  { %20902 = vtanh.f32 %v17882_v15  ;;  %v17886_v28 = vpop.f32.mrb[215].mxu1 }
0x1b81   :  { %20904 = vtanh.f32 %v17884_v24 }
0x1b82   :  { %v20899_v1 = vpop.eup %20898 }
0x1b83   :  { %v20901_v41 = vpop.eup %20900 }
0x1b84   :  { %v17942_v40 = vcombine.low %v20899_v1, %v20901_v41 }
0x1b85   :  { %v17922_v45 = vpop.f32.mrb[216].mxu1 }
0x1b86   :  { %17948 = vst [vmem:[%s26066_s19 + $0x8] sm:$0x77] %v17942_v40  ;;  %v17923_v27 = vadd.f32 %v17922_v45, %v17739_v53  ;;  %v19625_v54 = vpop.f32.mrb[217].mxu1 }
0x1b87   :  { %v17925_v60 = vpop.f32.mrb[218].mxu1 }
0x1b88   :  { %20906 = vtanh.f32 %v17923_v27  ;;  %v19626_v34 = vpop.f32.mrb[219].mxu1 }
0x1b8a   :  { %v20903_v52 = vpop.eup %20902 }
0x1b8b   :  { %v20905_v44 = vpop.eup %20904 }
0x1b8c   :  { %v17943_v21 = vcombine.low %v20903_v52, %v20905_v44 }
0x1b8e   :  { %17949 = vst [vmem:[%s26066_s19 + $0x10] sm:$0x77] %v17943_v21 }
0x1b92   :  { %v20907_v42 = vpop.eup %20906 }
0x1b93   :  { %17951 = vst.msk [vmem:[%s26066_s19 + $0x18] sm:$0x7] %vm17950_vm5, %v20907_v42 }

</bundles_post_ra>
